<compile_context>
chip_gen: v6e
topology: v6e:2x2x1
jax: 0.10.0
libtpu: 0.0.40
codegen_flags: <defaults>
</compile_context>

<pallas_src>
import functools

import jax
import jax.numpy as jnp
from jax.experimental import pallas as pl
from jax.experimental.pallas import tpu as pltpu


# --------------------------- stride-2 3x3 im2col ------------------------------

def _tap_concat(a, ho, wo):
    """Build the stride-2 3x3 im2col matrix from a (Hp, Wp, 8, cin) value.

    Returns (ho*wo*8, 9*cin); rows ordered (oy, ox, b), columns ordered
    (dy, dx, cin).  Uses only static leading-dim slices and layout-free
    reshapes (batch=8 fills the f32 sublane tile), plus one lane concat.
    """
    wp, cin = a.shape[1], a.shape[3]
    rows = ho * wo * 8
    taps = []
    for dy in range(3):
        rs = a[dy:dy + 2 * ho].reshape(ho, 2, wp, 8, cin)[:, 0]          # rows dy+2k
        for dx in range(3):
            win = rs[:, dx:dx + 2 * wo].reshape(ho, wo, 2, 8, cin)[:, :, 0]
            taps.append(win.reshape(rows, cin))                          # cols dx+2k
    return jnp.concatenate(taps, axis=-1)                                # (rows, 9*cin)


# --------------------------------- kernel -------------------------------------

def encoder_kernel(x1_ref, wc1_ref, bc1_ref, wc2_ref, bng_ref, bnb_ref,
                   wc3_ref, bc3_ref, wl1_ref, bl1_ref, wl2_ref, bl2_ref,
                   wl3_ref, bl3_ref, eps_ref,
                   z_ref, kl_ref, a2_ref, a3_ref, *, batch, eps_bn=1e-5):
    f32 = jnp.float32

    # ---- conv1: Conv2d(1, 8, 3, stride=2, padding=1) + ReLU  -> 14x14x8
    # im2col (1568, 9) built in the wrapper; one MXU matmul here.
    y = jnp.dot(x1_ref[...], wc1_ref[...], preferred_element_type=f32)   # (1568, 8)
    y = jnp.maximum(y + bc1_ref[...], 0.0)
    # Zero only the padding cells conv2 actually reads (row 0 / col 0 of the
    # (16,16) frame).  Row/col 15 are loaded by the slices below but the
    # phase split discards them before any arithmetic.
    a2_ref[0:1, :, :, :] = jnp.zeros((1, 16, 8, 8), f32)
    a2_ref[:, 0:1, :, :] = jnp.zeros((16, 1, 8, 8), f32)
    a2_ref[1:15, 1:15, :, :] = y.reshape(14, 14, 8, 8)

    # ---- conv2 (bias=False) + BatchNorm2d(16, batch stats) + ReLU -> 7x7x16
    y = jnp.dot(_tap_concat(a2_ref[...], 7, 7), wc2_ref[...],
                preferred_element_type=f32)                              # (392, 16)
    if batch == 8:                                   # trace-time mask skip
        ym, n_valid = y, 392
    else:
        rid = jax.lax.broadcasted_iota(jnp.int32, (392, 1), 0)
        ym = jnp.where((rid % 8) < batch, y, 0.0)    # ignore padded batch rows
        n_valid = 7 * 7 * batch
    mean = jnp.sum(ym, axis=0, keepdims=True) * (1.0 / n_valid)
    ex2 = jnp.sum(ym * ym, axis=0, keepdims=True) * (1.0 / n_valid)
    var = jnp.maximum(ex2 - mean * mean, 0.0)        # guard cancellation -> no NaN
    y = (y - mean) * jax.lax.rsqrt(var + eps_bn)
    y = jnp.maximum(y * bng_ref[...] + bnb_ref[...], 0.0)
    # conv3 has padding=0: no zero ring needed, just place the 7x7 image.
    a3_ref[0:7, 0:7, :, :] = y.reshape(7, 7, 8, 16)

    # ---- conv3: Conv2d(16, 32, 3, stride=2, padding=0) + ReLU -> 3x3x32
    y = jnp.dot(_tap_concat(a3_ref[...], 3, 3), wc3_ref[...],
                preferred_element_type=f32)                              # (72, 32)
    y = jnp.maximum(y + bc3_ref[...], 0.0)

    # ---- flatten + Linear(288, 128) + ReLU: one K=288 matmul
    f = y.reshape(9, 8, 32)                                              # (s, b, c)
    h_in = jnp.concatenate([f[s] for s in range(9)], axis=-1)            # (8, 288)
    h = jnp.dot(h_in, wl1_ref[...], preferred_element_type=f32) + bl1_ref[...]
    h = jnp.maximum(h, 0.0)

    # ---- mu, sigma, reparameterised z and the KL term
    mu = jnp.dot(h, wl2_ref[...], preferred_element_type=f32) + bl2_ref[...]
    slin = jnp.dot(h, wl3_ref[...], preferred_element_type=f32) + bl3_ref[...]
    sigma = jnp.exp(slin)
    z = mu + sigma * eps_ref[...]
    z_ref[...] = z[0:batch, :]

    kl_terms = sigma * sigma + mu * mu - slin - 0.5
    if batch != 8:
        bid = jax.lax.broadcasted_iota(jnp.int32, mu.shape, 0)
        kl_terms = jnp.where(bid < batch, kl_terms, 0.0)
    kl_ref[...] = jnp.sum(kl_terms, keepdims=True)


# -------------------------------- wrapper --------------------------------------

def encoder_forward(x, eps, params):
    """x: (B, 1, 28, 28) NCHW, eps: (B, latent) N(0,1) noise."""
    b = x.shape[0]
    # BatchNorm statistics span the whole batch, so a single kernel invocation
    # must see it all: restrict to <= 8 (one f32 sublane tile).
    # TODO(synk): B > 8 would need a cross-group BN stats pass before a
    # batch-group grid axis can be used.
    assert b <= 8, "kernel pads the batch to 8 sublanes"
    latent = params["lin2_w"].shape[0]
    f32 = jnp.float32

    # conv1 im2col in the wrapper (tiny): rows ordered (oy, ox, b), cols (dy, dx).
    xpad = jnp.pad(x[:, 0].astype(f32), ((0, 8 - b), (1, 1), (1, 1)))    # (8, 30, 30)
    taps = [xpad[:, dy:dy + 28:2, dx:dx + 28:2]
            for dy in range(3) for dx in range(3)]
    x1 = jnp.stack(taps, axis=-1)                                        # (8, 14, 14, 9)
    x1 = jnp.transpose(x1, (1, 2, 0, 3)).reshape(14 * 14 * 8, 9)         # (1568, 9)

    # One-time weight layout conversion (torch layouts -> kernel layouts).
    wc1 = jnp.transpose(params["conv1_w"], (2, 3, 1, 0)).reshape(9, 8)
    wc2 = jnp.transpose(params["conv2_w"], (2, 3, 1, 0)).reshape(72, 16)
    wc3 = jnp.transpose(params["conv3_w"], (2, 3, 1, 0)).reshape(144, 32)
    wl1 = jnp.transpose(params["lin1_w"].reshape(128, 32, 9),
                        (2, 1, 0)).reshape(288, 128)                     # (s*32+c, out)
    wl2 = params["lin2_w"].T                                             # (128, latent)
    wl3 = params["lin3_w"].T
    bc1 = params["conv1_b"].reshape(1, 8)
    bng = params["bn2_g"].reshape(1, 16)
    bnb = params["bn2_b"].reshape(1, 16)
    bc3 = params["conv3_b"].reshape(1, 32)
    bl1 = params["lin1_b"].reshape(1, 128)
    bl2 = params["lin2_b"].reshape(1, latent)
    bl3 = params["lin3_b"].reshape(1, latent)
    eps8 = jnp.pad(eps.astype(f32), ((0, 8 - b), (0, 0)))                # (8, latent)

    z, kl = pl.pallas_call(
        functools.partial(encoder_kernel, batch=b),
        out_shape=(jax.ShapeDtypeStruct((b, latent), f32),
                   jax.ShapeDtypeStruct((1, 1), f32)),
        scratch_shapes=[pltpu.VMEM((16, 16, 8, 8), f32),   # conv1 out (padded frame)
                        pltpu.VMEM((8, 8, 8, 16), f32)],   # conv2 out (7x7 image)
    )(x1, wc1, bc1, wc2, bng, bnb, wc3, bc3, wl1, bl1, wl2, bl2, wl3, bl3, eps8)
    return z, kl[0, 0]


# ----------------------------- pure-JAX reference -------------------------------

def reference_forward(x, eps, params):
    dn = ("NCHW", "OIHW", "NCHW")
    y = jax.lax.conv_general_dilated(x, params["conv1_w"], (2, 2),
                                     ((1, 1), (1, 1)), dimension_numbers=dn)
    y = jax.nn.relu(y + params["conv1_b"][None, :, None, None])
    y = jax.lax.conv_general_dilated(y, params["conv2_w"], (2, 2),
                                     ((1, 1), (1, 1)), dimension_numbers=dn)
    mean = jnp.mean(y, axis=(0, 2, 3), keepdims=True)
    var = jnp.var(y, axis=(0, 2, 3), keepdims=True)
    y = (y - mean) / jnp.sqrt(var + 1e-5)
    y = y * params["bn2_g"][None, :, None, None] + params["bn2_b"][None, :, None, None]
    y = jax.nn.relu(y)
    y = jax.lax.conv_general_dilated(y, params["conv3_w"], (2, 2),
                                     ((0, 0), (0, 0)), dimension_numbers=dn)
    y = jax.nn.relu(y + params["conv3_b"][None, :, None, None])
    f = y.reshape(y.shape[0], -1)
    h = jax.nn.relu(f @ params["lin1_w"].T + params["lin1_b"])
    mu = h @ params["lin2_w"].T + params["lin2_b"]
    slin = h @ params["lin3_w"].T + params["lin3_b"]
    sigma = jnp.exp(slin)
    z = mu + sigma * eps
    kl = jnp.sum(sigma ** 2 + mu ** 2 - slin - 0.5)
    return z, kl


# ----------------------------------- params -------------------------------------

def init_params(key, latent_dims):
    ks = jax.random.split(key, 13)
    f32 = jnp.float32

    def n(k, shape, scale=0.1):
        return scale * jax.random.normal(k, shape, f32)

    return {
        # torch layouts: Conv2d weight (Cout, Cin, k, k); Linear weight (out, in)
        "conv1_w": n(ks[0], (8, 1, 3, 3)),     "conv1_b": n(ks[1], (8,)),
        "conv2_w": n(ks[2], (16, 8, 3, 3)),    # bias=False
        "bn2_g": 1.0 + n(ks[3], (16,)),        "bn2_b": n(ks[4], (16,)),
        "conv3_w": n(ks[5], (32, 16, 3, 3)),   "conv3_b": n(ks[6], (32,)),
        "lin1_w": n(ks[7], (128, 3 * 3 * 32)), "lin1_b": n(ks[8], (128,)),
        "lin2_w": n(ks[9], (latent_dims, 128)), "lin2_b": n(ks[10], (latent_dims,)),
        "lin3_w": n(ks[11], (latent_dims, 128)), "lin3_b": n(ks[12], (latent_dims,)),
    }


# ------------------------------------ main ---------------------------------------

if __name__ == "__main__":
    latent_dims = 4
    batch = 2

    key = jax.random.PRNGKey(0)
    k_param, k_x, k_eps = jax.random.split(key, 3)
    params = init_params(k_param, latent_dims)
    x = jax.random.normal(k_x, (batch, 1, 28, 28), jnp.float32)
    # TODO(synk): torch.distributions.Normal(0,1).sample is replaced by an
    # explicit noise input (could also use pltpu.prng_* in-kernel).
    eps = jax.random.normal(k_eps, (batch, latent_dims), jnp.float32)

    z, kl = jax.jit(encoder_forward)(x, eps, params)
    z, kl = jax.block_until_ready((z, kl))

    assert z.shape == (batch, latent_dims), z.shape
    assert z.dtype == jnp.float32
    assert bool(jnp.all(jnp.isfinite(z))) and bool(jnp.isfinite(kl))

    # Pure-JAX reference (loose tolerance: TPU matmul precision differences).
    z_ref, kl_ref = reference_forward(x, eps, params)
    assert jnp.allclose(z, z_ref, rtol=5e-2, atol=5e-2), (z, z_ref)
    assert jnp.allclose(kl, kl_ref, rtol=5e-2, atol=0.5), (kl, kl_ref)

    print("KERNEL_OK")
</pallas_src>

<mosaic_0001>
module attributes {stable_mosaic.version = 11 : i64} {
  func.func @encoder_kernel(%arg0: memref<1568x9xf32, #tpu.memory_space<vmem>>, %arg1: memref<9x8xf32, #tpu.memory_space<vmem>>, %arg2: memref<1x8xf32, #tpu.memory_space<vmem>>, %arg3: memref<72x16xf32, #tpu.memory_space<vmem>>, %arg4: memref<1x16xf32, #tpu.memory_space<vmem>>, %arg5: memref<1x16xf32, #tpu.memory_space<vmem>>, %arg6: memref<144x32xf32, #tpu.memory_space<vmem>>, %arg7: memref<1x32xf32, #tpu.memory_space<vmem>>, %arg8: memref<288x128xf32, #tpu.memory_space<vmem>>, %arg9: memref<1x128xf32, #tpu.memory_space<vmem>>, %arg10: memref<128x4xf32, #tpu.memory_space<vmem>>, %arg11: memref<1x4xf32, #tpu.memory_space<vmem>>, %arg12: memref<128x4xf32, #tpu.memory_space<vmem>>, %arg13: memref<1x4xf32, #tpu.memory_space<vmem>>, %arg14: memref<8x4xf32, #tpu.memory_space<vmem>>, %arg15: memref<2x4xf32, #tpu.memory_space<vmem>>, %arg16: memref<1x1xf32, #tpu.memory_space<vmem>>, %arg17: memref<16x16x8x8xf32, #tpu.memory_space<vmem>>, %arg18: memref<8x8x8x16xf32, #tpu.memory_space<vmem>>) attributes {dimension_semantics = [], scalar_prefetch = 0 : i64, scratch_operands = 2 : i64, tpu.core_type = #tpu.core_type<tc>} {
    %c0 = arith.constant 0 : index
    %c0_0 = arith.constant 0 : index
    %0 = vector.load %arg0[%c0, %c0_0] : memref<1568x9xf32, #tpu.memory_space<vmem>>, vector<1568x9xf32>
    %c0_1 = arith.constant 0 : index
    %c0_2 = arith.constant 0 : index
    %1 = vector.load %arg1[%c0_1, %c0_2] : memref<9x8xf32, #tpu.memory_space<vmem>>, vector<9x8xf32>
    %cst = arith.constant dense<0.000000e+00> : vector<1568x8xf32>
    %2 = tpu.matmul %0, %1, %cst {dimension_numbers = #tpu.dot_dimension_numbers<[1], [0], [0], [1], [0, 0, 1, 1], [], []>} : vector<1568x9xf32>, vector<9x8xf32>, vector<1568x8xf32> -> vector<1568x8xf32>
    %c0_3 = arith.constant 0 : index
    %c0_4 = arith.constant 0 : index
    %3 = vector.load %arg2[%c0_3, %c0_4] : memref<1x8xf32, #tpu.memory_space<vmem>>, vector<1x8xf32>
    %4 = vector.broadcast %3 : vector<1x8xf32> to vector<1568x8xf32>
    %5 = arith.addf %2, %4 : vector<1568x8xf32>
    %cst_5 = arith.constant 0.000000e+00 : f32
    %6 = vector.broadcast %cst_5 : f32 to vector<1568x8xf32>
    %7 = arith.maximumf %5, %6 : vector<1568x8xf32>
    %cst_6 = arith.constant 0.000000e+00 : f32
    %8 = vector.broadcast %cst_6 : f32 to vector<1x16x8x8xf32>
    %c0_7 = arith.constant 0 : index
    %c0_8 = arith.constant 0 : index
    %c0_9 = arith.constant 0 : index
    %c0_10 = arith.constant 0 : index
    %9 = vector.load %arg17[%c0_7, %c0_8, %c0_9, %c0_10] : memref<16x16x8x8xf32, #tpu.memory_space<vmem>>, vector<1x16x8x8xf32>
    tpu.vector_store %arg17[%c0_7, %c0_8, %c0_9, %c0_10], %8 {strides = array<i32>} : memref<16x16x8x8xf32, #tpu.memory_space<vmem>>, vector<1x16x8x8xf32>,
    %cst_11 = arith.constant 0.000000e+00 : f32
    %10 = vector.broadcast %cst_11 : f32 to vector<16x1x8x8xf32>
    %c0_12 = arith.constant 0 : index
    %c0_13 = arith.constant 0 : index
    %c0_14 = arith.constant 0 : index
    %c0_15 = arith.constant 0 : index
    %11 = vector.load %arg17[%c0_12, %c0_13, %c0_14, %c0_15] : memref<16x16x8x8xf32, #tpu.memory_space<vmem>>, vector<16x1x8x8xf32>
    tpu.vector_store %arg17[%c0_12, %c0_13, %c0_14, %c0_15], %10 {strides = array<i32>} : memref<16x16x8x8xf32, #tpu.memory_space<vmem>>, vector<16x1x8x8xf32>,
    %12 = vector.shape_cast %7 : vector<1568x8xf32> to vector<14x14x8x8xf32>
    %c1 = arith.constant 1 : index
    %c1_16 = arith.constant 1 : index
    %c0_17 = arith.constant 0 : index
    %c0_18 = arith.constant 0 : index
    %13 = vector.load %arg17[%c1, %c1_16, %c0_17, %c0_18] : memref<16x16x8x8xf32, #tpu.memory_space<vmem>>, vector<14x14x8x8xf32>
    tpu.vector_store %arg17[%c1, %c1_16, %c0_17, %c0_18], %12 {strides = array<i32>} : memref<16x16x8x8xf32, #tpu.memory_space<vmem>>, vector<14x14x8x8xf32>,
    %c0_19 = arith.constant 0 : index
    %c0_20 = arith.constant 0 : index
    %c0_21 = arith.constant 0 : index
    %c0_22 = arith.constant 0 : index
    %14 = vector.load %arg17[%c0_19, %c0_20, %c0_21, %c0_22] : memref<16x16x8x8xf32, #tpu.memory_space<vmem>>, vector<16x16x8x8xf32>
    %15 = vector.extract_strided_slice %14 {offsets = [0, 0, 0, 0], sizes = [14, 16, 8, 8], strides = [1, 1, 1, 1]} : vector<16x16x8x8xf32> to vector<14x16x8x8xf32>
    %16 = vector.shape_cast %15 : vector<14x16x8x8xf32> to vector<7x2x16x8x8xf32>
    %17 = vector.extract_strided_slice %16 {offsets = [0, 0, 0, 0, 0], sizes = [7, 1, 16, 8, 8], strides = [1, 1, 1, 1, 1]} : vector<7x2x16x8x8xf32> to vector<7x1x16x8x8xf32>
    %18 = vector.shape_cast %17 : vector<7x1x16x8x8xf32> to vector<7x16x8x8xf32>
    %19 = vector.extract_strided_slice %18 {offsets = [0, 0, 0, 0], sizes = [7, 14, 8, 8], strides = [1, 1, 1, 1]} : vector<7x16x8x8xf32> to vector<7x14x8x8xf32>
    %20 = vector.shape_cast %19 : vector<7x14x8x8xf32> to vector<7x7x2x8x8xf32>
    %21 = vector.extract_strided_slice %20 {offsets = [0, 0, 0, 0, 0], sizes = [7, 7, 1, 8, 8], strides = [1, 1, 1, 1, 1]} : vector<7x7x2x8x8xf32> to vector<7x7x1x8x8xf32>
    %22 = vector.shape_cast %21 : vector<7x7x1x8x8xf32> to vector<7x7x8x8xf32>
    %23 = vector.shape_cast %22 : vector<7x7x8x8xf32> to vector<392x8xf32>
    %24 = vector.extract_strided_slice %18 {offsets = [0, 1, 0, 0], sizes = [7, 14, 8, 8], strides = [1, 1, 1, 1]} : vector<7x16x8x8xf32> to vector<7x14x8x8xf32>
    %25 = vector.shape_cast %24 : vector<7x14x8x8xf32> to vector<7x7x2x8x8xf32>
    %26 = vector.extract_strided_slice %25 {offsets = [0, 0, 0, 0, 0], sizes = [7, 7, 1, 8, 8], strides = [1, 1, 1, 1, 1]} : vector<7x7x2x8x8xf32> to vector<7x7x1x8x8xf32>
    %27 = vector.shape_cast %26 : vector<7x7x1x8x8xf32> to vector<7x7x8x8xf32>
    %28 = vector.shape_cast %27 : vector<7x7x8x8xf32> to vector<392x8xf32>
    %29 = vector.extract_strided_slice %18 {offsets = [0, 2, 0, 0], sizes = [7, 14, 8, 8], strides = [1, 1, 1, 1]} : vector<7x16x8x8xf32> to vector<7x14x8x8xf32>
    %30 = vector.shape_cast %29 : vector<7x14x8x8xf32> to vector<7x7x2x8x8xf32>
    %31 = vector.extract_strided_slice %30 {offsets = [0, 0, 0, 0, 0], sizes = [7, 7, 1, 8, 8], strides = [1, 1, 1, 1, 1]} : vector<7x7x2x8x8xf32> to vector<7x7x1x8x8xf32>
    %32 = vector.shape_cast %31 : vector<7x7x1x8x8xf32> to vector<7x7x8x8xf32>
    %33 = vector.shape_cast %32 : vector<7x7x8x8xf32> to vector<392x8xf32>
    %34 = vector.extract_strided_slice %14 {offsets = [1, 0, 0, 0], sizes = [14, 16, 8, 8], strides = [1, 1, 1, 1]} : vector<16x16x8x8xf32> to vector<14x16x8x8xf32>
    %35 = vector.shape_cast %34 : vector<14x16x8x8xf32> to vector<7x2x16x8x8xf32>
    %36 = vector.extract_strided_slice %35 {offsets = [0, 0, 0, 0, 0], sizes = [7, 1, 16, 8, 8], strides = [1, 1, 1, 1, 1]} : vector<7x2x16x8x8xf32> to vector<7x1x16x8x8xf32>
    %37 = vector.shape_cast %36 : vector<7x1x16x8x8xf32> to vector<7x16x8x8xf32>
    %38 = vector.extract_strided_slice %37 {offsets = [0, 0, 0, 0], sizes = [7, 14, 8, 8], strides = [1, 1, 1, 1]} : vector<7x16x8x8xf32> to vector<7x14x8x8xf32>
    %39 = vector.shape_cast %38 : vector<7x14x8x8xf32> to vector<7x7x2x8x8xf32>
    %40 = vector.extract_strided_slice %39 {offsets = [0, 0, 0, 0, 0], sizes = [7, 7, 1, 8, 8], strides = [1, 1, 1, 1, 1]} : vector<7x7x2x8x8xf32> to vector<7x7x1x8x8xf32>
    %41 = vector.shape_cast %40 : vector<7x7x1x8x8xf32> to vector<7x7x8x8xf32>
    %42 = vector.shape_cast %41 : vector<7x7x8x8xf32> to vector<392x8xf32>
    %43 = vector.extract_strided_slice %37 {offsets = [0, 1, 0, 0], sizes = [7, 14, 8, 8], strides = [1, 1, 1, 1]} : vector<7x16x8x8xf32> to vector<7x14x8x8xf32>
    %44 = vector.shape_cast %43 : vector<7x14x8x8xf32> to vector<7x7x2x8x8xf32>
    %45 = vector.extract_strided_slice %44 {offsets = [0, 0, 0, 0, 0], sizes = [7, 7, 1, 8, 8], strides = [1, 1, 1, 1, 1]} : vector<7x7x2x8x8xf32> to vector<7x7x1x8x8xf32>
    %46 = vector.shape_cast %45 : vector<7x7x1x8x8xf32> to vector<7x7x8x8xf32>
    %47 = vector.shape_cast %46 : vector<7x7x8x8xf32> to vector<392x8xf32>
    %48 = vector.extract_strided_slice %37 {offsets = [0, 2, 0, 0], sizes = [7, 14, 8, 8], strides = [1, 1, 1, 1]} : vector<7x16x8x8xf32> to vector<7x14x8x8xf32>
    %49 = vector.shape_cast %48 : vector<7x14x8x8xf32> to vector<7x7x2x8x8xf32>
    %50 = vector.extract_strided_slice %49 {offsets = [0, 0, 0, 0, 0], sizes = [7, 7, 1, 8, 8], strides = [1, 1, 1, 1, 1]} : vector<7x7x2x8x8xf32> to vector<7x7x1x8x8xf32>
    %51 = vector.shape_cast %50 : vector<7x7x1x8x8xf32> to vector<7x7x8x8xf32>
    %52 = vector.shape_cast %51 : vector<7x7x8x8xf32> to vector<392x8xf32>
    %53 = vector.extract_strided_slice %14 {offsets = [2, 0, 0, 0], sizes = [14, 16, 8, 8], strides = [1, 1, 1, 1]} : vector<16x16x8x8xf32> to vector<14x16x8x8xf32>
    %54 = vector.shape_cast %53 : vector<14x16x8x8xf32> to vector<7x2x16x8x8xf32>
    %55 = vector.extract_strided_slice %54 {offsets = [0, 0, 0, 0, 0], sizes = [7, 1, 16, 8, 8], strides = [1, 1, 1, 1, 1]} : vector<7x2x16x8x8xf32> to vector<7x1x16x8x8xf32>
    %56 = vector.shape_cast %55 : vector<7x1x16x8x8xf32> to vector<7x16x8x8xf32>
    %57 = vector.extract_strided_slice %56 {offsets = [0, 0, 0, 0], sizes = [7, 14, 8, 8], strides = [1, 1, 1, 1]} : vector<7x16x8x8xf32> to vector<7x14x8x8xf32>
    %58 = vector.shape_cast %57 : vector<7x14x8x8xf32> to vector<7x7x2x8x8xf32>
    %59 = vector.extract_strided_slice %58 {offsets = [0, 0, 0, 0, 0], sizes = [7, 7, 1, 8, 8], strides = [1, 1, 1, 1, 1]} : vector<7x7x2x8x8xf32> to vector<7x7x1x8x8xf32>
    %60 = vector.shape_cast %59 : vector<7x7x1x8x8xf32> to vector<7x7x8x8xf32>
    %61 = vector.shape_cast %60 : vector<7x7x8x8xf32> to vector<392x8xf32>
    %62 = vector.extract_strided_slice %56 {offsets = [0, 1, 0, 0], sizes = [7, 14, 8, 8], strides = [1, 1, 1, 1]} : vector<7x16x8x8xf32> to vector<7x14x8x8xf32>
    %63 = vector.shape_cast %62 : vector<7x14x8x8xf32> to vector<7x7x2x8x8xf32>
    %64 = vector.extract_strided_slice %63 {offsets = [0, 0, 0, 0, 0], sizes = [7, 7, 1, 8, 8], strides = [1, 1, 1, 1, 1]} : vector<7x7x2x8x8xf32> to vector<7x7x1x8x8xf32>
    %65 = vector.shape_cast %64 : vector<7x7x1x8x8xf32> to vector<7x7x8x8xf32>
    %66 = vector.shape_cast %65 : vector<7x7x8x8xf32> to vector<392x8xf32>
    %67 = vector.extract_strided_slice %56 {offsets = [0, 2, 0, 0], sizes = [7, 14, 8, 8], strides = [1, 1, 1, 1]} : vector<7x16x8x8xf32> to vector<7x14x8x8xf32>
    %68 = vector.shape_cast %67 : vector<7x14x8x8xf32> to vector<7x7x2x8x8xf32>
    %69 = vector.extract_strided_slice %68 {offsets = [0, 0, 0, 0, 0], sizes = [7, 7, 1, 8, 8], strides = [1, 1, 1, 1, 1]} : vector<7x7x2x8x8xf32> to vector<7x7x1x8x8xf32>
    %70 = vector.shape_cast %69 : vector<7x7x1x8x8xf32> to vector<7x7x8x8xf32>
    %71 = vector.shape_cast %70 : vector<7x7x8x8xf32> to vector<392x8xf32>
    %72 = tpu.concatenate %23, %28, %33, %42, %47, %52, %61, %66, %71 in 1 : vector<392x8xf32>, vector<392x8xf32>, vector<392x8xf32>, vector<392x8xf32>, vector<392x8xf32>, vector<392x8xf32>, vector<392x8xf32>, vector<392x8xf32>, vector<392x8xf32> -> vector<392x72xf32>
    %c0_23 = arith.constant 0 : index
    %c0_24 = arith.constant 0 : index
    %73 = vector.load %arg3[%c0_23, %c0_24] : memref<72x16xf32, #tpu.memory_space<vmem>>, vector<72x16xf32>
    %cst_25 = arith.constant dense<0.000000e+00> : vector<392x16xf32>
    %74 = tpu.matmul %72, %73, %cst_25 {dimension_numbers = #tpu.dot_dimension_numbers<[1], [0], [0], [1], [0, 0, 1, 1], [], []>} : vector<392x72xf32>, vector<72x16xf32>, vector<392x16xf32> -> vector<392x16xf32>
    %75 = tpu.iota {dimensions = array<i32: 0>} : vector<392x1xi32>
    %c8_i32 = arith.constant 8 : i32
    %c0_i32 = arith.constant 0 : i32
    %76 = arith.cmpi eq, %c8_i32, %c0_i32 : i32
    %c1_i32 = arith.constant 1 : i32
    %77 = arith.select %76, %c1_i32, %c8_i32 : i32
    %78 = vector.broadcast %77 : i32 to vector<392x1xi32>
    %79 = arith.remsi %75, %78 : vector<392x1xi32>
    %c0_i32_26 = arith.constant 0 : i32
    %80 = vector.broadcast %c0_i32_26 : i32 to vector<392x1xi32>
    %81 = arith.cmpi ne, %79, %80 : vector<392x1xi32>
    %c0_i32_27 = arith.constant 0 : i32
    %82 = vector.broadcast %c0_i32_27 : i32 to vector<392x1xi32>
    %83 = arith.cmpi slt, %79, %82 : vector<392x1xi32>
    %c0_i32_28 = arith.constant 0 : i32
    %84 = arith.cmpi slt, %77, %c0_i32_28 : i32
    %85 = vector.broadcast %84 : i1 to vector<392x1xi1>
    %86 = vector.broadcast %85 : vector<392x1xi1> to vector<392x1xi1>
    %87 = arith.xori %83, %86 : vector<392x1xi1>
    %88 = arith.andi %87, %81 : vector<392x1xi1>
    %89 = vector.broadcast %77 : i32 to vector<392x1xi32>
    %90 = arith.addi %79, %89 : vector<392x1xi32>
    %91 = arith.select %88, %90, %79 : vector<392x1xi1>, vector<392x1xi32>
    %c2_i32 = arith.constant 2 : i32
    %92 = vector.broadcast %c2_i32 : i32 to vector<392x1xi32>
    %93 = arith.cmpi slt, %91, %92 : vector<392x1xi32>
    %cst_29 = arith.constant 0.000000e+00 : f32
    %94 = vector.shape_cast %93 : vector<392x1xi1> to vector<392x1xi1>
    %95 = vector.broadcast %94 : vector<392x1xi1> to vector<392x16xi1>
    %96 = vector.broadcast %cst_29 : f32 to vector<392x16xf32>
    %97 = arith.select %95, %74, %96 : vector<392x16xi1>, vector<392x16xf32>
    %cst_30 = arith.constant dense<0.000000e+00> : vector<16xf32>
    %98 = vector.multi_reduction <add>, %97, %cst_30 [0] : vector<392x16xf32> to vector<16xf32>
    %99 = vector.shape_cast %98 : vector<16xf32> to vector<1x16xf32>
    %cst_31 = arith.constant 0.0102040814 : f32
    %100 = vector.broadcast %cst_31 : f32 to vector<1x16xf32>
    %101 = arith.mulf %99, %100 : vector<1x16xf32>
    %102 = arith.mulf %97, %97 : vector<392x16xf32>
    %cst_32 = arith.constant dense<0.000000e+00> : vector<16xf32>
    %103 = vector.multi_reduction <add>, %102, %cst_32 [0] : vector<392x16xf32> to vector<16xf32>
    %104 = vector.shape_cast %103 : vector<16xf32> to vector<1x16xf32>
    %cst_33 = arith.constant 0.0102040814 : f32
    %105 = vector.broadcast %cst_33 : f32 to vector<1x16xf32>
    %106 = arith.mulf %104, %105 : vector<1x16xf32>
    %107 = arith.mulf %101, %101 : vector<1x16xf32>
    %108 = arith.subf %106, %107 : vector<1x16xf32>
    %cst_34 = arith.constant 0.000000e+00 : f32
    %109 = vector.broadcast %cst_34 : f32 to vector<1x16xf32>
    %110 = arith.maximumf %108, %109 : vector<1x16xf32>
    %111 = vector.broadcast %101 : vector<1x16xf32> to vector<392x16xf32>
    %112 = arith.subf %74, %111 : vector<392x16xf32>
    %cst_35 = arith.constant 9.99999974E-6 : f32
    %113 = vector.broadcast %cst_35 : f32 to vector<1x16xf32>
    %114 = arith.addf %110, %113 : vector<1x16xf32>
    %115 = math.rsqrt %114 : vector<1x16xf32>
    %116 = vector.broadcast %115 : vector<1x16xf32> to vector<392x16xf32>
    %117 = arith.mulf %112, %116 : vector<392x16xf32>
    %c0_36 = arith.constant 0 : index
    %c0_37 = arith.constant 0 : index
    %118 = vector.load %arg4[%c0_36, %c0_37] : memref<1x16xf32, #tpu.memory_space<vmem>>, vector<1x16xf32>
    %119 = vector.broadcast %118 : vector<1x16xf32> to vector<392x16xf32>
    %120 = arith.mulf %117, %119 : vector<392x16xf32>
    %c0_38 = arith.constant 0 : index
    %c0_39 = arith.constant 0 : index
    %121 = vector.load %arg5[%c0_38, %c0_39] : memref<1x16xf32, #tpu.memory_space<vmem>>, vector<1x16xf32>
    %122 = vector.broadcast %121 : vector<1x16xf32> to vector<392x16xf32>
    %123 = arith.addf %120, %122 : vector<392x16xf32>
    %cst_40 = arith.constant 0.000000e+00 : f32
    %124 = vector.broadcast %cst_40 : f32 to vector<392x16xf32>
    %125 = arith.maximumf %123, %124 : vector<392x16xf32>
    %126 = vector.shape_cast %125 : vector<392x16xf32> to vector<7x7x8x16xf32>
    %c0_41 = arith.constant 0 : index
    %c0_42 = arith.constant 0 : index
    %c0_43 = arith.constant 0 : index
    %c0_44 = arith.constant 0 : index
    %127 = vector.load %arg18[%c0_41, %c0_42, %c0_43, %c0_44] : memref<8x8x8x16xf32, #tpu.memory_space<vmem>>, vector<7x7x8x16xf32>
    tpu.vector_store %arg18[%c0_41, %c0_42, %c0_43, %c0_44], %126 {strides = array<i32>} : memref<8x8x8x16xf32, #tpu.memory_space<vmem>>, vector<7x7x8x16xf32>,
    %c0_45 = arith.constant 0 : index
    %c0_46 = arith.constant 0 : index
    %c0_47 = arith.constant 0 : index
    %c0_48 = arith.constant 0 : index
    %128 = vector.load %arg18[%c0_45, %c0_46, %c0_47, %c0_48] : memref<8x8x8x16xf32, #tpu.memory_space<vmem>>, vector<8x8x8x16xf32>
    %129 = vector.extract_strided_slice %128 {offsets = [0, 0, 0, 0], sizes = [6, 8, 8, 16], strides = [1, 1, 1, 1]} : vector<8x8x8x16xf32> to vector<6x8x8x16xf32>
    %130 = vector.shape_cast %129 : vector<6x8x8x16xf32> to vector<3x2x8x8x16xf32>
    %131 = vector.extract_strided_slice %130 {offsets = [0, 0, 0, 0, 0], sizes = [3, 1, 8, 8, 16], strides = [1, 1, 1, 1, 1]} : vector<3x2x8x8x16xf32> to vector<3x1x8x8x16xf32>
    %132 = vector.shape_cast %131 : vector<3x1x8x8x16xf32> to vector<3x8x8x16xf32>
    %133 = vector.extract_strided_slice %132 {offsets = [0, 0, 0, 0], sizes = [3, 6, 8, 16], strides = [1, 1, 1, 1]} : vector<3x8x8x16xf32> to vector<3x6x8x16xf32>
    %134 = vector.shape_cast %133 : vector<3x6x8x16xf32> to vector<3x3x2x8x16xf32>
    %135 = vector.extract_strided_slice %134 {offsets = [0, 0, 0, 0, 0], sizes = [3, 3, 1, 8, 16], strides = [1, 1, 1, 1, 1]} : vector<3x3x2x8x16xf32> to vector<3x3x1x8x16xf32>
    %136 = vector.shape_cast %135 : vector<3x3x1x8x16xf32> to vector<3x3x8x16xf32>
    %137 = vector.shape_cast %136 : vector<3x3x8x16xf32> to vector<72x16xf32>
    %138 = vector.extract_strided_slice %132 {offsets = [0, 1, 0, 0], sizes = [3, 6, 8, 16], strides = [1, 1, 1, 1]} : vector<3x8x8x16xf32> to vector<3x6x8x16xf32>
    %139 = vector.shape_cast %138 : vector<3x6x8x16xf32> to vector<3x3x2x8x16xf32>
    %140 = vector.extract_strided_slice %139 {offsets = [0, 0, 0, 0, 0], sizes = [3, 3, 1, 8, 16], strides = [1, 1, 1, 1, 1]} : vector<3x3x2x8x16xf32> to vector<3x3x1x8x16xf32>
    %141 = vector.shape_cast %140 : vector<3x3x1x8x16xf32> to vector<3x3x8x16xf32>
    %142 = vector.shape_cast %141 : vector<3x3x8x16xf32> to vector<72x16xf32>
    %143 = vector.extract_strided_slice %132 {offsets = [0, 2, 0, 0], sizes = [3, 6, 8, 16], strides = [1, 1, 1, 1]} : vector<3x8x8x16xf32> to vector<3x6x8x16xf32>
    %144 = vector.shape_cast %143 : vector<3x6x8x16xf32> to vector<3x3x2x8x16xf32>
    %145 = vector.extract_strided_slice %144 {offsets = [0, 0, 0, 0, 0], sizes = [3, 3, 1, 8, 16], strides = [1, 1, 1, 1, 1]} : vector<3x3x2x8x16xf32> to vector<3x3x1x8x16xf32>
    %146 = vector.shape_cast %145 : vector<3x3x1x8x16xf32> to vector<3x3x8x16xf32>
    %147 = vector.shape_cast %146 : vector<3x3x8x16xf32> to vector<72x16xf32>
    %148 = vector.extract_strided_slice %128 {offsets = [1, 0, 0, 0], sizes = [6, 8, 8, 16], strides = [1, 1, 1, 1]} : vector<8x8x8x16xf32> to vector<6x8x8x16xf32>
    %149 = vector.shape_cast %148 : vector<6x8x8x16xf32> to vector<3x2x8x8x16xf32>
    %150 = vector.extract_strided_slice %149 {offsets = [0, 0, 0, 0, 0], sizes = [3, 1, 8, 8, 16], strides = [1, 1, 1, 1, 1]} : vector<3x2x8x8x16xf32> to vector<3x1x8x8x16xf32>
    %151 = vector.shape_cast %150 : vector<3x1x8x8x16xf32> to vector<3x8x8x16xf32>
    %152 = vector.extract_strided_slice %151 {offsets = [0, 0, 0, 0], sizes = [3, 6, 8, 16], strides = [1, 1, 1, 1]} : vector<3x8x8x16xf32> to vector<3x6x8x16xf32>
    %153 = vector.shape_cast %152 : vector<3x6x8x16xf32> to vector<3x3x2x8x16xf32>
    %154 = vector.extract_strided_slice %153 {offsets = [0, 0, 0, 0, 0], sizes = [3, 3, 1, 8, 16], strides = [1, 1, 1, 1, 1]} : vector<3x3x2x8x16xf32> to vector<3x3x1x8x16xf32>
    %155 = vector.shape_cast %154 : vector<3x3x1x8x16xf32> to vector<3x3x8x16xf32>
    %156 = vector.shape_cast %155 : vector<3x3x8x16xf32> to vector<72x16xf32>
    %157 = vector.extract_strided_slice %151 {offsets = [0, 1, 0, 0], sizes = [3, 6, 8, 16], strides = [1, 1, 1, 1]} : vector<3x8x8x16xf32> to vector<3x6x8x16xf32>
    %158 = vector.shape_cast %157 : vector<3x6x8x16xf32> to vector<3x3x2x8x16xf32>
    %159 = vector.extract_strided_slice %158 {offsets = [0, 0, 0, 0, 0], sizes = [3, 3, 1, 8, 16], strides = [1, 1, 1, 1, 1]} : vector<3x3x2x8x16xf32> to vector<3x3x1x8x16xf32>
    %160 = vector.shape_cast %159 : vector<3x3x1x8x16xf32> to vector<3x3x8x16xf32>
    %161 = vector.shape_cast %160 : vector<3x3x8x16xf32> to vector<72x16xf32>
    %162 = vector.extract_strided_slice %151 {offsets = [0, 2, 0, 0], sizes = [3, 6, 8, 16], strides = [1, 1, 1, 1]} : vector<3x8x8x16xf32> to vector<3x6x8x16xf32>
    %163 = vector.shape_cast %162 : vector<3x6x8x16xf32> to vector<3x3x2x8x16xf32>
    %164 = vector.extract_strided_slice %163 {offsets = [0, 0, 0, 0, 0], sizes = [3, 3, 1, 8, 16], strides = [1, 1, 1, 1, 1]} : vector<3x3x2x8x16xf32> to vector<3x3x1x8x16xf32>
    %165 = vector.shape_cast %164 : vector<3x3x1x8x16xf32> to vector<3x3x8x16xf32>
    %166 = vector.shape_cast %165 : vector<3x3x8x16xf32> to vector<72x16xf32>
    %167 = vector.extract_strided_slice %128 {offsets = [2, 0, 0, 0], sizes = [6, 8, 8, 16], strides = [1, 1, 1, 1]} : vector<8x8x8x16xf32> to vector<6x8x8x16xf32>
    %168 = vector.shape_cast %167 : vector<6x8x8x16xf32> to vector<3x2x8x8x16xf32>
    %169 = vector.extract_strided_slice %168 {offsets = [0, 0, 0, 0, 0], sizes = [3, 1, 8, 8, 16], strides = [1, 1, 1, 1, 1]} : vector<3x2x8x8x16xf32> to vector<3x1x8x8x16xf32>
    %170 = vector.shape_cast %169 : vector<3x1x8x8x16xf32> to vector<3x8x8x16xf32>
    %171 = vector.extract_strided_slice %170 {offsets = [0, 0, 0, 0], sizes = [3, 6, 8, 16], strides = [1, 1, 1, 1]} : vector<3x8x8x16xf32> to vector<3x6x8x16xf32>
    %172 = vector.shape_cast %171 : vector<3x6x8x16xf32> to vector<3x3x2x8x16xf32>
    %173 = vector.extract_strided_slice %172 {offsets = [0, 0, 0, 0, 0], sizes = [3, 3, 1, 8, 16], strides = [1, 1, 1, 1, 1]} : vector<3x3x2x8x16xf32> to vector<3x3x1x8x16xf32>
    %174 = vector.shape_cast %173 : vector<3x3x1x8x16xf32> to vector<3x3x8x16xf32>
    %175 = vector.shape_cast %174 : vector<3x3x8x16xf32> to vector<72x16xf32>
    %176 = vector.extract_strided_slice %170 {offsets = [0, 1, 0, 0], sizes = [3, 6, 8, 16], strides = [1, 1, 1, 1]} : vector<3x8x8x16xf32> to vector<3x6x8x16xf32>
    %177 = vector.shape_cast %176 : vector<3x6x8x16xf32> to vector<3x3x2x8x16xf32>
    %178 = vector.extract_strided_slice %177 {offsets = [0, 0, 0, 0, 0], sizes = [3, 3, 1, 8, 16], strides = [1, 1, 1, 1, 1]} : vector<3x3x2x8x16xf32> to vector<3x3x1x8x16xf32>
    %179 = vector.shape_cast %178 : vector<3x3x1x8x16xf32> to vector<3x3x8x16xf32>
    %180 = vector.shape_cast %179 : vector<3x3x8x16xf32> to vector<72x16xf32>
    %181 = vector.extract_strided_slice %170 {offsets = [0, 2, 0, 0], sizes = [3, 6, 8, 16], strides = [1, 1, 1, 1]} : vector<3x8x8x16xf32> to vector<3x6x8x16xf32>
    %182 = vector.shape_cast %181 : vector<3x6x8x16xf32> to vector<3x3x2x8x16xf32>
    %183 = vector.extract_strided_slice %182 {offsets = [0, 0, 0, 0, 0], sizes = [3, 3, 1, 8, 16], strides = [1, 1, 1, 1, 1]} : vector<3x3x2x8x16xf32> to vector<3x3x1x8x16xf32>
    %184 = vector.shape_cast %183 : vector<3x3x1x8x16xf32> to vector<3x3x8x16xf32>
    %185 = vector.shape_cast %184 : vector<3x3x8x16xf32> to vector<72x16xf32>
    %186 = tpu.concatenate %137, %142, %147, %156, %161, %166, %175, %180, %185 in 1 : vector<72x16xf32>, vector<72x16xf32>, vector<72x16xf32>, vector<72x16xf32>, vector<72x16xf32>, vector<72x16xf32>, vector<72x16xf32>, vector<72x16xf32>, vector<72x16xf32> -> vector<72x144xf32>
    %c0_49 = arith.constant 0 : index
    %c0_50 = arith.constant 0 : index
    %187 = vector.load %arg6[%c0_49, %c0_50] : memref<144x32xf32, #tpu.memory_space<vmem>>, vector<144x32xf32>
    %cst_51 = arith.constant dense<0.000000e+00> : vector<72x32xf32>
    %188 = tpu.matmul %186, %187, %cst_51 {dimension_numbers = #tpu.dot_dimension_numbers<[1], [0], [0], [1], [0, 0, 1, 1], [], []>} : vector<72x144xf32>, vector<144x32xf32>, vector<72x32xf32> -> vector<72x32xf32>
    %c0_52 = arith.constant 0 : index
    %c0_53 = arith.constant 0 : index
    %189 = vector.load %arg7[%c0_52, %c0_53] : memref<1x32xf32, #tpu.memory_space<vmem>>, vector<1x32xf32>
    %190 = vector.broadcast %189 : vector<1x32xf32> to vector<72x32xf32>
    %191 = arith.addf %188, %190 : vector<72x32xf32>
    %cst_54 = arith.constant 0.000000e+00 : f32
    %192 = vector.broadcast %cst_54 : f32 to vector<72x32xf32>
    %193 = arith.maximumf %191, %192 : vector<72x32xf32>
    %194 = vector.shape_cast %193 : vector<72x32xf32> to vector<9x8x32xf32>
    %195 = vector.extract_strided_slice %194 {offsets = [0, 0, 0], sizes = [1, 8, 32], strides = [1, 1, 1]} : vector<9x8x32xf32> to vector<1x8x32xf32>
    %196 = vector.shape_cast %195 : vector<1x8x32xf32> to vector<8x32xf32>
    %197 = vector.extract_strided_slice %194 {offsets = [1, 0, 0], sizes = [1, 8, 32], strides = [1, 1, 1]} : vector<9x8x32xf32> to vector<1x8x32xf32>
    %198 = vector.shape_cast %197 : vector<1x8x32xf32> to vector<8x32xf32>
    %199 = vector.extract_strided_slice %194 {offsets = [2, 0, 0], sizes = [1, 8, 32], strides = [1, 1, 1]} : vector<9x8x32xf32> to vector<1x8x32xf32>
    %200 = vector.shape_cast %199 : vector<1x8x32xf32> to vector<8x32xf32>
    %201 = vector.extract_strided_slice %194 {offsets = [3, 0, 0], sizes = [1, 8, 32], strides = [1, 1, 1]} : vector<9x8x32xf32> to vector<1x8x32xf32>
    %202 = vector.shape_cast %201 : vector<1x8x32xf32> to vector<8x32xf32>
    %203 = vector.extract_strided_slice %194 {offsets = [4, 0, 0], sizes = [1, 8, 32], strides = [1, 1, 1]} : vector<9x8x32xf32> to vector<1x8x32xf32>
    %204 = vector.shape_cast %203 : vector<1x8x32xf32> to vector<8x32xf32>
    %205 = vector.extract_strided_slice %194 {offsets = [5, 0, 0], sizes = [1, 8, 32], strides = [1, 1, 1]} : vector<9x8x32xf32> to vector<1x8x32xf32>
    %206 = vector.shape_cast %205 : vector<1x8x32xf32> to vector<8x32xf32>
    %207 = vector.extract_strided_slice %194 {offsets = [6, 0, 0], sizes = [1, 8, 32], strides = [1, 1, 1]} : vector<9x8x32xf32> to vector<1x8x32xf32>
    %208 = vector.shape_cast %207 : vector<1x8x32xf32> to vector<8x32xf32>
    %209 = vector.extract_strided_slice %194 {offsets = [7, 0, 0], sizes = [1, 8, 32], strides = [1, 1, 1]} : vector<9x8x32xf32> to vector<1x8x32xf32>
    %210 = vector.shape_cast %209 : vector<1x8x32xf32> to vector<8x32xf32>
    %211 = vector.extract_strided_slice %194 {offsets = [8, 0, 0], sizes = [1, 8, 32], strides = [1, 1, 1]} : vector<9x8x32xf32> to vector<1x8x32xf32>
    %212 = vector.shape_cast %211 : vector<1x8x32xf32> to vector<8x32xf32>
    %213 = tpu.concatenate %196, %198, %200, %202, %204, %206, %208, %210, %212 in 1 : vector<8x32xf32>, vector<8x32xf32>, vector<8x32xf32>, vector<8x32xf32>, vector<8x32xf32>, vector<8x32xf32>, vector<8x32xf32>, vector<8x32xf32>, vector<8x32xf32> -> vector<8x288xf32>
    %c0_55 = arith.constant 0 : index
    %c0_56 = arith.constant 0 : index
    %214 = vector.load %arg8[%c0_55, %c0_56] : memref<288x128xf32, #tpu.memory_space<vmem>>, vector<288x128xf32>
    %cst_57 = arith.constant dense<0.000000e+00> : vector<8x128xf32>
    %215 = tpu.matmul %213, %214, %cst_57 {dimension_numbers = #tpu.dot_dimension_numbers<[1], [0], [0], [1], [0, 0, 1, 1], [], []>} : vector<8x288xf32>, vector<288x128xf32>, vector<8x128xf32> -> vector<8x128xf32>
    %c0_58 = arith.constant 0 : index
    %c0_59 = arith.constant 0 : index
    %216 = vector.load %arg9[%c0_58, %c0_59] : memref<1x128xf32, #tpu.memory_space<vmem>>, vector<1x128xf32>
    %217 = vector.broadcast %216 : vector<1x128xf32> to vector<8x128xf32>
    %218 = arith.addf %215, %217 : vector<8x128xf32>
    %cst_60 = arith.constant 0.000000e+00 : f32
    %219 = vector.broadcast %cst_60 : f32 to vector<8x128xf32>
    %220 = arith.maximumf %218, %219 : vector<8x128xf32>
    %c0_61 = arith.constant 0 : index
    %c0_62 = arith.constant 0 : index
    %221 = vector.load %arg10[%c0_61, %c0_62] : memref<128x4xf32, #tpu.memory_space<vmem>>, vector<128x4xf32>
    %cst_63 = arith.constant dense<0.000000e+00> : vector<8x4xf32>
    %222 = tpu.matmul %220, %221, %cst_63 {dimension_numbers = #tpu.dot_dimension_numbers<[1], [0], [0], [1], [0, 0, 1, 1], [], []>} : vector<8x128xf32>, vector<128x4xf32>, vector<8x4xf32> -> vector<8x4xf32>
    %c0_64 = arith.constant 0 : index
    %c0_65 = arith.constant 0 : index
    %223 = vector.load %arg11[%c0_64, %c0_65] : memref<1x4xf32, #tpu.memory_space<vmem>>, vector<1x4xf32>
    %224 = vector.broadcast %223 : vector<1x4xf32> to vector<8x4xf32>
    %225 = arith.addf %222, %224 : vector<8x4xf32>
    %c0_66 = arith.constant 0 : index
    %c0_67 = arith.constant 0 : index
    %226 = vector.load %arg12[%c0_66, %c0_67] : memref<128x4xf32, #tpu.memory_space<vmem>>, vector<128x4xf32>
    %cst_68 = arith.constant dense<0.000000e+00> : vector<8x4xf32>
    %227 = tpu.matmul %220, %226, %cst_68 {dimension_numbers = #tpu.dot_dimension_numbers<[1], [0], [0], [1], [0, 0, 1, 1], [], []>} : vector<8x128xf32>, vector<128x4xf32>, vector<8x4xf32> -> vector<8x4xf32>
    %c0_69 = arith.constant 0 : index
    %c0_70 = arith.constant 0 : index
    %228 = vector.load %arg13[%c0_69, %c0_70] : memref<1x4xf32, #tpu.memory_space<vmem>>, vector<1x4xf32>
    %229 = vector.broadcast %228 : vector<1x4xf32> to vector<8x4xf32>
    %230 = arith.addf %227, %229 : vector<8x4xf32>
    %231 = math.exp %230 : vector<8x4xf32>
    %c0_71 = arith.constant 0 : index
    %c0_72 = arith.constant 0 : index
    %232 = vector.load %arg14[%c0_71, %c0_72] : memref<8x4xf32, #tpu.memory_space<vmem>>, vector<8x4xf32>
    %233 = arith.mulf %231, %232 : vector<8x4xf32>
    %234 = arith.addf %225, %233 : vector<8x4xf32>
    %235 = vector.extract_strided_slice %234 {offsets = [0, 0], sizes = [2, 4], strides = [1, 1]} : vector<8x4xf32> to vector<2x4xf32>
    %c0_73 = arith.constant 0 : index
    %c0_74 = arith.constant 0 : index
    %236 = vector.load %arg15[%c0_73, %c0_74] : memref<2x4xf32, #tpu.memory_space<vmem>>, vector<2x4xf32>
    tpu.vector_store %arg15[%c0_73, %c0_74], %235 {strides = array<i32>} : memref<2x4xf32, #tpu.memory_space<vmem>>, vector<2x4xf32>,
    %237 = arith.mulf %231, %231 : vector<8x4xf32>
    %238 = arith.mulf %225, %225 : vector<8x4xf32>
    %239 = arith.addf %237, %238 : vector<8x4xf32>
    %240 = arith.subf %239, %230 : vector<8x4xf32>
    %cst_75 = arith.constant 5.000000e-01 : f32
    %241 = vector.broadcast %cst_75 : f32 to vector<8x4xf32>
    %242 = arith.subf %240, %241 : vector<8x4xf32>
    %243 = tpu.iota {dimensions = array<i32: 0>} : vector<8x4xi32>
    %c2_i32_76 = arith.constant 2 : i32
    %244 = vector.broadcast %c2_i32_76 : i32 to vector<8x4xi32>
    %245 = arith.cmpi slt, %243, %244 : vector<8x4xi32>
    %cst_77 = arith.constant 0.000000e+00 : f32
    %246 = vector.broadcast %cst_77 : f32 to vector<8x4xf32>
    %247 = arith.select %245, %242, %246 : vector<8x4xi1>, vector<8x4xf32>
    %248 = vector.shape_cast %247 : vector<8x4xf32> to vector<1x8x4xf32>
    %cst_78 = arith.constant dense<0.000000e+00> : vector<1xf32>
    %249 = vector.multi_reduction <add>, %248, %cst_78 [1, 2] : vector<1x8x4xf32> to vector<1xf32>
    %250 = vector.shape_cast %249 : vector<1xf32> to vector<1x1x1xf32>
    %251 = vector.extract %250[0, 0, 0] : f32 from vector<1x1x1xf32>
    %252 = vector.broadcast %251 : f32 to vector<1x1xf32>
    %c0_79 = arith.constant 0 : index
    %c0_80 = arith.constant 0 : index
    %253 = vector.load %arg16[%c0_79, %c0_80] : memref<1x1xf32, #tpu.memory_space<vmem>>, vector<1x1xf32>
    tpu.vector_store %arg16[%c0_79, %c0_80], %252 {strides = array<i32>} : memref<1x1xf32, #tpu.memory_space<vmem>>, vector<1x1xf32>,
    return
  }
}

</mosaic_0001>

<bundles_post_ra>
// kernel: encoder_forward.1
= control target key start
LH: loop header
LB: loop body
LE: loop exit
PB: predicated region body
PF: predicated region fallthrough
CT: control target
= control target key end

     0   :  { %s13503_s0 = inlined_call_operand.vmem [shape: f32[1568,9], index: 0, kind: input, shape index: {}]   ;;  %s13504_s1 = inlined_call_operand.vmem [shape: f32[9,8], index: 1, kind: input, shape index: {}]   ;;  %s13505_s2 = inlined_call_operand.vmem [shape: f32[1,8], index: 2, kind: input, shape index: {}]   ;;  %s13506_s3 = inlined_call_operand.vmem [shape: f32[72,16], index: 3, kind: input, shape index: {}]   ;;  %s13507_s4 = inlined_call_operand.vmem [shape: f32[1,16], index: 4, kind: input, shape index: {}]   ;;  %s13508_s5 = inlined_call_operand.vmem [shape: f32[1,16], index: 5, kind: input, shape index: {}]   ;;  %s13509_s6 = inlined_call_operand.vmem [shape: f32[144,32], index: 6, kind: input, shape index: {}]   ;;  %s13510_s7 = inlined_call_operand.vmem [shape: f32[1,32], index: 7, kind: input, shape index: {}]   ;;  %s13511_s8 = inlined_call_operand.vmem [shape: f32[288,128], index: 8, kind: input, shape index: {}]   ;;  %s13512_s9 = inlined_call_operand.vmem [shape: f32[1,128], index: 9, kind: input, shape index: {}]   ;;  %s13513_s10 = inlined_call_operand.vmem [shape: f32[128,4], index: 10, kind: input, shape index: {}]   ;;  %s13514_s11 = inlined_call_operand.vmem [shape: f32[1,4], index: 11, kind: input, shape index: {}]   ;;  %s13515_s12 = inlined_call_operand.vmem [shape: f32[128,4], index: 12, kind: input, shape index: {}]   ;;  %s13516_s13 = inlined_call_operand.vmem [shape: f32[1,4], index: 13, kind: input, shape index: {}]   ;;  %s13517_s14 = inlined_call_operand.vmem [shape: f32[8,4], index: 14, kind: input, shape index: {}]   ;;  %s13518_s15 = inlined_call_operand.hbm [shape: f32[2,4], index: 15, kind: output, shape index: {0}]   ;;  %s13519_s16 = inlined_call_operand.hbm [shape: f32[1,1], index: 16, kind: output, shape index: {1}]  }
   0x1   :  { %13545 = sst [smem:[#allocation26_spill]] %s13503_s0 }
   0x2   :  { %22 = vsyncpa [#allocation5], 0  ;;  %v251_v0 = vld [vmem:[%s13504_s1 + $0x8] sm:$0x1]  ;;  %vm848_vm0 = vcmask 1040384   ;;  %v250_v1 = vld [vmem:[%s13504_s1] sm:$0xff] }
   0x3   :  { %s13546_s27 = sld [smem:[#allocation26_spill]]  ;;  %vm259_vm1 = vcmask 72704   ;;  %7785 = vmatprep.subr.msk.mxu0 %vm848_vm0, %v251_v0  ;;  %vm2093_vm2 = vcmask 64512   ;;  %v13521_v4 = vmov 0.0   ;;  %8329 = vmatprep.subr.msk.mxu1 %vm848_vm0, %v251_v0  ;;  %s8580_s29 = smov 8  }
   0x4   :  { %7786 = vmatpush3.msk.msra.mxu0 %vm848_vm0, %v251_v0  ;;  %2095 = vst.msk [vmem:[#allocation2 + $0x8] sm:$0xff] %vm2093_vm2, %v13521_v4  ;;  %2094 = vst.msk [vmem:[#allocation2] sm:$0xff] %vm2093_vm2, %v13521_v4  ;;  %8331 = vmatpush3.msk.msra.mxu1 %vm848_vm0, %v251_v0  ;;  %s8581_s18 = smov 16   ;;  %s8582_s21 = smov 24  }
   0x5   :  { %2096 = vst.msk [vmem:[#allocation2 + $0x10] sm:$0xff] %vm2093_vm2, %v13521_v4  ;;  %2097 = vst.msk [vmem:[#allocation2 + $0x18] sm:$0xff] %vm2093_vm2, %v13521_v4  ;;  %7787 = vmatprep.subr.mxu0 %v250_v1  ;;  %8330 = vmatprep.subr.mxu1 %v250_v1 }
   0x6   :  { %2098 = vst.msk [vmem:[#allocation2 + $0x20] sm:$0xff] %vm2093_vm2, %v13521_v4  ;;  %2099 = vst.msk [vmem:[#allocation2 + $0x28] sm:$0xff] %vm2093_vm2, %v13521_v4  ;;  %7788 = vmatpush3.msra.mxu0 %v250_v1  ;;  %8332 = vmatpush3.msra.mxu1 %v250_v1 }
   0x7   :  { %2100 = vst.msk [vmem:[#allocation2 + $0x30] sm:$0xff] %vm2093_vm2, %v13521_v4  ;;  %2101 = vst.msk [vmem:[#allocation2 + $0x38] sm:$0xff] %vm2093_vm2, %v13521_v4  ;;  %8083 = vmatprep.subr.mxu1 %v13521_v4 }
   0x8   :  { %2102 = vst.msk [vmem:[#allocation2 + $0x40] sm:$0xff] %vm2093_vm2, %v13521_v4  ;;  %2103 = vst.msk [vmem:[#allocation2 + $0x48] sm:$0xff] %vm2093_vm2, %v13521_v4 }
   0x9   :  { %v54_v2 = vld [vmem:[%s13546_s27] sm:$0xff]  ;;  %v55_v3 = vld [vmem:[%s13546_s27 + $0x8] sm:$0xff]  ;;  %2104 = vst.msk [vmem:[#allocation2 + $0x50] sm:$0xff] %vm2093_vm2, %v13521_v4  ;;  %2105 = vst.msk [vmem:[#allocation2 + $0x58] sm:$0xff] %vm2093_vm2, %v13521_v4 }
   0xa   :  { %7789 = vmatprep.mubr.msk.f32.mxu0 %vm259_vm1, %v54_v2  ;;  %2106 = vst.msk [vmem:[#allocation2 + $0x60] sm:$0xff] %vm2093_vm2, %v13521_v4  ;;  %2107 = vst.msk [vmem:[#allocation2 + $0x68] sm:$0xff] %vm2093_vm2, %v13521_v4  ;;  %v56_v5 = vld [vmem:[%s13546_s27 + $0x10] sm:$0xff]  ;;  %v57_v6 = vld [vmem:[%s13546_s27 + $0x18] sm:$0xff] }
   0xb   :  { %2108 = vst.msk [vmem:[#allocation2 + $0x70] sm:$0xff] %vm2093_vm2, %v13521_v4  ;;  %2111 = vst.msk [vmem:[#allocation2 + $0x80] sm:$0xff] %vm2093_vm2, %v13521_v4  ;;  %7790 = vmatmul.mubr.msk.f32.vlgmr.msra.gmra.mxu0 %vm259_vm1, %v55_v3  ;;  %v58_v7 = vld [vmem:[%s13546_s27 + $0x20] sm:$0xff]  ;;  %v59_v8 = vld [vmem:[%s13546_s27 + $0x28] sm:$0xff] }
   0xc   :  { %2112 = vst.msk [vmem:[#allocation2 + $0x100] sm:$0xff] %vm2093_vm2, %v13521_v4  ;;  %2113 = vst.msk [vmem:[#allocation2 + $0x180] sm:$0xff] %vm2093_vm2, %v13521_v4  ;;  %7792 = vmatprep.mubr.msk.f32.mxu0 %vm259_vm1, %v56_v5  ;;  %v60_v9 = vld [vmem:[%s13546_s27 + $0x30] sm:$0xff]  ;;  %v61_v10 = vld [vmem:[%s13546_s27 + $0x38] sm:$0xff] }
   0xd   :  { %2114 = vst.msk [vmem:[#allocation2 + $0x200] sm:$0xff] %vm2093_vm2, %v13521_v4  ;;  %2115 = vst.msk [vmem:[#allocation2 + $0x280] sm:$0xff] %vm2093_vm2, %v13521_v4  ;;  %v2324_v11 = vld [vmem:[#allocation2 + $0x8] sm:$0xff]  ;;  %v62_v12 = vld [vmem:[%s13546_s27 + $0x40] sm:$0xff] }
   0xe   :  { %2116 = vst.msk [vmem:[#allocation2 + $0x300] sm:$0xff] %vm2093_vm2, %v13521_v4  ;;  %2117 = vst.msk [vmem:[#allocation2 + $0x380] sm:$0xff] %vm2093_vm2, %v13521_v4  ;;  %2597 = vrot.lane.b32.xlu0 %v2324_v11, %s8580_s29  ;;  %v2325_v13 = vld [vmem:[#allocation2 + $0x10] sm:$0xff]  ;;  %v63_v14 = vld [vmem:[%s13546_s27 + $0x48] sm:$0xff] }
   0xf   :  { %2118 = vst.msk [vmem:[#allocation2 + $0x400] sm:$0xff] %vm2093_vm2, %v13521_v4  ;;  %2119 = vst.msk [vmem:[#allocation2 + $0x480] sm:$0xff] %vm2093_vm2, %v13521_v4  ;;  %7793 = vmatmul.mubr.msk.f32.gmra.mxu0 %vm259_vm1, %v57_v6  ;;  %v64_v15 = vld [vmem:[%s13546_s27 + $0x50] sm:$0xff]  ;;  %v2326_v16 = vld [vmem:[#allocation2 + $0x18] sm:$0xff] }
  0x10   :  { %2120 = vst.msk [vmem:[#allocation2 + $0x500] sm:$0xff] %vm2093_vm2, %v13521_v4  ;;  %2121 = vst.msk [vmem:[#allocation2 + $0x580] sm:$0xff] %vm2093_vm2, %v13521_v4  ;;  %7795 = vmatprep.mubr.msk.f32.mxu0 %vm259_vm1, %v58_v7  ;;  %v65_v18 = vld [vmem:[%s13546_s27 + $0x58] sm:$0xff]  ;;  %v66_v19 = vld [vmem:[%s13546_s27 + $0x60] sm:$0xff] }
  0x11   :  { %2122 = vst.msk [vmem:[#allocation2 + $0x600] sm:$0xff] %vm2093_vm2, %v13521_v4  ;;  %2123 = vst.msk [vmem:[#allocation2 + $0x680] sm:$0xff] %vm2093_vm2, %v13521_v4 }
  0x12   :  { %2124 = vst.msk [vmem:[#allocation2 + $0x700] sm:$0xff] %vm2093_vm2, %v13521_v4  ;;  %2110 = vst.msk [vmem:[#allocation2] sm:$0xff] %vm2093_vm2, %v13521_v4  ;;  %2793 = vrot.lane.b32.xlu0 %v2325_v13, %s8581_s18  ;;  %v2338_v17 = vld [vmem:[#allocation2 + $0x80] sm:$0xff] }
  0x13   :  { %7796 = vmatmul.mubr.msk.f32.gmra.mxu0 %vm259_vm1, %v59_v8  ;;  %2989 = vrot.lane.b32.xlu1 %v2338_v17, %s8582_s21  ;;  %v2353_v20 = vld [vmem:[#allocation2 + $0x100] sm:$0xff] }
  0x14   :  { %7798 = vmatprep.mubr.msk.f32.mxu0 %vm259_vm1, %v60_v9 }
  0x16   :  { %2599 = vrot.lane.b32.xlu0 %v2326_v16, %s8580_s29 }
  0x17   :  { %7799 = vmatmul.mubr.msk.f32.gmra.mxu0 %vm259_vm1, %v61_v10 }
  0x18   :  { %7801 = vmatprep.mubr.msk.f32.mxu0 %vm259_vm1, %v62_v12 }
  0x1b   :  { %7802 = vmatmul.mubr.msk.f32.gmra.mxu0 %vm259_vm1, %v63_v14 }
  0x1c   :  { %7804 = vmatprep.mubr.msk.f32.mxu0 %vm259_vm1, %v64_v15 }
  0x1d   :  { %23 = vsyncpa [#allocation7], 0  ;;  %v2327_v21 = vld [vmem:[#allocation2 + $0x20] sm:$0xff]  ;;  %v67_v22 = vld [vmem:[%s13546_s27 + $0x68] sm:$0xff]  ;;  %s8583_s26 = smov 48   ;;  %s8584_s24 = smov 40  }
  0x1e   :  { %3499 = vrot.lane.b32.xlu1 %v2353_v20, %s8583_s26  ;;  %v68_v23 = vld [vmem:[%s13546_s27 + $0x70] sm:$0xff]  ;;  %2795 = vrot.lane.b32.xlu0 %v2327_v21, %s8581_s18  ;;  %v2328_v24 = vld [vmem:[#allocation2 + $0x28] sm:$0xff]  ;;  %v69_v25 = vld [vmem:[%s13546_s27 + $0x78] sm:$0xff]  ;;  %s8585_s19 = smov 32   ;;  %s8586_s28 = smov 64   ;;  %vm8587_vm3 = vmmov 0  }
  0x1f   :  { %7805 = vmatmul.mubr.msk.f32.gmra.mxu0 %vm259_vm1, %v65_v18  ;;  %v70_v26 = vld [vmem:[%s13546_s27 + $0x80] sm:$0xff]  ;;  %v2329_v27 = vld [vmem:[#allocation2 + $0x30] sm:$0xff]  ;;  %v71_v28 = vld [vmem:[%s13546_s27 + $0x88] sm:$0xff]  ;;  %s8588_s30 = smov 56   ;;  %vm3997_vm4 = vcmask 130048   ;;  %vm4047_vm5 = vcmask 195584  }
  0x20   :  { %7807 = vmatprep.mubr.msk.f32.mxu0 %vm259_vm1, %v66_v19  ;;  %v72_v29 = vld [vmem:[%s13546_s27 + $0x90] sm:$0xff]  ;;  %v2330_v30 = vld [vmem:[#allocation2 + $0x38] sm:$0xff]  ;;  %v74_v32 = vld [vmem:[%s13546_s27 + $0xa0] sm:$0xff]  ;;  %vm4097_vm6 = vcmask 261120   ;;  %vm4147_vm7 = vcmask 326656   ;;  %vm4197_vm8 = vcmask 392192  }
  0x21   :  { %v73_v31 = vld [vmem:[%s13546_s27 + $0x98] sm:$0xff]  ;;  %v2331_v33 = vld [vmem:[#allocation2 + $0x40] sm:$0xff]  ;;  %v75_v34 = vld [vmem:[%s13546_s27 + $0xa8] sm:$0xff]  ;;  %vm4247_vm9 = vcmask 457728   ;;  %vm4297_vm10 = vcmask 523264   ;;  %vm4356_vm11 = vcmask 588800  }
  0x22   :  { %2601 = vrot.lane.b32.xlu0 %v2328_v24, %s8580_s29  ;;  %v76_v35 = vld [vmem:[%s13546_s27 + $0xb0] sm:$0xff]  ;;  %v2332_v36 = vld [vmem:[#allocation2 + $0x48] sm:$0xff]  ;;  %v77_v37 = vld [vmem:[%s13546_s27 + $0xb8] sm:$0xff]  ;;  %s8589_s25 = smov 96   ;;  %s8590_s1 = smov 80  }
  0x23   :  { %7808 = vmatmul.mubr.msk.f32.gmra.mxu0 %vm259_vm1, %v67_v22  ;;  %v78_v38 = vld [vmem:[%s13546_s27 + $0xc0] sm:$0xff]  ;;  %v2333_v39 = vld [vmem:[#allocation2 + $0x50] sm:$0xff]  ;;  %v79_v40 = vld [vmem:[%s13546_s27 + $0xc8] sm:$0xff] }
  0x24   :  { %7810 = vmatprep.mubr.msk.f32.mxu0 %vm259_vm1, %v68_v23  ;;  %v80_v41 = vld [vmem:[%s13546_s27 + $0xd0] sm:$0xff]  ;;  %v2334_v42 = vld [vmem:[#allocation2 + $0x58] sm:$0xff]  ;;  %v82_v44 = vld [vmem:[%s13546_s27 + $0xe0] sm:$0xff] }
  0x25   :  { %v81_v43 = vld [vmem:[%s13546_s27 + $0xd8] sm:$0xff]  ;;  %v2335_v45 = vld [vmem:[#allocation2 + $0x60] sm:$0xff]  ;;  %v83_v46 = vld [vmem:[%s13546_s27 + $0xe8] sm:$0xff] }
  0x26   :  { %2797 = vrot.lane.b32.xlu0 %v2329_v27, %s8581_s18  ;;  %v84_v47 = vld [vmem:[%s13546_s27 + $0xf0] sm:$0xff]  ;;  %v2336_v48 = vld [vmem:[#allocation2 + $0x68] sm:$0xff]  ;;  %v85_v49 = vld [vmem:[%s13546_s27 + $0xf8] sm:$0xff] }
  0x27   :  { %7811 = vmatmul.mubr.msk.f32.gmra.mxu0 %vm259_vm1, %v69_v25  ;;  %v86_v50 = vld [vmem:[%s13546_s27 + $0x100] sm:$0xff]  ;;  %v2337_v51 = vld [vmem:[#allocation2 + $0x70] sm:$0xff]  ;;  %v87_v52 = vld [vmem:[%s13546_s27 + $0x108] sm:$0xff] }
  0x28   :  { %7813 = vmatprep.mubr.msk.f32.mxu0 %vm259_vm1, %v70_v26  ;;  %v88_v53 = vld [vmem:[%s13546_s27 + $0x110] sm:$0xff]  ;;  %v2383_v54 = vld [vmem:[#allocation2 + $0x200] sm:$0xff]  ;;  %v89_v56 = vld [vmem:[%s13546_s27 + $0x118] sm:$0xff] }
  0x29   :  { %v2368_v55 = vld [vmem:[#allocation2 + $0x180] sm:$0xff]  ;;  %3513 = vrot.lane.b32.xlu1 %v2383_v54, %s8583_s26  ;;  %v91_v60 = vld [vmem:[%s13546_s27 + $0x128] sm:$0xff]  ;;  %v92_v61 = vld [vmem:[%s13546_s27 + $0x130] sm:$0xff] }
  0x2a   :  { %2603 = vrot.lane.b32.xlu0 %v2330_v30, %s8580_s29  ;;  %v90_v57 = vld [vmem:[%s13546_s27 + $0x120] sm:$0xff]  ;;  %v93_v0 = vld [vmem:[%s13546_s27 + $0x138] sm:$0xff]  ;;  %v95_v2 = vld [vmem:[%s13546_s27 + $0x148] sm:$0xff] }
  0x2b   :  { %7814 = vmatmul.mubr.msk.f32.gmra.mxu0 %vm259_vm1, %v71_v28  ;;  %v2413_v58 = vld [vmem:[#allocation2 + $0x300] sm:$0xff]  ;;  %v96_v3 = vld [vmem:[%s13546_s27 + $0x150] sm:$0xff]  ;;  %v97_v5 = vld [vmem:[%s13546_s27 + $0x158] sm:$0xff] }
  0x2c   :  { %7816 = vmatprep.mubr.msk.f32.mxu0 %vm259_vm1, %v72_v29  ;;  %v2398_v59 = vld [vmem:[#allocation2 + $0x280] sm:$0xff]  ;;  %v99_v7 = vld [vmem:[%s13546_s27 + $0x168] sm:$0xff]  ;;  %v100_v8 = vld [vmem:[%s13546_s27 + $0x170] sm:$0xff] }
  0x2d   :  { %3527 = vrot.lane.b32.xlu1 %v2413_v58, %s8583_s26  ;;  %v2443_v62 = vld [vmem:[#allocation2 + $0x400] sm:$0xff]  ;;  %v101_v9 = vld [vmem:[%s13546_s27 + $0x178] sm:$0xff]  ;;  %v103_v11 = vld [vmem:[%s13546_s27 + $0x188] sm:$0xff] }
  0x2e   :  { %2799 = vrot.lane.b32.xlu0 %v2331_v33, %s8581_s18  ;;  %v2428_v63 = vld [vmem:[#allocation2 + $0x380] sm:$0xff]  ;;  %v104_v12 = vld [vmem:[%s13546_s27 + $0x190] sm:$0xff]  ;;  %v105_v13 = vld [vmem:[%s13546_s27 + $0x198] sm:$0xff] }
  0x2f   :  { %7817 = vmatmul.mubr.msk.f32.gmra.mxu0 %vm259_vm1, %v73_v31  ;;  %v94_v1 = vld [vmem:[%s13546_s27 + $0x140] sm:$0xff]  ;;  %v107_v15 = vld [vmem:[%s13546_s27 + $0x1a8] sm:$0xff]  ;;  %v108_v16 = vld [vmem:[%s13546_s27 + $0x1b0] sm:$0xff] }
  0x30   :  { %7819 = vmatprep.mubr.msk.f32.mxu0 %vm259_vm1, %v74_v32  ;;  %v98_v6 = vld [vmem:[%s13546_s27 + $0x160] sm:$0xff]  ;;  %v109_v17 = vld [vmem:[%s13546_s27 + $0x1b8] sm:$0xff]  ;;  %v111_v19 = vld [vmem:[%s13546_s27 + $0x1c8] sm:$0xff] }
  0x31   :  { %3541 = vrot.lane.b32.xlu1 %v2443_v62, %s8583_s26  ;;  %v102_v10 = vld [vmem:[%s13546_s27 + $0x180] sm:$0xff]  ;;  %v112_v20 = vld [vmem:[%s13546_s27 + $0x1d0] sm:$0xff]  ;;  %v113_v21 = vld [vmem:[%s13546_s27 + $0x1d8] sm:$0xff] }
  0x32   :  { %2605 = vrot.lane.b32.xlu0 %v2332_v36, %s8580_s29  ;;  %v106_v14 = vld [vmem:[%s13546_s27 + $0x1a0] sm:$0xff]  ;;  %v115_v23 = vld [vmem:[%s13546_s27 + $0x1e8] sm:$0xff]  ;;  %v116_v24 = vld [vmem:[%s13546_s27 + $0x1f0] sm:$0xff] }
  0x33   :  { %7820 = vmatmul.mubr.msk.f32.gmra.mxu0 %vm259_vm1, %v75_v34  ;;  %v110_v18 = vld [vmem:[%s13546_s27 + $0x1c0] sm:$0xff]  ;;  %v117_v25 = vld [vmem:[%s13546_s27 + $0x1f8] sm:$0xff]  ;;  %v119_v27 = vld [vmem:[%s13546_s27 + $0x208] sm:$0xff] }
  0x34   :  { %7822 = vmatprep.mubr.msk.f32.mxu0 %vm259_vm1, %v76_v35  ;;  %v114_v22 = vld [vmem:[%s13546_s27 + $0x1e0] sm:$0xff]  ;;  %v120_v28 = vld [vmem:[%s13546_s27 + $0x210] sm:$0xff]  ;;  %v121_v29 = vld [vmem:[%s13546_s27 + $0x218] sm:$0xff] }
  0x35   :  { %v118_v26 = vld [vmem:[%s13546_s27 + $0x200] sm:$0xff]  ;;  %v123_v31 = vld [vmem:[%s13546_s27 + $0x228] sm:$0xff]  ;;  %v124_v32 = vld [vmem:[%s13546_s27 + $0x230] sm:$0xff] }
  0x36   :  { %2801 = vrot.lane.b32.xlu0 %v2333_v39, %s8581_s18  ;;  %v122_v30 = vld [vmem:[%s13546_s27 + $0x220] sm:$0xff]  ;;  %v125_v33 = vld [vmem:[%s13546_s27 + $0x238] sm:$0xff]  ;;  %v127_v35 = vld [vmem:[%s13546_s27 + $0x248] sm:$0xff] }
  0x37   :  { %7823 = vmatmul.mubr.msk.f32.gmra.mxu0 %vm259_vm1, %v77_v37  ;;  %v126_v34 = vld [vmem:[%s13546_s27 + $0x240] sm:$0xff]  ;;  %v128_v36 = vld [vmem:[%s13546_s27 + $0x250] sm:$0xff]  ;;  %v129_v37 = vld [vmem:[%s13546_s27 + $0x258] sm:$0xff] }
  0x38   :  { %7825 = vmatprep.mubr.msk.f32.mxu0 %vm259_vm1, %v78_v38  ;;  %v130_v38 = vld [vmem:[%s13546_s27 + $0x260] sm:$0xff]  ;;  %v131_v39 = vld [vmem:[%s13546_s27 + $0x268] sm:$0xff]  ;;  %v144_v54 = vld [vmem:[%s13546_s27 + $0x2d0] sm:$0xff] }
  0x39   :  { %v231_v58 = vld [vmem:[%s13546_s27 + $0x588] sm:$0xff] }
  0x3a   :  { %2607 = vrot.lane.b32.xlu0 %v2334_v42, %s8580_s29  ;;  %v134_v42 = vld [vmem:[%s13546_s27 + $0x280] sm:$0xff] }
  0x3b   :  { %7826 = vmatmul.mubr.msk.f32.gmra.mxu0 %vm259_vm1, %v79_v40  ;;  %v132_v40 = vld [vmem:[%s13546_s27 + $0x270] sm:$0xff] }
  0x3c   :  { %7828 = vmatprep.mubr.msk.f32.mxu0 %vm259_vm1, %v80_v41  ;;  %v133_v41 = vld [vmem:[%s13546_s27 + $0x278] sm:$0xff] }
  0x3e   :  { %2803 = vrot.lane.b32.xlu0 %v2335_v45, %s8581_s18  ;;  %v137_v45 = vld [vmem:[%s13546_s27 + $0x298] sm:$0xff] }
  0x3f   :  { %7829 = vmatmul.mubr.msk.f32.gmra.mxu0 %vm259_vm1, %v81_v43  ;;  %v135_v43 = vld [vmem:[%s13546_s27 + $0x288] sm:$0xff] }
  0x40   :  { %7831 = vmatprep.mubr.msk.f32.mxu0 %vm259_vm1, %v82_v44  ;;  %v136_v44 = vld [vmem:[%s13546_s27 + $0x290] sm:$0xff] }
  0x42   :  { %2609 = vrot.lane.b32.xlu0 %v2336_v48, %s8580_s29  ;;  %v140_v48 = vld [vmem:[%s13546_s27 + $0x2b0] sm:$0xff] }
  0x43   :  { %7832 = vmatmul.mubr.msk.f32.gmra.mxu0 %vm259_vm1, %v83_v46  ;;  %v138_v46 = vld [vmem:[%s13546_s27 + $0x2a0] sm:$0xff] }
  0x44   :  { %7834 = vmatprep.mubr.msk.f32.mxu0 %vm259_vm1, %v84_v47  ;;  %v139_v47 = vld [vmem:[%s13546_s27 + $0x2a8] sm:$0xff] }
  0x46   :  { %2805 = vrot.lane.b32.xlu0 %v2337_v51, %s8581_s18  ;;  %v143_v51 = vld [vmem:[%s13546_s27 + $0x2c8] sm:$0xff] }
  0x47   :  { %7835 = vmatmul.mubr.msk.f32.gmra.mxu0 %vm259_vm1, %v85_v49  ;;  %v141_v49 = vld [vmem:[%s13546_s27 + $0x2b8] sm:$0xff] }
  0x48   :  { %7837 = vmatprep.mubr.msk.f32.mxu0 %vm259_vm1, %v86_v50  ;;  %v142_v50 = vld [vmem:[%s13546_s27 + $0x2c0] sm:$0xff] }
  0x4a   :  { %3003 = vrot.lane.b32.xlu0 %v2368_v55, %s8582_s21  ;;  %v230_v55 = vld [vmem:[%s13546_s27 + $0x580] sm:$0xff] }
  0x4b   :  { %7838 = vmatmul.mubr.msk.f32.gmra.mxu0 %vm259_vm1, %v87_v52  ;;  %v9135_v52 = vld [vmem:[%s13505_s2] ss:$0 sm:$0xff]  ;;  %8053 = vmatprep.mubr.msk.f32.mxu1 %vm259_vm1, %v230_v55 }
  0x4c   :  { %7840 = vmatprep.mubr.msk.f32.mxu0 %vm259_vm1, %v88_v53  ;;  %8054 = vmatmul.mubr.msk.f32.vlgmr.msra.gmra.mxu1 %vm259_vm1, %v231_v58  ;;  %v4355_v55 = vld [vmem:[%s13506_s3 + $0x40] sm:$0xff] }
  0x4d   :  { %8084 = vmatpush3.msra.mxu1 %v4355_v55 }
  0x4e   :  { %3017 = vrot.lane.b32.xlu0 %v2398_v59, %s8582_s21  ;;  %8085 = vmatprep.subr.mxu1 %v13521_v4 }
  0x4f   :  { %7841 = vmatmul.mubr.msk.f32.gmra.mxu0 %vm259_vm1, %v89_v56 }
  0x50   :  { %7843 = vmatprep.mubr.msk.f32.mxu0 %vm259_vm1, %v90_v57  ;;  %v145_v57 = vld [vmem:[%s13546_s27 + $0x2d8] sm:$0xff] }
  0x52   :  { %3031 = vrot.lane.b32.xlu0 %v2428_v63, %s8582_s21  ;;  %v232_v63 = vld [vmem:[%s13546_s27 + $0x590] sm:$0xff] }
  0x53   :  { %7844 = vmatmul.mubr.msk.f32.gmra.mxu0 %vm259_vm1, %v91_v60  ;;  %8056 = vmatprep.mubr.msk.f32.mxu1 %vm259_vm1, %v232_v63 }
  0x54   :  { %7846 = vmatprep.mubr.msk.f32.mxu0 %vm259_vm1, %v92_v61 }
  0x57   :  { %7847 = vmatmul.mubr.msk.f32.gmra.mxu0 %vm259_vm1, %v93_v0 }
  0x58   :  { %7849 = vmatprep.mubr.msk.f32.mxu0 %vm259_vm1, %v94_v1 }
  0x5b   :  { %7850 = vmatmul.mubr.msk.f32.gmra.mxu0 %vm259_vm1, %v95_v2  ;;  %v233_v2 = vld [vmem:[%s13546_s27 + $0x598] sm:$0xff] }
  0x5c   :  { %7852 = vmatprep.mubr.msk.f32.mxu0 %vm259_vm1, %v96_v3  ;;  %8057 = vmatmul.mubr.msk.f32.gmra.mxu1 %vm259_vm1, %v233_v2  ;;  %v244_v2 = vld [vmem:[%s13546_s27 + $0x5f0] sm:$0xff] }
  0x5f   :  { %7853 = vmatmul.mubr.msk.f32.gmra.mxu0 %vm259_vm1, %v97_v5 }
  0x60   :  { %7855 = vmatprep.mubr.msk.f32.mxu0 %vm259_vm1, %v98_v6 }
  0x63   :  { %7856 = vmatmul.mubr.msk.f32.gmra.mxu0 %vm259_vm1, %v99_v7 }
  0x64   :  { %7858 = vmatprep.mubr.msk.f32.mxu0 %vm259_vm1, %v100_v8  ;;  %v234_v8 = vld [vmem:[%s13546_s27 + $0x5a0] sm:$0xff] }
  0x65   :  { %8059 = vmatprep.mubr.msk.f32.mxu1 %vm259_vm1, %v234_v8 }
  0x67   :  { %7859 = vmatmul.mubr.msk.f32.gmra.mxu0 %vm259_vm1, %v101_v9 }
  0x68   :  { %7861 = vmatprep.mubr.msk.f32.mxu0 %vm259_vm1, %v102_v10 }
  0x6b   :  { %7862 = vmatmul.mubr.msk.f32.gmra.mxu0 %vm259_vm1, %v103_v11  ;;  %v235_v11 = vld [vmem:[%s13546_s27 + $0x5a8] sm:$0xff] }
  0x6c   :  { %7864 = vmatprep.mubr.msk.f32.mxu0 %vm259_vm1, %v104_v12  ;;  %8060 = vmatmul.mubr.msk.f32.gmra.mxu1 %vm259_vm1, %v235_v11 }
  0x6f   :  { %7865 = vmatmul.mubr.msk.f32.gmra.mxu0 %vm259_vm1, %v105_v13 }
  0x70   :  { %7867 = vmatprep.mubr.msk.f32.mxu0 %vm259_vm1, %v106_v14 }
  0x73   :  { %7868 = vmatmul.mubr.msk.f32.gmra.mxu0 %vm259_vm1, %v107_v15 }
  0x74   :  { %7870 = vmatprep.mubr.msk.f32.mxu0 %vm259_vm1, %v108_v16 }
  0x77   :  { %7871 = vmatmul.mubr.msk.f32.gmra.mxu0 %vm259_vm1, %v109_v17  ;;  %v146_v17 = vld [vmem:[%s13546_s27 + $0x2e0] sm:$0xff] }
  0x78   :  { %7873 = vmatprep.mubr.msk.f32.mxu0 %vm259_vm1, %v110_v18  ;;  %v236_v18 = vld [vmem:[%s13546_s27 + $0x5b0] sm:$0xff] }
  0x79   :  { %8062 = vmatprep.mubr.msk.f32.mxu1 %vm259_vm1, %v236_v18 }
  0x7b   :  { %7874 = vmatmul.mubr.msk.f32.gmra.mxu0 %vm259_vm1, %v111_v19 }
  0x7c   :  { %7876 = vmatprep.mubr.msk.f32.mxu0 %vm259_vm1, %v112_v20 }
  0x7f   :  { %7877 = vmatmul.mubr.msk.f32.gmra.mxu0 %vm259_vm1, %v113_v21  ;;  %v147_v21 = vld [vmem:[%s13546_s27 + $0x2e8] sm:$0xff] }
  0x80   :  { %7879 = vmatprep.mubr.msk.f32.mxu0 %vm259_vm1, %v114_v22  ;;  %v237_v22 = vld [vmem:[%s13546_s27 + $0x5b8] sm:$0xff] }
  0x81   :  { %8063 = vmatmul.mubr.msk.f32.gmra.mxu1 %vm259_vm1, %v237_v22 }
  0x83   :  { %7880 = vmatmul.mubr.msk.f32.gmra.mxu0 %vm259_vm1, %v115_v23 }
  0x84   :  { %7882 = vmatprep.mubr.msk.f32.mxu0 %vm259_vm1, %v116_v24 }
  0x87   :  { %7883 = vmatmul.mubr.msk.f32.gmra.mxu0 %vm259_vm1, %v117_v25 }
  0x88   :  { %7885 = vmatprep.mubr.msk.f32.mxu0 %vm259_vm1, %v118_v26 }
  0x8b   :  { %7886 = vmatmul.mubr.msk.f32.gmra.mxu0 %vm259_vm1, %v119_v27 }
  0x8c   :  { %7888 = vmatprep.mubr.msk.f32.mxu0 %vm259_vm1, %v120_v28 }
  0x8f   :  { %7889 = vmatmul.mubr.msk.f32.gmra.mxu0 %vm259_vm1, %v121_v29  ;;  %v238_v29 = vld [vmem:[%s13546_s27 + $0x5c0] sm:$0xff] }
  0x90   :  { %7891 = vmatprep.mubr.msk.f32.mxu0 %vm259_vm1, %v122_v30  ;;  %8065 = vmatprep.mubr.msk.f32.mxu1 %vm259_vm1, %v238_v29 }
  0x93   :  { %7892 = vmatmul.mubr.msk.f32.gmra.mxu0 %vm259_vm1, %v123_v31 }
  0x94   :  { %7894 = vmatprep.mubr.msk.f32.mxu0 %vm259_vm1, %v124_v32  ;;  %v239_v32 = vld [vmem:[%s13546_s27 + $0x5c8] sm:$0xff] }
  0x95   :  { %8066 = vmatmul.mubr.msk.f32.gmra.mxu1 %vm259_vm1, %v239_v32  ;;  %v248_v32 = vld [vmem:[%s13546_s27 + $0x610] sm:$0xff] }
  0x97   :  { %7895 = vmatmul.mubr.msk.f32.gmra.mxu0 %vm259_vm1, %v125_v33 }
  0x98   :  { %7897 = vmatprep.mubr.msk.f32.mxu0 %vm259_vm1, %v126_v34 }
  0x9b   :  { %7898 = vmatmul.mubr.msk.f32.gmra.mxu0 %vm259_vm1, %v127_v35 }
  0x9c   :  { %7900 = vmatprep.mubr.msk.f32.mxu0 %vm259_vm1, %v128_v36 }
  0x9f   :  { %7901 = vmatmul.mubr.msk.f32.gmra.mxu0 %vm259_vm1, %v129_v37 }
  0xa0   :  { %7903 = vmatprep.mubr.msk.f32.mxu0 %vm259_vm1, %v130_v38  ;;  %v148_v38 = vld [vmem:[%s13546_s27 + $0x2f0] sm:$0xff] }
  0xa3   :  { %7904 = vmatmul.mubr.msk.f32.gmra.mxu0 %vm259_vm1, %v131_v39  ;;  %v240_v39 = vld [vmem:[%s13546_s27 + $0x5d0] sm:$0xff] }
  0xa4   :  { %7906 = vmatprep.mubr.msk.f32.mxu0 %vm259_vm1, %v132_v40  ;;  %8068 = vmatprep.mubr.msk.f32.mxu1 %vm259_vm1, %v240_v39  ;;  %v4349_v39 = vld [vmem:[%s13506_s3 + $0x10] sm:$0xff] }
  0xa7   :  { %7907 = vmatmul.mubr.msk.f32.gmra.mxu0 %vm259_vm1, %v133_v41 }
  0xa8   :  { %7909 = vmatprep.mubr.msk.f32.mxu0 %vm259_vm1, %v134_v42  ;;  %v149_v42 = vld [vmem:[%s13546_s27 + $0x2f8] sm:$0xff] }
  0xab   :  { %7910 = vmatmul.mubr.msk.f32.gmra.mxu0 %vm259_vm1, %v135_v43  ;;  %v241_v43 = vld [vmem:[%s13546_s27 + $0x5d8] sm:$0xff] }
  0xac   :  { %7912 = vmatprep.mubr.msk.f32.mxu0 %vm259_vm1, %v136_v44  ;;  %8069 = vmatmul.mubr.msk.f32.gmra.mxu1 %vm259_vm1, %v241_v43  ;;  %v249_v43 = vld [vmem:[%s13546_s27 + $0x618] sm:$0xff] }
  0xaf   :  { %7913 = vmatmul.mubr.msk.f32.gmra.mxu0 %vm259_vm1, %v137_v45 }
  0xb0   :  { %7915 = vmatprep.mubr.msk.f32.mxu0 %vm259_vm1, %v138_v46 }
  0xb3   :  { %7916 = vmatmul.mubr.msk.f32.gmra.mxu0 %vm259_vm1, %v139_v47 }
  0xb4   :  { %7918 = vmatprep.mubr.msk.f32.mxu0 %vm259_vm1, %v140_v48 }
  0xb7   :  { %7919 = vmatmul.mubr.msk.f32.gmra.mxu0 %vm259_vm1, %v141_v49  ;;  %v150_v49 = vld [vmem:[%s13546_s27 + $0x300] sm:$0xff] }
  0xb8   :  { %7921 = vmatprep.mubr.msk.f32.mxu0 %vm259_vm1, %v142_v50  ;;  %v242_v50 = vld [vmem:[%s13546_s27 + $0x5e0] sm:$0xff] }
  0xb9   :  { %8071 = vmatprep.mubr.msk.f32.mxu1 %vm259_vm1, %v242_v50 }
  0xbb   :  { %7922 = vmatmul.mubr.msk.f32.gmra.mxu0 %vm259_vm1, %v143_v51 }
  0xbc   :  { %7924 = vmatprep.mubr.msk.f32.mxu0 %vm259_vm1, %v144_v54  ;;  %v9247_v54 = vpop.permute.xlu0 %2597 }
  0xbf   :  { %7925 = vmatmul.mubr.msk.f32.gmra.mxu0 %vm259_vm1, %v145_v57 }
  0xc0   :  { %7927 = vmatprep.mubr.msk.f32.mxu0 %vm259_vm1, %v146_v17 }
  0xc3   :  { %7928 = vmatmul.mubr.msk.f32.gmra.mxu0 %vm259_vm1, %v147_v21 }
  0xc4   :  { %7930 = vmatprep.mubr.msk.f32.mxu0 %vm259_vm1, %v148_v38 }
  0xc7   :  { %7931 = vmatmul.mubr.msk.f32.gmra.mxu0 %vm259_vm1, %v149_v42 }
  0xc8   :  { %7933 = vmatprep.mubr.msk.f32.mxu0 %vm259_vm1, %v150_v49  ;;  %v4348_v49 = vld [vmem:[%s13506_s3 + $0x8] sm:$0xff] }
  0xcb   :  { %v7791_v53 = vpop.f32.mrf.mxu0 }
  0xcc   :  { %v924_v56 = vadd.f32 %v7791_v53, %v9135_v52 }
  0xcd   :  { %v918_v59 = vpop.f32.mrf.mxu0 }
  0xce   :  { %v1898_v60 = vmax.f32 %v924_v56, 0.0  ;;  %v919_v61 = vadd.f32 %v9135_v52, %v918_v59  ;;  %v151_v56 = vld [vmem:[%s13546_s27 + $0x308] sm:$0xff] }
  0xcf   :  { %v7794_v62 = vpop.f32.mrf.mxu0  ;;  %v243_v59 = vld [vmem:[%s13546_s27 + $0x5e8] sm:$0xff]  ;;  %7934 = vmatmul.mubr.msk.f32.gmra.mxu0 %vm259_vm1, %v151_v56 }
  0xd0   :  { %2128 = vst.msk [vmem:[#allocation2 + $0x90] sm:$0xff] %vm2093_vm2, %v1898_v60  ;;  %v1897_v0 = vmax.f32 %v919_v61, 0.0  ;;  %v934_v1 = vadd.f32 %v7794_v62, %v9135_v52  ;;  %v4354_v62 = vld [vmem:[%s13506_s3 + $0x38] sm:$0xff]  ;;  %8072 = vmatmul.mubr.msk.f32.gmra.mxu1 %vm259_vm1, %v243_v59 }
  0xd1   :  { %v928_v3 = vpop.f32.mrf.mxu0  ;;  %8086 = vmatpush3.msra.mxu1 %v4354_v62  ;;  %8074 = vmatprep.mubr.msk.f32.mxu1 %vm259_vm1, %v244_v2 }
  0xd2   :  { %2127 = vst.msk [vmem:[#allocation2 + $0x88] sm:$0xff] %vm2093_vm2, %v1897_v0  ;;  %v1900_v5 = vmax.f32 %v934_v1, 0.0  ;;  %v929_v6 = vadd.f32 %v9135_v52, %v928_v3  ;;  %v152_v1 = vld [vmem:[%s13546_s27 + $0x310] sm:$0xff]  ;;  %8087 = vmatprep.subr.mxu1 %v13521_v4 }
  0xd3   :  { %v7797_v7 = vpop.f32.mrf.mxu0  ;;  %7936 = vmatprep.mubr.msk.f32.mxu0 %vm259_vm1, %v152_v1 }
  0xd4   :  { %2130 = vst.msk [vmem:[#allocation2 + $0xa0] sm:$0xff] %vm2093_vm2, %v1900_v5  ;;  %v1899_v9 = vmax.f32 %v929_v6, 0.0  ;;  %v944_v10 = vadd.f32 %v7797_v7, %v9135_v52  ;;  %v4353_v6 = vld [vmem:[%s13506_s3 + $0x30] sm:$0xff]  ;;  %v153_v7 = vld [vmem:[%s13546_s27 + $0x318] sm:$0xff] }
  0xd5   :  { %v938_v12 = vpop.f32.mrf.mxu0  ;;  %8088 = vmatpush3.msra.mxu1 %v4353_v6  ;;  %7937 = vmatmul.mubr.msk.f32.gmra.mxu0 %vm259_vm1, %v153_v7 }
  0xd6   :  { %2129 = vst.msk [vmem:[#allocation2 + $0x98] sm:$0xff] %vm2093_vm2, %v1899_v9  ;;  %v1902_v13 = vmax.f32 %v944_v10, 0.0  ;;  %v939_v14 = vadd.f32 %v9135_v52, %v938_v12  ;;  %v9287_v12 = vpop.permute.xlu0 %2793  ;;  %8089 = vmatprep.subr.mxu1 %v13521_v4 }
  0xd7   :  { %v2340_v15 = vld [vmem:[#allocation2 + $0x90] sm:$0xff]  ;;  %v7800_v16 = vpop.f32.mrf.mxu0 }
  0xd8   :  { %2132 = vst.msk [vmem:[#allocation2 + $0xb0] sm:$0xff] %vm2093_vm2, %v1902_v13  ;;  %v1901_v19 = vmax.f32 %v939_v14, 0.0  ;;  %2991 = vrot.lane.b32.xlu0 %v2340_v15, %s8582_s21  ;;  %3339 = vrot.lane.b32.xlu1 %v2340_v15, %s8584_s24  ;;  %v954_v20 = vadd.f32 %v7800_v16, %v9135_v52  ;;  %v245_v13 = vld [vmem:[%s13546_s27 + $0x5f8] sm:$0xff]  ;;  %v4352_v15 = vld [vmem:[%s13506_s3 + $0x28] sm:$0xff] }
  0xd9   :  { %v948_v23 = vpop.f32.mrf.mxu0  ;;  %v2339_v27 = vld [vmem:[#allocation2 + $0x88] sm:$0xff]  ;;  %v246_v16 = vld [vmem:[%s13546_s27 + $0x600] sm:$0xff]  ;;  %8075 = vmatmul.mubr.msk.f32.gmra.mxu1 %vm259_vm1, %v245_v13 }
  0xda   :  { %2131 = vst.msk [vmem:[#allocation2 + $0xa8] sm:$0xff] %vm2093_vm2, %v1901_v19  ;;  %v1904_v24 = vmax.f32 %v954_v20, 0.0  ;;  %v949_v25 = vadd.f32 %v9135_v52, %v948_v23  ;;  %8090 = vmatpush3.msra.mxu1 %v4352_v15  ;;  %8077 = vmatprep.mubr.msk.f32.mxu1 %vm259_vm1, %v246_v16  ;;  %v4351_v23 = vld [vmem:[%s13506_s3 + $0x20] sm:$0xff] }
  0xdb   :  { %v2342_v26 = vld [vmem:[#allocation2 + $0xa0] sm:$0xff]  ;;  %v7803_v28 = vpop.f32.mrf.mxu0  ;;  %8091 = vmatprep.subr.mxu1 %v13521_v4 }
  0xdc   :  { %2134 = vst.msk [vmem:[#allocation2 + $0xc0] sm:$0xff] %vm2093_vm2, %v1904_v24  ;;  %v1903_v30 = vmax.f32 %v949_v25, 0.0  ;;  %2993 = vrot.lane.b32.xlu0 %v2342_v26, %s8582_s21  ;;  %3185 = vrot.lane.b32.xlu1 %v2339_v27, %s8585_s19  ;;  %v964_v31 = vadd.f32 %v7803_v28, %v9135_v52  ;;  %v154_v27 = vld [vmem:[%s13546_s27 + $0x320] sm:$0xff] }
  0xdd   :  { %v958_v33 = vpop.f32.mrf.mxu0  ;;  %v2341_v34 = vld [vmem:[#allocation2 + $0x98] sm:$0xff]  ;;  %8092 = vmatpush3.msra.mxu1 %v4351_v23  ;;  %7939 = vmatprep.mubr.msk.f32.mxu0 %vm259_vm1, %v154_v27  ;;  %v162_v15 = vld [vmem:[%s13546_s27 + $0x360] sm:$0xff]  ;;  %v163_v23 = vld [vmem:[%s13546_s27 + $0x368] sm:$0xff] }
  0xde   :  { %2133 = vst.msk [vmem:[#allocation2 + $0xb8] sm:$0xff] %vm2093_vm2, %v1903_v30  ;;  %v1906_v35 = vmax.f32 %v964_v31, 0.0  ;;  %v959_v36 = vadd.f32 %v9135_v52, %v958_v33  ;;  %v9327_v30 = vpop.permute.xlu0 %2599  ;;  %v4350_v31 = vld [vmem:[%s13506_s3 + $0x18] sm:$0xff]  ;;  %8093 = vmatprep.subr.mxu1 %v13521_v4 }
  0xdf   :  { %v7806_v37 = vpop.f32.mrf.mxu0  ;;  %v2344_v45 = vld [vmem:[#allocation2 + $0xb0] sm:$0xff]  ;;  %8094 = vmatpush3.msra.mxu1 %v4350_v31 }
  0xe0   :  { %2136 = vst.msk [vmem:[#allocation2 + $0xd0] sm:$0xff] %vm2093_vm2, %v1906_v35  ;;  %v1905_v40 = vmax.f32 %v959_v36, 0.0  ;;  %3187 = vrot.lane.b32.xlu0 %v2341_v34, %s8585_s19  ;;  %3341 = vrot.lane.b32.xlu1 %v2342_v26, %s8584_s24  ;;  %v974_v41 = vadd.f32 %v7806_v37, %v9135_v52  ;;  %v247_v26 = vld [vmem:[%s13546_s27 + $0x608] sm:$0xff] }
  0xe1   :  { %v968_v44 = vpop.f32.mrf.mxu0  ;;  %v2343_v63 = vld [vmem:[#allocation2 + $0xa8] sm:$0xff]  ;;  %8078 = vmatmul.mubr.msk.f32.gmra.mxu1 %vm259_vm1, %v247_v26  ;;  %8095 = vmatprep.subr.mxu1 %v13521_v4  ;;  %v164_v26 = vld [vmem:[%s13546_s27 + $0x370] sm:$0xff] }
  0xe2   :  { %2135 = vst.msk [vmem:[#allocation2 + $0xc8] sm:$0xff] %vm2093_vm2, %v1905_v40  ;;  %v1908_v46 = vmax.f32 %v974_v41, 0.0  ;;  %v969_v47 = vadd.f32 %v9135_v52, %v968_v44  ;;  %v155_v37 = vld [vmem:[%s13546_s27 + $0x328] sm:$0xff]  ;;  %8080 = vmatprep.mubr.msk.f32.mxu1 %vm259_vm1, %v248_v32  ;;  %v156_v40 = vld [vmem:[%s13546_s27 + $0x330] sm:$0xff]  ;;  %8096 = vmatpush3.msra.mxu1 %v4349_v39  ;;  %v165_v32 = vld [vmem:[%s13546_s27 + $0x378] sm:$0xff] }
  0xe3   :  { %v7809_v48 = vpop.f32.mrf.mxu0  ;;  %v2346_v58 = vld [vmem:[#allocation2 + $0xc0] sm:$0xff]  ;;  %7940 = vmatmul.mubr.msk.f32.gmra.mxu0 %vm259_vm1, %v155_v37  ;;  %8097 = vmatprep.subr.mxu1 %v13521_v4 }
  0xe4   :  { %2138 = vst.msk [vmem:[#allocation2 + $0xe0] sm:$0xff] %vm2093_vm2, %v1908_v46  ;;  %v1907_v51 = vmax.f32 %v969_v47, 0.0  ;;  %2995 = vrot.lane.b32.xlu0 %v2344_v45, %s8582_s21  ;;  %3343 = vrot.lane.b32.xlu1 %v2344_v45, %s8584_s24  ;;  %v984_v53 = vadd.f32 %v7809_v48, %v9135_v52  ;;  %v9363_v48 = vpop.permute.xlu0 %2795 }
  0xe5   :  { %v978_v57 = vpop.f32.mrf.mxu0  ;;  %v2345_v24 = vld [vmem:[#allocation2 + $0xb8] sm:$0xff]  ;;  %7942 = vmatprep.mubr.msk.f32.mxu0 %vm259_vm1, %v156_v40  ;;  %8081 = vmatmul.mubr.msk.f32.gmra.mxu1 %vm259_vm1, %v249_v43 }
  0xe6   :  { %2137 = vst.msk [vmem:[#allocation2 + $0xd8] sm:$0xff] %vm2093_vm2, %v1907_v51  ;;  %v1910_v60 = vmax.f32 %v984_v53, 0.0  ;;  %v979_v61 = vadd.f32 %v9135_v52, %v978_v57  ;;  %v157_v53 = vld [vmem:[%s13546_s27 + $0x338] sm:$0xff]  ;;  %v4347_v57 = vld [vmem:[%s13506_s3] sm:$0xff]  ;;  %8098 = vmatpush3.msra.mxu1 %v4348_v49  ;;  %8101 = vmatprep.mubr.msk.f32.mxu1 %vm8587_vm3, %v13521_v4 }
  0xe7   :  { %v7812_v0 = vpop.f32.mrf.mxu0  ;;  %v2348_v9 = vld [vmem:[#allocation2 + $0xd0] sm:$0xff]  ;;  %8099 = vmatprep.subr.mxu1 %v13521_v4  ;;  %7943 = vmatmul.mubr.msk.f32.gmra.mxu0 %vm259_vm1, %v157_v53 }
  0xe8   :  { %2140 = vst.msk [vmem:[#allocation2 + $0xf0] sm:$0xff] %vm2093_vm2, %v1910_v60  ;;  %v1909_v3 = vmax.f32 %v979_v61, 0.0  ;;  %3189 = vrot.lane.b32.xlu0 %v2343_v63, %s8585_s19  ;;  %3345 = vrot.lane.b32.xlu1 %v2346_v58, %s8584_s24  ;;  %v994_v5 = vadd.f32 %v7812_v0, %v9135_v52  ;;  %v159_v63 = vld [vmem:[%s13546_s27 + $0x348] sm:$0xff]  ;;  %v9399_v0 = vpop.permute.xlu0 %2601 }
  0xe9   :  { %v988_v8 = vpop.f32.mrf.mxu0  ;;  %v2347_v50 = vld [vmem:[#allocation2 + $0xc8] sm:$0xff]  ;;  %8100 = vmatpush3.msra.mxu1 %v4347_v57 }
  0xea   :  { %2139 = vst.msk [vmem:[#allocation2 + $0xe8] sm:$0xff] %vm2093_vm2, %v1909_v3  ;;  %v1912_v10 = vmax.f32 %v994_v5, 0.0  ;;  %v989_v11 = vadd.f32 %v9135_v52, %v988_v8  ;;  %v160_v3 = vld [vmem:[%s13546_s27 + $0x350] sm:$0xff]  ;;  %6613 = vmatprep.subr.mxu1 %v13521_v4 }
  0xeb   :  { %v7815_v14 = vpop.f32.mrf.mxu0  ;;  %v9305_v19 = vld [vmem:[#allocation2 + $0xe0] sm:$0xff] }
  0xec   :  { %2142 = vst.msk [vmem:[#allocation2 + $0x110] sm:$0xff] %vm2093_vm2, %v1912_v10  ;;  %v1911_v17 = vmax.f32 %v989_v11, 0.0  ;;  %2997 = vrot.lane.b32.xlu0 %v2346_v58, %s8582_s21  ;;  %3347 = vrot.lane.b32.xlu1 %v2348_v9, %s8584_s24  ;;  %v1004_v18 = vadd.f32 %v7815_v14, %v9135_v52  ;;  %v158_v58 = vld [vmem:[%s13546_s27 + $0x340] sm:$0xff]  ;;  %v161_v11 = vld [vmem:[%s13546_s27 + $0x358] sm:$0xff] }
  0xed   :  { %v998_v20 = vpop.f32.mrf.mxu0  ;;  %7945 = vmatprep.mubr.msk.f32.mxu0 %vm259_vm1, %v158_v58  ;;  %v2349_v8 = vld [vmem:[#allocation2 + $0xd8] sm:$0xff] }
  0xee   :  { %2141 = vst.msk [vmem:[#allocation2 + $0x108] sm:$0xff] %vm2093_vm2, %v1911_v17  ;;  %v1914_v21 = vmax.f32 %v1004_v18, 0.0  ;;  %v999_v22 = vadd.f32 %v9135_v52, %v998_v20  ;;  %7946 = vmatmul.mubr.msk.f32.gmra.mxu0 %vm259_vm1, %v159_v63  ;;  %v9421_v18 = vpop.permute.xlu0 %2797 }
  0xef   :  { %v7818_v25 = vpop.f32.mrf.mxu0  ;;  %v2352_v33 = vld [vmem:[#allocation2 + $0xf0] sm:$0xff]  ;;  %7948 = vmatprep.mubr.msk.f32.mxu0 %vm259_vm1, %v160_v3 }
  0xf0   :  { %3191 = vrot.lane.b32.xlu0 %v2345_v24, %s8585_s19  ;;  %3349 = vrot.lane.b32.xlu1 %v9305_v19, %s8584_s24  ;;  %2144 = vst.msk [vmem:[#allocation2 + $0x120] sm:$0xff] %vm2093_vm2, %v1914_v21  ;;  %v1913_v28 = vmax.f32 %v999_v22, 0.0  ;;  %v1014_v29 = vadd.f32 %v7818_v25, %v9135_v52 }
  0xf1   :  { %v1008_v34 = vpop.f32.mrf.mxu0  ;;  %v2351_v21 = vld [vmem:[#allocation2 + $0xe8] sm:$0xff] }
  0xf2   :  { %2143 = vst.msk [vmem:[#allocation2 + $0x118] sm:$0xff] %vm2093_vm2, %v1913_v28  ;;  %v1916_v35 = vmax.f32 %v1014_v29, 0.0  ;;  %v1009_v36 = vadd.f32 %v9135_v52, %v1008_v34  ;;  %7949 = vmatmul.mubr.msk.f32.gmra.mxu0 %vm259_vm1, %v161_v11 }
  0xf3   :  { %v7821_v38 = vpop.f32.mrf.mxu0  ;;  %v9357_v44 = vld [vmem:[#allocation2 + $0x110] sm:$0xff]  ;;  %7951 = vmatprep.mubr.msk.f32.mxu0 %vm259_vm1, %v162_v15 }
  0xf4   :  { %2999 = vrot.lane.b32.xlu0 %v2348_v9, %s8582_s21  ;;  %3351 = vrot.lane.b32.xlu1 %v2352_v33, %s8584_s24  ;;  %2146 = vst.msk [vmem:[#allocation2 + $0x130] sm:$0xff] %vm2093_vm2, %v1916_v35  ;;  %v1915_v41 = vmax.f32 %v1009_v36, 0.0  ;;  %v1024_v42 = vadd.f32 %v7821_v38, %v9135_v52  ;;  %v9447_v33 = vpop.permute.xlu0 %2603  ;;  %v166_v36 = vld [vmem:[%s13546_s27 + $0x380] sm:$0xff] }
  0xf5   :  { %v1018_v45 = vpop.f32.mrf.mxu0  ;;  %v2354_v9 = vld [vmem:[#allocation2 + $0x108] sm:$0xff] }
  0xf6   :  { %2145 = vst.msk [vmem:[#allocation2 + $0x128] sm:$0xff] %vm2093_vm2, %v1915_v41  ;;  %v1918_v46 = vmax.f32 %v1024_v42, 0.0  ;;  %v1019_v47 = vadd.f32 %v9135_v52, %v1018_v45  ;;  %7952 = vmatmul.mubr.msk.f32.gmra.mxu0 %vm259_vm1, %v163_v23  ;;  %v167_v42 = vld [vmem:[%s13546_s27 + $0x388] sm:$0xff] }
  0xf7   :  { %v7824_v51 = vpop.f32.mrf.mxu0  ;;  %v2357_v16 = vld [vmem:[#allocation2 + $0x120] sm:$0xff]  ;;  %7954 = vmatprep.mubr.msk.f32.mxu0 %vm259_vm1, %v164_v26 }
  0xf8   :  { %3193 = vrot.lane.b32.xlu0 %v2347_v50, %s8585_s19  ;;  %3801 = vrot.lane.b32.xlu1 %v9357_v44, %s8586_s28  ;;  %2148 = vst.msk [vmem:[#allocation2 + $0x140] sm:$0xff] %vm2093_vm2, %v1918_v46  ;;  %v1917_v55 = vmax.f32 %v1019_v47, 0.0  ;;  %v1034_v56 = vadd.f32 %v7824_v51, %v9135_v52  ;;  %v9465_v47 = vpop.permute.xlu0 %2799 }
  0xf9   :  { %v1028_v59 = vpop.f32.mrf.mxu0  ;;  %v2356_v40 = vld [vmem:[#allocation2 + $0x118] sm:$0xff] }
  0xfa   :  { %2147 = vst.msk [vmem:[#allocation2 + $0x138] sm:$0xff] %vm2093_vm2, %v1917_v55  ;;  %v1920_v60 = vmax.f32 %v1034_v56, 0.0  ;;  %v1029_v61 = vadd.f32 %v9135_v52, %v1028_v59  ;;  %7955 = vmatmul.mubr.msk.f32.gmra.mxu0 %vm259_vm1, %v165_v32 }
  0xfb   :  { %v7827_v62 = vpop.f32.mrf.mxu0  ;;  %7957 = vmatprep.mubr.msk.f32.mxu0 %vm259_vm1, %v166_v36  ;;  %v2359_v45 = vld [vmem:[#allocation2 + $0x130] sm:$0xff] }
  0xfc   :  { %3001 = vrot.lane.b32.xlu0 %v9305_v19, %s8582_s21  ;;  %3501 = vrot.lane.b32.xlu1 %v9357_v44, %s8583_s26  ;;  %2150 = vst.msk [vmem:[#allocation2 + $0x150] sm:$0xff] %vm2093_vm2, %v1920_v60  ;;  %v1919_v1 = vmax.f32 %v1029_v61, 0.0  ;;  %v1044_v2 = vadd.f32 %v7827_v62, %v9135_v52  ;;  %v9478_v60 = vpop.permute.xlu0 %2605 }
  0xfd   :  { %v1038_v5 = vpop.f32.mrf.mxu0  ;;  %v2358_v3 = vld [vmem:[#allocation2 + $0x128] sm:$0xff] }
  0xfe   :  { %2149 = vst.msk [vmem:[#allocation2 + $0x148] sm:$0xff] %vm2093_vm2, %v1919_v1  ;;  %v1922_v6 = vmax.f32 %v1044_v2, 0.0  ;;  %v1039_v7 = vadd.f32 %v9135_v52, %v1038_v5  ;;  %7958 = vmatmul.mubr.msk.f32.gmra.mxu0 %vm259_vm1, %v167_v42  ;;  %v170_v42 = vld [vmem:[%s13546_s27 + $0x3a0] sm:$0xff] }
  0xff   :  { %v7830_v10 = vpop.f32.mrf.mxu0 }
 0x100   :  { %3195 = vrot.lane.b32.xlu0 %v2349_v8, %s8585_s19  ;;  %3653 = vrot.lane.b32.xlu1 %v2354_v9, %s8588_s30  ;;  %2152 = vst.msk [vmem:[#allocation2 + $0x160] sm:$0xff] %vm2093_vm2, %v1922_v6  ;;  %v1921_v13 = vmax.f32 %v1039_v7, 0.0  ;;  %v1054_v14 = vadd.f32 %v7830_v10, %v9135_v52  ;;  %v168_v6 = vld [vmem:[%s13546_s27 + $0x390] sm:$0xff]  ;;  %v2361_v10 = vld [vmem:[#allocation2 + $0x140] sm:$0xff] }
 0x101   :  { %v1048_v17 = vpop.f32.mrf.mxu0  ;;  %7960 = vmatprep.mubr.msk.f32.mxu0 %vm259_vm1, %v168_v6 }
 0x102   :  { %2151 = vst.msk [vmem:[#allocation2 + $0x158] sm:$0xff] %vm2093_vm2, %v1921_v13  ;;  %v1924_v19 = vmax.f32 %v1054_v14, 0.0  ;;  %v1049_v20 = vadd.f32 %v9135_v52, %v1048_v17  ;;  %v9495_v13 = vpop.permute.xlu0 %2801 }
 0x103   :  { %v7833_v22 = vpop.f32.mrf.mxu0  ;;  %v2363_v36 = vld [vmem:[#allocation2 + $0x150] sm:$0xff] }
 0x104   :  { %3197 = vrot.lane.b32.xlu0 %v2351_v21, %s8585_s19  ;;  %3803 = vrot.lane.b32.xlu1 %v2357_v16, %s8586_s28  ;;  %2154 = vst.msk [vmem:[#allocation2 + $0x170] sm:$0xff] %vm2093_vm2, %v1924_v19  ;;  %v1923_v24 = vmax.f32 %v1049_v20, 0.0  ;;  %v1064_v25 = vadd.f32 %v7833_v22, %v9135_v52 }
 0x105   :  { %v1058_v27 = vpop.f32.mrf.mxu0 }
 0x106   :  { %2153 = vst.msk [vmem:[#allocation2 + $0x168] sm:$0xff] %vm2093_vm2, %v1923_v24  ;;  %v1926_v28 = vmax.f32 %v1064_v25, 0.0  ;;  %v1059_v29 = vadd.f32 %v9135_v52, %v1058_v27  ;;  %v9508_v24 = vpop.permute.xlu0 %2607 }
 0x107   :  { %v7836_v31 = vpop.f32.mrf.mxu0 }
 0x108   :  { %2807 = vrot.lane.b32.xlu0 %v9357_v44, %s8581_s18  ;;  %3503 = vrot.lane.b32.xlu1 %v2357_v16, %s8583_s26  ;;  %2156 = vst.msk [vmem:[#allocation2 + $0x190] sm:$0xff] %vm2093_vm2, %v1926_v28  ;;  %v1925_v34 = vmax.f32 %v1059_v29, 0.0  ;;  %v1074_v35 = vadd.f32 %v7836_v31, %v9135_v52  ;;  %v2360_v31 = vld [vmem:[#allocation2 + $0x138] sm:$0xff] }
 0x109   :  { %v1068_v37 = vpop.f32.mrf.mxu0 }
 0x10a   :  { %2155 = vst.msk [vmem:[#allocation2 + $0x188] sm:$0xff] %vm2093_vm2, %v1925_v34  ;;  %v1928_v38 = vmax.f32 %v1074_v35, 0.0  ;;  %v1069_v39 = vadd.f32 %v9135_v52, %v1068_v37 }
 0x10b   :  { %v7839_v41 = vpop.f32.mrf.mxu0 }
 0x10c   :  { %2611 = vrot.lane.b32.xlu0 %v2354_v9, %s8580_s29  ;;  %3655 = vrot.lane.b32.xlu1 %v2356_v40, %s8588_s30  ;;  %2158 = vst.msk [vmem:[#allocation2 + $0x1a0] sm:$0xff] %vm2093_vm2, %v1928_v38  ;;  %v1927_v43 = vmax.f32 %v1069_v39, 0.0  ;;  %v1084_v44 = vadd.f32 %v7839_v41, %v9135_v52  ;;  %v169_v9 = vld [vmem:[%s13546_s27 + $0x398] sm:$0xff]  ;;  %v9518_v38 = vpop.permute.xlu0 %2803 }
 0x10d   :  { %v1078_v46 = vpop.f32.mrf.mxu0  ;;  %7961 = vmatmul.mubr.msk.f32.gmra.mxu0 %vm259_vm1, %v169_v9 }
 0x10e   :  { %2157 = vst.msk [vmem:[#allocation2 + $0x198] sm:$0xff] %vm2093_vm2, %v1927_v43  ;;  %v1930_v49 = vmax.f32 %v1084_v44, 0.0  ;;  %v1079_v50 = vadd.f32 %v9135_v52, %v1078_v46  ;;  %7963 = vmatprep.mubr.msk.f32.mxu0 %vm259_vm1, %v170_v42 }
 0x10f   :  { %v7842_v51 = vpop.f32.mrf.mxu0 }
 0x110   :  { %2809 = vrot.lane.b32.xlu0 %v2357_v16, %s8581_s18  ;;  %3805 = vrot.lane.b32.xlu1 %v2359_v45, %s8586_s28  ;;  %2160 = vst.msk [vmem:[#allocation2 + $0x1b0] sm:$0xff] %vm2093_vm2, %v1930_v49  ;;  %v1929_v53 = vmax.f32 %v1079_v50, 0.0  ;;  %v1094_v55 = vadd.f32 %v7842_v51, %v9135_v52  ;;  %v2362_v51 = vld [vmem:[#allocation2 + $0x148] sm:$0xff] }
 0x111   :  { %v1088_v56 = vpop.f32.mrf.mxu0 }
 0x112   :  { %2159 = vst.msk [vmem:[#allocation2 + $0x1a8] sm:$0xff] %vm2093_vm2, %v1929_v53  ;;  %v1932_v57 = vmax.f32 %v1094_v55, 0.0  ;;  %v1089_v58 = vadd.f32 %v9135_v52, %v1088_v56  ;;  %v9538_v55 = vpop.permute.xlu1 %2989  ;;  %v9540_v56 = vpop.permute.xlu0 %2609 }
 0x113   :  { %v7845_v59 = vpop.f32.mrf.mxu0 }
 0x114   :  { %2613 = vrot.lane.b32.xlu0 %v2356_v40, %s8580_s29  ;;  %3505 = vrot.lane.b32.xlu1 %v2359_v45, %s8583_s26  ;;  %2162 = vst.msk [vmem:[#allocation2 + $0x1c0] sm:$0xff] %vm2093_vm2, %v1932_v57  ;;  %v1931_v61 = vmax.f32 %v1089_v58, 0.0  ;;  %v1104_v62 = vadd.f32 %v7845_v59, %v9135_v52  ;;  %v2365_v59 = vld [vmem:[#allocation2 + $0x160] sm:$0xff] }
 0x115   :  { %v1098_v63 = vpop.f32.mrf.mxu0 }
 0x116   :  { %2161 = vst.msk [vmem:[#allocation2 + $0x1b8] sm:$0xff] %vm2093_vm2, %v1931_v61  ;;  %v1934_v1 = vmax.f32 %v1104_v62, 0.0  ;;  %v1099_v2 = vadd.f32 %v9135_v52, %v1098_v63  ;;  %v9555_v9 = vpop.permute.xlu0 %2805 }
 0x117   :  { %v7848_v5 = vpop.f32.mrf.mxu0 }
 0x118   :  { %2811 = vrot.lane.b32.xlu0 %v2359_v45, %s8581_s18  ;;  %3657 = vrot.lane.b32.xlu1 %v2358_v3, %s8588_s30  ;;  %2164 = vst.msk [vmem:[#allocation2 + $0x1d0] sm:$0xff] %vm2093_vm2, %v1934_v1  ;;  %v1933_v7 = vmax.f32 %v1099_v2, 0.0  ;;  %v1114_v8 = vadd.f32 %v7848_v5, %v9135_v52  ;;  %v171_v45 = vld [vmem:[%s13546_s27 + $0x3a8] sm:$0xff]  ;;  %v2364_v5 = vld [vmem:[#allocation2 + $0x158] sm:$0xff] }
 0x119   :  { %v1108_v11 = vpop.f32.mrf.mxu0  ;;  %7964 = vmatmul.mubr.msk.f32.gmra.mxu0 %vm259_vm1, %v171_v45 }
 0x11a   :  { %2163 = vst.msk [vmem:[#allocation2 + $0x1c8] sm:$0xff] %vm2093_vm2, %v1933_v7  ;;  %v1936_v14 = vmax.f32 %v1114_v8, 0.0  ;;  %v1109_v15 = vadd.f32 %v9135_v52, %v1108_v11  ;;  %v172_v7 = vld [vmem:[%s13546_s27 + $0x3b0] sm:$0xff]  ;;  %v9553_v8 = vpop.permute.xlu1 %3499 }
 0x11b   :  { %v7851_v16 = vpop.f32.mrf.mxu0  ;;  %7966 = vmatprep.mubr.msk.f32.mxu0 %vm259_vm1, %v172_v7 }
 0x11c   :  { %2615 = vrot.lane.b32.xlu0 %v2358_v3, %s8580_s29  ;;  %3807 = vrot.lane.b32.xlu1 %v2361_v10, %s8586_s28  ;;  %2166 = vst.msk [vmem:[#allocation2 + $0x1e0] sm:$0xff] %vm2093_vm2, %v1936_v14  ;;  %v1935_v17 = vmax.f32 %v1109_v15, 0.0  ;;  %v1124_v19 = vadd.f32 %v7851_v16, %v9135_v52  ;;  %v173_v14 = vld [vmem:[%s13546_s27 + $0x3b8] sm:$0xff] }
 0x11d   :  { %v1118_v20 = vpop.f32.mrf.mxu0  ;;  %7967 = vmatmul.mubr.msk.f32.gmra.mxu0 %vm259_vm1, %v173_v14  ;;  %v2372_v14 = vld [vmem:[#allocation2 + $0x1a0] sm:$0xff] }
 0x11e   :  { %2165 = vst.msk [vmem:[#allocation2 + $0x1d8] sm:$0xff] %vm2093_vm2, %v1935_v17  ;;  %v1938_v21 = vmax.f32 %v1124_v19, 0.0  ;;  %v1119_v22 = vadd.f32 %v9135_v52, %v1118_v20  ;;  %v174_v19 = vld [vmem:[%s13546_s27 + $0x3c0] sm:$0xff]  ;;  %v2367_v20 = vld [vmem:[#allocation2 + $0x170] sm:$0xff] }
 0x11f   :  { %v7854_v23 = vpop.f32.mrf.mxu0  ;;  %7969 = vmatprep.mubr.msk.f32.mxu0 %vm259_vm1, %v174_v19 }
 0x120   :  { %2813 = vrot.lane.b32.xlu0 %v2361_v10, %s8581_s18  ;;  %3507 = vrot.lane.b32.xlu1 %v2361_v10, %s8583_s26  ;;  %2168 = vst.msk [vmem:[#allocation2 + $0x1f0] sm:$0xff] %vm2093_vm2, %v1938_v21  ;;  %v1937_v25 = vmax.f32 %v1119_v22, 0.0  ;;  %v1134_v26 = vadd.f32 %v7854_v23, %v9135_v52 }
 0x121   :  { %v1128_v27 = vpop.f32.mrf.mxu0 }
 0x122   :  { %2167 = vst.msk [vmem:[#allocation2 + $0x1e8] sm:$0xff] %vm2093_vm2, %v1937_v25  ;;  %v1940_v28 = vmax.f32 %v1134_v26, 0.0  ;;  %v1129_v29 = vadd.f32 %v9135_v52, %v1128_v27  ;;  %v175_v25 = vld [vmem:[%s13546_s27 + $0x3c8] sm:$0xff]  ;;  %v9580_v27 = vpop.permute.xlu1 %3513 }
 0x123   :  { %v7857_v32 = vpop.f32.mrf.mxu0  ;;  %7970 = vmatmul.mubr.msk.f32.gmra.mxu0 %vm259_vm1, %v175_v25 }
 0x124   :  { %2617 = vrot.lane.b32.xlu0 %v2360_v31, %s8580_s29  ;;  %3659 = vrot.lane.b32.xlu1 %v2360_v31, %s8588_s30  ;;  %2170 = vst.msk [vmem:[#allocation2 + $0x210] sm:$0xff] %vm2093_vm2, %v1940_v28  ;;  %v1939_v34 = vmax.f32 %v1129_v29, 0.0  ;;  %v1144_v35 = vadd.f32 %v7857_v32, %v9135_v52  ;;  %v9582_v28 = vpop.permute.xlu0 %3003  ;;  %v2366_v32 = vld [vmem:[#allocation2 + $0x168] sm:$0xff] }
 0x125   :  { %v1138_v37 = vpop.f32.mrf.mxu0 }
 0x126   :  { %2169 = vst.msk [vmem:[#allocation2 + $0x208] sm:$0xff] %vm2093_vm2, %v1939_v34  ;;  %v1942_v39 = vmax.f32 %v1144_v35, 0.0  ;;  %v1139_v40 = vadd.f32 %v9135_v52, %v1138_v37  ;;  %v176_v35 = vld [vmem:[%s13546_s27 + $0x3d0] sm:$0xff] }
 0x127   :  { %v7860_v41 = vpop.f32.mrf.mxu0  ;;  %7972 = vmatprep.mubr.msk.f32.mxu0 %vm259_vm1, %v176_v35 }
 0x128   :  { %2815 = vrot.lane.b32.xlu0 %v2363_v36, %s8581_s18  ;;  %3809 = vrot.lane.b32.xlu1 %v2363_v36, %s8586_s28  ;;  %2172 = vst.msk [vmem:[#allocation2 + $0x220] sm:$0xff] %vm2093_vm2, %v1942_v39  ;;  %v1941_v43 = vmax.f32 %v1139_v40, 0.0  ;;  %v1154_v44 = vadd.f32 %v7860_v41, %v9135_v52  ;;  %v177_v39 = vld [vmem:[%s13546_s27 + $0x3d8] sm:$0xff] }
 0x129   :  { %v1148_v46 = vpop.f32.mrf.mxu0  ;;  %7973 = vmatmul.mubr.msk.f32.gmra.mxu0 %vm259_vm1, %v177_v39 }
 0x12a   :  { %2171 = vst.msk [vmem:[#allocation2 + $0x218] sm:$0xff] %vm2093_vm2, %v1941_v43  ;;  %v1944_v49 = vmax.f32 %v1154_v44, 0.0  ;;  %v1149_v50 = vadd.f32 %v9135_v52, %v1148_v46  ;;  %v178_v43 = vld [vmem:[%s13546_s27 + $0x3e0] sm:$0xff]  ;;  %v2370_v44 = vld [vmem:[#allocation2 + $0x190] sm:$0xff]  ;;  %v9604_v46 = vpop.permute.xlu1 %3527 }
 0x12b   :  { %v7863_v53 = vpop.f32.mrf.mxu0  ;;  %7975 = vmatprep.mubr.msk.f32.mxu0 %vm259_vm1, %v178_v43 }
 0x12c   :  { %2619 = vrot.lane.b32.xlu0 %v2362_v51, %s8580_s29  ;;  %3509 = vrot.lane.b32.xlu1 %v2363_v36, %s8583_s26  ;;  %2174 = vst.msk [vmem:[#allocation2 + $0x230] sm:$0xff] %vm2093_vm2, %v1944_v49  ;;  %v1943_v57 = vmax.f32 %v1149_v50, 0.0  ;;  %v1164_v58 = vadd.f32 %v7863_v53, %v9135_v52  ;;  %v9606_v49 = vpop.permute.xlu0 %3017  ;;  %v179_v53 = vld [vmem:[%s13546_s27 + $0x3e8] sm:$0xff] }
 0x12d   :  { %v1158_v61 = vpop.f32.mrf.mxu0  ;;  %7976 = vmatmul.mubr.msk.f32.gmra.mxu0 %vm259_vm1, %v179_v53 }
 0x12e   :  { %2173 = vst.msk [vmem:[#allocation2 + $0x228] sm:$0xff] %vm2093_vm2, %v1943_v57  ;;  %v1946_v62 = vmax.f32 %v1164_v58, 0.0  ;;  %v1159_v63 = vadd.f32 %v9135_v52, %v1158_v61  ;;  %v180_v61 = vld [vmem:[%s13546_s27 + $0x3f0] sm:$0xff] }
 0x12f   :  { %v7866_v1 = vpop.f32.mrf.mxu0  ;;  %7978 = vmatprep.mubr.msk.f32.mxu0 %vm259_vm1, %v180_v61 }
 0x130   :  { %2817 = vrot.lane.b32.xlu0 %v2365_v59, %s8581_s18  ;;  %3661 = vrot.lane.b32.xlu1 %v2362_v51, %s8588_s30  ;;  %2176 = vst.msk [vmem:[#allocation2 + $0x240] sm:$0xff] %vm2093_vm2, %v1946_v62  ;;  %v1945_v2 = vmax.f32 %v1159_v63, 0.0  ;;  %v1174_v3 = vadd.f32 %v7866_v1, %v9135_v52  ;;  %v2369_v62 = vld [vmem:[#allocation2 + $0x188] sm:$0xff]  ;;  %v9632_v7 = vpop.permute.xlu0 %3031 }
 0x131   :  { %v1168_v6 = vpop.f32.mrf.mxu0 }
 0x132   :  { %2175 = vst.msk [vmem:[#allocation2 + $0x238] sm:$0xff] %vm2093_vm2, %v1945_v2  ;;  %v1948_v10 = vmax.f32 %v1174_v3, 0.0  ;;  %v1169_v11 = vadd.f32 %v9135_v52, %v1168_v6  ;;  %v181_v3 = vld [vmem:[%s13546_s27 + $0x3f8] sm:$0xff]  ;;  %v9630_v6 = vpop.permute.xlu1 %3541 }
 0x133   :  { %v7869_v15 = vpop.f32.mrf.mxu0  ;;  %7979 = vmatmul.mubr.msk.f32.gmra.mxu0 %vm259_vm1, %v181_v3 }
 0x134   :  { %2621 = vrot.lane.b32.xlu0 %v2364_v5, %s8580_s29  ;;  %3811 = vrot.lane.b32.xlu1 %v2365_v59, %s8586_s28  ;;  %2178 = vst.msk [vmem:[#allocation2 + $0x250] sm:$0xff] %vm2093_vm2, %v1948_v10  ;;  %v1947_v16 = vmax.f32 %v1169_v11, 0.0  ;;  %v1184_v17 = vadd.f32 %v7869_v15, %v9135_v52 }
 0x135   :  { %v1178_v21 = vpop.f32.mrf.mxu0 }
 0x136   :  { %2177 = vst.msk [vmem:[#allocation2 + $0x248] sm:$0xff] %vm2093_vm2, %v1947_v16  ;;  %v1950_v22 = vmax.f32 %v1184_v17, 0.0  ;;  %v1179_v23 = vadd.f32 %v9135_v52, %v1178_v21 }
 0x137   :  { %v7872_v26 = vpop.f32.mrf.mxu0 }
 0x138   :  { %2819 = vrot.lane.b32.xlu0 %v2367_v20, %s8581_s18  ;;  %3511 = vrot.lane.b32.xlu1 %v2365_v59, %s8583_s26  ;;  %2180 = vst.msk [vmem:[#allocation2 + $0x260] sm:$0xff] %vm2093_vm2, %v1950_v22  ;;  %v1949_v29 = vmax.f32 %v1179_v23, 0.0  ;;  %v1194_v31 = vadd.f32 %v7872_v26, %v9135_v52  ;;  %v2371_v22 = vld [vmem:[#allocation2 + $0x198] sm:$0xff] }
 0x139   :  { %v1188_v34 = vpop.f32.mrf.mxu0 }
 0x13a   :  { %2179 = vst.msk [vmem:[#allocation2 + $0x258] sm:$0xff] %vm2093_vm2, %v1949_v29  ;;  %v1952_v36 = vmax.f32 %v1194_v31, 0.0  ;;  %v1189_v37 = vadd.f32 %v9135_v52, %v1188_v34  ;;  %v9650_v31 = vld [vmem:[%s13505_s2] ss:$0 sm:$0xff] }
 0x13b   :  { %v7875_v40 = vpop.f32.mrf.mxu0 }
 0x13c   :  { %2623 = vrot.lane.b32.xlu0 %v2366_v32, %s8580_s29  ;;  %3663 = vrot.lane.b32.xlu1 %v2364_v5, %s8588_s30  ;;  %2182 = vst.msk [vmem:[#allocation2 + $0x270] sm:$0xff] %vm2093_vm2, %v1952_v36  ;;  %v1951_v41 = vmax.f32 %v1189_v37, 0.0  ;;  %v1204_v42 = vadd.f32 %v7875_v40, %v9135_v52  ;;  %v2374_v36 = vld [vmem:[#allocation2 + $0x1b0] sm:$0xff] }
 0x13d   :  { %v1198_v45 = vpop.f32.mrf.mxu0 }
 0x13e   :  { %2181 = vst.msk [vmem:[#allocation2 + $0x268] sm:$0xff] %vm2093_vm2, %v1951_v41  ;;  %v1954_v50 = vmax.f32 %v1204_v42, 0.0  ;;  %v1199_v51 = vadd.f32 %v9135_v52, %v1198_v45 }
 0x13f   :  { %v7878_v57 = vpop.f32.mrf.mxu0 }
 0x140   :  { %3005 = vrot.lane.b32.xlu0 %v2370_v44, %s8582_s21  ;;  %3813 = vrot.lane.b32.xlu1 %v2367_v20, %s8586_s28  ;;  %2184 = vst.msk [vmem:[#allocation2 + $0x290] sm:$0xff] %vm2093_vm2, %v1954_v50  ;;  %v1953_v58 = vmax.f32 %v1199_v51, 0.0  ;;  %v1214_v59 = vadd.f32 %v7878_v57, %v9135_v52  ;;  %v182_v50 = vld [vmem:[%s13546_s27 + $0x400] sm:$0xff] }
 0x141   :  { %v1208_v63 = vpop.f32.mrf.mxu0  ;;  %v2376_v51 = vld [vmem:[#allocation2 + $0x1c0] sm:$0xff]  ;;  %7981 = vmatprep.mubr.msk.f32.mxu0 %vm259_vm1, %v182_v50 }
 0x142   :  { %2183 = vst.msk [vmem:[#allocation2 + $0x288] sm:$0xff] %vm2093_vm2, %v1953_v58  ;;  %v1956_v1 = vmax.f32 %v1214_v59, 0.0  ;;  %v1209_v2 = vadd.f32 %v9135_v52, %v1208_v63  ;;  %v2373_v63 = vld [vmem:[#allocation2 + $0x1a8] sm:$0xff] }
 0x143   :  { %v7881_v5 = vpop.f32.mrf.mxu0 }
 0x144   :  { %3199 = vrot.lane.b32.xlu0 %v2369_v62, %s8585_s19  ;;  %3665 = vrot.lane.b32.xlu1 %v2366_v32, %s8588_s30  ;;  %2186 = vst.msk [vmem:[#allocation2 + $0x2a0] sm:$0xff] %vm2093_vm2, %v1956_v1  ;;  %v1955_v10 = vmax.f32 %v1209_v2, 0.0  ;;  %v1224_v11 = vadd.f32 %v7881_v5, %v9135_v52  ;;  %v183_v62 = vld [vmem:[%s13546_s27 + $0x408] sm:$0xff]  ;;  %v2378_v5 = vld [vmem:[#allocation2 + $0x1d0] sm:$0xff] }
 0x145   :  { %v1218_v15 = vpop.f32.mrf.mxu0  ;;  %7982 = vmatmul.mubr.msk.f32.gmra.mxu0 %vm259_vm1, %v183_v62 }
 0x146   :  { %2185 = vst.msk [vmem:[#allocation2 + $0x298] sm:$0xff] %vm2093_vm2, %v1955_v10  ;;  %v1958_v16 = vmax.f32 %v1224_v11, 0.0  ;;  %v1219_v17 = vadd.f32 %v9135_v52, %v1218_v15 }
 0x147   :  { %v7884_v19 = vpop.f32.mrf.mxu0 }
 0x148   :  { %3007 = vrot.lane.b32.xlu0 %v2372_v14, %s8582_s21  ;;  %3353 = vrot.lane.b32.xlu1 %v2370_v44, %s8584_s24  ;;  %2188 = vst.msk [vmem:[#allocation2 + $0x2b0] sm:$0xff] %vm2093_vm2, %v1958_v16  ;;  %v1957_v20 = vmax.f32 %v1219_v17, 0.0  ;;  %v1234_v21 = vadd.f32 %v7884_v19, %v9135_v52 }
 0x149   :  { %v1228_v23 = vpop.f32.mrf.mxu0 }
 0x14a   :  { %v9642_v25 = vpop.permute.xlu0 %2991  ;;  %v9644_v26 = vpop.permute.xlu1 %3339  ;;  %2187 = vst.msk [vmem:[#allocation2 + $0x2a8] sm:$0xff] %vm2093_vm2, %v1957_v20  ;;  %v1960_v29 = vmax.f32 %v1234_v21, 0.0  ;;  %v1229_v32 = vadd.f32 %v9650_v31, %v1228_v23  ;;  %v2380_v21 = vld [vmem:[#allocation2 + $0x1e0] sm:$0xff] }
 0x14b   :  { %v7887_v34 = vpop.f32.mrf.mxu0 }
 0x14c   :  { %3201 = vrot.lane.b32.xlu0 %v2371_v22, %s8585_s19  ;;  %3355 = vrot.lane.b32.xlu1 %v2372_v14, %s8584_s24  ;;  %2190 = vst.msk [vmem:[#allocation2 + $0x2c0] sm:$0xff] %vm2093_vm2, %v1960_v29  ;;  %v1959_v52 = vmax.f32 %v1229_v32, 0.0  ;;  %v1244_v35 = vadd.f32 %v9650_v31, %v7887_v34 }
 0x14d   :  { %v1238_v37 = vpop.f32.mrf.mxu0 }
 0x14e   :  { %v9657_v39 = vpop.permute.xlu0 %2993  ;;  %v9659_v40 = vpop.permute.xlu1 %3185  ;;  %2189 = vst.msk [vmem:[#allocation2 + $0x2b8] sm:$0xff] %vm2093_vm2, %v1959_v52  ;;  %v1962_v41 = vmax.f32 %v1244_v35, 0.0  ;;  %v1239_v42 = vadd.f32 %v9650_v31, %v1238_v37  ;;  %v2375_v52 = vld [vmem:[#allocation2 + $0x1b8] sm:$0xff] }
 0x14f   :  { %v7890_v43 = vpop.f32.mrf.mxu0 }
 0x150   :  { %3009 = vrot.lane.b32.xlu0 %v2374_v36, %s8582_s21  ;;  %3357 = vrot.lane.b32.xlu1 %v2374_v36, %s8584_s24  ;;  %2192 = vst.msk [vmem:[#allocation2 + $0x2d0] sm:$0xff] %vm2093_vm2, %v1962_v41  ;;  %v1961_v44 = vmax.f32 %v1239_v42, 0.0  ;;  %v1254_v45 = vadd.f32 %v9650_v31, %v7890_v43  ;;  %v2382_v41 = vld [vmem:[#allocation2 + $0x1f0] sm:$0xff] }
 0x151   :  { %v1248_v53 = vpop.f32.mrf.mxu0 }
 0x152   :  { %v9671_v57 = vpop.permute.xlu0 %3187  ;;  %v9673_v58 = vpop.permute.xlu1 %3341  ;;  %2191 = vst.msk [vmem:[#allocation2 + $0x2c8] sm:$0xff] %vm2093_vm2, %v1961_v44  ;;  %v1964_v59 = vmax.f32 %v1254_v45, 0.0  ;;  %v1249_v61 = vadd.f32 %v9650_v31, %v1248_v53 }
 0x153   :  { %v7893_v1 = vpop.f32.mrf.mxu0 }
 0x154   :  { %3203 = vrot.lane.b32.xlu0 %v2373_v63, %s8585_s19  ;;  %3359 = vrot.lane.b32.xlu1 %v2376_v51, %s8584_s24  ;;  %2194 = vst.msk [vmem:[#allocation2 + $0x2e0] sm:$0xff] %vm2093_vm2, %v1964_v59  ;;  %v1963_v2 = vmax.f32 %v1249_v61, 0.0  ;;  %v1264_v3 = vadd.f32 %v9650_v31, %v7893_v1  ;;  %v9715_v61 = vld [vmem:[#allocation2 + $0x210] sm:$0xff]  ;;  %v2323_v1 = vld [vmem:[#allocation2] sm:$0xff] }
 0x155   :  { %v1258_v10 = vpop.f32.mrf.mxu0  ;;  %v184_v63 = vld [vmem:[%s13546_s27 + $0x410] sm:$0xff] }
 0x156   :  { %v9685_v11 = vpop.permute.xlu0 %2995  ;;  %v9687_v14 = vpop.permute.xlu1 %3343  ;;  %2193 = vst.msk [vmem:[#allocation2 + $0x2d8] sm:$0xff] %vm2093_vm2, %v1963_v2  ;;  %v1966_v15 = vmax.f32 %v1264_v3, 0.0  ;;  %v1259_v16 = vadd.f32 %v9650_v31, %v1258_v10  ;;  %7984 = vmatprep.mubr.msk.f32.mxu0 %vm259_vm1, %v184_v63  ;;  %v189_v63 = vld [vmem:[%s13546_s27 + $0x438] sm:$0xff] }
 0x157   :  { %v7896_v17 = vpop.f32.mrf.mxu0 }
 0x158   :  { %3011 = vrot.lane.b32.xlu0 %v2376_v51, %s8582_s21  ;;  %3361 = vrot.lane.b32.xlu1 %v2378_v5, %s8584_s24  ;;  %2196 = vst.msk [vmem:[#allocation2 + $0x2f0] sm:$0xff] %vm2093_vm2, %v1966_v15  ;;  %v1965_v19 = vmax.f32 %v1259_v16, 0.0  ;;  %v1274_v20 = vadd.f32 %v9650_v31, %v7896_v17  ;;  %v185_v15 = vld [vmem:[%s13546_s27 + $0x418] sm:$0xff]  ;;  %v2377_v16 = vld [vmem:[#allocation2 + $0x1c8] sm:$0xff] }
 0x159   :  { %v1268_v22 = vpop.f32.mrf.mxu0  ;;  %7985 = vmatmul.mubr.msk.f32.gmra.mxu0 %vm259_vm1, %v185_v15 }
 0x15a   :  { %v9695_v23 = vpop.permute.xlu0 %3189  ;;  %v9697_v29 = vpop.permute.xlu1 %3345  ;;  %2195 = vst.msk [vmem:[#allocation2 + $0x2e8] sm:$0xff] %vm2093_vm2, %v1965_v19  ;;  %v1968_v32 = vmax.f32 %v1274_v20, 0.0  ;;  %v1269_v34 = vadd.f32 %v9650_v31, %v1268_v22  ;;  %v3948_v19 = vsel %vm2093_vm2, %v2323_v1, %v9247_v54  ;;  %v9777_v1 = vld [vmem:[#allocation2 + $0x220] sm:$0xff] }
 0x15b   :  { %v7899_v35 = vpop.f32.mrf.mxu0 }
 0x15c   :  { %3205 = vrot.lane.b32.xlu0 %v2375_v52, %s8585_s19  ;;  %3363 = vrot.lane.b32.xlu1 %v2380_v21, %s8584_s24  ;;  %2198 = vst.msk [vmem:[#allocation2 + $0x310] sm:$0xff] %vm2093_vm2, %v1968_v32  ;;  %v1967_v36 = vmax.f32 %v1269_v34, 0.0  ;;  %v1284_v37 = vadd.f32 %v9650_v31, %v7899_v35  ;;  %v186_v35 = vld [vmem:[%s13546_s27 + $0x420] sm:$0xff] }
 0x15d   :  { %v1278_v42 = vpop.f32.mrf.mxu0  ;;  %7987 = vmatprep.mubr.msk.f32.mxu0 %vm259_vm1, %v186_v35 }
 0x15e   :  { %v9705_v43 = vpop.permute.xlu0 %2997  ;;  %v9707_v44 = vpop.permute.xlu1 %3347  ;;  %2197 = vst.msk [vmem:[#allocation2 + $0x308] sm:$0xff] %vm2093_vm2, %v1967_v36  ;;  %v1970_v45 = vmax.f32 %v1284_v37, 0.0  ;;  %v1279_v50 = vadd.f32 %v9650_v31, %v1278_v42  ;;  %v3998_v36 = vsel %vm3997_vm4, %v3948_v19, %v9287_v12 }
 0x15f   :  { %v7902_v51 = vpop.f32.mrf.mxu0 }
 0x160   :  { %3013 = vrot.lane.b32.xlu0 %v2378_v5, %s8582_s21  ;;  %3365 = vrot.lane.b32.xlu1 %v2382_v41, %s8584_s24  ;;  %2200 = vst.msk [vmem:[#allocation2 + $0x320] sm:$0xff] %vm2093_vm2, %v1970_v45  ;;  %v1969_v53 = vmax.f32 %v1279_v50, 0.0  ;;  %v1294_v59 = vadd.f32 %v9650_v31, %v7902_v51  ;;  %v187_v41 = vld [vmem:[%s13546_s27 + $0x428] sm:$0xff]  ;;  %v2379_v50 = vld [vmem:[#allocation2 + $0x1d8] sm:$0xff] }
 0x161   :  { %v1288_v62 = vpop.f32.mrf.mxu0  ;;  %7988 = vmatmul.mubr.msk.f32.gmra.mxu0 %vm259_vm1, %v187_v41  ;;  %v9762_v51 = vld [vmem:[#allocation2 + $0x208] sm:$0xff] }
 0x162   :  { %v9720_v2 = vpop.permute.xlu0 %3191  ;;  %v9722_v3 = vpop.permute.xlu1 %3349  ;;  %2199 = vst.msk [vmem:[#allocation2 + $0x318] sm:$0xff] %vm2093_vm2, %v1969_v53  ;;  %v1972_v5 = vmax.f32 %v1294_v59, 0.0  ;;  %v1289_v10 = vadd.f32 %v9650_v31, %v1288_v62  ;;  %v188_v59 = vld [vmem:[%s13546_s27 + $0x430] sm:$0xff] }
 0x163   :  { %v7905_v20 = vpop.f32.mrf.mxu0  ;;  %7990 = vmatprep.mubr.msk.f32.mxu0 %vm259_vm1, %v188_v59  ;;  %v192_v59 = vld [vmem:[%s13546_s27 + $0x450] sm:$0xff] }
 0x164   :  { %3207 = vrot.lane.b32.xlu0 %v2377_v16, %s8585_s19  ;;  %3815 = vrot.lane.b32.xlu1 %v9715_v61, %s8586_s28  ;;  %2202 = vst.msk [vmem:[#allocation2 + $0x330] sm:$0xff] %vm2093_vm2, %v1972_v5  ;;  %v1971_v17 = vmax.f32 %v1289_v10, 0.0  ;;  %v1304_v34 = vadd.f32 %v9650_v31, %v7905_v20  ;;  %v2381_v20 = vld [vmem:[#allocation2 + $0x1e8] sm:$0xff] }
 0x165   :  { %v1298_v52 = vpop.f32.mrf.mxu0  ;;  %7991 = vmatmul.mubr.msk.f32.gmra.mxu0 %vm259_vm1, %v189_v63  ;;  %v193_v63 = vld [vmem:[%s13546_s27 + $0x458] sm:$0xff] }
 0x166   :  { %v9737_v22 = vpop.permute.xlu0 %2999  ;;  %v9739_v32 = vpop.permute.xlu1 %3351  ;;  %2201 = vst.msk [vmem:[#allocation2 + $0x328] sm:$0xff] %vm2093_vm2, %v1971_v17  ;;  %v1974_v54 = vmax.f32 %v1304_v34, 0.0  ;;  %v1299_v37 = vadd.f32 %v9650_v31, %v1298_v52  ;;  %v190_v17 = vld [vmem:[%s13546_s27 + $0x440] sm:$0xff] }
 0x167   :  { %v7908_v53 = vpop.f32.mrf.mxu0  ;;  %7993 = vmatprep.mubr.msk.f32.mxu0 %vm259_vm1, %v190_v17 }
 0x168   :  { %3015 = vrot.lane.b32.xlu0 %v2380_v21, %s8582_s21  ;;  %3515 = vrot.lane.b32.xlu1 %v9715_v61, %s8583_s26  ;;  %2204 = vst.msk [vmem:[#allocation2 + $0x340] sm:$0xff] %vm2093_vm2, %v1974_v54  ;;  %v1973_v12 = vmax.f32 %v1299_v37, 0.0  ;;  %v4048_v21 = vsel %vm4047_vm5, %v3998_v36, %v9538_v55  ;;  %v1314_v55 = vadd.f32 %v9650_v31, %v7908_v53 }
 0x169   :  { %v4098_v62 = vsel %vm4097_vm6, %v4048_v21, %v9659_v40  ;;  %v1308_v5 = vpop.f32.mrf.mxu0 }
 0x16a   :  { %v9756_v42 = vpop.permute.xlu0 %3193  ;;  %v3802_v45 = vpop.permute.xlu1 %3801  ;;  %2203 = vst.msk [vmem:[#allocation2 + $0x338] sm:$0xff] %vm2093_vm2, %v1973_v12  ;;  %v1976_v15 = vmax.f32 %v1314_v55, 0.0  ;;  %v1309_v16 = vadd.f32 %v9650_v31, %v1308_v5  ;;  %v4148_v19 = vsel %vm4147_vm7, %v4098_v62, %v9644_v26  ;;  %v191_v26 = vld [vmem:[%s13546_s27 + $0x448] sm:$0xff]  ;;  %v8495_v5 = vld [vmem:[#allocation2 + $0x10] sm:$0xff] }
 0x16b   :  { %v7911_v34 = vpop.f32.mrf.mxu0  ;;  %v4198_v37 = vsel %vm4197_vm8, %v4148_v19, %v9553_v8  ;;  %7994 = vmatmul.mubr.msk.f32.gmra.mxu0 %vm259_vm1, %v191_v26 }
 0x16c   :  { %3209 = vrot.lane.b32.xlu0 %v2379_v50, %s8585_s19  ;;  %3667 = vrot.lane.b32.xlu1 %v9762_v51, %s8588_s30  ;;  %2206 = vst.msk [vmem:[#allocation2 + $0x350] sm:$0xff] %vm2093_vm2, %v1976_v15  ;;  %v1975_v52 = vmax.f32 %v1309_v16, 0.0  ;;  %v1324_v35 = vadd.f32 %v9650_v31, %v7911_v34  ;;  %v3949_v15 = vsel %vm2093_vm2, %v8495_v5, %v9327_v30  ;;  %v194_v34 = vld [vmem:[%s13546_s27 + $0x460] sm:$0xff] }
 0x16d   :  { %v1318_v36 = vpop.f32.mrf.mxu0  ;;  %7996 = vmatprep.mubr.msk.f32.mxu0 %vm259_vm1, %v192_v59  ;;  %v8496_v5 = vld [vmem:[#allocation2 + $0x20] sm:$0xff] }
 0x16e   :  { %v9780_v10 = vpop.permute.xlu0 %3001  ;;  %v9782_v40 = vpop.permute.xlu1 %3501  ;;  %2205 = vst.msk [vmem:[#allocation2 + $0x348] sm:$0xff] %vm2093_vm2, %v1975_v52  ;;  %v1978_v12 = vmax.f32 %v1324_v35, 0.0  ;;  %v1319_v21 = vadd.f32 %v9650_v31, %v1318_v36  ;;  %v3999_v52 = vsel %vm3997_vm4, %v3949_v15, %v9363_v48  ;;  %v195_v36 = vld [vmem:[%s13546_s27 + $0x468] sm:$0xff] }
 0x16f   :  { %v7914_v53 = vpop.f32.mrf.mxu0  ;;  %7997 = vmatmul.mubr.msk.f32.gmra.mxu0 %vm259_vm1, %v193_v63 }
 0x170   :  { %3211 = vrot.lane.b32.xlu0 %v2381_v20, %s8585_s19  ;;  %3817 = vrot.lane.b32.xlu1 %v9777_v1, %s8586_s28  ;;  %2208 = vst.msk [vmem:[#allocation2 + $0x360] sm:$0xff] %vm2093_vm2, %v1978_v12  ;;  %v1977_v8 = vmax.f32 %v1319_v21, 0.0  ;;  %v1334_v55 = vadd.f32 %v9650_v31, %v7914_v53  ;;  %v2386_v20 = vld [vmem:[#allocation2 + $0x218] sm:$0xff] }
 0x171   :  { %7999 = vmatprep.mubr.msk.f32.mxu0 %vm259_vm1, %v194_v34  ;;  %v2391_v34 = vld [vmem:[#allocation2 + $0x240] sm:$0xff] }
 0x172   :  { %v9800_v54 = vpop.permute.xlu0 %3195  ;;  %v3654_v41 = vpop.permute.xlu1 %3653  ;;  %2207 = vst.msk [vmem:[#allocation2 + $0x358] sm:$0xff] %vm2093_vm2, %v1977_v8  ;;  %v1980_v17 = vmax.f32 %v1334_v55, 0.0 }
 0x173   :  { %v4248_v50 = vsel %vm4247_vm9, %v4198_v37, %v3654_v41  ;;  %v4049_v37 = vsel %vm4047_vm5, %v3999_v52, %v9642_v25  ;;  %v2389_v41 = vld [vmem:[#allocation2 + $0x230] sm:$0xff]  ;;  %8000 = vmatmul.mubr.msk.f32.gmra.mxu0 %vm259_vm1, %v195_v36 }
 0x174   :  { %v4298_v62 = vsel %vm4297_vm10, %v4248_v50, %v3802_v45  ;;  %2821 = vrot.lane.b32.xlu0 %v9715_v61, %s8581_s18  ;;  %3517 = vrot.lane.b32.xlu1 %v9777_v1, %s8583_s26  ;;  %v1328_v61 = vpop.f32.mrf.mxu0  ;;  %2210 = vst.msk [vmem:[#allocation2 + $0x370] sm:$0xff] %vm2093_vm2, %v1980_v17  ;;  %v4099_v48 = vsel %vm4097_vm6, %v4049_v37, %v9671_v57  ;;  %v196_v36 = vld [vmem:[%s13546_s27 + $0x470] sm:$0xff] }
 0x175   :  { %8102 = vmatmul.mubr.msk.f32.vlgmr.msra.gmra.mxu1 %vm4356_vm11, %v4298_v62  ;;  %v1329_v19 = vadd.f32 %v9650_v31, %v1328_v61  ;;  %v4149_v57 = vsel %vm4147_vm7, %v4099_v48, %v9673_v58  ;;  %8002 = vmatprep.mubr.msk.f32.mxu0 %vm259_vm1, %v196_v36 }
 0x176   :  { %v9825_v45 = vpop.permute.xlu0 %3197  ;;  %v3804_v16 = vpop.permute.xlu1 %3803  ;;  %8104 = vmatprep.mubr.msk.f32.mxu1 %vm8587_vm3, %v13521_v4  ;;  %v4199_v53 = vsel %vm4197_vm8, %v4149_v57, %v9782_v40  ;;  %v3950_v40 = vsel %vm2093_vm2, %v8496_v5, %v9399_v0 }
 0x177   :  { %v7917_v30 = vpop.f32.mrf.mxu0  ;;  %v1979_v35 = vmax.f32 %v1329_v19, 0.0  ;;  %v2388_v19 = vld [vmem:[#allocation2 + $0x228] sm:$0xff] }
 0x178   :  { %2625 = vrot.lane.b32.xlu0 %v9762_v51, %s8580_s29  ;;  %3669 = vrot.lane.b32.xlu1 %v2386_v20, %s8588_s30  ;;  %v1344_v26 = vadd.f32 %v9650_v31, %v7917_v30 }
 0x179   :  { %2209 = vst.msk [vmem:[#allocation2 + $0x368] sm:$0xff] %vm2093_vm2, %v1979_v35  ;;  %v1338_v50 = vpop.f32.mrf.mxu0 }
 0x17a   :  { %v9850_v51 = vpop.permute.xlu0 %2807  ;;  %v3504_v12 = vpop.permute.xlu1 %3503  ;;  %v1982_v21 = vmax.f32 %v1344_v26, 0.0  ;;  %v1339_v25 = vadd.f32 %v9650_v31, %v1338_v50 }
 0x17b   :  { %v7920_v63 = vpop.f32.mrf.mxu0 }
 0x17c   :  { %2823 = vrot.lane.b32.xlu0 %v9777_v1, %s8581_s18  ;;  %3819 = vrot.lane.b32.xlu1 %v2389_v41, %s8586_s28  ;;  %2212 = vst.msk [vmem:[#allocation2 + $0x390] sm:$0xff] %vm2093_vm2, %v1982_v21  ;;  %v1981_v8 = vmax.f32 %v1339_v25, 0.0  ;;  %v1354_v58 = vadd.f32 %v9650_v31, %v7920_v63  ;;  %v8055_v63 = vpop.f32.mrf.mxu1 }
 0x17e   :  { %v9863_v59 = vpop.permute.xlu0 %2611  ;;  %v3656_v62 = vpop.permute.xlu1 %3655  ;;  %2211 = vst.msk [vmem:[#allocation2 + $0x388] sm:$0xff] %vm2093_vm2, %v1981_v8  ;;  %v1984_v17 = vmax.f32 %v1354_v58, 0.0  ;;  %v8497_v8 = vld [vmem:[#allocation2 + $0x30] sm:$0xff] }
 0x17f   :  { %v4249_v55 = vsel %vm4247_vm9, %v4199_v53, %v3656_v62 }
 0x180   :  { %2627 = vrot.lane.b32.xlu0 %v2386_v20, %s8580_s29  ;;  %3519 = vrot.lane.b32.xlu1 %v2389_v41, %s8583_s26  ;;  %v4299_v1 = vsel %vm4297_vm10, %v4249_v55, %v3804_v16  ;;  %v1348_v20 = vpop.f32.mrf.mxu0  ;;  %v4000_v16 = vsel %vm3997_vm4, %v3950_v40, %v9421_v18  ;;  %2214 = vst.msk [vmem:[#allocation2 + $0x3a0] sm:$0xff] %vm2093_vm2, %v1984_v17  ;;  %v2390_v17 = vld [vmem:[#allocation2 + $0x238] sm:$0xff] }
 0x181   :  { %8105 = vmatmul.mubr.msk.f32.gmra.mxu1 %vm4356_vm11, %v4299_v1  ;;  %v1349_v0 = vadd.f32 %v9650_v31, %v1348_v20  ;;  %v4050_v30 = vsel %vm4047_vm5, %v4000_v16, %v9657_v39  ;;  %v1798_v20 = vpop.f32.mrf.mxu1 }
 0x182   :  { %v9874_v15 = vpop.permute.xlu0 %2809  ;;  %v3806_v61 = vpop.permute.xlu1 %3805  ;;  %8107 = vmatprep.mubr.msk.f32.mxu1 %vm8587_vm3, %v13521_v4  ;;  %v4100_v52 = vsel %vm4097_vm6, %v4050_v30, %v9695_v23  ;;  %v197_v23 = vld [vmem:[%s13546_s27 + $0x478] sm:$0xff] }
 0x183   :  { %v1983_v18 = vmax.f32 %v1349_v0, 0.0  ;;  %v7923_v37 = vpop.f32.mrf.mxu0  ;;  %8003 = vmatmul.mubr.msk.f32.gmra.mxu0 %vm259_vm1, %v197_v23  ;;  %v8058_v36 = vpop.f32.mrf.mxu1 }
 0x184   :  { %2825 = vrot.lane.b32.xlu0 %v2389_v41, %s8581_s18  ;;  %3671 = vrot.lane.b32.xlu1 %v2388_v19, %s8588_s30  ;;  %v1364_v39 = vadd.f32 %v9650_v31, %v7923_v37  ;;  %v4150_v41 = vsel %vm4147_vm7, %v4100_v52, %v9687_v14  ;;  %v2393_v52 = vld [vmem:[#allocation2 + $0x250] sm:$0xff] }
 0x185   :  { %2213 = vst.msk [vmem:[#allocation2 + $0x398] sm:$0xff] %vm2093_vm2, %v1983_v18  ;;  %v4200_v48 = vsel %vm4197_vm8, %v4150_v41, %v3504_v12  ;;  %v1358_v53 = vpop.f32.mrf.mxu0  ;;  %v3951_v12 = vsel %vm2093_vm2, %v8497_v8, %v9447_v33  ;;  %v1799_v18 = vadd.f32 %v9650_v31, %v1798_v20  ;;  %v1814_v41 = vadd.f32 %v9650_v31, %v8058_v36  ;;  %v199_v20 = vld [vmem:[%s13546_s27 + $0x488] sm:$0xff] }
 0x186   :  { %v9888_v35 = vpop.permute.xlu0 %2613  ;;  %v9890_v26 = vpop.permute.xlu1 %3505  ;;  %v1986_v25 = vmax.f32 %v1364_v39, 0.0  ;;  %v1359_v14 = vadd.f32 %v9650_v31, %v1358_v53  ;;  %v4001_v33 = vsel %vm3997_vm4, %v3951_v12, %v9465_v47 }
 0x187   :  { %v7926_v55 = vpop.f32.mrf.mxu0 }
 0x188   :  { %2629 = vrot.lane.b32.xlu0 %v2388_v19, %s8580_s29  ;;  %3821 = vrot.lane.b32.xlu1 %v2391_v34, %s8586_s28  ;;  %2216 = vst.msk [vmem:[#allocation2 + $0x3b0] sm:$0xff] %vm2093_vm2, %v1986_v25  ;;  %v1985_v5 = vmax.f32 %v1359_v14, 0.0  ;;  %v1374_v40 = vadd.f32 %v9650_v31, %v7926_v55 }
 0x189   :  { %v1368_v19 = vpop.f32.mrf.mxu0 }
 0x18a   :  { %v9907_v21 = vpop.permute.xlu0 %2811  ;;  %v3658_v50 = vpop.permute.xlu1 %3657  ;;  %2215 = vst.msk [vmem:[#allocation2 + $0x3a8] sm:$0xff] %vm2093_vm2, %v1985_v5  ;;  %v1988_v16 = vmax.f32 %v1374_v40, 0.0  ;;  %v1369_v30 = vadd.f32 %v9650_v31, %v1368_v19  ;;  %v8498_v40 = vld [vmem:[#allocation2 + $0x40] sm:$0xff] }
 0x18b   :  { %v4250_v57 = vsel %vm4247_vm9, %v4200_v48, %v3658_v50  ;;  %v2073_v48 = vmax.f32 %v1799_v18, 0.0 }
 0x18c   :  { %2827 = vrot.lane.b32.xlu0 %v2391_v34, %s8581_s18  ;;  %3521 = vrot.lane.b32.xlu1 %v2391_v34, %s8583_s26  ;;  %v4300_v62 = vsel %vm4297_vm10, %v4250_v57, %v3806_v61  ;;  %v1804_v61 = vadd.f32 %v9650_v31, %v8055_v63  ;;  %v4051_v34 = vsel %vm4047_vm5, %v4001_v33, %v9685_v11  ;;  %v1987_v23 = vmax.f32 %v1369_v30, 0.0  ;;  %v1808_v11 = vpop.f32.mrf.mxu1  ;;  %v2392_v63 = vld [vmem:[#allocation2 + $0x248] sm:$0xff]  ;;  %v2395_v33 = vld [vmem:[#allocation2 + $0x260] sm:$0xff]  ;;  %v7929_v30 = vpop.f32.mrf.mxu0 }
 0x18d   :  { %8108 = vmatmul.mubr.msk.f32.gmra.mxu1 %vm4356_vm11, %v4300_v62  ;;  %v4101_v47 = vsel %vm4097_vm6, %v4051_v34, %v9720_v2  ;;  %2218 = vst.msk [vmem:[#allocation2 + $0x3c0] sm:$0xff] %vm2093_vm2, %v1988_v16  ;;  %v2076_v2 = vmax.f32 %v1814_v41, 0.0  ;;  %v1809_v50 = vadd.f32 %v9650_v31, %v1808_v11  ;;  %2303 = vst.msk [vmem:[#allocation2 + $0x6c8] sm:$0xff] %vm2093_vm2, %v2073_v48 }
 0x18e   :  { %v9918_v1 = vpop.permute.xlu0 %2615  ;;  %v3808_v58 = vpop.permute.xlu1 %3807  ;;  %8110 = vmatprep.mubr.msk.f32.mxu1 %vm8587_vm3, %v13521_v4  ;;  %v2074_v0 = vmax.f32 %v1804_v61, 0.0  ;;  %2217 = vst.msk [vmem:[#allocation2 + $0x3b8] sm:$0xff] %vm2093_vm2, %v1987_v23  ;;  %v4151_v25 = vsel %vm4147_vm7, %v4101_v47, %v9697_v29  ;;  %v198_v29 = vld [vmem:[%s13546_s27 + $0x480] sm:$0xff]  ;;  %v1384_v18 = vadd.f32 %v9650_v31, %v7929_v30  ;;  %v9988_v23 = vld [vmem:[#allocation2 + $0x258] sm:$0xff] }
 0x18f   :  { %v8061_v57 = vpop.f32.mrf.mxu1  ;;  %v4201_v53 = vsel %vm4197_vm8, %v4151_v25, %v9890_v26  ;;  %2306 = vst.msk [vmem:[#allocation2 + $0x6e0] sm:$0xff] %vm2093_vm2, %v2076_v2  ;;  %v2075_v8 = vmax.f32 %v1809_v50, 0.0  ;;  %v3952_v26 = vsel %vm2093_vm2, %v8498_v40, %v9478_v60  ;;  %8005 = vmatprep.mubr.msk.f32.mxu0 %vm259_vm1, %v198_v29 }
 0x190   :  { %2631 = vrot.lane.b32.xlu0 %v2390_v17, %s8580_s29  ;;  %3673 = vrot.lane.b32.xlu1 %v2390_v17, %s8588_s30  ;;  %2304 = vst.msk [vmem:[#allocation2 + $0x6d0] sm:$0xff] %vm2093_vm2, %v2074_v0  ;;  %v1824_v12 = vadd.f32 %v9650_v31, %v8061_v57  ;;  %v4002_v0 = vsel %vm3997_vm4, %v3952_v26, %v9495_v13  ;;  %v1378_v13 = vpop.f32.mrf.mxu0  ;;  %v1990_v11 = vmax.f32 %v1384_v18, 0.0  ;;  %v10032_v18 = vld [vmem:[#allocation2 + $0x268] sm:$0xff] }
 0x191   :  { %v1818_v5 = vpop.f32.mrf.mxu1  ;;  %2305 = vst.msk [vmem:[#allocation2 + $0x6d8] sm:$0xff] %vm2093_vm2, %v2075_v8  ;;  %8006 = vmatmul.mubr.msk.f32.gmra.mxu0 %vm259_vm1, %v199_v20  ;;  %v1379_v50 = vadd.f32 %v9650_v31, %v1378_v13  ;;  %v200_v8 = vld [vmem:[%s13546_s27 + $0x490] sm:$0xff] }
 0x192   :  { %v9935_v37 = vpop.permute.xlu0 %2813  ;;  %v9937_v39 = vpop.permute.xlu1 %3507  ;;  %v2078_v17 = vmax.f32 %v1824_v12, 0.0  ;;  %v1819_v19 = vadd.f32 %v9650_v31, %v1818_v5  ;;  %2220 = vst.msk [vmem:[#allocation2 + $0x3d0] sm:$0xff] %vm2093_vm2, %v1990_v11  ;;  %8008 = vmatprep.mubr.msk.f32.mxu0 %vm259_vm1, %v200_v8 }
 0x193   :  { %v8064_v34 = vpop.f32.mrf.mxu1 }
 0x194   :  { %2829 = vrot.lane.b32.xlu0 %v2393_v52, %s8581_s18  ;;  %3823 = vrot.lane.b32.xlu1 %v2393_v52, %s8586_s28  ;;  %2308 = vst.msk [vmem:[#allocation2 + $0x6f0] sm:$0xff] %vm2093_vm2, %v2078_v17  ;;  %v1834_v36 = vadd.f32 %v9650_v31, %v8064_v34  ;;  %v8499_v34 = vld [vmem:[#allocation2 + $0x50] sm:$0xff] }
 0x195   :  { %v1828_v41 = vpop.f32.mrf.mxu1 }
 0x196   :  { %v9951_v62 = vpop.permute.xlu0 %2617  ;;  %v3660_v14 = vpop.permute.xlu1 %3659  ;;  %v2080_v2 = vmax.f32 %v1834_v36, 0.0  ;;  %v1829_v25 = vadd.f32 %v9650_v31, %v1828_v41 }
 0x197   :  { %v4251_v55 = vsel %vm4247_vm9, %v4201_v53, %v3660_v14  ;;  %v8067_v57 = vpop.f32.mrf.mxu1 }
 0x198   :  { %2633 = vrot.lane.b32.xlu0 %v2392_v63, %s8580_s29  ;;  %3523 = vrot.lane.b32.xlu1 %v2393_v52, %s8583_s26  ;;  %v4301_v61 = vsel %vm4297_vm10, %v4251_v55, %v3808_v58  ;;  %v2077_v58 = vmax.f32 %v1819_v19, 0.0  ;;  %v4052_v52 = vsel %vm4047_vm5, %v4002_v0, %v9705_v43  ;;  %2310 = vst.msk [vmem:[#allocation2 + $0x710] sm:$0xff] %vm2093_vm2, %v2080_v2  ;;  %v2079_v53 = vmax.f32 %v1829_v25, 0.0  ;;  %v10007_v55 = vld [vmem:[#allocation2 + $0x270] sm:$0xff]  ;;  %v7932_v19 = vpop.f32.mrf.mxu0 }
 0x199   :  { %8111 = vmatmul.mubr.msk.f32.gmra.mxu1 %vm4356_vm11, %v4301_v61  ;;  %v4102_v47 = vsel %vm4097_vm6, %v4052_v52, %v9756_v42  ;;  %v1989_v42 = vmax.f32 %v1379_v50, 0.0  ;;  %v1844_v14 = vadd.f32 %v9650_v31, %v8067_v57  ;;  %v1394_v0 = vadd.f32 %v9650_v31, %v7932_v19  ;;  %v203_v50 = vld [vmem:[%s13546_s27 + $0x4a8] sm:$0xff] }
 0x19a   :  { %v9971_v60 = vpop.permute.xlu0 %2815  ;;  %v3810_v16 = vpop.permute.xlu1 %3809  ;;  %8113 = vmatprep.mubr.msk.f32.mxu1 %vm8587_vm3, %v13521_v4  ;;  %2307 = vst.msk [vmem:[#allocation2 + $0x6e8] sm:$0xff] %vm2093_vm2, %v2077_v58  ;;  %v4152_v12 = vsel %vm4147_vm7, %v4102_v47, %v9707_v44  ;;  %2309 = vst.msk [vmem:[#allocation2 + $0x708] sm:$0xff] %vm2093_vm2, %v2079_v53  ;;  %v201_v44 = vld [vmem:[%s13546_s27 + $0x498] sm:$0xff]  ;;  %v3953_v52 = vsel %vm2093_vm2, %v8499_v34, %v9508_v24  ;;  %v206_v34 = vld [vmem:[%s13546_s27 + $0x4c0] sm:$0xff] }
 0x19b   :  { %v4202_v5 = vsel %vm4197_vm8, %v4152_v12, %v9937_v39  ;;  %2219 = vst.msk [vmem:[#allocation2 + $0x3c8] sm:$0xff] %vm2093_vm2, %v1989_v42  ;;  %v2082_v26 = vmax.f32 %v1844_v14, 0.0  ;;  %8009 = vmatmul.mubr.msk.f32.gmra.mxu0 %vm259_vm1, %v201_v44  ;;  %v1388_v36 = vpop.f32.mrf.mxu0  ;;  %v1992_v24 = vmax.f32 %v1394_v0, 0.0  ;;  %v4003_v42 = vsel %vm3997_vm4, %v3953_v52, %v9518_v38  ;;  %v204_v12 = vld [vmem:[%s13546_s27 + $0x4b0] sm:$0xff]  ;;  %v8500_v52 = vld [vmem:[#allocation2 + $0x60] sm:$0xff] }
 0x19c   :  { %2831 = vrot.lane.b32.xlu0 %v2395_v33, %s8581_s18  ;;  %3675 = vrot.lane.b32.xlu1 %v2392_v63, %s8588_s30  ;;  %v1838_v63 = vpop.f32.mrf.mxu1  ;;  %v1389_v11 = vadd.f32 %v9650_v31, %v1388_v36  ;;  %v4053_v38 = vsel %vm4047_vm5, %v4003_v42, %v9737_v22  ;;  %v3954_v36 = vsel %vm2093_vm2, %v8500_v52, %v9540_v56 }
 0x19d   :  { %v1839_v61 = vadd.f32 %v9650_v31, %v1838_v63  ;;  %2312 = vst.msk [vmem:[#allocation2 + $0x720] sm:$0xff] %vm2093_vm2, %v2082_v26  ;;  %v7935_v25 = vpop.f32.mrf.mxu0  ;;  %2222 = vst.msk [vmem:[#allocation2 + $0x3e0] sm:$0xff] %vm2093_vm2, %v1992_v24  ;;  %v10065_v63 = vld [vmem:[#allocation2 + $0x290] sm:$0xff]  ;;  %v4103_v26 = vsel %vm4097_vm6, %v4053_v38, %v9800_v54 }
 0x19e   :  { %v9990_v48 = vpop.permute.xlu0 %2619  ;;  %v9992_v43 = vpop.permute.xlu1 %3509  ;;  %v1991_v53 = vmax.f32 %v1389_v11, 0.0  ;;  %v1404_v8 = vadd.f32 %v9650_v31, %v7935_v25  ;;  %v207_v25 = vld [vmem:[%s13546_s27 + $0x4c8] sm:$0xff] }
 0x19f   :  { %v8070_v20 = vpop.f32.mrf.mxu1  ;;  %v2081_v58 = vmax.f32 %v1839_v61, 0.0 }
 0x1a0   :  { %2635 = vrot.lane.b32.xlu0 %v9988_v23, %s8580_s29  ;;  %3825 = vrot.lane.b32.xlu1 %v2395_v33, %s8586_s28  ;;  %v1854_v30 = vadd.f32 %v9650_v31, %v8070_v20  ;;  %2221 = vst.msk [vmem:[#allocation2 + $0x3d8] sm:$0xff] %vm2093_vm2, %v1991_v53  ;;  %v1994_v22 = vmax.f32 %v1404_v8, 0.0  ;;  %v205_v20 = vld [vmem:[%s13546_s27 + $0x4b8] sm:$0xff] }
 0x1a1   :  { %v1848_v47 = vpop.f32.mrf.mxu1  ;;  %2311 = vst.msk [vmem:[#allocation2 + $0x718] sm:$0xff] %vm2093_vm2, %v2081_v58 }
 0x1a2   :  { %v10012_v29 = vpop.permute.xlu0 %2817  ;;  %v3662_v40 = vpop.permute.xlu1 %3661  ;;  %v2084_v41 = vmax.f32 %v1854_v30, 0.0  ;;  %v1849_v2 = vadd.f32 %v9650_v31, %v1848_v47  ;;  %2224 = vst.msk [vmem:[#allocation2 + $0x3f0] sm:$0xff] %vm2093_vm2, %v1994_v22  ;;  %v4153_v47 = vsel %vm4147_vm7, %v4103_v26, %v9722_v3 }
 0x1a3   :  { %v4252_v17 = vsel %vm4247_vm9, %v4202_v5, %v3662_v40  ;;  %v8073_v57 = vpop.f32.mrf.mxu1 }
 0x1a4   :  { %2833 = vrot.lane.b32.xlu0 %v10007_v55, %s8581_s18  ;;  %3525 = vrot.lane.b32.xlu1 %v2395_v33, %s8583_s26  ;;  %v4302_v39 = vsel %vm4297_vm10, %v4252_v17, %v3810_v16  ;;  %v202_v33 = vld [vmem:[%s13546_s27 + $0x4a0] sm:$0xff]  ;;  %2314 = vst.msk [vmem:[#allocation2 + $0x730] sm:$0xff] %vm2093_vm2, %v2084_v41  ;;  %v2083_v14 = vmax.f32 %v1849_v2, 0.0  ;;  %v1864_v5 = vadd.f32 %v9650_v31, %v8073_v57 }
 0x1a5   :  { %8114 = vmatmul.mubr.msk.f32.gmra.mxu1 %vm4356_vm11, %v4302_v39  ;;  %8011 = vmatprep.mubr.msk.f32.mxu0 %vm259_vm1, %v202_v33  ;;  %v1858_v40 = vpop.f32.mrf.mxu1  ;;  %v2399_v33 = vld [vmem:[#allocation2 + $0x288] sm:$0xff]  ;;  %v4203_v41 = vsel %vm4197_vm8, %v4153_v47, %v9992_v43  ;;  %v4004_v43 = vsel %vm3997_vm4, %v3954_v36, %v9555_v9  ;;  %v2402_v9 = vld [vmem:[#allocation2 + $0x2a0] sm:$0xff] }
 0x1a6   :  { %v10037_v16 = vpop.permute.xlu0 %2621  ;;  %v10039_v13 = vpop.permute.xlu1 %3811  ;;  %8116 = vmatprep.mubr.msk.f32.mxu1 %vm8587_vm3, %v13521_v4  ;;  %8012 = vmatmul.mubr.msk.f32.gmra.mxu0 %vm259_vm1, %v203_v50  ;;  %2313 = vst.msk [vmem:[#allocation2 + $0x728] sm:$0xff] %vm2093_vm2, %v2083_v14  ;;  %v1859_v19 = vadd.f32 %v9650_v31, %v1858_v40  ;;  %v2086_v39 = vmax.f32 %v1864_v5, 0.0  ;;  %v4054_v38 = vsel %vm4047_vm5, %v4004_v43, %v9780_v10  ;;  %v209_v10 = vld [vmem:[%s13546_s27 + $0x4d8] sm:$0xff]  ;;  %v10175_v43 = vld [vmem:[%s13505_s2] ss:$0 sm:$0xff] }
 0x1a7   :  { %8014 = vmatprep.mubr.msk.f32.mxu0 %vm259_vm1, %v204_v12  ;;  %v208_v12 = vld [vmem:[%s13546_s27 + $0x4d0] sm:$0xff] }
 0x1a8   :  { %2637 = vrot.lane.b32.xlu0 %v10032_v18, %s8580_s29  ;;  %3677 = vrot.lane.b32.xlu1 %v9988_v23, %s8588_s30  ;;  %v1398_v23 = vpop.f32.mrf.mxu0  ;;  %v2085_v0 = vmax.f32 %v1859_v19, 0.0  ;;  %2316 = vst.msk [vmem:[#allocation2 + $0x740] sm:$0xff] %vm2093_vm2, %v2086_v39 }
 0x1a9   :  { %v1399_v17 = vadd.f32 %v9650_v31, %v1398_v23 }
 0x1aa   :  { %v10071_v61 = vpop.permute.xlu0 %2819  ;;  %v10073_v44 = vpop.permute.xlu1 %3511  ;;  %8015 = vmatmul.mubr.msk.f32.gmra.mxu0 %vm259_vm1, %v205_v20  ;;  %2315 = vst.msk [vmem:[#allocation2 + $0x738] sm:$0xff] %vm2093_vm2, %v2085_v0 }
 0x1ab   :  { %v7938_v58 = vpop.f32.mrf.mxu0  ;;  %v1993_v54 = vmax.f32 %v1399_v17, 0.0  ;;  %8017 = vmatprep.mubr.msk.f32.mxu0 %vm259_vm1, %v206_v34  ;;  %v2401_v17 = vld [vmem:[#allocation2 + $0x298] sm:$0xff] }
 0x1ac   :  { %3019 = vrot.lane.b32.xlu0 %v10065_v63, %s8582_s21  ;;  %3827 = vrot.lane.b32.xlu1 %v10007_v55, %s8586_s28  ;;  %v1414_v30 = vadd.f32 %v9650_v31, %v7938_v58  ;;  %v8076_v55 = vpop.f32.mrf.mxu1 }
 0x1ad   :  { %v1408_v24 = vpop.f32.mrf.mxu0  ;;  %2223 = vst.msk [vmem:[#allocation2 + $0x3e8] sm:$0xff] %vm2093_vm2, %v1993_v54  ;;  %v1874_v3 = vadd.f32 %v9650_v31, %v8076_v55  ;;  %v2404_v55 = vld [vmem:[#allocation2 + $0x2b0] sm:$0xff] }
 0x1ae   :  { %v10100_v11 = vpop.permute.xlu0 %2623  ;;  %v3664_v2 = vpop.permute.xlu1 %3663  ;;  %v1996_v56 = vmax.f32 %v1414_v30, 0.0  ;;  %v1409_v50 = vadd.f32 %v9650_v31, %v1408_v24  ;;  %8018 = vmatmul.mubr.msk.f32.gmra.mxu0 %vm259_vm1, %v207_v25 }
 0x1af   :  { %v4253_v57 = vsel %vm4247_vm9, %v4203_v41, %v3664_v2  ;;  %v1868_v42 = vpop.f32.mrf.mxu1  ;;  %v2088_v14 = vmax.f32 %v1874_v3, 0.0  ;;  %8020 = vmatprep.mubr.msk.f32.mxu0 %vm259_vm1, %v208_v12  ;;  %v7941_v20 = vpop.f32.mrf.mxu0 }
 0x1b0   :  { %3213 = vrot.lane.b32.xlu0 %v2399_v33, %s8585_s19  ;;  %3679 = vrot.lane.b32.xlu1 %v10032_v18, %s8588_s30  ;;  %v4303_v53 = vsel %vm4297_vm10, %v4253_v57, %v10039_v13  ;;  %2226 = vst.msk [vmem:[#allocation2 + $0x410] sm:$0xff] %vm2093_vm2, %v1996_v56  ;;  %v1995_v8 = vmax.f32 %v1409_v50, 0.0  ;;  %v1869_v5 = vadd.f32 %v9650_v31, %v1868_v42 }
 0x1b1   :  { %8117 = vmatmul.mubr.msk.f32.gmra.mxu1 %vm4356_vm11, %v4303_v53  ;;  %v4104_v18 = vsel %vm4097_vm6, %v4054_v38, %v9825_v45  ;;  %2318 = vst.msk [vmem:[#allocation2 + $0x750] sm:$0xff] %vm2093_vm2, %v2088_v14  ;;  %v8079_v26 = vpop.f32.mrf.mxu1  ;;  %v2406_v14 = vld [vmem:[#allocation2 + $0x2c0] sm:$0xff] }
 0x1b2   :  { %v10129_v13 = vpop.permute.xlu0 %3005  ;;  %v3814_v23 = vpop.permute.xlu1 %3813  ;;  %8119 = vmatprep.mubr.msk.f32.mxu1 %vm8587_vm3, %v13521_v4  ;;  %2225 = vst.msk [vmem:[#allocation2 + $0x408] sm:$0xff] %vm2093_vm2, %v1995_v8  ;;  %v2087_v40 = vmax.f32 %v1869_v5, 0.0  ;;  %8021 = vmatmul.mubr.msk.f32.gmra.mxu0 %vm259_vm1, %v209_v10  ;;  %v1884_v45 = vadd.f32 %v9650_v31, %v8079_v26  ;;  %v4154_v22 = vsel %vm4147_vm7, %v4104_v18, %v9739_v32  ;;  %v2403_v5 = vld [vmem:[#allocation2 + $0x2a8] sm:$0xff] }
 0x1b3   :  { %v1878_v19 = vpop.f32.mrf.mxu1  ;;  %v4204_v39 = vsel %vm4197_vm8, %v4154_v22, %v10073_v44  ;;  %v1418_v32 = vpop.f32.mrf.mxu0 }
 0x1b4   :  { %3021 = vrot.lane.b32.xlu0 %v2402_v9, %s8582_s21  ;;  %3367 = vrot.lane.b32.xlu1 %v10065_v63, %s8584_s24  ;;  %2317 = vst.msk [vmem:[#allocation2 + $0x748] sm:$0xff] %vm2093_vm2, %v2087_v40  ;;  %v2090_v0 = vmax.f32 %v1884_v45, 0.0  ;;  %v1879_v30 = vadd.f32 %v9650_v31, %v1878_v19  ;;  %v1424_v63 = vadd.f32 %v9650_v31, %v7941_v20  ;;  %v2408_v40 = vld [vmem:[#allocation2 + $0x2d0] sm:$0xff]  ;;  %v210_v45 = vld [vmem:[%s13546_s27 + $0x4e0] sm:$0xff] }
 0x1b5   :  { %v8082_v52 = vpop.f32.mrf.mxu1  ;;  %v1419_v24 = vadd.f32 %v9650_v31, %v1418_v32  ;;  %v7944_v57 = vpop.f32.mrf.mxu0  ;;  %8023 = vmatprep.mubr.msk.f32.mxu0 %vm259_vm1, %v210_v45 }
 0x1b6   :  { %v10148_v58 = vpop.permute.xlu0 %3199  ;;  %v3666_v54 = vpop.permute.xlu1 %3665  ;;  %2320 = vst.msk [vmem:[#allocation2 + $0x760] sm:$0xff] %vm2093_vm2, %v2090_v0  ;;  %v2089_v44 = vmax.f32 %v1879_v30, 0.0  ;;  %v1998_v47 = vmax.f32 %v1424_v63, 0.0  ;;  %v1894_v33 = vadd.f32 %v9650_v31, %v8082_v52  ;;  %v1434_v53 = vadd.f32 %v10175_v43, %v7944_v57  ;;  %v2410_v63 = vld [vmem:[#allocation2 + $0x2e0] sm:$0xff] }
 0x1b7   :  { %v4254_v34 = vsel %vm4247_vm9, %v4204_v39, %v3666_v54  ;;  %v1888_v41 = vpop.f32.mrf.mxu1  ;;  %v1997_v25 = vmax.f32 %v1419_v24, 0.0  ;;  %v211_v39 = vld [vmem:[%s13546_s27 + $0x4e8] sm:$0xff] }
 0x1b8   :  { %3215 = vrot.lane.b32.xlu0 %v2401_v17, %s8585_s19  ;;  %3369 = vrot.lane.b32.xlu1 %v2402_v9, %s8584_s24  ;;  %v4304_v36 = vsel %vm4297_vm10, %v4254_v34, %v3814_v23  ;;  %2319 = vst.msk [vmem:[#allocation2 + $0x758] sm:$0xff] %vm2093_vm2, %v2089_v44  ;;  %2228 = vst.msk [vmem:[#allocation2 + $0x420] sm:$0xff] %vm2093_vm2, %v1998_v47  ;;  %v2092_v3 = vmax.f32 %v1894_v33, 0.0  ;;  %v1889_v50 = vadd.f32 %v9650_v31, %v1888_v41  ;;  %v1428_v31 = vpop.f32.mrf.mxu0  ;;  %v2405_v47 = vld [vmem:[#allocation2 + $0x2b8] sm:$0xff]  ;;  %v2412_v41 = vld [vmem:[#allocation2 + $0x2f0] sm:$0xff] }
 0x1b9   :  { %8120 = vmatmul.mubr.msk.f32.gmra.mxu1 %vm4356_vm11, %v4304_v36  ;;  %2227 = vst.msk [vmem:[#allocation2 + $0x418] sm:$0xff] %vm2093_vm2, %v1997_v25  ;;  %v2000_v38 = vmax.f32 %v1434_v53, 0.0  ;;  %v1429_v9 = vadd.f32 %v10175_v43, %v1428_v31  ;;  %8024 = vmatmul.mubr.msk.f32.gmra.mxu0 %vm259_vm1, %v211_v39  ;;  %v212_v39 = vld [vmem:[%s13546_s27 + $0x4f0] sm:$0xff] }
 0x1ba   :  { %v10160_v2 = vpop.permute.xlu0 %3007  ;;  %v10162_v56 = vpop.permute.xlu1 %3353  ;;  %8122 = vmatprep.mubr.msk.f32.mxu1 %vm8587_vm3, %v13521_v4  ;;  %2322 = vst.msk [vmem:[#allocation2 + $0x770] sm:$0xff] %vm2093_vm2, %v2092_v3  ;;  %v2091_v42 = vmax.f32 %v1889_v50, 0.0  ;;  %8026 = vmatprep.mubr.msk.f32.mxu0 %vm259_vm1, %v212_v39 }
 0x1bb   :  { %v7947_v18 = vpop.f32.mrf.mxu0  ;;  %2230 = vst.msk [vmem:[#allocation2 + $0x430] sm:$0xff] %vm2093_vm2, %v2000_v38  ;;  %v1999_v23 = vmax.f32 %v1429_v9, 0.0  ;;  %v10227_v38 = vld [vmem:[#allocation2 + $0x310] sm:$0xff] }
 0x1bc   :  { %3023 = vrot.lane.b32.xlu0 %v2404_v55, %s8582_s21  ;;  %3371 = vrot.lane.b32.xlu1 %v2404_v55, %s8584_s24  ;;  %2321 = vst.msk [vmem:[#allocation2 + $0x768] sm:$0xff] %vm2093_vm2, %v2091_v42  ;;  %v1444_v10 = vadd.f32 %v10175_v43, %v7947_v18 }
 0x1bd   :  { %v1438_v26 = vpop.f32.mrf.mxu0  ;;  %2229 = vst.msk [vmem:[#allocation2 + $0x428] sm:$0xff] %vm2093_vm2, %v1999_v23 }
 0x1be   :  { %v10179_v8 = vpop.permute.xlu0 %3201  ;;  %v10181_v12 = vpop.permute.xlu1 %3355  ;;  %v2002_v19 = vmax.f32 %v1444_v10, 0.0  ;;  %v1439_v20 = vadd.f32 %v10175_v43, %v1438_v26 }
 0x1bf   :  { %v7950_v54 = vpop.f32.mrf.mxu0 }
 0x1c0   :  { %3217 = vrot.lane.b32.xlu0 %v2403_v5, %s8585_s19  ;;  %3373 = vrot.lane.b32.xlu1 %v2406_v14, %s8584_s24  ;;  %2232 = vst.msk [vmem:[#allocation2 + $0x440] sm:$0xff] %vm2093_vm2, %v2002_v19  ;;  %v2001_v0 = vmax.f32 %v1439_v20, 0.0  ;;  %v1454_v30 = vadd.f32 %v10175_v43, %v7950_v54 }
 0x1c1   :  { %v1448_v34 = vpop.f32.mrf.mxu0 }
 0x1c2   :  { %v10192_v22 = vpop.permute.xlu0 %3009  ;;  %v10194_v17 = vpop.permute.xlu1 %3357  ;;  %2231 = vst.msk [vmem:[#allocation2 + $0x438] sm:$0xff] %vm2093_vm2, %v2001_v0  ;;  %v2004_v36 = vmax.f32 %v1454_v30, 0.0  ;;  %v1449_v44 = vadd.f32 %v10175_v43, %v1448_v34 }
 0x1c3   :  { %v7953_v33 = vpop.f32.mrf.mxu0 }
 0x1c4   :  { %3025 = vrot.lane.b32.xlu0 %v2406_v14, %s8582_s21  ;;  %3375 = vrot.lane.b32.xlu1 %v2408_v40, %s8584_s24  ;;  %2234 = vst.msk [vmem:[#allocation2 + $0x450] sm:$0xff] %vm2093_vm2, %v2004_v36  ;;  %v2003_v55 = vmax.f32 %v1449_v44, 0.0  ;;  %v1464_v24 = vadd.f32 %v10175_v43, %v7953_v33  ;;  %v213_v36 = vld [vmem:[%s13546_s27 + $0x4f8] sm:$0xff]  ;;  %v8502_v44 = vld [vmem:[#allocation2 + $0x100] sm:$0xff] }
 0x1c5   :  { %v1458_v3 = vpop.f32.mrf.mxu0  ;;  %8027 = vmatmul.mubr.msk.f32.gmra.mxu0 %vm259_vm1, %v213_v36 }
 0x1c6   :  { %v10207_v52 = vpop.permute.xlu0 %3203  ;;  %v10209_v32 = vpop.permute.xlu1 %3359  ;;  %2233 = vst.msk [vmem:[#allocation2 + $0x448] sm:$0xff] %vm2093_vm2, %v2003_v55  ;;  %v2006_v57 = vmax.f32 %v1464_v24, 0.0  ;;  %v1459_v42 = vadd.f32 %v10175_v43, %v1458_v3  ;;  %v2409_v3 = vld [vmem:[#allocation2 + $0x2d8] sm:$0xff] }
 0x1c7   :  { %v7956_v53 = vpop.f32.mrf.mxu0 }
 0x1c8   :  { %3219 = vrot.lane.b32.xlu0 %v2405_v47, %s8585_s19  ;;  %3377 = vrot.lane.b32.xlu1 %v2410_v63, %s8584_s24  ;;  %2236 = vst.msk [vmem:[#allocation2 + $0x460] sm:$0xff] %vm2093_vm2, %v2006_v57  ;;  %v2005_v14 = vmax.f32 %v1459_v42, 0.0  ;;  %v1474_v31 = vadd.f32 %v10175_v43, %v7956_v53  ;;  %v3955_v47 = vsel %vm2093_vm2, %v8502_v44, %v9863_v59  ;;  %v2414_v59 = vld [vmem:[#allocation2 + $0x308] sm:$0xff]  ;;  %v2417_v42 = vld [vmem:[#allocation2 + $0x320] sm:$0xff] }
 0x1c9   :  { %v1468_v9 = vpop.f32.mrf.mxu0  ;;  %v4005_v55 = vsel %vm3997_vm4, %v3955_v47, %v9850_v51  ;;  %v215_v57 = vld [vmem:[%s13546_s27 + $0x508] sm:$0xff]  ;;  %v8503_v47 = vld [vmem:[#allocation2 + $0x110] sm:$0xff] }
 0x1ca   :  { %v10217_v50 = vpop.permute.xlu0 %3011  ;;  %v10219_v25 = vpop.permute.xlu1 %3361  ;;  %2235 = vst.msk [vmem:[#allocation2 + $0x458] sm:$0xff] %vm2093_vm2, %v2005_v14  ;;  %v2008_v23 = vmax.f32 %v1474_v31, 0.0  ;;  %v1469_v10 = vadd.f32 %v10175_v43, %v1468_v9  ;;  %v4055_v51 = vsel %vm4047_vm5, %v4005_v55, %v9582_v28  ;;  %v216_v28 = vld [vmem:[%s13546_s27 + $0x510] sm:$0xff]  ;;  %v219_v44 = vld [vmem:[%s13546_s27 + $0x528] sm:$0xff] }
 0x1cb   :  { %v7959_v26 = vpop.f32.mrf.mxu0  ;;  %v4105_v53 = vsel %vm4097_vm6, %v4055_v51, %v10148_v58  ;;  %v2419_v51 = vld [vmem:[#allocation2 + $0x330] sm:$0xff] }
 0x1cc   :  { %3027 = vrot.lane.b32.xlu0 %v2408_v40, %s8582_s21  ;;  %3379 = vrot.lane.b32.xlu1 %v2412_v41, %s8584_s24  ;;  %v2407_v40 = vld [vmem:[#allocation2 + $0x2c8] sm:$0xff]  ;;  %2238 = vst.msk [vmem:[#allocation2 + $0x470] sm:$0xff] %vm2093_vm2, %v2008_v23  ;;  %v2007_v45 = vmax.f32 %v1469_v10, 0.0  ;;  %v1484_v19 = vadd.f32 %v10175_v43, %v7959_v26  ;;  %v4155_v9 = vsel %vm4147_vm7, %v4105_v53, %v10162_v56 }
 0x1cd   :  { %v1478_v20 = vpop.f32.mrf.mxu0  ;;  %v2411_v23 = vld [vmem:[#allocation2 + $0x2e8] sm:$0xff] }
 0x1ce   :  { %v10229_v5 = vpop.permute.xlu0 %3205  ;;  %v10231_v18 = vpop.permute.xlu1 %3363  ;;  %2237 = vst.msk [vmem:[#allocation2 + $0x468] sm:$0xff] %vm2093_vm2, %v2007_v45  ;;  %v2010_v30 = vmax.f32 %v1484_v19, 0.0  ;;  %v1479_v34 = vadd.f32 %v10175_v43, %v1478_v20  ;;  %v4205_v45 = vsel %vm4197_vm8, %v4155_v9, %v9580_v27 }
 0x1cf   :  { %v7962_v10 = vpop.f32.mrf.mxu0 }
 0x1d0   :  { %3221 = vrot.lane.b32.xlu0 %v2407_v40, %s8585_s19  ;;  %3829 = vrot.lane.b32.xlu1 %v10227_v38, %s8586_s28  ;;  %2240 = vst.msk [vmem:[#allocation2 + $0x490] sm:$0xff] %vm2093_vm2, %v2010_v30  ;;  %v2009_v33 = vmax.f32 %v1479_v34, 0.0  ;;  %v1494_v58 = vadd.f32 %v10175_v43, %v7962_v10  ;;  %v217_v40 = vld [vmem:[%s13546_s27 + $0x518] sm:$0xff]  ;;  %v218_v34 = vld [vmem:[%s13546_s27 + $0x520] sm:$0xff] }
 0x1d1   :  { %v1488_v26 = vpop.f32.mrf.mxu0 }
 0x1d2   :  { %v10243_v54 = vpop.permute.xlu0 %3013  ;;  %v10245_v0 = vpop.permute.xlu1 %3365  ;;  %2239 = vst.msk [vmem:[#allocation2 + $0x488] sm:$0xff] %vm2093_vm2, %v2009_v33  ;;  %v2012_v20 = vmax.f32 %v1494_v58, 0.0  ;;  %v1489_v39 = vadd.f32 %v10175_v43, %v1488_v26  ;;  %v3956_v33 = vsel %vm2093_vm2, %v8503_v47, %v9888_v35  ;;  %v8504_v26 = vld [vmem:[#allocation2 + $0x120] sm:$0xff] }
 0x1d3   :  { %v4006_v35 = vsel %vm3997_vm4, %v3956_v33, %v9874_v15 }
 0x1d4   :  { %3029 = vrot.lane.b32.xlu0 %v2410_v63, %s8582_s21  ;;  %3529 = vrot.lane.b32.xlu1 %v10227_v38, %s8583_s26  ;;  %v214_v63 = vld [vmem:[%s13546_s27 + $0x500] sm:$0xff]  ;;  %2242 = vst.msk [vmem:[#allocation2 + $0x4a0] sm:$0xff] %vm2093_vm2, %v2012_v20  ;;  %v2011_v27 = vmax.f32 %v1489_v39, 0.0 }
 0x1d5   :  { %8029 = vmatprep.mubr.msk.f32.mxu0 %vm259_vm1, %v214_v63  ;;  %v221_v63 = vld [vmem:[%s13546_s27 + $0x538] sm:$0xff] }
 0x1d6   :  { %v10262_v24 = vpop.permute.xlu0 %3207  ;;  %v3816_v41 = vpop.permute.xlu1 %3815  ;;  %8030 = vmatmul.mubr.msk.f32.gmra.mxu0 %vm259_vm1, %v215_v57  ;;  %2241 = vst.msk [vmem:[#allocation2 + $0x498] sm:$0xff] %vm2093_vm2, %v2011_v27  ;;  %v4056_v57 = vsel %vm4047_vm5, %v4006_v35, %v10129_v13  ;;  %v223_v13 = vld [vmem:[%s13546_s27 + $0x548] sm:$0xff] }
 0x1d7   :  { %8032 = vmatprep.mubr.msk.f32.mxu0 %vm259_vm1, %v216_v28  ;;  %v4106_v53 = vsel %vm4097_vm6, %v4056_v57, %v10179_v8 }
 0x1d8   :  { %3223 = vrot.lane.b32.xlu0 %v2409_v3, %s8585_s19  ;;  %3681 = vrot.lane.b32.xlu1 %v2414_v59, %s8588_s30  ;;  %v220_v3 = vld [vmem:[%s13546_s27 + $0x530] sm:$0xff]  ;;  %v4156_v8 = vsel %vm4147_vm7, %v4106_v53, %v10181_v12 }
 0x1d9   :  { %v7965_v58 = vpop.f32.mrf.mxu0 }
 0x1da   :  { %v10278_v14 = vpop.permute.xlu0 %3015  ;;  %v3516_v31 = vpop.permute.xlu1 %3515  ;;  %8033 = vmatmul.mubr.msk.f32.gmra.mxu0 %vm259_vm1, %v217_v40  ;;  %v1504_v12 = vadd.f32 %v10175_v43, %v7965_v58 }
 0x1db   :  { %8035 = vmatprep.mubr.msk.f32.mxu0 %vm259_vm1, %v218_v34  ;;  %v2418_v34 = vld [vmem:[#allocation2 + $0x328] sm:$0xff] }
 0x1dc   :  { %3225 = vrot.lane.b32.xlu0 %v2411_v23, %s8585_s19  ;;  %3831 = vrot.lane.b32.xlu1 %v2417_v42, %s8586_s28  ;;  %v4206_v23 = vsel %vm4197_vm8, %v4156_v8, %v3516_v31  ;;  %v3957_v31 = vsel %vm2093_vm2, %v8504_v26, %v9918_v1  ;;  %v2014_v39 = vmax.f32 %v1504_v12, 0.0 }
 0x1de   :  { %v10293_v56 = vpop.permute.xlu0 %3209  ;;  %v3668_v19 = vpop.permute.xlu1 %3667  ;;  %8036 = vmatmul.mubr.msk.f32.gmra.mxu0 %vm259_vm1, %v219_v44  ;;  %2244 = vst.msk [vmem:[#allocation2 + $0x4b0] sm:$0xff] %vm2093_vm2, %v2014_v39  ;;  %v2421_v44 = vld [vmem:[#allocation2 + $0x340] sm:$0xff] }
 0x1df   :  { %v4255_v30 = vsel %vm4247_vm9, %v4205_v45, %v3668_v19  ;;  %8038 = vmatprep.mubr.msk.f32.mxu0 %vm259_vm1, %v220_v3  ;;  %v1498_v45 = vpop.f32.mrf.mxu0 }
 0x1e0   :  { %2835 = vrot.lane.b32.xlu0 %v10227_v38, %s8581_s18  ;;  %3531 = vrot.lane.b32.xlu1 %v2417_v42, %s8583_s26  ;;  %v4305_v36 = vsel %vm4297_vm10, %v4255_v30, %v3816_v41  ;;  %v2416_v41 = vld [vmem:[#allocation2 + $0x318] sm:$0xff]  ;;  %v1499_v30 = vadd.f32 %v10175_v43, %v1498_v45 }
 0x1e1   :  { %8123 = vmatmul.mubr.msk.f32.gmra.mxu1 %vm4356_vm11, %v4305_v36  ;;  %v4007_v36 = vsel %vm3997_vm4, %v3957_v31, %v9907_v21  ;;  %v7968_v21 = vpop.f32.mrf.mxu0 }
 0x1e2   :  { %v10315_v38 = vpop.permute.xlu0 %3211  ;;  %v3818_v55 = vpop.permute.xlu1 %3817  ;;  %8125 = vmatprep.mubr.msk.f32.mxu1 %vm8587_vm3, %v13521_v4  ;;  %8039 = vmatmul.mubr.msk.f32.gmra.mxu0 %vm259_vm1, %v221_v63  ;;  %v2013_v1 = vmax.f32 %v1499_v30, 0.0  ;;  %v4057_v27 = vsel %vm4047_vm5, %v4007_v36, %v10160_v2  ;;  %v10418_v36 = vld [vmem:[#allocation2 + $0x350] sm:$0xff] }
 0x1e3   :  { %v4107_v47 = vsel %vm4097_vm6, %v4057_v27, %v10207_v52  ;;  %v1508_v3 = vpop.f32.mrf.mxu0  ;;  %v1514_v52 = vadd.f32 %v10175_v43, %v7968_v21 }
 0x1e4   :  { %2639 = vrot.lane.b32.xlu0 %v2414_v59, %s8580_s29  ;;  %3683 = vrot.lane.b32.xlu1 %v2416_v41, %s8588_s30  ;;  %v222_v59 = vld [vmem:[%s13546_s27 + $0x540] sm:$0xff]  ;;  %2243 = vst.msk [vmem:[#allocation2 + $0x4a8] sm:$0xff] %vm2093_vm2, %v2013_v1  ;;  %v1509_v57 = vadd.f32 %v10175_v43, %v1508_v3 }
 0x1e5   :  { %8041 = vmatprep.mubr.msk.f32.mxu0 %vm259_vm1, %v222_v59  ;;  %v7971_v53 = vpop.f32.mrf.mxu0  ;;  %v224_v59 = vld [vmem:[%s13546_s27 + $0x550] sm:$0xff] }
 0x1e6   :  { %v10336_v9 = vpop.permute.xlu0 %2821  ;;  %v3518_v15 = vpop.permute.xlu1 %3517  ;;  %8042 = vmatmul.mubr.msk.f32.gmra.mxu0 %vm259_vm1, %v223_v13  ;;  %v2015_v13 = vmax.f32 %v1509_v57, 0.0  ;;  %v1524_v8 = vadd.f32 %v10175_v43, %v7971_v53 }
 0x1e7   :  { %8044 = vmatprep.mubr.msk.f32.mxu0 %vm259_vm1, %v224_v59  ;;  %v1518_v58 = vpop.f32.mrf.mxu0 }
 0x1e8   :  { %2837 = vrot.lane.b32.xlu0 %v2417_v42, %s8581_s18  ;;  %3833 = vrot.lane.b32.xlu1 %v2419_v51, %s8586_s28  ;;  %2245 = vst.msk [vmem:[#allocation2 + $0x4b8] sm:$0xff] %vm2093_vm2, %v2015_v13  ;;  %v2018_v26 = vmax.f32 %v1524_v8, 0.0  ;;  %v1519_v31 = vadd.f32 %v10175_v43, %v1518_v58 }
 0x1e9   :  { %v7974_v45 = vpop.f32.mrf.mxu0 }
 0x1ea   :  { %v10351_v10 = vpop.permute.xlu0 %2625  ;;  %v3670_v28 = vpop.permute.xlu1 %3669  ;;  %2248 = vst.msk [vmem:[#allocation2 + $0x4d0] sm:$0xff] %vm2093_vm2, %v2018_v26  ;;  %v2017_v39 = vmax.f32 %v1519_v31, 0.0 }
 0x1eb   :  { %v4256_v42 = vsel %vm4247_vm9, %v4206_v23, %v3670_v28  ;;  %v225_v23 = vld [vmem:[%s13546_s27 + $0x558] sm:$0xff]  ;;  %v8505_v28 = vld [vmem:[#allocation2 + $0x130] sm:$0xff]  ;;  %v1528_v1 = vpop.f32.mrf.mxu0 }
 0x1ec   :  { %2641 = vrot.lane.b32.xlu0 %v2416_v41, %s8580_s29  ;;  %3533 = vrot.lane.b32.xlu1 %v2419_v51, %s8583_s26  ;;  %v4306_v40 = vsel %vm4297_vm10, %v4256_v42, %v3818_v55  ;;  %v4157_v41 = vsel %vm4147_vm7, %v4107_v47, %v10194_v17  ;;  %v3958_v42 = vsel %vm2093_vm2, %v8505_v28, %v9951_v62  ;;  %v2420_v62 = vld [vmem:[#allocation2 + $0x338] sm:$0xff] }
 0x1ed   :  { %8126 = vmatmul.mubr.msk.f32.gmra.mxu1 %vm4356_vm11, %v4306_v40  ;;  %v4207_v2 = vsel %vm4197_vm8, %v4157_v41, %v3518_v15  ;;  %v2016_v15 = vmax.f32 %v1514_v52, 0.0  ;;  %8045 = vmatmul.mubr.msk.f32.gmra.mxu0 %vm259_vm1, %v225_v23  ;;  %2247 = vst.msk [vmem:[#allocation2 + $0x4c8] sm:$0xff] %vm2093_vm2, %v2017_v39  ;;  %v1534_v47 = vadd.f32 %v10175_v43, %v7974_v45  ;;  %v7977_v41 = vpop.f32.mrf.mxu0  ;;  %v8506_v23 = vld [vmem:[#allocation2 + $0x140] sm:$0xff]  ;;  %v227_v39 = vld [vmem:[%s13546_s27 + $0x568] sm:$0xff] }
 0x1ee   :  { %v10362_v19 = vpop.permute.xlu0 %2823  ;;  %v3820_v20 = vpop.permute.xlu1 %3819  ;;  %8128 = vmatprep.mubr.msk.f32.mxu1 %vm8587_vm3, %v13521_v4  ;;  %v1529_v21 = vadd.f32 %v10175_v43, %v1528_v1  ;;  %v3959_v28 = vsel %vm2093_vm2, %v8506_v23, %v9990_v48  ;;  %v226_v45 = vld [vmem:[%s13546_s27 + $0x560] sm:$0xff] }
 0x1ef   :  { %2246 = vst.msk [vmem:[#allocation2 + $0x4c0] sm:$0xff] %vm2093_vm2, %v2016_v15  ;;  %v1538_v52 = vpop.f32.mrf.mxu0  ;;  %v4009_v48 = vsel %vm3997_vm4, %v3959_v28, %v9971_v60  ;;  %v10471_v1 = vld [vmem:[#allocation2 + $0x3a0] sm:$0xff]  ;;  %8047 = vmatprep.mubr.msk.f32.mxu0 %vm259_vm1, %v226_v45  ;;  %v2435_v45 = vld [vmem:[#allocation2 + $0x3b8] sm:$0xff] }
 0x1f0   :  { %2839 = vrot.lane.b32.xlu0 %v2419_v51, %s8581_s18  ;;  %3685 = vrot.lane.b32.xlu1 %v2418_v34, %s8588_s30  ;;  %v2019_v3 = vmax.f32 %v1529_v21, 0.0  ;;  %v2431_v21 = vld [vmem:[#allocation2 + $0x398] sm:$0xff] }
 0x1f1   :  { %8048 = vmatmul.mubr.msk.f32.gmra.mxu0 %vm259_vm1, %v227_v39 }
 0x1f2   :  { %v10376_v33 = vpop.permute.xlu0 %2627  ;;  %v3520_v55 = vpop.permute.xlu1 %3519  ;;  %2249 = vst.msk [vmem:[#allocation2 + $0x4d8] sm:$0xff] %vm2093_vm2, %v2019_v3 }
 0x1f3   :  { %v7980_v13 = vpop.f32.mrf.mxu0 }
 0x1f4   :  { %2643 = vrot.lane.b32.xlu0 %v2418_v34, %s8580_s29  ;;  %3835 = vrot.lane.b32.xlu1 %v2421_v44, %s8586_s28  ;;  %v2422_v34 = vld [vmem:[#allocation2 + $0x348] sm:$0xff]  ;;  %v1554_v8 = vadd.f32 %v10175_v43, %v7980_v13 }
 0x1f5   :  { %v1548_v58 = vpop.f32.mrf.mxu0  ;;  %v2433_v13 = vld [vmem:[#allocation2 + $0x3a8] sm:$0xff] }
 0x1f6   :  { %v10384_v35 = vpop.permute.xlu0 %2825  ;;  %v3672_v63 = vpop.permute.xlu1 %3671 }
 0x1f7   :  { %v4257_v51 = vsel %vm4247_vm9, %v4207_v2, %v3672_v63  ;;  %v1544_v2 = vadd.f32 %v10175_v43, %v7977_v41  ;;  %v10433_v63 = vld [vmem:[#allocation2 + $0x390] sm:$0xff] }
 0x1f8   :  { %2841 = vrot.lane.b32.xlu0 %v2421_v44, %s8581_s18  ;;  %3535 = vrot.lane.b32.xlu1 %v2421_v44, %s8583_s26  ;;  %v4307_v17 = vsel %vm4297_vm10, %v4257_v51, %v3820_v20  ;;  %v4008_v20 = vsel %vm3997_vm4, %v3958_v42, %v9935_v37  ;;  %v2429_v42 = vld [vmem:[#allocation2 + $0x388] sm:$0xff] }
 0x1f9   :  { %8129 = vmatmul.mubr.msk.f32.gmra.mxu1 %vm4356_vm11, %v4307_v17  ;;  %v4058_v30 = vsel %vm4047_vm5, %v4008_v20, %v10192_v22  ;;  %v2020_v22 = vmax.f32 %v1534_v47, 0.0  ;;  %v2022_v59 = vmax.f32 %v1544_v2, 0.0  ;;  %v1539_v17 = vadd.f32 %v10175_v43, %v1538_v52 }
 0x1fa   :  { %v10403_v40 = vpop.permute.xlu0 %2629  ;;  %v3822_v12 = vpop.permute.xlu1 %3821  ;;  %8131 = vmatprep.mubr.msk.f32.mxu1 %vm8587_vm3, %v13521_v4  ;;  %v4108_v27 = vsel %vm4097_vm6, %v4058_v30, %v10229_v5  ;;  %v4059_v30 = vsel %vm4047_vm5, %v4009_v48, %v10217_v50 }
 0x1fb   :  { %v4158_v5 = vsel %vm4147_vm7, %v4108_v27, %v10209_v32  ;;  %2250 = vst.msk [vmem:[#allocation2 + $0x4e0] sm:$0xff] %vm2093_vm2, %v2020_v22  ;;  %2252 = vst.msk [vmem:[#allocation2 + $0x4f0] sm:$0xff] %vm2093_vm2, %v2022_v59  ;;  %v10473_v27 = vld [vmem:[#allocation2 + $0x360] sm:$0xff]  ;;  %v4109_v60 = vsel %vm4097_vm6, %v4059_v30, %v10262_v24 }
 0x1fc   :  { %2645 = vrot.lane.b32.xlu0 %v2420_v62, %s8580_s29  ;;  %3687 = vrot.lane.b32.xlu1 %v2420_v62, %s8588_s30  ;;  %v4208_v57 = vsel %vm4197_vm8, %v4158_v5, %v3520_v55  ;;  %v2021_v55 = vmax.f32 %v1539_v17, 0.0  ;;  %v1549_v62 = vadd.f32 %v10175_v43, %v1548_v58  ;;  %v4159_v50 = vsel %vm4147_vm7, %v4109_v60, %v10219_v25  ;;  %v8507_v5 = vld [vmem:[#allocation2 + $0x150] sm:$0xff]  ;;  %v10544_v60 = vld [vmem:[#allocation2 + $0x368] sm:$0xff] }
 0x1fd   :  { %v3960_v52 = vsel %vm2093_vm2, %v8507_v5, %v10037_v16  ;;  %v10499_v25 = vld [vmem:[#allocation2 + $0x3b0] sm:$0xff] }
 0x1fe   :  { %v10422_v44 = vpop.permute.xlu0 %2827  ;;  %v3522_v37 = vpop.permute.xlu1 %3521  ;;  %2251 = vst.msk [vmem:[#allocation2 + $0x4e8] sm:$0xff] %vm2093_vm2, %v2021_v55  ;;  %v2023_v20 = vmax.f32 %v1549_v62, 0.0  ;;  %v4010_v17 = vsel %vm3997_vm4, %v3960_v52, %v10012_v29  ;;  %v228_v58 = vld [vmem:[%s13546_s27 + $0x570] sm:$0xff] }
 0x1ff   :  { %v4209_v41 = vsel %vm4197_vm8, %v4159_v50, %v3522_v37  ;;  %8050 = vmatprep.mubr.msk.f32.mxu0 %vm259_vm1, %v228_v58 }
 0x200   :  { %2647 = vrot.lane.b32.xlu0 %v2422_v34, %s8580_s29  ;;  %3837 = vrot.lane.b32.xlu1 %v10418_v36, %s8586_s28  ;;  %2253 = vst.msk [vmem:[#allocation2 + $0x508] sm:$0xff] %vm2093_vm2, %v2023_v20 }
 0x202   :  { %v10436_v51 = vpop.permute.xlu0 %2631  ;;  %v3674_v53 = vpop.permute.xlu1 %3673 }
 0x203   :  { %v4258_v15 = vsel %vm4247_vm9, %v4208_v57, %v3674_v53  ;;  %v10505_v53 = vld [vmem:[#allocation2 + $0x358] sm:$0xff] }
 0x204   :  { %3033 = vrot.lane.b32.xlu0 %v10433_v63, %s8582_s21  ;;  %3537 = vrot.lane.b32.xlu1 %v10418_v36, %s8583_s26  ;;  %v4308_v32 = vsel %vm4297_vm10, %v4258_v15, %v3822_v12  ;;  %v2024_v12 = vmax.f32 %v1554_v8, 0.0  ;;  %v4060_v15 = vsel %vm4047_vm5, %v4010_v17, %v10243_v54 }
 0x205   :  { %8132 = vmatmul.mubr.msk.f32.gmra.mxu1 %vm4356_vm11, %v4308_v32  ;;  %v7983_v59 = vpop.f32.mrf.mxu0  ;;  %v10516_v32 = vld [vmem:[#allocation2 + $0x370] sm:$0xff]  ;;  %v4110_v8 = vsel %vm4097_vm6, %v4060_v15, %v10293_v56  ;;  %v229_v56 = vld [vmem:[%s13546_s27 + $0x578] sm:$0xff]  ;;  %s8591_s27 = smov 112  }
 0x206   :  { %v10452_v26 = vpop.permute.xlu0 %2829  ;;  %v3824_v31 = vpop.permute.xlu1 %3823  ;;  %8134 = vmatprep.mubr.msk.f32.mxu1 %vm8587_vm3, %v13521_v4  ;;  %2254 = vst.msk [vmem:[#allocation2 + $0x510] sm:$0xff] %vm2093_vm2, %v2024_v12  ;;  %v1564_v16 = vadd.f32 %v10175_v43, %v7983_v59  ;;  %v4160_v62 = vsel %vm4147_vm7, %v4110_v8, %v10231_v18  ;;  %8051 = vmatmul.mubr.msk.f32.gmra.mxu0 %vm259_vm1, %v229_v56 }
 0x207   :  { %v1558_v55 = vpop.f32.mrf.mxu0 }
 0x208   :  { %3227 = vrot.lane.b32.xlu0 %v2429_v42, %s8585_s19  ;;  %3689 = vrot.lane.b32.xlu1 %v2422_v34, %s8588_s30  ;;  %v2026_v28 = vmax.f32 %v1564_v16, 0.0  ;;  %v1559_v42 = vadd.f32 %v10175_v43, %v1558_v55 }
 0x20a   :  { %v10478_v34 = vpop.permute.xlu0 %2633  ;;  %v3524_v47 = vpop.permute.xlu1 %3523  ;;  %2256 = vst.msk [vmem:[#allocation2 + $0x520] sm:$0xff] %vm2093_vm2, %v2026_v28  ;;  %v2025_v54 = vmax.f32 %v1559_v42, 0.0 }
 0x20b   :  { %v4210_v48 = vsel %vm4197_vm8, %v4160_v62, %v3524_v47 }
 0x20c   :  { %3035 = vrot.lane.b32.xlu0 %v10471_v1, %s8582_s21  ;;  %3839 = vrot.lane.b32.xlu1 %v10473_v27, %s8586_s28  ;;  %2255 = vst.msk [vmem:[#allocation2 + $0x518] sm:$0xff] %vm2093_vm2, %v2025_v54  ;;  %v2438_v54 = vld [vmem:[#allocation2 + $0x3d0] sm:$0xff] }
 0x20e   :  { %v10489_v24 = vpop.permute.xlu0 %2831  ;;  %v3676_v22 = vpop.permute.xlu1 %3675 }
 0x20f   :  { %v4259_v3 = vsel %vm4247_vm9, %v4209_v41, %v3676_v22 }
 0x210   :  { %3229 = vrot.lane.b32.xlu0 %v2431_v21, %s8585_s19  ;;  %3539 = vrot.lane.b32.xlu1 %v10473_v27, %s8583_s26  ;;  %v4309_v2 = vsel %vm4297_vm10, %v4259_v3, %v3824_v31  ;;  %v8508_v31 = vld [vmem:[#allocation2 + $0x160] sm:$0xff] }
 0x211   :  { %8135 = vmatmul.mubr.msk.f32.gmra.mxu1 %vm4356_vm11, %v4309_v2  ;;  %v3961_v12 = vsel %vm2093_vm2, %v8508_v31, %v10100_v11 }
 0x212   :  { %v10501_v37 = vpop.permute.xlu0 %2635  ;;  %v3826_v57 = vpop.permute.xlu1 %3825  ;;  %8137 = vmatprep.mubr.msk.f32.mxu1 %vm8587_vm3, %v13521_v4  ;;  %v4011_v11 = vsel %vm3997_vm4, %v3961_v12, %v10071_v61 }
 0x213   :  { %v4061_v47 = vsel %vm4047_vm5, %v4011_v11, %v10278_v14  ;;  %v2436_v14 = vld [vmem:[#allocation2 + $0x3c0] sm:$0xff] }
 0x214   :  { %3037 = vrot.lane.b32.xlu0 %v10499_v25, %s8582_s21  ;;  %3691 = vrot.lane.b32.xlu1 %v10505_v53, %s8588_s30  ;;  %v4111_v50 = vsel %vm4097_vm6, %v4061_v47, %v10315_v38 }
 0x215   :  { %v4161_v61 = vsel %vm4147_vm7, %v4111_v50, %v10245_v0  ;;  %v10619_v50 = vld [vmem:[#allocation2 + $0x410] sm:$0xff] }
 0x216   :  { %v10520_v23 = vpop.permute.xlu0 %2833  ;;  %v3526_v29 = vpop.permute.xlu1 %3525 }
 0x217   :  { %v4211_v22 = vsel %vm4197_vm8, %v4161_v61, %v3526_v29 }
 0x218   :  { %3231 = vrot.lane.b32.xlu0 %v2433_v13, %s8585_s19  ;;  %3841 = vrot.lane.b32.xlu1 %v10516_v32, %s8586_s28 }
 0x219   :  { %v7986_v5 = vpop.f32.mrf.mxu0 }
 0x21a   :  { %v10539_v20 = vpop.permute.xlu0 %2637  ;;  %v3678_v39 = vpop.permute.xlu1 %3677  ;;  %v1574_v59 = vadd.f32 %v10175_v43, %v7986_v5  ;;  %v2439_v5 = vld [vmem:[#allocation2 + $0x3d8] sm:$0xff] }
 0x21b   :  { %v4260_v30 = vsel %vm4247_vm9, %v4210_v48, %v3678_v39  ;;  %v1568_v0 = vpop.f32.mrf.mxu0 }
 0x21c   :  { %3233 = vrot.lane.b32.xlu0 %v2435_v45, %s8585_s19  ;;  %3693 = vrot.lane.b32.xlu1 %v10544_v60, %s8588_s30  ;;  %v4310_v18 = vsel %vm4297_vm10, %v4260_v30, %v3826_v57  ;;  %v1569_v17 = vadd.f32 %v10175_v43, %v1568_v0  ;;  %v2440_v30 = vld [vmem:[#allocation2 + $0x3e0] sm:$0xff] }
 0x21d   :  { %8138 = vmatmul.mubr.msk.f32.gmra.mxu1 %vm4356_vm11, %v4310_v18 }
 0x21e   :  { %v10557_v21 = vpop.permute.xlu0 %3019  ;;  %v3828_v41 = vpop.permute.xlu1 %3827  ;;  %8140 = vmatprep.mubr.msk.f32.mxu1 %vm8587_vm3, %v13521_v4  ;;  %v2027_v16 = vmax.f32 %v1569_v17, 0.0 }
 0x220   :  { %2843 = vrot.lane.b32.xlu0 %v10418_v36, %s8581_s18  ;;  %3381 = vrot.lane.b32.xlu1 %v10433_v63, %s8584_s24  ;;  %v2437_v63 = vld [vmem:[#allocation2 + $0x3c8] sm:$0xff]  ;;  %2257 = vst.msk [vmem:[#allocation2 + $0x528] sm:$0xff] %vm2093_vm2, %v2027_v16 }
 0x221   :  { %v7989_v55 = vpop.f32.mrf.mxu0 }
 0x222   :  { %v10568_v3 = vpop.permute.xlu0 %3213  ;;  %v3680_v38 = vpop.permute.xlu1 %3679  ;;  %v1584_v8 = vadd.f32 %v10175_v43, %v7989_v55 }
 0x223   :  { %v4261_v2 = vsel %vm4247_vm9, %v4211_v22, %v3680_v38  ;;  %v1578_v29 = vpop.f32.mrf.mxu0 }
 0x224   :  { %3039 = vrot.lane.b32.xlu0 %v2436_v14, %s8582_s21  ;;  %3383 = vrot.lane.b32.xlu1 %v10471_v1, %s8584_s24  ;;  %v4311_v36 = vsel %vm4297_vm10, %v4261_v2, %v3828_v41  ;;  %v2028_v1 = vmax.f32 %v1574_v59, 0.0  ;;  %v2030_v42 = vmax.f32 %v1584_v8, 0.0  ;;  %v1579_v58 = vadd.f32 %v10175_v43, %v1578_v29 }
 0x225   :  { %8141 = vmatmul.mubr.msk.f32.gmra.mxu1 %vm4356_vm11, %v4311_v36  ;;  %v7992_v56 = vpop.f32.mrf.mxu0 }
 0x226   :  { %v10576_v52 = vpop.permute.xlu0 %3021  ;;  %v10578_v57 = vpop.permute.xlu1 %3367  ;;  %8143 = vmatprep.mubr.msk.f32.mxu1 %vm8587_vm3, %v13521_v4  ;;  %2258 = vst.msk [vmem:[#allocation2 + $0x530] sm:$0xff] %vm2093_vm2, %v2028_v1  ;;  %2260 = vst.msk [vmem:[#allocation2 + $0x540] sm:$0xff] %vm2093_vm2, %v2030_v42  ;;  %v1594_v31 = vadd.f32 %v10175_v43, %v7992_v56 }
 0x227   :  { %v1588_v12 = vpop.f32.mrf.mxu0 }
 0x228   :  { %3235 = vrot.lane.b32.xlu0 %v2437_v63, %s8585_s19  ;;  %3385 = vrot.lane.b32.xlu1 %v10499_v25, %s8584_s24  ;;  %v2032_v48 = vmax.f32 %v1594_v31, 0.0  ;;  %v1589_v39 = vadd.f32 %v10175_v43, %v1588_v12  ;;  %v8509_v12 = vld [vmem:[#allocation2 + $0x200] sm:$0xff] }
 0x22a   :  { %v10587_v15 = vpop.permute.xlu0 %3215  ;;  %v10589_v13 = vpop.permute.xlu1 %3369  ;;  %2262 = vst.msk [vmem:[#allocation2 + $0x550] sm:$0xff] %vm2093_vm2, %v2032_v48  ;;  %v2444_v48 = vld [vmem:[#allocation2 + $0x408] sm:$0xff] }
 0x22b   :  { %v7995_v11 = vpop.f32.mrf.mxu0 }
 0x22c   :  { %2649 = vrot.lane.b32.xlu0 %v10505_v53, %s8580_s29  ;;  %3387 = vrot.lane.b32.xlu1 %v2436_v14, %s8584_s24  ;;  %v2029_v53 = vmax.f32 %v1579_v58, 0.0  ;;  %v1604_v18 = vadd.f32 %v10175_v43, %v7995_v11 }
 0x22d   :  { %v1598_v41 = vpop.f32.mrf.mxu0 }
 0x22e   :  { %v10597_v25 = vpop.permute.xlu0 %3023  ;;  %v10599_v28 = vpop.permute.xlu1 %3371  ;;  %2259 = vst.msk [vmem:[#allocation2 + $0x538] sm:$0xff] %vm2093_vm2, %v2029_v53  ;;  %v2034_v22 = vmax.f32 %v1604_v18, 0.0  ;;  %v1599_v38 = vadd.f32 %v10175_v43, %v1598_v41 }
 0x22f   :  { %v7998_v36 = vpop.f32.mrf.mxu0 }
 0x230   :  { %2845 = vrot.lane.b32.xlu0 %v10473_v27, %s8581_s18  ;;  %3389 = vrot.lane.b32.xlu1 %v2438_v54, %s8584_s24  ;;  %v2031_v27 = vmax.f32 %v1589_v39, 0.0  ;;  %2264 = vst.msk [vmem:[#allocation2 + $0x560] sm:$0xff] %vm2093_vm2, %v2034_v22  ;;  %v2033_v63 = vmax.f32 %v1599_v38, 0.0  ;;  %v1614_v0 = vadd.f32 %v10175_v43, %v7998_v36  ;;  %v2441_v36 = vld [vmem:[#allocation2 + $0x3e8] sm:$0xff] }
 0x231   :  { %v1608_v59 = vpop.f32.mrf.mxu0 }
 0x232   :  { %v10607_v62 = vpop.permute.xlu0 %3217  ;;  %v10609_v45 = vpop.permute.xlu1 %3373  ;;  %2261 = vst.msk [vmem:[#allocation2 + $0x548] sm:$0xff] %vm2093_vm2, %v2031_v27  ;;  %2263 = vst.msk [vmem:[#allocation2 + $0x558] sm:$0xff] %vm2093_vm2, %v2033_v63  ;;  %v2036_v16 = vmax.f32 %v1614_v0, 0.0  ;;  %v1609_v55 = vadd.f32 %v10175_v43, %v1608_v59  ;;  %v10658_v27 = vld [vmem:[#allocation2 + $0x420] sm:$0xff] }
 0x233   :  { %v8001_v8 = vpop.f32.mrf.mxu0 }
 0x234   :  { %3041 = vrot.lane.b32.xlu0 %v2438_v54, %s8582_s21  ;;  %3391 = vrot.lane.b32.xlu1 %v2440_v30, %s8584_s24  ;;  %2266 = vst.msk [vmem:[#allocation2 + $0x570] sm:$0xff] %vm2093_vm2, %v2036_v16  ;;  %v2035_v29 = vmax.f32 %v1609_v55, 0.0  ;;  %v1624_v42 = vadd.f32 %v10175_v43, %v8001_v8  ;;  %v2446_v16 = vld [vmem:[#allocation2 + $0x418] sm:$0xff] }
 0x235   :  { %v10617_v47 = vpop.f32.mrf.mxu1  ;;  %v1618_v58 = vpop.f32.mrf.mxu0 }
 0x236   :  { %v10621_v61 = vpop.permute.xlu0 %3025  ;;  %v10623_v14 = vpop.permute.xlu1 %3375  ;;  %2265 = vst.msk [vmem:[#allocation2 + $0x568] sm:$0xff] %vm2093_vm2, %v2035_v29  ;;  %v2038_v53 = vmax.f32 %v1624_v42, 0.0  ;;  %v1619_v31 = vadd.f32 %v10175_v43, %v1618_v58  ;;  %v8510_v42 = vld [vmem:[#allocation2 + $0x210] sm:$0xff] }
 0x237   :  { %v8103_v2 = vpop.f32.mrf.mxu1 }
 0x238   :  { %3237 = vrot.lane.b32.xlu0 %v2439_v5, %s8585_s19  ;;  %3843 = vrot.lane.b32.xlu1 %v10619_v50, %s8586_s28  ;;  %2268 = vst.msk [vmem:[#allocation2 + $0x590] sm:$0xff] %vm2093_vm2, %v2038_v53  ;;  %v2037_v39 = vmax.f32 %v1619_v31, 0.0  ;;  %v10694_v53 = vld [vmem:[#allocation2 + $0x430] sm:$0xff] }
 0x23a   :  { %v10632_v17 = vpop.permute.xlu0 %3219  ;;  %v10634_v1 = vpop.permute.xlu1 %3377  ;;  %2267 = vst.msk [vmem:[#allocation2 + $0x588] sm:$0xff] %vm2093_vm2, %v2037_v39  ;;  %v2458_v39 = vld [vmem:[#allocation2 + $0x480] sm:$0xff] }
 0x23c   :  { %2651 = vrot.lane.b32.xlu0 %v10544_v60, %s8580_s29  ;;  %3543 = vrot.lane.b32.xlu1 %v10619_v50, %s8583_s26  ;;  %v3962_v60 = vsel %vm2093_vm2, %v8509_v12, %v10351_v10 }
 0x23d   :  { %v4012_v18 = vsel %vm3997_vm4, %v3962_v60, %v10336_v9 }
 0x23e   :  { %v10644_v54 = vpop.permute.xlu0 %3027  ;;  %v10646_v56 = vpop.permute.xlu1 %3379 }
 0x240   :  { %2847 = vrot.lane.b32.xlu0 %v10516_v32, %s8581_s18  ;;  %3695 = vrot.lane.b32.xlu1 %v2444_v48, %s8588_s30  ;;  %v4062_v32 = vsel %vm4047_vm5, %v4012_v18, %v9606_v49 }
 0x241   :  { %v10656_v11 = vpop.f32.mrf.mxu1  ;;  %v4112_v38 = vsel %vm4097_vm6, %v4062_v32, %v10568_v3 }
 0x242   :  { %13547 = vst [vmem:[#allocation10_spill] sm:$0xff] %v10656_v11  ;;  %v10662_v41 = vpop.permute.xlu0 %3221  ;;  %v3830_v22 = vpop.permute.xlu1 %3829  ;;  %v4162_v5 = vsel %vm4147_vm7, %v4112_v38, %v10578_v57 }
 0x243   :  { %v8106_v10 = vpop.f32.mrf.mxu1  ;;  %v4212_v49 = vsel %vm4197_vm8, %v4162_v5, %v9604_v46  ;;  %v3963_v46 = vsel %vm2093_vm2, %v8510_v42, %v10376_v33 }
 0x244   :  { %3043 = vrot.lane.b32.xlu0 %v2440_v30, %s8582_s21  ;;  %3845 = vrot.lane.b32.xlu1 %v10658_v27, %s8586_s28  ;;  %v8004_v30 = vpop.f32.mrf.mxu0 }
 0x245   :  { %v1634_v3 = vadd.f32 %v10175_v43, %v8004_v30  ;;  %v8511_v30 = vld [vmem:[#allocation2 + $0x220] sm:$0xff] }
 0x246   :  { %v10672_v2 = vpop.permute.xlu0 %3029  ;;  %v3530_v9 = vpop.permute.xlu1 %3529 }
 0x247   :  { %v1628_v55 = vpop.f32.mrf.mxu0  ;;  %v2040_v8 = vmax.f32 %v1634_v3, 0.0 }
 0x248   :  { %3239 = vrot.lane.b32.xlu0 %v2441_v36, %s8585_s19  ;;  %3545 = vrot.lane.b32.xlu1 %v10658_v27, %s8583_s26  ;;  %v1629_v29 = vadd.f32 %v10175_v43, %v1628_v55 }
 0x249   :  { %2270 = vst.msk [vmem:[#allocation2 + $0x5a0] sm:$0xff] %vm2093_vm2, %v2040_v8 }
 0x24a   :  { %v10679_v63 = vpop.permute.xlu0 %3223  ;;  %v3682_v0 = vpop.permute.xlu1 %3681  ;;  %v2039_v60 = vmax.f32 %v1629_v29, 0.0 }
 0x24b   :  { %v4262_v59 = vsel %vm4247_vm9, %v4212_v49, %v3682_v0 }
 0x24c   :  { %2653 = vrot.lane.b32.xlu0 %v2444_v48, %s8580_s29  ;;  %3697 = vrot.lane.b32.xlu1 %v2446_v16, %s8588_s30  ;;  %v4312_v57 = vsel %vm4297_vm10, %v4262_v59, %v3830_v22  ;;  %v4013_v48 = vsel %vm3997_vm4, %v3963_v46, %v10362_v19  ;;  %2269 = vst.msk [vmem:[#allocation2 + $0x598] sm:$0xff] %vm2093_vm2, %v2039_v60 }
 0x24d   :  { %v10691_v58 = vpop.f32.mrf.mxu1  ;;  %8144 = vmatmul.mubr.msk.f32.gmra.mxu1 %vm4356_vm11, %v4312_v57  ;;  %v4063_v33 = vsel %vm4047_vm5, %v4013_v48, %v10557_v21  ;;  %v10765_v48 = vld [vmem:[#allocation2 + $0x490] sm:$0xff] }
 0x24e   :  { %13548 = vst [vmem:[#allocation11_spill] sm:$0xff] %v10691_v58  ;;  %v10696_v31 = vpop.permute.xlu0 %3225  ;;  %v3832_v12 = vpop.permute.xlu1 %3831  ;;  %8146 = vmatprep.mubr.msk.f32.mxu1 %vm8587_vm3, %v13521_v4  ;;  %v4113_v18 = vsel %vm4097_vm6, %v4063_v33, %v10587_v15  ;;  %v10723_v15 = vld [vmem:[#allocation2 + $0x428] sm:$0xff] }
 0x24f   :  { %v8109_v43 = vpop.f32.mrf.mxu1  ;;  %v4163_v19 = vsel %vm4147_vm7, %v4113_v18, %v10589_v13  ;;  %v3964_v13 = vsel %vm2093_vm2, %v8511_v30, %v10403_v40  ;;  %v10748_v40 = vld [vmem:[%s13505_s2] ss:$0 sm:$0xff]  ;;  %v10772_v18 = vld [vmem:[#allocation2 + $0x438] sm:$0xff] }
 0x250   :  { %2849 = vrot.lane.b32.xlu0 %v10619_v50, %s8581_s18  ;;  %3847 = vrot.lane.b32.xlu1 %v10694_v53, %s8586_s28  ;;  %v2459_v50 = vld [vmem:[#allocation2 + $0x488] sm:$0xff]  ;;  %v4213_v32 = vsel %vm4197_vm8, %v4163_v19, %v3530_v9  ;;  %v10734_v9 = vld [vmem:[#allocation2 + $0x440] sm:$0xff]  ;;  %v4014_v57 = vsel %vm3997_vm4, %v3964_v13, %v10384_v35 }
 0x251   :  { %v8007_v55 = vpop.f32.mrf.mxu0  ;;  %v4064_v29 = vsel %vm4047_vm5, %v4014_v57, %v10576_v52 }
 0x252   :  { %v10712_v22 = vpop.permute.xlu0 %2835  ;;  %v3532_v10 = vpop.permute.xlu1 %3531  ;;  %v1644_v8 = vadd.f32 %v10748_v40, %v8007_v55  ;;  %v4114_v46 = vsel %vm4097_vm6, %v4064_v29, %v10607_v62 }
 0x253   :  { %v1638_v42 = vpop.f32.mrf.mxu0  ;;  %v4164_v52 = vsel %vm4147_vm7, %v4114_v46, %v10599_v28 }
 0x254   :  { %3045 = vrot.lane.b32.xlu0 %v2458_v39, %s8582_s21  ;;  %3547 = vrot.lane.b32.xlu1 %v10694_v53, %s8583_s26  ;;  %v1639_v60 = vadd.f32 %v10748_v40, %v1638_v42  ;;  %v4214_v62 = vsel %vm4197_vm8, %v4164_v52, %v3532_v10 }
 0x256   :  { %v10720_v38 = vpop.permute.xlu0 %2639  ;;  %v3684_v21 = vpop.permute.xlu1 %3683  ;;  %v2041_v43 = vmax.f32 %v1639_v60, 0.0 }
 0x257   :  { %v4263_v5 = vsel %vm4247_vm9, %v4213_v32, %v3684_v21 }
 0x258   :  { %3241 = vrot.lane.b32.xlu0 %v2459_v50, %s8585_s19  ;;  %3699 = vrot.lane.b32.xlu1 %v10723_v15, %s8588_s30  ;;  %v4313_v36 = vsel %vm4297_vm10, %v4263_v5, %v3832_v12  ;;  %v2042_v12 = vmax.f32 %v1644_v8, 0.0  ;;  %2271 = vst.msk [vmem:[#allocation2 + $0x5a8] sm:$0xff] %vm2093_vm2, %v2041_v43  ;;  %v8513_v50 = vld [vmem:[#allocation2 + $0x230] sm:$0xff]  ;;  %v2461_v5 = vld [vmem:[#allocation2 + $0x498] sm:$0xff] }
 0x259   :  { %v10731_v49 = vpop.f32.mrf.mxu1  ;;  %8147 = vmatmul.mubr.msk.f32.gmra.mxu1 %vm4356_vm11, %v4313_v36  ;;  %v3965_v32 = vsel %vm2093_vm2, %v8513_v50, %v10436_v51  ;;  %v10785_v36 = vld [vmem:[#allocation2 + $0x450] sm:$0xff] }
 0x25a   :  { %13549 = vst [vmem:[#allocation12_spill] sm:$0xff] %v10731_v49  ;;  %v10736_v0 = vpop.permute.xlu0 %2837  ;;  %v3834_v3 = vpop.permute.xlu1 %3833  ;;  %8149 = vmatprep.mubr.msk.f32.mxu1 %vm8587_vm3, %v13521_v4  ;;  %2272 = vst.msk [vmem:[#allocation2 + $0x5b0] sm:$0xff] %vm2093_vm2, %v2042_v12  ;;  %v4015_v51 = vsel %vm3997_vm4, %v3965_v32, %v10422_v44 }
 0x25b   :  { %v8112_v59 = vpop.f32.mrf.mxu1  ;;  %v8010_v19 = vpop.f32.mrf.mxu0  ;;  %v4065_v42 = vsel %vm4047_vm5, %v4015_v51, %v10597_v25 }
 0x25c   :  { %2655 = vrot.lane.b32.xlu0 %v2446_v16, %s8580_s29  ;;  %3849 = vrot.lane.b32.xlu1 %v10734_v9, %s8586_s28  ;;  %v1654_v10 = vadd.f32 %v10748_v40, %v8010_v19  ;;  %v4115_v12 = vsel %vm4097_vm6, %v4065_v42, %v10632_v17 }
 0x25d   :  { %v1648_v30 = vpop.f32.mrf.mxu0  ;;  %v4165_v19 = vsel %vm4147_vm7, %v4115_v12, %v10609_v45 }
 0x25e   :  { %v10755_v35 = vpop.permute.xlu0 %2641  ;;  %v3534_v16 = vpop.permute.xlu1 %3533  ;;  %v1649_v55 = vadd.f32 %v10748_v40, %v1648_v30 }
 0x260   :  { %2851 = vrot.lane.b32.xlu0 %v10658_v27, %s8581_s18  ;;  %3549 = vrot.lane.b32.xlu1 %v10734_v9, %s8583_s26  ;;  %v2043_v29 = vmax.f32 %v1649_v55, 0.0 }
 0x262   :  { %v10768_v33 = vpop.permute.xlu0 %2839  ;;  %v3686_v39 = vpop.permute.xlu1 %3685  ;;  %2273 = vst.msk [vmem:[#allocation2 + $0x5b8] sm:$0xff] %vm2093_vm2, %v2043_v29  ;;  %v10837_v29 = vld [vmem:[#allocation2 + $0x4a0] sm:$0xff] }
 0x263   :  { %v4264_v27 = vsel %vm4247_vm9, %v4214_v62, %v3686_v39  ;;  %v10809_v62 = vld [vmem:[#allocation2 + $0x448] sm:$0xff] }
 0x264   :  { %3047 = vrot.lane.b32.xlu0 %v10765_v48, %s8582_s21  ;;  %3701 = vrot.lane.b32.xlu1 %v10772_v18, %s8588_s30  ;;  %v4314_v28 = vsel %vm4297_vm10, %v4264_v27, %v3834_v3  ;;  %v2044_v3 = vmax.f32 %v1654_v10, 0.0  ;;  %v4215_v10 = vsel %vm4197_vm8, %v4165_v19, %v3534_v16  ;;  %v2463_v19 = vld [vmem:[#allocation2 + $0x4a8] sm:$0xff] }
 0x265   :  { %v10782_v21 = vpop.f32.mrf.mxu1  ;;  %8150 = vmatmul.mubr.msk.f32.gmra.mxu1 %vm4356_vm11, %v4314_v28 }
 0x266   :  { %13550 = vst [vmem:[#allocation13_spill] sm:$0xff] %v10782_v21  ;;  %v10787_v13 = vpop.permute.xlu0 %2643  ;;  %v3836_v59 = vpop.permute.xlu1 %3835  ;;  %8152 = vmatprep.mubr.msk.f32.mxu1 %vm8587_vm3, %v13521_v4  ;;  %2274 = vst.msk [vmem:[#allocation2 + $0x5c0] sm:$0xff] %vm2093_vm2, %v2044_v3 }
 0x267   :  { %v8115_v57 = vpop.f32.mrf.mxu1  ;;  %v8013_v8 = vpop.f32.mrf.mxu0 }
 0x268   :  { %3243 = vrot.lane.b32.xlu0 %v2461_v5, %s8585_s19  ;;  %3851 = vrot.lane.b32.xlu1 %v10785_v36, %s8586_s28  ;;  %v1664_v44 = vadd.f32 %v10748_v40, %v8013_v8  ;;  %v8514_v57 = vld [vmem:[#allocation2 + $0x240] sm:$0xff] }
 0x269   :  { %v1658_v46 = vpop.f32.mrf.mxu0  ;;  %v3966_v8 = vsel %vm2093_vm2, %v8514_v57, %v10478_v34  ;;  %v10845_v34 = vld [vmem:[#allocation2 + $0x458] sm:$0xff] }
 0x26a   :  { %v10802_v60 = vpop.permute.xlu0 %2841  ;;  %v10804_v43 = vpop.permute.xlu1 %3535  ;;  %v1659_v52 = vadd.f32 %v10748_v40, %v1658_v46  ;;  %v2046_v25 = vmax.f32 %v1664_v44, 0.0 }
 0x26b   :  { %v8016_v39 = vpop.f32.mrf.mxu0 }
 0x26c   :  { %2657 = vrot.lane.b32.xlu0 %v10723_v15, %s8580_s29  ;;  %3703 = vrot.lane.b32.xlu1 %v10809_v62, %s8588_s30  ;;  %v2045_v17 = vmax.f32 %v1659_v52, 0.0  ;;  %v1674_v27 = vadd.f32 %v10748_v40, %v8016_v39  ;;  %2276 = vst.msk [vmem:[#allocation2 + $0x5d0] sm:$0xff] %vm2093_vm2, %v2046_v25  ;;  %v4016_v39 = vsel %vm3997_vm4, %v3966_v8, %v10452_v26 }
 0x26d   :  { %v1668_v28 = vpop.f32.mrf.mxu0 }
 0x26e   :  { %v10819_v50 = vpop.permute.xlu0 %2645  ;;  %v3688_v32 = vpop.permute.xlu1 %3687  ;;  %2275 = vst.msk [vmem:[#allocation2 + $0x5c8] sm:$0xff] %vm2093_vm2, %v2045_v17  ;;  %v2048_v15 = vmax.f32 %v1674_v27, 0.0  ;;  %v1669_v5 = vadd.f32 %v10748_v40, %v1668_v28  ;;  %v4066_v27 = vsel %vm4047_vm5, %v4016_v39, %v10621_v61 }
 0x26f   :  { %v4265_v30 = vsel %vm4247_vm9, %v4215_v10, %v3688_v32  ;;  %v8019_v3 = vpop.f32.mrf.mxu0  ;;  %v4116_v10 = vsel %vm4097_vm6, %v4066_v27, %v10662_v41 }
 0x270   :  { %2853 = vrot.lane.b32.xlu0 %v10694_v53, %s8581_s18  ;;  %3551 = vrot.lane.b32.xlu1 %v10785_v36, %s8583_s26  ;;  %v4315_v45 = vsel %vm4297_vm10, %v4265_v30, %v3836_v59  ;;  %2278 = vst.msk [vmem:[#allocation2 + $0x5e0] sm:$0xff] %vm2093_vm2, %v2048_v15  ;;  %v2047_v16 = vmax.f32 %v1669_v5, 0.0  ;;  %v1684_v55 = vadd.f32 %v10748_v40, %v8019_v3  ;;  %v10863_v30 = vld [vmem:[#allocation2 + $0x460] sm:$0xff] }
 0x271   :  { %v10834_v51 = vpop.f32.mrf.mxu1  ;;  %8153 = vmatmul.mubr.msk.f32.gmra.mxu1 %vm4356_vm11, %v4315_v45  ;;  %v1678_v53 = vpop.f32.mrf.mxu0  ;;  %v4166_v41 = vsel %vm4147_vm7, %v4116_v10, %v10623_v14 }
 0x272   :  { %v10839_v42 = vpop.permute.xlu0 %2647  ;;  %v3838_v46 = vpop.permute.xlu1 %3837  ;;  %8155 = vmatprep.mubr.msk.f32.mxu1 %vm8587_vm3, %v13521_v4  ;;  %2277 = vst.msk [vmem:[#allocation2 + $0x5d8] sm:$0xff] %vm2093_vm2, %v2047_v16  ;;  %v2050_v59 = vmax.f32 %v1684_v55, 0.0  ;;  %v1679_v12 = vadd.f32 %v10748_v40, %v1678_v53  ;;  %v4216_v45 = vsel %vm4197_vm8, %v4166_v41, %v10804_v43  ;;  %v2442_v53 = vld [vmem:[#allocation2 + $0x3f0] sm:$0xff] }
 0x273   :  { %v8118_v44 = vpop.f32.mrf.mxu1  ;;  %v8022_v52 = vpop.f32.mrf.mxu0 }
 0x274   :  { %3049 = vrot.lane.b32.xlu0 %v10837_v29, %s8582_s21  ;;  %3705 = vrot.lane.b32.xlu1 %v10845_v34, %s8588_s30  ;;  %2280 = vst.msk [vmem:[#allocation2 + $0x5f0] sm:$0xff] %vm2093_vm2, %v2050_v59  ;;  %v2049_v25 = vmax.f32 %v1679_v12, 0.0  ;;  %v1694_v17 = vadd.f32 %v10748_v40, %v8022_v52  ;;  %v8515_v59 = vld [vmem:[#allocation2 + $0x250] sm:$0xff] }
 0x275   :  { %v1688_v28 = vpop.f32.mrf.mxu0  ;;  %v3967_v43 = vsel %vm2093_vm2, %v8515_v59, %v10501_v37 }
 0x276   :  { %v10859_v26 = vpop.permute.xlu0 %3033  ;;  %v3538_v32 = vpop.permute.xlu1 %3537  ;;  %2279 = vst.msk [vmem:[#allocation2 + $0x5e8] sm:$0xff] %vm2093_vm2, %v2049_v25  ;;  %v2052_v15 = vmax.f32 %v1694_v17, 0.0  ;;  %v1689_v5 = vadd.f32 %v10748_v40, %v1688_v28  ;;  %v4017_v52 = vsel %vm3997_vm4, %v3967_v43, %v10489_v24  ;;  %v10902_v25 = vld [vmem:[#allocation2 + $0x4b0] sm:$0xff]  ;;  %v10904_v17 = vld [vmem:[#allocation2 + $0x468] sm:$0xff] }
 0x277   :  { %v4067_v37 = vsel %vm4047_vm5, %v4017_v52, %v10644_v54  ;;  %v8516_v54 = vld [vmem:[#allocation2 + $0x260] sm:$0xff] }
 0x278   :  { %3245 = vrot.lane.b32.xlu0 %v2463_v19, %s8585_s19  ;;  %3853 = vrot.lane.b32.xlu1 %v10863_v30, %s8586_s28  ;;  %2282 = vst.msk [vmem:[#allocation2 + $0x610] sm:$0xff] %vm2093_vm2, %v2052_v15  ;;  %v2051_v61 = vmax.f32 %v1689_v5, 0.0  ;;  %v10960_v52 = vld [vmem:[#allocation2 + $0x4c0] sm:$0xff] }
 0x279   :  { %v10871_v3 = vpop.f32.mrf.mxu1  ;;  %v8025_v24 = vpop.f32.mrf.mxu0 }
 0x27a   :  { %v10875_v16 = vpop.permute.xlu0 %3227  ;;  %v3690_v55 = vpop.permute.xlu1 %3689  ;;  %2281 = vst.msk [vmem:[#allocation2 + $0x608] sm:$0xff] %vm2093_vm2, %v2051_v61 }
 0x27b   :  { %v4266_v57 = vsel %vm4247_vm9, %v4216_v45, %v3690_v55  ;;  %v8121_v8 = vpop.f32.mrf.mxu1  ;;  %v1698_v19 = vpop.f32.mrf.mxu0  ;;  %v2465_v45 = vld [vmem:[#allocation2 + $0x4b8] sm:$0xff]  ;;  %v10920_v55 = vld [vmem:[#allocation2 + $0x470] sm:$0xff] }
 0x27c   :  { %2659 = vrot.lane.b32.xlu0 %v10772_v18, %s8580_s29  ;;  %3393 = vrot.lane.b32.xlu1 %v2442_v53, %s8584_s24  ;;  %v4316_v14 = vsel %vm4297_vm10, %v4266_v57, %v3838_v46  ;;  %v4117_v18 = vsel %vm4097_vm6, %v4067_v37, %v10679_v63  ;;  %v3968_v63 = vsel %vm2093_vm2, %v8516_v54, %v10539_v20  ;;  %v10962_v37 = vld [vmem:[#allocation2 + $0x508] sm:$0xff] }
 0x27d   :  { %8156 = vmatmul.mubr.msk.f32.gmra.mxu1 %vm4356_vm11, %v4316_v14  ;;  %v4167_v27 = vsel %vm4147_vm7, %v4117_v18, %v10634_v1  ;;  %v1699_v61 = vadd.f32 %v10748_v40, %v1698_v19  ;;  %v4018_v20 = vsel %vm3997_vm4, %v3968_v63, %v10520_v23  ;;  %v2473_v14 = vld [vmem:[#allocation2 + $0x500] sm:$0xff]  ;;  %v10974_v19 = vld [vmem:[#allocation2 + $0x510] sm:$0xff] }
 0x27e   :  { %v10886_v12 = vpop.permute.xlu0 %3035  ;;  %v3840_v44 = vpop.permute.xlu1 %3839  ;;  %8158 = vmatprep.mubr.msk.f32.mxu1 %vm8587_vm3, %v13521_v4  ;;  %v4217_v28 = vsel %vm4197_vm8, %v4167_v27, %v3538_v32  ;;  %v4068_v57 = vsel %vm4047_vm5, %v4018_v20, %v10672_v2  ;;  %v2467_v27 = vld [vmem:[#allocation2 + $0x4c8] sm:$0xff] }
 0x27f   :  { %v2053_v32 = vmax.f32 %v1699_v61, 0.0  ;;  %v4118_v8 = vsel %vm4097_vm6, %v4068_v57, %v10696_v31 }
 0x280   :  { %2855 = vrot.lane.b32.xlu0 %v10734_v9, %s8581_s18  ;;  %3553 = vrot.lane.b32.xlu1 %v10863_v30, %s8583_s26  ;;  %v1704_v9 = vadd.f32 %v10748_v40, %v8025_v24  ;;  %v4168_v2 = vsel %vm4147_vm7, %v4118_v8, %v10646_v56 }
 0x281   :  { %2283 = vst.msk [vmem:[#allocation2 + $0x618] sm:$0xff] %vm2093_vm2, %v2053_v32 }
 0x282   :  { %v10900_v46 = vpop.permute.xlu0 %3229  ;;  %v3540_v39 = vpop.permute.xlu1 %3539  ;;  %v2054_v5 = vmax.f32 %v1704_v9, 0.0 }
 0x283   :  { %v4218_v31 = vsel %vm4197_vm8, %v4168_v2, %v3540_v39 }
 0x284   :  { %3051 = vrot.lane.b32.xlu0 %v10902_v25, %s8582_s21  ;;  %3707 = vrot.lane.b32.xlu1 %v10904_v17, %s8588_s30  ;;  %2284 = vst.msk [vmem:[#allocation2 + $0x620] sm:$0xff] %vm2093_vm2, %v2054_v5 }
 0x285   :  { %v8028_v18 = vpop.f32.mrf.mxu0 }
 0x286   :  { %v10916_v10 = vpop.permute.xlu0 %3037  ;;  %v3692_v15 = vpop.permute.xlu1 %3691 }
 0x287   :  { %v4267_v41 = vsel %vm4247_vm9, %v4217_v28, %v3692_v15  ;;  %v1708_v39 = vpop.f32.mrf.mxu0 }
 0x288   :  { %3247 = vrot.lane.b32.xlu0 %v2465_v45, %s8585_s19  ;;  %3855 = vrot.lane.b32.xlu1 %v10920_v55, %s8586_s28  ;;  %v4317_v1 = vsel %vm4297_vm10, %v4267_v41, %v3840_v44  ;;  %v1709_v63 = vadd.f32 %v10748_v40, %v1708_v39 }
 0x289   :  { %8159 = vmatmul.mubr.msk.f32.gmra.mxu1 %vm4356_vm11, %v4317_v1 }
 0x28a   :  { %v10934_v53 = vpop.permute.xlu0 %3231  ;;  %v3842_v23 = vpop.permute.xlu1 %3841  ;;  %8161 = vmatprep.mubr.msk.f32.mxu1 %vm8587_vm3, %v13521_v4  ;;  %v2055_v28 = vmax.f32 %v1709_v63, 0.0 }
 0x28c   :  { %2661 = vrot.lane.b32.xlu0 %v10809_v62, %s8580_s29  ;;  %3395 = vrot.lane.b32.xlu1 %v10765_v48, %s8584_s24  ;;  %2285 = vst.msk [vmem:[#allocation2 + $0x628] sm:$0xff] %vm2093_vm2, %v2055_v28 }
 0x28e   :  { %v10946_v59 = vpop.permute.xlu0 %3233  ;;  %v3694_v43 = vpop.permute.xlu1 %3693 }
 0x28f   :  { %v4268_v44 = vsel %vm4247_vm9, %v4218_v31, %v3694_v43 }
 0x290   :  { %2857 = vrot.lane.b32.xlu0 %v10785_v36, %s8581_s18  ;;  %3555 = vrot.lane.b32.xlu1 %v2473_v14, %s8583_s26  ;;  %v4318_v62 = vsel %vm4297_vm10, %v4268_v44, %v3842_v23  ;;  %v1714_v36 = vadd.f32 %v10748_v40, %v8028_v18  ;;  %v11011_v18 = vld [vmem:[#allocation2 + $0x518] sm:$0xff] }
 0x291   :  { %8162 = vmatmul.mubr.msk.f32.gmra.mxu1 %vm4356_vm11, %v4318_v62  ;;  %v11009_v62 = vld [vmem:[#allocation2 + $0x4d0] sm:$0xff] }
 0x292   :  { %v10954_v48 = vpop.permute.xlu0 %2843  ;;  %v10956_v56 = vpop.permute.xlu1 %3381  ;;  %8164 = vmatprep.mubr.msk.f32.mxu1 %vm8587_vm3, %v13521_v4  ;;  %v2056_v54 = vmax.f32 %v1714_v36, 0.0 }
 0x294   :  { %3053 = vrot.lane.b32.xlu0 %v10960_v52, %s8582_s21  ;;  %3709 = vrot.lane.b32.xlu1 %v10962_v37, %s8588_s30  ;;  %2286 = vst.msk [vmem:[#allocation2 + $0x630] sm:$0xff] %vm2093_vm2, %v2056_v54 }
 0x296   :  { %v10969_v24 = vpop.permute.xlu0 %3039  ;;  %v10971_v9 = vpop.permute.xlu1 %3383 }
 0x297   :  { %v8031_v61 = vpop.f32.mrf.mxu0 }
 0x298   :  { %3249 = vrot.lane.b32.xlu0 %v2467_v27, %s8585_s19  ;;  %3857 = vrot.lane.b32.xlu1 %v10974_v19, %s8586_s28  ;;  %v1724_v41 = vadd.f32 %v10748_v40, %v8031_v61 }
 0x299   :  { %v1718_v45 = vpop.f32.mrf.mxu0 }
 0x29a   :  { %v10980_v15 = vpop.permute.xlu0 %3235  ;;  %v10982_v5 = vpop.permute.xlu1 %3385  ;;  %v2058_v32 = vmax.f32 %v1724_v41, 0.0  ;;  %v1719_v57 = vadd.f32 %v10748_v40, %v1718_v45  ;;  %v8517_v45 = vld [vmem:[#allocation2 + $0x300] sm:$0xff] }
 0x29b   :  { %v8034_v8 = vpop.f32.mrf.mxu0 }
 0x29c   :  { %2663 = vrot.lane.b32.xlu0 %v10845_v34, %s8580_s29  ;;  %3397 = vrot.lane.b32.xlu1 %v10837_v29, %s8584_s24  ;;  %2288 = vst.msk [vmem:[#allocation2 + $0x640] sm:$0xff] %vm2093_vm2, %v2058_v32  ;;  %v2057_v29 = vmax.f32 %v1719_v57, 0.0  ;;  %v1734_v34 = vadd.f32 %v10748_v40, %v8034_v8  ;;  %v3969_v32 = vsel %vm2093_vm2, %v8517_v45, %v10720_v38  ;;  %v2469_v57 = vld [vmem:[#allocation2 + $0x4d8] sm:$0xff]  ;;  %v11027_v8 = vld [vmem:[#allocation2 + $0x520] sm:$0xff] }
 0x29d   :  { %v1728_v2 = vpop.f32.mrf.mxu0 }
 0x29e   :  { %v10990_v20 = vpop.permute.xlu0 %2649  ;;  %v10992_v1 = vpop.permute.xlu1 %3387  ;;  %2287 = vst.msk [vmem:[#allocation2 + $0x638] sm:$0xff] %vm2093_vm2, %v2057_v29  ;;  %v2060_v43 = vmax.f32 %v1734_v34, 0.0 }
 0x29f   :  { %v8037_v36 = vpop.f32.mrf.mxu0 }
 0x2a0   :  { %2859 = vrot.lane.b32.xlu0 %v10863_v30, %s8581_s18  ;;  %3557 = vrot.lane.b32.xlu1 %v10974_v19, %s8583_s26  ;;  %v1729_v30 = vadd.f32 %v10748_v40, %v1728_v2  ;;  %2290 = vst.msk [vmem:[#allocation2 + $0x650] sm:$0xff] %vm2093_vm2, %v2060_v43  ;;  %v1744_v54 = vadd.f32 %v10748_v40, %v8037_v36 }
 0x2a1   :  { %v11001_v23 = vpop.f32.mrf.mxu1  ;;  %v1738_v63 = vpop.f32.mrf.mxu0 }
 0x2a2   :  { %v11003_v14 = vpop.permute.xlu0 %2845  ;;  %v11005_v31 = vpop.permute.xlu1 %3389  ;;  %v2059_v39 = vmax.f32 %v1729_v30, 0.0  ;;  %v2062_v61 = vmax.f32 %v1744_v54, 0.0  ;;  %v1739_v41 = vadd.f32 %v10748_v40, %v1738_v63  ;;  %v4019_v30 = vsel %vm3997_vm4, %v3969_v32, %v10712_v22 }
 0x2a3   :  { %v8124_v44 = vpop.f32.mrf.mxu1  ;;  %v8040_v29 = vpop.f32.mrf.mxu0 }
 0x2a4   :  { %3055 = vrot.lane.b32.xlu0 %v11009_v62, %s8582_s21  ;;  %3711 = vrot.lane.b32.xlu1 %v11011_v18, %s8588_s30  ;;  %2289 = vst.msk [vmem:[#allocation2 + $0x648] sm:$0xff] %vm2093_vm2, %v2059_v39  ;;  %2292 = vst.msk [vmem:[#allocation2 + $0x660] sm:$0xff] %vm2093_vm2, %v2062_v61  ;;  %v2061_v34 = vmax.f32 %v1739_v41, 0.0  ;;  %v1754_v2 = vadd.f32 %v10748_v40, %v8040_v29  ;;  %v4069_v61 = vsel %vm4047_vm5, %v4019_v30, %v9632_v7 }
 0x2a5   :  { %v1748_v43 = vpop.f32.mrf.mxu0  ;;  %v4119_v32 = vsel %vm4097_vm6, %v4069_v61, %v10875_v16  ;;  %v2471_v61 = vld [vmem:[#allocation2 + $0x4e8] sm:$0xff] }
 0x2a6   :  { %v11019_v27 = vpop.permute.xlu0 %3041  ;;  %v11021_v28 = vpop.permute.xlu1 %3391  ;;  %2291 = vst.msk [vmem:[#allocation2 + $0x658] sm:$0xff] %vm2093_vm2, %v2061_v34  ;;  %v2064_v36 = vmax.f32 %v1754_v2, 0.0  ;;  %v1749_v39 = vadd.f32 %v10748_v40, %v1748_v43  ;;  %v4169_v34 = vsel %vm4147_vm7, %v4119_v32, %v10956_v56 }
 0x2a7   :  { %v8043_v54 = vpop.f32.mrf.mxu0  ;;  %v4219_v43 = vsel %vm4197_vm8, %v4169_v34, %v9630_v6 }
 0x2a8   :  { %3251 = vrot.lane.b32.xlu0 %v2469_v57, %s8585_s19  ;;  %3859 = vrot.lane.b32.xlu1 %v11027_v8, %s8586_s28  ;;  %2294 = vst.msk [vmem:[#allocation2 + $0x670] sm:$0xff] %vm2093_vm2, %v2064_v36  ;;  %v2063_v63 = vmax.f32 %v1749_v39, 0.0  ;;  %v1764_v22 = vadd.f32 %v10748_v40, %v8043_v54  ;;  %v11069_v36 = vld [vmem:[#allocation2 + $0x4e0] sm:$0xff]  ;;  %v11071_v39 = vld [vmem:[#allocation2 + $0x528] sm:$0xff] }
 0x2a9   :  { %v1758_v45 = vpop.f32.mrf.mxu0 }
 0x2aa   :  { %v11036_v44 = vpop.permute.xlu0 %3237  ;;  %v3844_v38 = vpop.permute.xlu1 %3843  ;;  %2293 = vst.msk [vmem:[#allocation2 + $0x668] sm:$0xff] %vm2093_vm2, %v2063_v63  ;;  %v1759_v29 = vadd.f32 %v10748_v40, %v1758_v45  ;;  %v8518_v63 = vld [vmem:[#allocation2 + $0x310] sm:$0xff] }
 0x2ab   :  { %v11085_v45 = vld [vmem:[#allocation2 + $0x530] sm:$0xff] }
 0x2ac   :  { %2665 = vrot.lane.b32.xlu0 %v10904_v17, %s8580_s29  ;;  %3399 = vrot.lane.b32.xlu1 %v10902_v25, %s8584_s24  ;;  %v2066_v25 = vmax.f32 %v1764_v22, 0.0  ;;  %v2065_v7 = vmax.f32 %v1759_v29, 0.0  ;;  %v3970_v22 = vsel %vm2093_vm2, %v8518_v63, %v10755_v35 }
 0x2ad   :  { %v11048_v41 = vpop.f32.mrf.mxu1  ;;  %v4020_v32 = vsel %vm3997_vm4, %v3970_v22, %v10736_v0 }
 0x2ae   :  { %13551 = vst [vmem:[#allocation14_spill] sm:$0xff] %v11048_v41  ;;  %v11052_v57 = vpop.permute.xlu0 %2651  ;;  %v3544_v17 = vpop.permute.xlu1 %3543  ;;  %2296 = vst.msk [vmem:[#allocation2 + $0x690] sm:$0xff] %vm2093_vm2, %v2066_v25  ;;  %v4070_v34 = vsel %vm4047_vm5, %v4020_v32, %v10859_v26 }
 0x2af   :  { %v8127_v2 = vpop.f32.mrf.mxu1  ;;  %2295 = vst.msk [vmem:[#allocation2 + $0x688] sm:$0xff] %vm2093_vm2, %v2065_v7  ;;  %v4120_v7 = vsel %vm4097_vm6, %v4070_v34, %v10900_v46  ;;  %v11126_v34 = vld [vmem:[#allocation2 + $0x538] sm:$0xff] }
 0x2b0   :  { %2861 = vrot.lane.b32.xlu0 %v10920_v55, %s8581_s18  ;;  %3559 = vrot.lane.b32.xlu1 %v11027_v8, %s8583_s26  ;;  %v8046_v2 = vpop.f32.mrf.mxu0  ;;  %v4170_v0 = vsel %vm4147_vm7, %v4120_v7, %v10971_v9  ;;  %v2488_v9 = vld [vmem:[#allocation2 + $0x580] sm:$0xff] }
 0x2b2   :  { %v11063_v16 = vpop.permute.xlu0 %2847  ;;  %v3696_v30 = vpop.permute.xlu1 %3695 }
 0x2b3   :  { %v4269_v56 = vsel %vm4247_vm9, %v4219_v43, %v3696_v30  ;;  %v1774_v43 = vadd.f32 %v10748_v40, %v8046_v2  ;;  %v1768_v30 = vpop.f32.mrf.mxu0 }
 0x2b4   :  { %3057 = vrot.lane.b32.xlu0 %v11069_v36, %s8582_s21  ;;  %3713 = vrot.lane.b32.xlu1 %v11071_v39, %s8588_s30  ;;  %v4319_v55 = vsel %vm4297_vm10, %v4269_v56, %v3844_v38  ;;  %v4220_v56 = vsel %vm4197_vm8, %v4170_v0, %v3544_v17  ;;  %v1769_v46 = vadd.f32 %v10748_v40, %v1768_v30  ;;  %v11139_v30 = vld [vmem:[#allocation2 + $0x540] sm:$0xff] }
 0x2b5   :  { %8165 = vmatmul.mubr.msk.f32.gmra.mxu1 %vm4356_vm11, %v4319_v55  ;;  %v2068_v63 = vmax.f32 %v1774_v43, 0.0 }
 0x2b6   :  { %v11079_v6 = vpop.permute.xlu0 %3043  ;;  %v3846_v54 = vpop.permute.xlu1 %3845  ;;  %8167 = vmatprep.mubr.msk.f32.mxu1 %vm8587_vm3, %v13521_v4 }
 0x2b7   :  { %2298 = vst.msk [vmem:[#allocation2 + $0x6a0] sm:$0xff] %vm2093_vm2, %v2068_v63 }
 0x2b8   :  { %3253 = vrot.lane.b32.xlu0 %v2471_v61, %s8585_s19  ;;  %3861 = vrot.lane.b32.xlu1 %v11085_v45, %s8586_s28 }
 0x2b9   :  { %v11090_v38 = vpop.f32.mrf.mxu1 }
 0x2ba   :  { %v11094_v25 = vpop.permute.xlu0 %3239  ;;  %v3546_v29 = vpop.permute.xlu1 %3545 }
 0x2bb   :  { %v8130_v35 = vpop.f32.mrf.mxu1 }
 0x2bc   :  { %2667 = vrot.lane.b32.xlu0 %v10962_v37, %s8580_s29  ;;  %3401 = vrot.lane.b32.xlu1 %v10960_v52, %s8584_s24  ;;  %v2067_v37 = vmax.f32 %v1769_v46, 0.0  ;;  %v2489_v35 = vld [vmem:[#allocation2 + $0x588] sm:$0xff] }
 0x2be   :  { %v11108_v26 = vpop.permute.xlu0 %2653  ;;  %v3698_v55 = vpop.permute.xlu1 %3697  ;;  %2297 = vst.msk [vmem:[#allocation2 + $0x698] sm:$0xff] %vm2093_vm2, %v2067_v37 }
 0x2bf   :  { %v4270_v22 = vsel %vm4247_vm9, %v4220_v56, %v3698_v55 }
 0x2c0   :  { %2863 = vrot.lane.b32.xlu0 %v10974_v19, %s8581_s18  ;;  %3561 = vrot.lane.b32.xlu1 %v11085_v45, %s8583_s26  ;;  %v4320_v52 = vsel %vm4297_vm10, %v4270_v22, %v3846_v54  ;;  %v8519_v19 = vld [vmem:[#allocation2 + $0x320] sm:$0xff]  ;;  %v8049_v22 = vpop.f32.mrf.mxu0 }
 0x2c1   :  { %8168 = vmatmul.mubr.msk.f32.gmra.mxu1 %vm4356_vm11, %v4320_v52  ;;  %v3971_v32 = vsel %vm2093_vm2, %v8519_v19, %v10787_v13  ;;  %v1784_v52 = vadd.f32 %v10748_v40, %v8049_v22 }
 0x2c2   :  { %v11119_v17 = vpop.permute.xlu0 %2849  ;;  %v3848_v61 = vpop.permute.xlu1 %3847  ;;  %8170 = vmatprep.mubr.msk.f32.mxu1 %vm8587_vm3, %v13521_v4  ;;  %v4021_v2 = vsel %vm3997_vm4, %v3971_v32, %v10768_v33 }
 0x2c3   :  { %v4071_v0 = vsel %vm4047_vm5, %v4021_v2, %v10886_v12 }
 0x2c4   :  { %3059 = vrot.lane.b32.xlu0 %v2488_v9, %s8582_s21  ;;  %3715 = vrot.lane.b32.xlu1 %v11126_v34, %s8588_s30  ;;  %v4121_v56 = vsel %vm4097_vm6, %v4071_v0, %v10934_v53  ;;  %v2070_v9 = vmax.f32 %v1784_v52, 0.0  ;;  %v8521_v52 = vld [vmem:[#allocation2 + $0x340] sm:$0xff] }
 0x2c5   :  { %v11131_v54 = vpop.f32.mrf.mxu1  ;;  %v4171_v33 = vsel %vm4147_vm7, %v4121_v56, %v10982_v5  ;;  %v1778_v5 = vpop.f32.mrf.mxu0  ;;  %v11182_v56 = vld [vmem:[#allocation2 + $0x548] sm:$0xff] }
 0x2c6   :  { %v11135_v7 = vpop.permute.xlu0 %3045  ;;  %v3548_v43 = vpop.permute.xlu1 %3547  ;;  %v4221_v55 = vsel %vm4197_vm8, %v4171_v33, %v3546_v29  ;;  %v1779_v19 = vadd.f32 %v10748_v40, %v1778_v5  ;;  %2300 = vst.msk [vmem:[#allocation2 + $0x6b0] sm:$0xff] %vm2093_vm2, %v2070_v9 }
 0x2c7   :  { %v8133_v13 = vpop.f32.mrf.mxu1 }
 0x2c8   :  { %3255 = vrot.lane.b32.xlu0 %v2489_v35, %s8585_s19  ;;  %3863 = vrot.lane.b32.xlu1 %v11139_v30, %s8586_s28  ;;  %v11173_v35 = vld [vmem:[#allocation2 + $0x590] sm:$0xff] }
 0x2ca   :  { %v11149_v63 = vpop.permute.xlu0 %3241  ;;  %v3700_v46 = vpop.permute.xlu1 %3699 }
 0x2cb   :  { %v4271_v12 = vsel %vm4247_vm9, %v4221_v55, %v3700_v46  ;;  %v2491_v55 = vld [vmem:[#allocation2 + $0x598] sm:$0xff] }
 0x2cc   :  { %2669 = vrot.lane.b32.xlu0 %v11011_v18, %s8580_s29  ;;  %3403 = vrot.lane.b32.xlu1 %v11009_v62, %s8584_s24  ;;  %v4321_v53 = vsel %vm4297_vm10, %v4271_v12, %v3848_v61  ;;  %v8520_v18 = vld [vmem:[#allocation2 + $0x330] sm:$0xff]  ;;  %v2069_v61 = vmax.f32 %v1779_v19, 0.0 }
 0x2cd   :  { %8171 = vmatmul.mubr.msk.f32.gmra.mxu1 %vm4356_vm11, %v4321_v53  ;;  %v3972_v62 = vsel %vm2093_vm2, %v8520_v18, %v10819_v50  ;;  %v11196_v53 = vld [vmem:[#allocation2 + $0x550] sm:$0xff]  ;;  %v8052_v18 = vpop.f32.mrf.mxu0 }
 0x2ce   :  { %v11159_v29 = vpop.permute.xlu0 %2655  ;;  %v3850_v37 = vpop.permute.xlu1 %3849  ;;  %8173 = vmatprep.mubr.msk.f32.mxu1 %vm8587_vm3, %v13521_v4  ;;  %v4022_v2 = vsel %vm3997_vm4, %v3972_v62, %v10802_v60  ;;  %2299 = vst.msk [vmem:[#allocation2 + $0x6a8] sm:$0xff] %vm2093_vm2, %v2069_v61 }
 0x2cf   :  { %v4072_v50 = vsel %vm4047_vm5, %v4022_v2, %v10916_v10  ;;  %v1788_v61 = vpop.f32.mrf.mxu0 }
 0x2d0   :  { %2865 = vrot.lane.b32.xlu0 %v11027_v8, %s8581_s18  ;;  %3563 = vrot.lane.b32.xlu1 %v11139_v30, %s8583_s26  ;;  %v4122_v33 = vsel %vm4097_vm6, %v4072_v50, %v10946_v59 }
 0x2d1   :  { %v11171_v32 = vpop.f32.mrf.mxu1  ;;  %v4172_v60 = vsel %vm4147_vm7, %v4122_v33, %v10992_v1  ;;  %v3973_v1 = vsel %vm2093_vm2, %v8521_v52, %v10839_v42  ;;  %v1794_v42 = vadd.f32 %v10748_v40, %v8052_v18  ;;  %v2493_v52 = vld [vmem:[#allocation2 + $0x5a8] sm:$0xff] }
 0x2d2   :  { %v11177_v0 = vpop.permute.xlu0 %2851  ;;  %v3550_v13 = vpop.permute.xlu1 %3549  ;;  %v4222_v46 = vsel %vm4197_vm8, %v4172_v60, %v3548_v43  ;;  %v4023_v43 = vsel %vm3997_vm4, %v3973_v1, %v10954_v48  ;;  %v8522_v60 = vld [vmem:[#allocation2 + $0x350] sm:$0xff] }
 0x2d3   :  { %v8136_v8 = vpop.f32.mrf.mxu1  ;;  %v4073_v19 = vsel %vm4047_vm5, %v4023_v43, %v10969_v24 }
 0x2d4   :  { %3061 = vrot.lane.b32.xlu0 %v11173_v35, %s8582_s21  ;;  %3717 = vrot.lane.b32.xlu1 %v11182_v56, %s8588_s30  ;;  %v1789_v8 = vadd.f32 %v10748_v40, %v1788_v61  ;;  %v3974_v40 = vsel %vm2093_vm2, %v8522_v60, %v10990_v20 }
 0x2d6   :  { %v11193_v12 = vpop.permute.xlu0 %3047  ;;  %v3702_v10 = vpop.permute.xlu1 %3701 }
 0x2d7   :  { %v4272_v22 = vsel %vm4247_vm9, %v4222_v46, %v3702_v10  ;;  %v11247_v10 = vld [vmem:[#allocation2 + $0x558] sm:$0xff] }
 0x2d8   :  { %3257 = vrot.lane.b32.xlu0 %v2491_v55, %s8585_s19  ;;  %3865 = vrot.lane.b32.xlu1 %v11196_v53, %s8586_s28  ;;  %v4322_v59 = vsel %vm4297_vm10, %v4272_v22, %v3850_v37  ;;  %v4123_v37 = vsel %vm4097_vm6, %v4073_v19, %v10980_v15  ;;  %v2072_v15 = vmax.f32 %v1794_v42, 0.0 }
 0x2d9   :  { %8174 = vmatmul.mubr.msk.f32.gmra.mxu1 %vm4356_vm11, %v4322_v59  ;;  %v4173_v48 = vsel %vm4147_vm7, %v4123_v37, %v11005_v31 }
 0x2da   :  { %v11207_v5 = vpop.permute.xlu0 %3243  ;;  %v3852_v9 = vpop.permute.xlu1 %3851  ;;  %8176 = vmatprep.mubr.msk.f32.mxu1 %vm8587_vm3, %v13521_v4  ;;  %v4223_v24 = vsel %vm4197_vm8, %v4173_v48, %v3550_v13  ;;  %2302 = vst.msk [vmem:[#allocation2 + $0x6c0] sm:$0xff] %vm2093_vm2, %v2072_v15  ;;  %v11236_v13 = vld [vmem:[#allocation2 + $0x5a0] sm:$0xff]  ;;  %v2472_v48 = vld [vmem:[#allocation2 + $0x4f0] sm:$0xff]  ;;  %v11289_v15 = vld [vmem:[#allocation2 + $0x568] sm:$0xff] }
 0x2dc   :  { %2671 = vrot.lane.b32.xlu0 %v11071_v39, %s8580_s29  ;;  %3405 = vrot.lane.b32.xlu1 %v11069_v36, %s8584_s24  ;;  %v2071_v36 = vmax.f32 %v1789_v8, 0.0  ;;  %v8523_v8 = vld [vmem:[#allocation2 + $0x360] sm:$0xff] }
 0x2dd   :  { %v11222_v62 = vpop.f32.mrf.mxu1 }
 0x2de   :  { %v11225_v2 = vpop.permute.xlu0 %2657  ;;  %v3704_v50 = vpop.permute.xlu1 %3703  ;;  %2301 = vst.msk [vmem:[#allocation2 + $0x6b8] sm:$0xff] %vm2093_vm2, %v2071_v36 }
 0x2df   :  { %v4273_v39 = vsel %vm4247_vm9, %v4223_v24, %v3704_v50  ;;  %v8139_v33 = vpop.f32.mrf.mxu1 }
 0x2e0   :  { %2867 = vrot.lane.b32.xlu0 %v11085_v45, %s8581_s18  ;;  %3565 = vrot.lane.b32.xlu1 %v11196_v53, %s8583_s26  ;;  %v4323_v31 = vsel %vm4297_vm10, %v4273_v39, %v3852_v9  ;;  %v4024_v45 = vsel %vm3997_vm4, %v3974_v40, %v11003_v14  ;;  %v11261_v9 = vld [vmem:[#allocation2 + $0x560] sm:$0xff]  ;;  %v3975_v39 = vsel %vm2093_vm2, %v8523_v8, %v11052_v57  ;;  %v11305_v57 = vld [vmem:[#allocation2 + $0x570] sm:$0xff] }
 0x2e1   :  { %8177 = vmatmul.mubr.msk.f32.gmra.mxu1 %vm4356_vm11, %v4323_v31  ;;  %v4074_v22 = vsel %vm4047_vm5, %v4024_v45, %v11019_v27  ;;  %v4025_v33 = vsel %vm3997_vm4, %v3975_v39, %v11063_v16  ;;  %v2497_v39 = vld [vmem:[#allocation2 + $0x5c8] sm:$0xff] }
 0x2e2   :  { %v11240_v55 = vpop.permute.xlu0 %2853  ;;  %v3552_v46 = vpop.permute.xlu1 %3551  ;;  %8179 = vmatprep.mubr.msk.f32.mxu1 %vm8587_vm3, %v13521_v4  ;;  %v4124_v20 = vsel %vm4097_vm6, %v4074_v22, %v11036_v44  ;;  %v4075_v31 = vsel %vm4047_vm5, %v4025_v33, %v11079_v6 }
 0x2e3   :  { %v4174_v27 = vsel %vm4147_vm7, %v4124_v20, %v11021_v28  ;;  %v4125_v40 = vsel %vm4097_vm6, %v4075_v31, %v11094_v25  ;;  %v11321_v25 = vld [vmem:[#allocation2 + $0x600] sm:$0xff] }
 0x2e4   :  { %3063 = vrot.lane.b32.xlu0 %v11236_v13, %s8582_s21  ;;  %3719 = vrot.lane.b32.xlu1 %v11247_v10, %s8588_s30  ;;  %v4224_v19 = vsel %vm4197_vm8, %v4174_v27, %v3552_v46  ;;  %v2495_v46 = vld [vmem:[#allocation2 + $0x5b8] sm:$0xff] }
 0x2e5   :  { %v11257_v59 = vpop.f32.mrf.mxu1 }
 0x2e6   :  { %v11259_v1 = vpop.permute.xlu0 %3049  ;;  %v3706_v14 = vpop.permute.xlu1 %3705 }
 0x2e7   :  { %v8142_v43 = vpop.f32.mrf.mxu1  ;;  %v4274_v44 = vsel %vm4247_vm9, %v4224_v19, %v3706_v14  ;;  %v11335_v19 = vld [vmem:[#allocation2 + $0x608] sm:$0xff] }
 0x2e8   :  { %3259 = vrot.lane.b32.xlu0 %v2493_v52, %s8585_s19  ;;  %3867 = vrot.lane.b32.xlu1 %v11261_v9, %s8586_s28 }
 0x2ea   :  { %v11270_v18 = vpop.permute.xlu0 %3245  ;;  %v3854_v37 = vpop.permute.xlu1 %3853 }
 0x2eb   :  { %v4324_v42 = vsel %vm4297_vm10, %v4274_v44, %v3854_v37  ;;  %v8524_v44 = vld [vmem:[#allocation2 + $0x400] sm:$0xff] }
 0x2ec   :  { %2673 = vrot.lane.b32.xlu0 %v11126_v34, %s8580_s29  ;;  %3407 = vrot.lane.b32.xlu1 %v2472_v48, %s8584_s24  ;;  %v11287_v34 = vld [vmem:[#allocation2 + $0x5b0] sm:$0xff]  ;;  %v3976_v37 = vsel %vm2093_vm2, %v8524_v44, %v11108_v26 }
 0x2ed   :  { %8180 = vmatmul.mubr.msk.f32.gmra.mxu1 %vm4356_vm11, %v4324_v42  ;;  %v4026_v42 = vsel %vm3997_vm4, %v3976_v37, %v11119_v17  ;;  %v11351_v26 = vld [vmem:[#allocation2 + $0x610] sm:$0xff] }
 0x2ee   :  { %v11277_v28 = vpop.permute.xlu0 %2659  ;;  %v3394_v61 = vpop.permute.xlu1 %3393  ;;  %8182 = vmatprep.mubr.msk.f32.mxu1 %vm8587_vm3, %v13521_v4  ;;  %v4076_v48 = vsel %vm4047_vm5, %v4026_v42, %v11135_v7 }
 0x2ef   :  { %v4175_v45 = vsel %vm4147_vm7, %v4125_v40, %v3394_v61  ;;  %v4126_v8 = vsel %vm4097_vm6, %v4076_v48, %v11149_v63 }
 0x2f0   :  { %2869 = vrot.lane.b32.xlu0 %v11139_v30, %s8581_s18  ;;  %3567 = vrot.lane.b32.xlu1 %v11261_v9, %s8583_s26 }
 0x2f2   :  { %v11285_v24 = vpop.permute.xlu0 %2855  ;;  %v3554_v50 = vpop.permute.xlu1 %3553 }
 0x2f3   :  { %v4225_v16 = vsel %vm4197_vm8, %v4175_v45, %v3554_v50 }
 0x2f4   :  { %3065 = vrot.lane.b32.xlu0 %v11287_v34, %s8582_s21  ;;  %3721 = vrot.lane.b32.xlu1 %v11289_v15, %s8588_s30 }
 0x2f6   :  { %v11301_v36 = vpop.permute.xlu0 %3051  ;;  %v3708_v60 = vpop.permute.xlu1 %3707 }
 0x2f7   :  { %v4275_v6 = vsel %vm4247_vm9, %v4225_v16, %v3708_v60 }
 0x2f8   :  { %3261 = vrot.lane.b32.xlu0 %v2495_v46, %s8585_s19  ;;  %3869 = vrot.lane.b32.xlu1 %v11305_v57, %s8586_s28 }
 0x2fa   :  { %v11313_v22 = vpop.permute.xlu0 %3247  ;;  %v3856_v20 = vpop.permute.xlu1 %3855 }
 0x2fb   :  { %v4325_v52 = vsel %vm4297_vm10, %v4275_v6, %v3856_v20  ;;  %v11379_v6 = vld [vmem:[#allocation2 + $0x5d0] sm:$0xff]  ;;  %v11381_v20 = vld [vmem:[#allocation2 + $0x618] sm:$0xff] }
 0x2fc   :  { %2675 = vrot.lane.b32.xlu0 %v11182_v56, %s8580_s29  ;;  %3409 = vrot.lane.b32.xlu1 %v11173_v35, %s8584_s24  ;;  %v11333_v35 = vld [vmem:[#allocation2 + $0x5c0] sm:$0xff] }
 0x2fd   :  { %8183 = vmatmul.mubr.msk.f32.gmra.mxu1 %vm4356_vm11, %v4325_v52  ;;  %v8525_v52 = vld [vmem:[#allocation2 + $0x410] sm:$0xff] }
 0x2fe   :  { %v11323_v14 = vpop.permute.xlu0 %2661  ;;  %v3396_v43 = vpop.permute.xlu1 %3395  ;;  %8185 = vmatprep.mubr.msk.f32.mxu1 %vm8587_vm3, %v13521_v4 }
 0x2ff   :  { %v4176_v33 = vsel %vm4147_vm7, %v4126_v8, %v3396_v43  ;;  %v3977_v43 = vsel %vm2093_vm2, %v8525_v52, %v11159_v29  ;;  %v11397_v29 = vld [vmem:[#allocation2 + $0x620] sm:$0xff] }
 0x300   :  { %2871 = vrot.lane.b32.xlu0 %v11196_v53, %s8581_s18  ;;  %3569 = vrot.lane.b32.xlu1 %v11321_v25, %s8583_s26 }
 0x302   :  { %v11331_v56 = vpop.permute.xlu0 %2857  ;;  %v3556_v27 = vpop.permute.xlu1 %3555 }
 0x303   :  { %v4226_v17 = vsel %vm4197_vm8, %v4176_v33, %v3556_v27  ;;  %v4027_v27 = vsel %vm3997_vm4, %v3977_v43, %v11177_v0 }
 0x304   :  { %3067 = vrot.lane.b32.xlu0 %v11333_v35, %s8582_s21  ;;  %3723 = vrot.lane.b32.xlu1 %v11335_v19, %s8588_s30  ;;  %v4077_v44 = vsel %vm4047_vm5, %v4027_v27, %v11193_v12 }
 0x305   :  { %v4127_v48 = vsel %vm4097_vm6, %v4077_v44, %v11207_v5 }
 0x306   :  { %v11347_v61 = vpop.permute.xlu0 %3053  ;;  %v3710_v50 = vpop.permute.xlu1 %3709 }
 0x307   :  { %v4276_v7 = vsel %vm4247_vm9, %v4226_v17, %v3710_v50  ;;  %v2499_v50 = vld [vmem:[#allocation2 + $0x5d8] sm:$0xff] }
 0x308   :  { %3263 = vrot.lane.b32.xlu0 %v2497_v39, %s8585_s19  ;;  %3871 = vrot.lane.b32.xlu1 %v11351_v26, %s8586_s28 }
 0x30a   :  { %v11359_v31 = vpop.permute.xlu0 %3249  ;;  %v3858_v60 = vpop.permute.xlu1 %3857 }
 0x30b   :  { %v4326_v40 = vsel %vm4297_vm10, %v4276_v7, %v3858_v60 }
 0x30c   :  { %2677 = vrot.lane.b32.xlu0 %v11247_v10, %s8580_s29  ;;  %3411 = vrot.lane.b32.xlu1 %v11236_v13, %s8584_s24 }
 0x30d   :  { %8186 = vmatmul.mubr.msk.f32.gmra.mxu1 %vm4356_vm11, %v4326_v40  ;;  %v11367_v63 = vpop.f32.mrf.mxu1 }
 0x30e   :  { %v11369_v46 = vpop.permute.xlu0 %2663  ;;  %v3398_v45 = vpop.permute.xlu1 %3397  ;;  %8188 = vmatprep.mubr.msk.f32.mxu1 %vm8587_vm3, %v13521_v4 }
 0x30f   :  { %v8145_v16 = vpop.f32.mrf.mxu1  ;;  %v4177_v8 = vsel %vm4147_vm7, %v4127_v48, %v3398_v45 }
 0x310   :  { %2873 = vrot.lane.b32.xlu0 %v11261_v9, %s8581_s18  ;;  %3571 = vrot.lane.b32.xlu1 %v11351_v26, %s8583_s26  ;;  %v11425_v16 = vld [vmem:[#allocation2 + $0x5e0] sm:$0xff] }
 0x312   :  { %v11377_v10 = vpop.permute.xlu0 %2859  ;;  %v3558_v13 = vpop.permute.xlu1 %3557 }
 0x313   :  { %v4227_v0 = vsel %vm4197_vm8, %v4177_v8, %v3558_v13  ;;  %v8526_v13 = vld [vmem:[#allocation2 + $0x420] sm:$0xff]  ;;  %v11445_v8 = vld [vmem:[#allocation2 + $0x630] sm:$0xff] }
 0x314   :  { %3069 = vrot.lane.b32.xlu0 %v11379_v6, %s8582_s21  ;;  %3725 = vrot.lane.b32.xlu1 %v11381_v20, %s8588_s30  ;;  %v3978_v52 = vsel %vm2093_vm2, %v8526_v13, %v11225_v2 }
 0x316   :  { %v11393_v37 = vpop.permute.xlu0 %3055  ;;  %v3712_v42 = vpop.permute.xlu1 %3711 }
 0x317   :  { %v4277_v12 = vsel %vm4247_vm9, %v4227_v0, %v3712_v42 }
 0x318   :  { %3265 = vrot.lane.b32.xlu0 %v2499_v50, %s8585_s19  ;;  %3873 = vrot.lane.b32.xlu1 %v11397_v29, %s8586_s28  ;;  %v2501_v50 = vld [vmem:[#allocation2 + $0x5e8] sm:$0xff] }
 0x319   :  { %v11404_v39 = vpop.f32.mrf.mxu1 }
 0x31a   :  { %13552 = vst [vmem:[#allocation15_spill] sm:$0xff] %v11404_v39  ;;  %v11407_v33 = vpop.permute.xlu0 %3251  ;;  %v3860_v17 = vpop.permute.xlu1 %3859 }
 0x31b   :  { %v4327_v5 = vsel %vm4297_vm10, %v4277_v12, %v3860_v17  ;;  %v8148_v7 = vpop.f32.mrf.mxu1 }
 0x31c   :  { %2679 = vrot.lane.b32.xlu0 %v11289_v15, %s8580_s29  ;;  %3413 = vrot.lane.b32.xlu1 %v11287_v34, %s8584_s24  ;;  %v11427_v34 = vld [vmem:[#allocation2 + $0x628] sm:$0xff] }
 0x31d   :  { %8189 = vmatmul.mubr.msk.f32.gmra.mxu1 %vm4356_vm11, %v4327_v5 }
 0x31e   :  { %v11415_v60 = vpop.permute.xlu0 %2665  ;;  %v3400_v40 = vpop.permute.xlu1 %3399  ;;  %8191 = vmatprep.mubr.msk.f32.mxu1 %vm8587_vm3, %v13521_v4 }
 0x320   :  { %2875 = vrot.lane.b32.xlu0 %v11305_v57, %s8581_s18  ;;  %3573 = vrot.lane.b32.xlu1 %v11397_v29, %s8583_s26  ;;  %v4028_v57 = vsel %vm3997_vm4, %v3978_v52, %v11240_v55  ;;  %v11473_v52 = vld [vmem:[#allocation2 + $0x638] sm:$0xff] }
 0x321   :  { %v4078_v27 = vsel %vm4047_vm5, %v4028_v57, %v11259_v1  ;;  %v8527_v57 = vld [vmem:[#allocation2 + $0x430] sm:$0xff] }
 0x322   :  { %v11423_v45 = vpop.permute.xlu0 %2861  ;;  %v3560_v15 = vpop.permute.xlu1 %3559  ;;  %v4128_v2 = vsel %vm4097_vm6, %v4078_v27, %v11270_v18  ;;  %v3979_v27 = vsel %vm2093_vm2, %v8527_v57, %v11277_v28 }
 0x323   :  { %v4178_v0 = vsel %vm4147_vm7, %v4128_v2, %v3400_v40  ;;  %v2519_v2 = vld [vmem:[#allocation2 + $0x688] sm:$0xff] }
 0x324   :  { %3071 = vrot.lane.b32.xlu0 %v11425_v16, %s8582_s21  ;;  %3727 = vrot.lane.b32.xlu1 %v11427_v34, %s8588_s30  ;;  %v4228_v55 = vsel %vm4197_vm8, %v4178_v0, %v3560_v15 }
 0x325   :  { %v11437_v43 = vpop.f32.mrf.mxu1 }
 0x326   :  { %13553 = vst [vmem:[#allocation16_spill] sm:$0xff] %v11437_v43  ;;  %v11441_v44 = vpop.permute.xlu0 %3057  ;;  %v3714_v42 = vpop.permute.xlu1 %3713 }
 0x327   :  { %v8151_v48 = vpop.f32.mrf.mxu1  ;;  %v4278_v1 = vsel %vm4247_vm9, %v4228_v55, %v3714_v42  ;;  %v4029_v42 = vsel %vm3997_vm4, %v3979_v27, %v11285_v24  ;;  %v11518_v27 = vld [vmem:[#allocation2 + $0x648] sm:$0xff] }
 0x328   :  { %3267 = vrot.lane.b32.xlu0 %v2501_v50, %s8585_s19  ;;  %3875 = vrot.lane.b32.xlu1 %v11445_v8, %s8586_s28  ;;  %v4079_v48 = vsel %vm4047_vm5, %v4029_v42, %v11301_v36  ;;  %v8528_v42 = vld [vmem:[#allocation2 + $0x440] sm:$0xff] }
 0x329   :  { %v4129_v55 = vsel %vm4097_vm6, %v4079_v48, %v11313_v22 }
 0x32a   :  { %v11453_v12 = vpop.permute.xlu0 %3253  ;;  %v3862_v17 = vpop.permute.xlu1 %3861 }
 0x32b   :  { %v4328_v18 = vsel %vm4297_vm10, %v4278_v1, %v3862_v17  ;;  %v11488_v1 = vld [vmem:[#allocation2 + $0x640] sm:$0xff] }
 0x32c   :  { %2681 = vrot.lane.b32.xlu0 %v11335_v19, %s8580_s29  ;;  %3415 = vrot.lane.b32.xlu1 %v11333_v35, %s8584_s24  ;;  %v2518_v19 = vld [vmem:[#allocation2 + $0x680] sm:$0xff] }
 0x32d   :  { %8192 = vmatmul.mubr.msk.f32.gmra.mxu1 %vm4356_vm11, %v4328_v18 }
 0x32e   :  { %v11461_v5 = vpop.permute.xlu0 %2667  ;;  %v3402_v7 = vpop.permute.xlu1 %3401  ;;  %8194 = vmatprep.mubr.msk.f32.mxu1 %vm8587_vm3, %v13521_v4 }
 0x32f   :  { %v4179_v28 = vsel %vm4147_vm7, %v4129_v55, %v3402_v7 }
 0x330   :  { %2877 = vrot.lane.b32.xlu0 %v11351_v26, %s8581_s18  ;;  %3575 = vrot.lane.b32.xlu1 %v11445_v8, %s8583_s26 }
 0x331   :  { %v11469_v40 = vpop.f32.mrf.mxu1 }
 0x332   :  { %13554 = vst [vmem:[#allocation17_spill] sm:$0xff] %v11469_v40  ;;  %v11471_v15 = vpop.permute.xlu0 %2863  ;;  %v3562_v35 = vpop.permute.xlu1 %3561  ;;  %v2535_v40 = vld [vmem:[#allocation2 + $0x710] sm:$0xff] }
 0x333   :  { %v8154_v13 = vpop.f32.mrf.mxu1  ;;  %v4229_v24 = vsel %vm4197_vm8, %v4179_v28, %v3562_v35 }
 0x334   :  { %3073 = vrot.lane.b32.xlu0 %v2518_v19, %s8582_s21  ;;  %3729 = vrot.lane.b32.xlu1 %v11473_v52, %s8588_s30 }
 0x336   :  { %v11484_v50 = vpop.permute.xlu0 %3059  ;;  %v3716_v0 = vpop.permute.xlu1 %3715 }
 0x337   :  { %v4279_v17 = vsel %vm4247_vm9, %v4229_v24, %v3716_v0  ;;  %v2521_v0 = vld [vmem:[#allocation2 + $0x698] sm:$0xff] }
 0x338   :  { %3269 = vrot.lane.b32.xlu0 %v2519_v2, %s8585_s19  ;;  %3877 = vrot.lane.b32.xlu1 %v11488_v1, %s8586_s28  ;;  %v3980_v2 = vsel %vm2093_vm2, %v8528_v42, %v11323_v14  ;;  %v11534_v14 = vld [vmem:[#allocation2 + $0x650] sm:$0xff] }
 0x339   :  { %v4030_v48 = vsel %vm3997_vm4, %v3980_v2, %v11331_v56 }
 0x33a   :  { %v11496_v36 = vpop.permute.xlu0 %3255  ;;  %v3864_v18 = vpop.permute.xlu1 %3863  ;;  %v4080_v55 = vsel %vm4047_vm5, %v4030_v48, %v11347_v61 }
 0x33b   :  { %v4329_v19 = vsel %vm4297_vm10, %v4279_v17, %v3864_v18  ;;  %v4130_v17 = vsel %vm4097_vm6, %v4080_v55, %v11359_v31 }
 0x33c   :  { %2683 = vrot.lane.b32.xlu0 %v11381_v20, %s8580_s29  ;;  %3417 = vrot.lane.b32.xlu1 %v11379_v6, %s8584_s24  ;;  %v11514_v20 = vld [vmem:[#allocation2 + $0x690] sm:$0xff] }
 0x33d   :  { %8195 = vmatmul.mubr.msk.f32.gmra.mxu1 %vm4356_vm11, %v4329_v19  ;;  %v11504_v22 = vpop.f32.mrf.mxu1 }
 0x33e   :  { %13555 = vst [vmem:[#allocation18_spill] sm:$0xff] %v11504_v22  ;;  %v11506_v7 = vpop.permute.xlu0 %2669  ;;  %v3404_v35 = vpop.permute.xlu1 %3403  ;;  %8197 = vmatprep.mubr.msk.f32.mxu1 %vm8587_vm3, %v13521_v4 }
 0x33f   :  { %v8157_v13 = vpop.f32.mrf.mxu1  ;;  %v4180_v18 = vsel %vm4147_vm7, %v4130_v17, %v3404_v35  ;;  %v8529_v17 = vld [vmem:[#allocation2 + $0x450] sm:$0xff] }
 0x340   :  { %2879 = vrot.lane.b32.xlu0 %v11397_v29, %s8581_s18  ;;  %3577 = vrot.lane.b32.xlu1 %v11488_v1, %s8583_s26 }
 0x342   :  { %v11516_v6 = vpop.permute.xlu0 %2865  ;;  %v3564_v57 = vpop.permute.xlu1 %3563 }
 0x343   :  { %v4230_v56 = vsel %vm4197_vm8, %v4180_v18, %v3564_v57  ;;  %v3981_v18 = vsel %vm2093_vm2, %v8529_v17, %v11369_v46  ;;  %v11582_v46 = vld [vmem:[#allocation2 + $0x660] sm:$0xff] }
 0x344   :  { %3075 = vrot.lane.b32.xlu0 %v11514_v20, %s8582_s21  ;;  %3731 = vrot.lane.b32.xlu1 %v11518_v27, %s8588_s30 }
 0x346   :  { %v11530_v28 = vpop.permute.xlu0 %3061  ;;  %v3718_v24 = vpop.permute.xlu1 %3717 }
 0x347   :  { %v4280_v61 = vsel %vm4247_vm9, %v4230_v56, %v3718_v24  ;;  %v11566_v24 = vld [vmem:[#allocation2 + $0x658] sm:$0xff]  ;;  %v4031_v56 = vsel %vm3997_vm4, %v3981_v18, %v11377_v10 }
 0x348   :  { %3271 = vrot.lane.b32.xlu0 %v2521_v0, %s8585_s19  ;;  %3879 = vrot.lane.b32.xlu1 %v11534_v14, %s8586_s28 }
 0x349   :  { %v11541_v19 = vpop.f32.mrf.mxu1 }
 0x34a   :  { %13556 = vst [vmem:[#allocation19_spill] sm:$0xff] %v11541_v19  ;;  %v11544_v13 = vpop.permute.xlu0 %3257  ;;  %v3866_v42 = vpop.permute.xlu1 %3865 }
 0x34b   :  { %v4330_v31 = vsel %vm4297_vm10, %v4280_v61, %v3866_v42  ;;  %v8160_v2 = vpop.f32.mrf.mxu1  ;;  %v2523_v61 = vld [vmem:[#allocation2 + $0x6a8] sm:$0xff]  ;;  %v4081_v42 = vsel %vm4047_vm5, %v4031_v56, %v11393_v37 }
 0x34c   :  { %2685 = vrot.lane.b32.xlu0 %v11427_v34, %s8580_s29  ;;  %3419 = vrot.lane.b32.xlu1 %v11425_v16, %s8584_s24  ;;  %v11562_v34 = vld [vmem:[#allocation2 + $0x6a0] sm:$0xff] }
 0x34d   :  { %8198 = vmatmul.mubr.msk.f32.gmra.mxu1 %vm4356_vm11, %v4330_v31 }
 0x34e   :  { %v11552_v35 = vpop.permute.xlu0 %2671  ;;  %v3406_v57 = vpop.permute.xlu1 %3405  ;;  %8200 = vmatprep.mubr.msk.f32.mxu1 %vm8587_vm3, %v13521_v4 }
 0x350   :  { %2881 = vrot.lane.b32.xlu0 %v11445_v8, %s8581_s18  ;;  %3579 = vrot.lane.b32.xlu1 %v11534_v14, %s8583_s26 }
 0x351   :  { %v11560_v48 = vpop.f32.mrf.mxu1 }
 0x352   :  { %13557 = vst [vmem:[#allocation20_spill] sm:$0xff] %v11560_v48  ;;  %v11564_v0 = vpop.permute.xlu0 %2867  ;;  %v3566_v16 = vpop.permute.xlu1 %3565  ;;  %v2502_v48 = vld [vmem:[#allocation2 + $0x5f0] sm:$0xff] }
 0x353   :  { %v8163_v55 = vpop.f32.mrf.mxu1 }
 0x354   :  { %3077 = vrot.lane.b32.xlu0 %v11562_v34, %s8582_s21  ;;  %3733 = vrot.lane.b32.xlu1 %v11566_v24, %s8588_s30  ;;  %v4131_v55 = vsel %vm4097_vm6, %v4081_v42, %v11407_v33 }
 0x355   :  { %v4181_v17 = vsel %vm4147_vm7, %v4131_v55, %v3406_v57 }
 0x356   :  { %v11578_v31 = vpop.permute.xlu0 %3063  ;;  %v3720_v2 = vpop.permute.xlu1 %3719  ;;  %v4231_v10 = vsel %vm4197_vm8, %v4181_v17, %v3566_v16  ;;  %v11605_v16 = vld [vmem:[#allocation2 + $0x6b0] sm:$0xff]  ;;  %v2525_v17 = vld [vmem:[#allocation2 + $0x6b8] sm:$0xff] }
 0x357   :  { %v4281_v18 = vsel %vm4247_vm9, %v4231_v10, %v3720_v2 }
 0x358   :  { %3273 = vrot.lane.b32.xlu0 %v2523_v61, %s8585_s19  ;;  %3881 = vrot.lane.b32.xlu1 %v11582_v46, %s8586_s28  ;;  %v13558_v61 = vmov 0.0  }
 0x35a   :  { %v11590_v37 = vpop.permute.xlu0 %3259  ;;  %v3868_v56 = vpop.permute.xlu1 %3867 }
 0x35b   :  { %v4331_v4 = vsel %vm4297_vm10, %v4281_v18, %v3868_v56 }
 0x35c   :  { %2687 = vrot.lane.b32.xlu0 %v11473_v52, %s8580_s29  ;;  %3421 = vrot.lane.b32.xlu1 %v2502_v48, %s8584_s24  ;;  %v11609_v48 = vld [vmem:[#allocation2 + $0x668] sm:$0xff] }
 0x35d   :  { %8201 = vmatmul.mubr.msk.f32.gmra.mxu1 %vm4356_vm11, %v4331_v4  ;;  %v8530_v4 = vld [vmem:[#allocation2 + $0x460] sm:$0xff] }
 0x35e   :  { %v11597_v33 = vpop.permute.xlu0 %2673  ;;  %v3408_v57 = vpop.permute.xlu1 %3407  ;;  %8203 = vmatprep.mubr.msk.f32.mxu1 %vm8587_vm3, %v13558_v61  ;;  %v3982_v2 = vsel %vm2093_vm2, %v8530_v4, %v11415_v60  ;;  %v11625_v60 = vld [vmem:[#allocation2 + $0x670] sm:$0xff] }
 0x35f   :  { %v4032_v55 = vsel %vm3997_vm4, %v3982_v2, %v11423_v45 }
 0x360   :  { %2883 = vrot.lane.b32.xlu0 %v11488_v1, %s8581_s18  ;;  %3581 = vrot.lane.b32.xlu1 %v11582_v46, %s8583_s26  ;;  %v4082_v10 = vsel %vm4047_vm5, %v4032_v55, %v11441_v44 }
 0x361   :  { %v4132_v19 = vsel %vm4097_vm6, %v4082_v10, %v11453_v12  ;;  %v2533_v12 = vld [vmem:[#allocation2 + $0x700] sm:$0xff] }
 0x362   :  { %v11607_v42 = vpop.permute.xlu0 %2869  ;;  %v3568_v52 = vpop.permute.xlu1 %3567  ;;  %v4182_v4 = vsel %vm4147_vm7, %v4132_v19, %v3408_v57  ;;  %v8531_v10 = vld [vmem:[#allocation2 + $0x500] sm:$0xff] }
 0x363   :  { %v4232_v45 = vsel %vm4197_vm8, %v4182_v4, %v3568_v52  ;;  %v11648_v52 = vld [vmem:[#allocation2 + $0x6c0] sm:$0xff] }
 0x364   :  { %3079 = vrot.lane.b32.xlu0 %v11605_v16, %s8582_s21  ;;  %3735 = vrot.lane.b32.xlu1 %v11609_v48, %s8588_s30 }
 0x366   :  { %v11621_v18 = vpop.permute.xlu0 %3065  ;;  %v3722_v56 = vpop.permute.xlu1 %3721 }
 0x367   :  { %v4282_v2 = vsel %vm4247_vm9, %v4232_v45, %v3722_v56 }
 0x368   :  { %3275 = vrot.lane.b32.xlu0 %v2525_v17, %s8585_s19  ;;  %3883 = vrot.lane.b32.xlu1 %v11625_v60, %s8586_s28 }
 0x36a   :  { %v11633_v44 = vpop.permute.xlu0 %3261  ;;  %v3870_v55 = vpop.permute.xlu1 %3869 }
 0x36b   :  { %v4332_v22 = vsel %vm4297_vm10, %v4282_v2, %v3870_v55 }
 0x36c   :  { %2689 = vrot.lane.b32.xlu0 %v11518_v27, %s8580_s29  ;;  %3423 = vrot.lane.b32.xlu1 %v11514_v20, %s8584_s24  ;;  %v2534_v20 = vld [vmem:[#allocation2 + $0x708] sm:$0xff] }
 0x36d   :  { %8204 = vmatmul.mubr.msk.f32.gmra.mxu1 %vm4356_vm11, %v4332_v22  ;;  %v3983_v22 = vsel %vm2093_vm2, %v8531_v10, %v11461_v5  ;;  %v2527_v10 = vld [vmem:[#allocation2 + $0x6c8] sm:$0xff] }
 0x36e   :  { %v11641_v19 = vpop.permute.xlu0 %2675  ;;  %v3410_v57 = vpop.permute.xlu1 %3409  ;;  %8206 = vmatprep.mubr.msk.f32.mxu1 %vm8587_vm3, %v13558_v61  ;;  %v4033_v56 = vsel %vm3997_vm4, %v3983_v22, %v11471_v15 }
 0x36f   :  { %v4083_v45 = vsel %vm4047_vm5, %v4033_v56, %v11484_v50 }
 0x370   :  { %2885 = vrot.lane.b32.xlu0 %v11534_v14, %s8581_s18  ;;  %3583 = vrot.lane.b32.xlu1 %v2533_v12, %s8583_s26  ;;  %v4133_v12 = vsel %vm4097_vm6, %v4083_v45, %v11496_v36 }
 0x371   :  { %v4183_v43 = vsel %vm4147_vm7, %v4133_v12, %v3410_v57  ;;  %v8532_v12 = vld [vmem:[#allocation2 + $0x510] sm:$0xff] }
 0x372   :  { %v11650_v27 = vpop.permute.xlu0 %2871  ;;  %v3570_v17 = vpop.permute.xlu1 %3569 }
 0x373   :  { %v4233_v15 = vsel %vm4197_vm8, %v4183_v43, %v3570_v17 }
 0x374   :  { %3081 = vrot.lane.b32.xlu0 %v11648_v52, %s8582_s21  ;;  %3737 = vrot.lane.b32.xlu1 %v2534_v20, %s8588_s30 }
 0x375   :  { %v11659_v4 = vpop.f32.mrf.mxu1 }
 0x376   :  { %v11663_v2 = vpop.permute.xlu0 %3067  ;;  %v3724_v55 = vpop.permute.xlu1 %3723 }
 0x377   :  { %v8166_v5 = vpop.f32.mrf.mxu1  ;;  %v4283_v20 = vsel %vm4247_vm9, %v4233_v15, %v3724_v55  ;;  %v2536_v55 = vld [vmem:[#allocation2 + $0x718] sm:$0xff] }
 0x378   :  { %3277 = vrot.lane.b32.xlu0 %v2527_v10, %s8585_s19  ;;  %3885 = vrot.lane.b32.xlu1 %v2535_v40, %s8586_s28  ;;  %v3984_v5 = vsel %vm2093_vm2, %v8532_v12, %v11506_v7 }
 0x37a   :  { %v11672_v50 = vpop.permute.xlu0 %3263  ;;  %v3872_v22 = vpop.permute.xlu1 %3871 }
 0x37b   :  { %v4333_v56 = vsel %vm4297_vm10, %v4283_v20, %v3872_v22 }
 0x37c   :  { %2691 = vrot.lane.b32.xlu0 %v11566_v24, %s8580_s29  ;;  %3425 = vrot.lane.b32.xlu1 %v11562_v34, %s8584_s24  ;;  %v11691_v34 = vld [vmem:[#allocation2 + $0x6d0] sm:$0xff] }
 0x37d   :  { %8207 = vmatmul.mubr.msk.f32.gmra.mxu1 %vm4356_vm11, %v4333_v56  ;;  %v2529_v56 = vld [vmem:[#allocation2 + $0x6d8] sm:$0xff] }
 0x37e   :  { %v11680_v36 = vpop.permute.xlu0 %2677  ;;  %v3412_v57 = vpop.permute.xlu1 %3411  ;;  %8209 = vmatprep.mubr.msk.f32.mxu1 %vm8587_vm3, %v13558_v61 }
 0x380   :  { %2887 = vrot.lane.b32.xlu0 %v11582_v46, %s8581_s18  ;;  %3585 = vrot.lane.b32.xlu1 %v2535_v40, %s8583_s26  ;;  %v4034_v40 = vsel %vm3997_vm4, %v3984_v5, %v11516_v6 }
 0x381   :  { %v11687_v43 = vpop.f32.mrf.mxu1  ;;  %v4084_v10 = vsel %vm4047_vm5, %v4034_v40, %v11530_v28 }
 0x382   :  { %v11689_v17 = vpop.permute.xlu0 %2873  ;;  %v3572_v24 = vpop.permute.xlu1 %3571  ;;  %v4134_v22 = vsel %vm4097_vm6, %v4084_v10, %v11544_v13 }
 0x383   :  { %v8169_v45 = vpop.f32.mrf.mxu1  ;;  %v4184_v7 = vsel %vm4147_vm7, %v4134_v22, %v3412_v57  ;;  %v8533_v22 = vld [vmem:[#allocation2 + $0x520] sm:$0xff] }
 0x384   :  { %3083 = vrot.lane.b32.xlu0 %v11691_v34, %s8582_s21  ;;  %3739 = vrot.lane.b32.xlu1 %v2536_v55, %s8588_s30  ;;  %v2537_v45 = vld [vmem:[#allocation2 + $0x720] sm:$0xff]  ;;  %v4234_v55 = vsel %vm4197_vm8, %v4184_v7, %v3572_v24 }
 0x386   :  { %v11702_v15 = vpop.permute.xlu0 %3069  ;;  %v3726_v20 = vpop.permute.xlu1 %3725 }
 0x387   :  { %v4284_v6 = vsel %vm4247_vm9, %v4234_v55, %v3726_v20  ;;  %v2538_v20 = vld [vmem:[#allocation2 + $0x728] sm:$0xff] }
 0x388   :  { %3279 = vrot.lane.b32.xlu0 %v2529_v56, %s8585_s19  ;;  %3887 = vrot.lane.b32.xlu1 %v2537_v45, %s8586_s28  ;;  %v3985_v56 = vsel %vm2093_vm2, %v8533_v22, %v11552_v35 }
 0x38a   :  { %v11711_v12 = vpop.permute.xlu0 %3265  ;;  %v3874_v28 = vpop.permute.xlu1 %3873 }
 0x38b   :  { %v4334_v5 = vsel %vm4297_vm10, %v4284_v6, %v3874_v28  ;;  %v2531_v28 = vld [vmem:[#allocation2 + $0x6e8] sm:$0xff] }
 0x38c   :  { %2693 = vrot.lane.b32.xlu0 %v11609_v48, %s8580_s29  ;;  %3427 = vrot.lane.b32.xlu1 %v11605_v16, %s8584_s24  ;;  %v11730_v16 = vld [vmem:[#allocation2 + $0x6e0] sm:$0xff] }
 0x38d   :  { %8210 = vmatmul.mubr.msk.f32.gmra.mxu1 %vm4356_vm11, %v4334_v5  ;;  %v11719_v13 = vpop.f32.mrf.mxu1  ;;  %v2539_v5 = vld [vmem:[#allocation2 + $0x730] sm:$0xff] }
 0x38e   :  { %v11721_v57 = vpop.permute.xlu0 %2679  ;;  %v3414_v24 = vpop.permute.xlu1 %3413  ;;  %8212 = vmatprep.mubr.msk.f32.mxu1 %vm8587_vm3, %v13558_v61 }
 0x38f   :  { %v8172_v40 = vpop.f32.mrf.mxu1 }
 0x390   :  { %2889 = vrot.lane.b32.xlu0 %v11625_v60, %s8581_s18  ;;  %3587 = vrot.lane.b32.xlu1 %v2537_v45, %s8583_s26  ;;  %v4035_v60 = vsel %vm3997_vm4, %v3985_v56, %v11564_v0 }
 0x391   :  { %v4085_v45 = vsel %vm4047_vm5, %v4035_v60, %v11578_v31  ;;  %v2532_v60 = vld [vmem:[#allocation2 + $0x6f0] sm:$0xff] }
 0x392   :  { %v11728_v48 = vpop.permute.xlu0 %2875  ;;  %v3574_v10 = vpop.permute.xlu1 %3573  ;;  %v4135_v6 = vsel %vm4097_vm6, %v4085_v45, %v11590_v37 }
 0x393   :  { %v4185_v35 = vsel %vm4147_vm7, %v4135_v6, %v3414_v24  ;;  %v2546_v24 = vld [vmem:[#allocation2 + $0x768] sm:$0xff] }
 0x394   :  { %3085 = vrot.lane.b32.xlu0 %v11730_v16, %s8582_s21  ;;  %3741 = vrot.lane.b32.xlu1 %v2538_v20, %s8588_s30  ;;  %v4235_v40 = vsel %vm4197_vm8, %v4185_v35, %v3574_v10 }
 0x396   :  { %v11741_v7 = vpop.permute.xlu0 %3071  ;;  %v3728_v55 = vpop.permute.xlu1 %3727 }
 0x397   :  { %v4285_v31 = vsel %vm4247_vm9, %v4235_v40, %v3728_v55  ;;  %v8534_v40 = vld [vmem:[#allocation2 + $0x530] sm:$0xff] }
 0x398   :  { %3281 = vrot.lane.b32.xlu0 %v2531_v28, %s8585_s19  ;;  %3889 = vrot.lane.b32.xlu1 %v2539_v5, %s8586_s28 }
 0x399   :  { %v11749_v0 = vpop.f32.mrf.mxu1 }
 0x39a   :  { %13559 = vst [vmem:[#allocation21_spill] sm:$0xff] %v11749_v0  ;;  %v11752_v20 = vpop.permute.xlu0 %3267  ;;  %v3876_v22 = vpop.permute.xlu1 %3875 }
 0x39b   :  { %v4335_v56 = vsel %vm4297_vm10, %v4285_v31, %v3876_v22  ;;  %v8175_v37 = vpop.f32.mrf.mxu1  ;;  %v3986_v31 = vsel %vm2093_vm2, %v8534_v40, %v11597_v33 }
 0x39c   :  { %3435 = vrot.lane.b32.xlu0 %v2532_v60, %s8584_s24  ;;  %3429 = vrot.lane.b32.xlu1 %v11648_v52, %s8584_s24  ;;  %v2540_v52 = vld [vmem:[#allocation2 + $0x738] sm:$0xff]  ;;  %v4036_v22 = vsel %vm3997_vm4, %v3986_v31, %v11607_v42 }
 0x39d   :  { %8213 = vmatmul.mubr.msk.f32.gmra.mxu1 %vm4356_vm11, %v4335_v56 }
 0x39e   :  { %v11759_v10 = vpop.permute.xlu0 %2681  ;;  %v3416_v45 = vpop.permute.xlu1 %3415  ;;  %8215 = vmatprep.mubr.msk.f32.mxu1 %vm8587_vm3, %v13558_v61 }
 0x3a0   :  { %3589 = vrot.lane.b32.xlu1 %v2539_v5, %s8583_s26  ;;  %3749 = vrot.lane.b32.xlu0 %v2546_v24, %s8588_s30  ;;  %v4086_v5 = vsel %vm4047_vm5, %v4036_v22, %v11621_v18  ;;  %v2541_v24 = vld [vmem:[#allocation2 + $0x740] sm:$0xff] }
 0x3a1   :  { %v11765_v55 = vpop.f32.mrf.mxu1  ;;  %v4136_v60 = vsel %vm4097_vm6, %v4086_v5, %v11633_v44 }
 0x3a2   :  { %13560 = vst [vmem:[#allocation22_spill] sm:$0xff] %v11765_v55  ;;  %v11767_v6 = vpop.permute.xlu0 %2877  ;;  %v3576_v28 = vpop.permute.xlu1 %3575 }
 0x3a3   :  { %v8178_v35 = vpop.f32.mrf.mxu1 }
 0x3a4   :  { %3743 = vrot.lane.b32.xlu1 %v2540_v52, %s8588_s30  ;;  %v4186_v35 = vsel %vm4147_vm7, %v4136_v60, %v3416_v45 }
 0x3a5   :  { %v4236_v33 = vsel %vm4197_vm8, %v4186_v35, %v3576_v28 }
 0x3a6   :  { %v11776_v56 = vpop.permute.xlu0 %3073  ;;  %v3730_v37 = vpop.permute.xlu1 %3729 }
 0x3a7   :  { %v4286_v52 = vsel %vm4247_vm9, %v4236_v33, %v3730_v37  ;;  %v2542_v37 = vld [vmem:[#allocation2 + $0x748] sm:$0xff] }
 0x3a8   :  { %3891 = vrot.lane.b32.xlu1 %v2541_v24, %s8586_s28 }
 0x3aa   :  { %v11784_v40 = vpop.permute.xlu0 %3269  ;;  %v3878_v42 = vpop.permute.xlu1 %3877 }
 0x3ab   :  { %v4336_v18 = vsel %vm4297_vm10, %v4286_v52, %v3878_v42  ;;  %v2543_v42 = vld [vmem:[#allocation2 + $0x750] sm:$0xff] }
 0x3ac   :  { %3431 = vrot.lane.b32.xlu1 %v11691_v34, %s8584_s24  ;;  %8216 = vmatmul.mubr.msk.f32.gmra.mxu1 %vm4356_vm11, %v4336_v18  ;;  %v3987_v34 = vsel %vm2093_vm2, %v11139_v30, %v11641_v19 }
 0x3ad   :  { %v11790_v44 = vpop.f32.mrf.mxu1  ;;  %8218 = vmatprep.mubr.msk.f32.mxu1 %vm8587_vm3, %v13558_v61  ;;  %v4037_v60 = vsel %vm3997_vm4, %v3987_v34, %v11650_v27 }
 0x3ae   :  { %v11794_v45 = vpop.permute.xlu0 %2683  ;;  %v3418_v28 = vpop.permute.xlu1 %3417  ;;  %v4087_v35 = vsel %vm4047_vm5, %v4037_v60, %v11663_v2  ;;  %v2544_v60 = vld [vmem:[#allocation2 + $0x758] sm:$0xff] }
 0x3af   :  { %v8181_v31 = vpop.f32.mrf.mxu1 }
 0x3b0   :  { %3591 = vrot.lane.b32.xlu1 %v2541_v24, %s8583_s26  ;;  %v4137_v24 = vsel %vm4097_vm6, %v4087_v35, %v11672_v50 }
 0x3b1   :  { %v4187_v18 = vsel %vm4147_vm7, %v4137_v24, %v3418_v28 }
 0x3b2   :  { %v11797_v22 = vpop.permute.xlu0 %2879  ;;  %v3578_v5 = vpop.permute.xlu1 %3577 }
 0x3b3   :  { %v4237_v30 = vsel %vm4197_vm8, %v4187_v18, %v3578_v5  ;;  %v2545_v18 = vld [vmem:[#allocation2 + $0x760] sm:$0xff] }
 0x3b4   :  { %3745 = vrot.lane.b32.xlu1 %v2542_v37, %s8588_s30 }
 0x3b6   :  { %v3732_v33 = vpop.permute.xlu1 %3731  ;;  %v11809_v52 = vpop.permute.xlu0 %3075 }
 0x3b7   :  { %v4287_v19 = vsel %vm4247_vm9, %v4237_v30, %v3732_v33 }
 0x3b8   :  { %3893 = vrot.lane.b32.xlu1 %v2543_v42, %s8586_s28 }
 0x3ba   :  { %v3880_v31 = vpop.permute.xlu1 %3879  ;;  %v11819_v2 = vpop.permute.xlu0 %3271 }
 0x3bb   :  { %v4337_v27 = vsel %vm4297_vm10, %v4287_v19, %v3880_v31 }
 0x3bc   :  { %3433 = vrot.lane.b32.xlu1 %v11730_v16, %s8584_s24  ;;  %8219 = vmatmul.mubr.msk.f32.gmra.mxu1 %vm4356_vm11, %v4337_v27  ;;  %v3988_v16 = vsel %vm2093_vm2, %v11196_v53, %v11680_v36 }
 0x3bd   :  { %v11821_v50 = vpop.f32.mrf.mxu1  ;;  %8221 = vmatprep.mubr.msk.f32.mxu1 %vm8587_vm3, %v13558_v61  ;;  %v4038_v35 = vsel %vm3997_vm4, %v3988_v16, %v11689_v17 }
 0x3be   :  { %v3420_v28 = vpop.permute.xlu1 %3419  ;;  %v11826_v34 = vpop.permute.xlu0 %2685  ;;  %v4088_v33 = vsel %vm4047_vm5, %v4038_v35, %v11702_v15 }
 0x3bf   :  { %v8184_v37 = vpop.f32.mrf.mxu1 }
 0x3c0   :  { %3593 = vrot.lane.b32.xlu1 %v2543_v42, %s8583_s26  ;;  %v4138_v42 = vsel %vm4097_vm6, %v4088_v33, %v11711_v12  ;;  %v2547_v37 = vld [vmem:[#allocation2 + $0x770] sm:$0xff] }
 0x3c1   :  { %v4188_v30 = vsel %vm4147_vm7, %v4138_v42, %v3420_v28 }
 0x3c2   :  { %v3580_v5 = vpop.permute.xlu1 %3579  ;;  %v11840_v19 = vpop.permute.xlu0 %2881 }
 0x3c3   :  { %v4238_v53 = vsel %vm4197_vm8, %v4188_v30, %v3580_v5 }
 0x3c4   :  { %3747 = vrot.lane.b32.xlu1 %v2544_v60, %s8588_s30  ;;  %v3989_v60 = vsel %vm2093_vm2, %v11261_v9, %v11721_v57 }
 0x3c5   :  { %v4039_v16 = vsel %vm3997_vm4, %v3989_v60, %v11728_v48 }
 0x3c6   :  { %v3734_v24 = vpop.permute.xlu1 %3733  ;;  %v11851_v27 = vpop.permute.xlu0 %3077  ;;  %v4089_v33 = vsel %vm4047_vm5, %v4039_v16, %v11741_v7 }
 0x3c7   :  { %v4288_v36 = vsel %vm4247_vm9, %v4238_v53, %v3734_v24  ;;  %v4139_v42 = vsel %vm4097_vm6, %v4089_v33, %v11752_v20 }
 0x3c8   :  { %3895 = vrot.lane.b32.xlu1 %v2545_v18, %s8586_s28 }
 0x3ca   :  { %v3882_v31 = vpop.permute.xlu1 %3881  ;;  %v3274_v35 = vpop.permute.xlu0 %3273 }
 0x3cb   :  { %v4338_v17 = vsel %vm4297_vm10, %v4288_v36, %v3882_v31 }
 0x3cc   :  { %3595 = vrot.lane.b32.xlu1 %v2545_v18, %s8583_s26  ;;  %8222 = vmatmul.mubr.msk.f32.gmra.mxu1 %vm4356_vm11, %v4338_v17 }
 0x3cd   :  { %v11847_v15 = vpop.f32.mrf.mxu1  ;;  %8224 = vmatprep.mubr.msk.f32.mxu1 %vm8587_vm3, %v13558_v61 }
 0x3ce   :  { %13561 = vst [vmem:[#allocation23_spill] sm:$0xff] %v11847_v15  ;;  %v3422_v12 = vpop.permute.xlu1 %3421  ;;  %v11866_v31 = vpop.permute.xlu0 %2687 }
 0x3cf   :  { %v8187_v28 = vpop.f32.mrf.mxu1  ;;  %v4189_v18 = vsel %vm4147_vm7, %v4139_v42, %v3422_v12  ;;  %v3990_v12 = vsel %vm2093_vm2, %v11321_v25, %v11759_v10 }
 0x3d0   :  { %3897 = vrot.lane.b32.xlu1 %v2547_v37, %s8586_s28  ;;  %v4040_v28 = vsel %vm3997_vm4, %v3990_v12, %v11767_v6 }
 0x3d1   :  { %v4090_v37 = vsel %vm4047_vm5, %v4040_v28, %v11776_v56 }
 0x3d2   :  { %v3582_v5 = vpop.permute.xlu1 %3581  ;;  %v2884_v20 = vpop.permute.xlu0 %2883  ;;  %v4140_v60 = vsel %vm4097_vm6, %v4090_v37, %v11784_v40 }
 0x3d3   :  { %v4239_v30 = vsel %vm4197_vm8, %v4189_v18, %v3582_v5 }
 0x3d6   :  { %v3736_v24 = vpop.permute.xlu1 %3735  ;;  %v3080_v16 = vpop.permute.xlu0 %3079 }
 0x3d7   :  { %v4289_v53 = vsel %vm4247_vm9, %v4239_v30, %v3736_v24 }
 0x3da   :  { %v3884_v36 = vpop.permute.xlu1 %3883  ;;  %v3276_v10 = vpop.permute.xlu0 %3275 }
 0x3db   :  { %v4339_v9 = vsel %vm4297_vm10, %v4289_v53, %v3884_v36  ;;  %v3991_v36 = vsel %vm2093_vm2, %v11351_v26, %v11794_v45 }
 0x3dc   :  { %8225 = vmatmul.mubr.msk.f32.gmra.mxu1 %vm4356_vm11, %v4339_v9  ;;  %v4041_v9 = vsel %vm3997_vm4, %v3991_v36, %v11797_v22 }
 0x3dd   :  { %v11870_v57 = vpop.f32.mrf.mxu1  ;;  %8227 = vmatprep.mubr.msk.f32.mxu1 %vm8587_vm3, %v13558_v61 }
 0x3de   :  { %13562 = vst [vmem:[#allocation24_spill] sm:$0xff] %v11870_v57  ;;  %v3424_v48 = vpop.permute.xlu1 %3423  ;;  %v2690_v53 = vpop.permute.xlu0 %2689 }
 0x3df   :  { %v8190_v7 = vpop.f32.mrf.mxu1  ;;  %v4190_v33 = vsel %vm4147_vm7, %v4140_v60, %v3424_v48  ;;  %v4091_v48 = vsel %vm4047_vm5, %v4041_v9, %v11809_v52 }
 0x3e2   :  { %v3584_v17 = vpop.permute.xlu1 %3583  ;;  %v2886_v28 = vpop.permute.xlu0 %2885 }
 0x3e3   :  { %v4240_v24 = vsel %vm4197_vm8, %v4190_v33, %v3584_v17  ;;  %v4141_v17 = vsel %vm4097_vm6, %v4091_v48, %v11819_v2 }
 0x3e6   :  { %v3738_v5 = vpop.permute.xlu1 %3737  ;;  %v3082_v52 = vpop.permute.xlu0 %3081 }
 0x3e7   :  { %v4290_v42 = vsel %vm4247_vm9, %v4240_v24, %v3738_v5  ;;  %v3992_v24 = vsel %vm2093_vm2, %v11397_v29, %v11826_v34 }
 0x3ea   :  { %v3886_v18 = vpop.permute.xlu1 %3885 }
 0x3eb   :  { %v4340_v25 = vsel %vm4297_vm10, %v4290_v42, %v3886_v18  ;;  %v4042_v42 = vsel %vm3997_vm4, %v3992_v24, %v11840_v19  ;;  %v3278_v18 = vpop.permute.xlu0 %3277 }
 0x3ec   :  { %8228 = vmatmul.mubr.msk.f32.gmra.mxu1 %vm4356_vm11, %v4340_v25  ;;  %v4092_v25 = vsel %vm4047_vm5, %v4042_v42, %v11851_v27 }
 0x3ed   :  { %v11888_v6 = vpop.f32.mrf.mxu1  ;;  %8230 = vmatprep.mubr.msk.f32.mxu1 %vm8587_vm3, %v13558_v61 }
 0x3ee   :  { %v3426_v56 = vpop.permute.xlu1 %3425 }
 0x3ef   :  { %v8193_v40 = vpop.f32.mrf.mxu1  ;;  %v4191_v12 = vsel %vm4147_vm7, %v4141_v17, %v3426_v56 }
 0x3f0   :  { %v4142_v40 = vsel %vm4097_vm6, %v4092_v25, %v3274_v35 }
 0x3f2   :  { %v3586_v30 = vpop.permute.xlu1 %3585 }
 0x3f3   :  { %v4241_v37 = vsel %vm4197_vm8, %v4191_v12, %v3586_v30  ;;  %v3993_v12 = vsel %vm2093_vm2, %v11445_v8, %v11866_v31 }
 0x3f6   :  { %v3740_v7 = vpop.permute.xlu1 %3739 }
 0x3f7   :  { %v4291_v5 = vsel %vm4247_vm9, %v4241_v37, %v3740_v7  ;;  %v2692_v7 = vpop.permute.xlu0 %2691  ;;  %v4043_v37 = vsel %vm3997_vm4, %v3993_v12, %v2884_v20 }
 0x3fa   :  { %v3888_v60 = vpop.permute.xlu1 %3887 }
 0x3fb   :  { %v4341_v26 = vsel %vm4297_vm10, %v4291_v5, %v3888_v60  ;;  %v2888_v35 = vpop.permute.xlu0 %2887  ;;  %v4093_v5 = vsel %vm4047_vm5, %v4043_v37, %v3080_v16 }
 0x3fc   :  { %8231 = vmatmul.mubr.msk.f32.gmra.mxu1 %vm4356_vm11, %v4341_v26  ;;  %v4143_v26 = vsel %vm4097_vm6, %v4093_v5, %v3276_v10  ;;  %v3995_v5 = vsel %vm2093_vm2, %v11534_v14, %v2692_v7 }
 0x3fd   :  { %v11906_v45 = vpop.f32.mrf.mxu1  ;;  %8233 = vmatprep.mubr.msk.f32.mxu1 %vm8587_vm3, %v13558_v61 }
 0x3fe   :  { %v3428_v22 = vpop.permute.xlu1 %3427 }
 0x3ff   :  { %v8196_v2 = vpop.f32.mrf.mxu1  ;;  %v4192_v30 = vsel %vm4147_vm7, %v4142_v40, %v3428_v22  ;;  %v3084_v22 = vpop.permute.xlu0 %3083  ;;  %v3994_v40 = vsel %vm2093_vm2, %v11488_v1, %v2690_v53 }
 0x402   :  { %v3588_v33 = vpop.permute.xlu1 %3587 }
 0x403   :  { %v4242_v36 = vsel %vm4197_vm8, %v4192_v30, %v3588_v33  ;;  %v3280_v8 = vpop.permute.xlu0 %3279  ;;  %v4044_v30 = vsel %vm3997_vm4, %v3994_v40, %v2886_v28 }
 0x406   :  { %v3742_v56 = vpop.permute.xlu1 %3741 }
 0x407   :  { %v4292_v9 = vsel %vm4247_vm9, %v4242_v36, %v3742_v56  ;;  %v2694_v56 = vpop.permute.xlu0 %2693  ;;  %v4094_v36 = vsel %vm4047_vm5, %v4044_v30, %v3082_v52 }
 0x40a   :  { %v3890_v48 = vpop.permute.xlu1 %3889 }
 0x40b   :  { %v4342_v29 = vsel %vm4297_vm10, %v4292_v9, %v3890_v48  ;;  %v4144_v48 = vsel %vm4097_vm6, %v4094_v36, %v3278_v18 }
 0x40c   :  { %8234 = vmatmul.mubr.msk.f32.gmra.mxu1 %vm4356_vm11, %v4342_v29 }
 0x40d   :  { %v11923_v34 = vpop.f32.mrf.mxu1  ;;  %8236 = vmatprep.mubr.msk.f32.mxu1 %vm8587_vm3, %v13558_v61 }
 0x40e   :  { %v3430_v19 = vpop.permute.xlu1 %3429 }
 0x40f   :  { %v8199_v27 = vpop.f32.mrf.mxu1  ;;  %v4193_v2 = vsel %vm4147_vm7, %v4143_v26, %v3430_v19  ;;  %v2890_v19 = vpop.permute.xlu0 %2889 }
 0x412   :  { %v3590_v17 = vpop.permute.xlu1 %3589 }
 0x413   :  { %v4243_v33 = vsel %vm4197_vm8, %v4193_v2, %v3590_v17  ;;  %v3086_v28 = vpop.permute.xlu0 %3085 }
 0x416   :  { %v3744_v60 = vpop.permute.xlu1 %3743 }
 0x417   :  { %v4293_v24 = vsel %vm4247_vm9, %v4243_v33, %v3744_v60  ;;  %v4045_v60 = vsel %vm3997_vm4, %v3995_v5, %v2888_v35  ;;  %v3282_v26 = vpop.permute.xlu0 %3281  ;;  %v4814_v5 = vlaneseq }
 0x418   :  { %v4095_v2 = vsel %vm4047_vm5, %v4045_v60, %v3084_v22 }
 0x419   :  { %v11988_v60 = vshrl.u32 %v4814_v5, 7 }
 0x41a   :  { %v3892_v42 = vpop.permute.xlu1 %3891 }
 0x41b   :  { %v4343_v25 = vsel %vm4297_vm10, %v4293_v24, %v3892_v42  ;;  %v4145_v24 = vsel %vm4097_vm6, %v4095_v2, %v3280_v8  ;;  %v3436_v7 = vpop.permute.xlu0 %3435  ;;  %13563 = vst [vmem:[#allocation25_spill] sm:$0xff] %v11988_v60  ;;  %v4816_v2 = vadd.s32 8, %v11988_v60  ;;  %v4825_v5 = vadd.s32 80, %v11988_v60 }
 0x41c   :  { %8237 = vmatmul.mubr.msk.f32.gmra.mxu1 %vm4356_vm11, %v4343_v25 }
 0x41d   :  { %v11938_v31 = vpop.f32.mrf.mxu1  ;;  %8239 = vmatprep.mubr.msk.f32.mxu1 %vm8587_vm3, %v13558_v61 }
 0x41e   :  { %v3432_v20 = vpop.permute.xlu1 %3431 }
 0x41f   :  { %v8202_v16 = vpop.f32.mrf.mxu1  ;;  %v4194_v29 = vsel %vm4147_vm7, %v4144_v48, %v3432_v20  ;;  %v3996_v20 = vsel %vm2093_vm2, %v11582_v46, %v2694_v56 }
 0x420   :  { %v4046_v14 = vsel %vm3997_vm4, %v3996_v20, %v2890_v19  ;;  %v4868_v20 = vand.u32 7, %v11988_v60 }
 0x421   :  { %v4096_v22 = vsel %vm4047_vm5, %v4046_v14, %v3086_v28  ;;  %v4820_v14 = vadd.s32 40, %v11988_v60 }
 0x422   :  { %v3592_v10 = vpop.permute.xlu1 %3591  ;;  %v4146_v8 = vsel %vm4097_vm6, %v4096_v22, %v3282_v26  ;;  %v4822_v22 = vadd.s32 56, %v11988_v60  ;;  %vm5452_vm13 = vcmp.lt.s32.totalorder %v4868_v20, 2 }
 0x423   :  { %v4244_v27 = vsel %vm4197_vm8, %v4194_v29, %v3592_v10  ;;  %v4196_v46 = vsel %vm4147_vm7, %v4146_v8, %v3436_v7  ;;  %v4821_v7 = vadd.s32 48, %v11988_v60  ;;  %v4823_v8 = vadd.s32 64, %v11988_v60 }
 0x426   :  { %v3746_v9 = vpop.permute.xlu1 %3745 }
 0x427   :  { %v4294_v17 = vsel %vm4247_vm9, %v4244_v27, %v3746_v9  ;;  %v3750_v9 = vpop.permute.xlu0 %3749 }
 0x42a   :  { %v3894_v12 = vpop.permute.xlu1 %3893 }
 0x42b   :  { %v4344_v37 = vsel %vm4297_vm10, %v4294_v17, %v3894_v12 }
 0x42c   :  { %8240 = vmatmul.mubr.msk.f32.gmra.mxu1 %vm4356_vm11, %v4344_v37 }
 0x42d   :  { %v11952_v1 = vpop.f32.mrf.mxu1  ;;  %8242 = vmatprep.mubr.msk.f32.mxu1 %vm8587_vm3, %v13558_v61 }
 0x42e   :  { %v3434_v53 = vpop.permute.xlu1 %3433 }
 0x42f   :  { %v8205_v52 = vpop.f32.mrf.mxu1  ;;  %v4195_v42 = vsel %vm4147_vm7, %v4145_v24, %v3434_v53  ;;  %v4817_v24 = vadd.s32 16, %v11988_v60 }
 0x432   :  { %v3594_v18 = vpop.permute.xlu1 %3593 }
 0x433   :  { %v4245_v25 = vsel %vm4197_vm8, %v4195_v42, %v3594_v18  ;;  %v4875_v42 = vand.u32 7, %v4816_v2 }
 0x435   :  { %vm5453_vm12 = vcmp.lt.s32.totalorder %v4875_v42, 2  ;;  %v13594_v42 = vld [vmem:[#allocation16_spill] sm:$0xff] }
 0x436   :  { %v3748_v33 = vpop.permute.xlu1 %3747 }
 0x437   :  { %v4295_v16 = vsel %vm4247_vm9, %v4245_v25, %v3748_v33  ;;  %v4818_v25 = vadd.s32 24, %v11988_v60 }
 0x43a   :  { %v3896_v10 = vpop.permute.xlu1 %3895 }
 0x43b   :  { %v4345_v35 = vsel %vm4297_vm10, %v4295_v16, %v3896_v10  ;;  %v4882_v16 = vand.u32 7, %v4817_v24  ;;  %v4819_v10 = vadd.s32 32, %v11988_v60 }
 0x43c   :  { %8243 = vmatmul.mubr.msk.f32.gmra.mxu1 %vm4356_vm11, %v4345_v35  ;;  %v4889_v35 = vand.u32 7, %v4818_v25  ;;  %v4826_v25 = vadd.s32 88, %v11988_v60 }
 0x43d   :  { %v11971_v40 = vpop.f32.mrf.mxu1  ;;  %8245 = vmatprep.mubr.msk.f32.mxu1 %vm8587_vm3, %v13558_v61  ;;  %vm5454_vm14 = vcmp.lt.s32.totalorder %v4882_v16, 2 }
 0x43e   :  { %v3596_v56 = vpop.permute.xlu1 %3595  ;;  %vm5455_vm15 = vcmp.lt.s32.totalorder %v4889_v35, 2 }
 0x43f   :  { %v8208_v30 = vpop.f32.mrf.mxu1  ;;  %v4246_v36 = vsel %vm4197_vm8, %v4196_v46, %v3596_v56  ;;  %v5600_v46 = vsel %vm5453_vm12, %v10656_v11, 0.0  ;;  %v4896_v56 = vand.u32 7, %v4819_v10  ;;  %v5602_v24 = vsel %vm5455_vm15, %v10731_v49, 0.0 }
 0x440   :  { %v4296_v48 = vsel %vm4247_vm9, %v4246_v36, %v3750_v9  ;;  %v4903_v30 = vand.u32 7, %v4820_v14  ;;  %v4910_v36 = vand.u32 7, %v4821_v7  ;;  %v5599_v9 = vsel %vm5452_vm13, %v10617_v47, 0.0 }
 0x441   :  { %vm12004_vm0 = vcmp.lt.s32.totalorder %v4896_v56, 2  ;;  %v5649_v20 = vsel %vm3997_vm4, %v5600_v46, 0.0  ;;  %v5648_v35 = vsel %vm3997_vm4, %v5599_v9, 0.0  ;;  %v4831_v10 = vadd.s32 128, %v11988_v60 }
 0x442   :  { %v3898_v29 = vpop.permute.xlu1 %3897  ;;  %vm12008_vm1 = vcmp.lt.s32.totalorder %v4903_v30, 2  ;;  %vm12017_vm2 = vcmp.lt.s32.totalorder %v4910_v36, 2  ;;  %v5755_v30 = vmul.f32 %v5602_v24, %v5602_v24  ;;  %v5650_v49 = vadd.f32 %v5649_v20, %v5648_v35 }
 0x443   :  { %v4346_v19 = vsel %vm4297_vm10, %v4296_v48, %v3898_v29  ;;  %v4917_v48 = vand.u32 7, %v4822_v22  ;;  %v4924_v29 = vand.u32 7, %v4823_v8  ;;  %v5603_v8 = vsel %vm12004_vm0, %v10782_v21, 0.0 }
 0x444   :  { %8246 = vmatmul.mubr.msk.f32.gmra.mxu1 %vm4356_vm11, %v4346_v19  ;;  %v5753_v19 = vmul.f32 %v5600_v46, %v5600_v46  ;;  %v4827_v46 = vadd.s32 96, %v11988_v60  ;;  %v5756_v21 = vmul.f32 %v5603_v8, %v5603_v8 }
 0x445   :  { %vm12023_vm5 = vcmp.lt.s32.totalorder %v4917_v48, 2  ;;  %vm12027_vm7 = vcmp.lt.s32.totalorder %v4924_v29, 2  ;;  %v4938_v48 = vand.u32 7, %v4825_v5  ;;  %v4828_v5 = vadd.s32 104, %v11988_v60 }
 0x446   :  { %v5802_v22 = vsel %vm3997_vm4, %v5753_v19, 0.0  ;;  %v5808_v35 = vsel %vm3997_vm4, %v5756_v21, 0.0  ;;  %v5607_v21 = vsel %vm12027_vm7, %v11048_v41, 0.0  ;;  %v4835_v41 = vadd.s32 160, %v11988_v60 }
 0x447   :  { %vm12053_vm11 = vcmp.lt.s32.totalorder %v4938_v48, 2  ;;  %v4830_v48 = vadd.s32 120, %v11988_v60 }
 0x44d   :  { %v11980_v27 = vpop.f32.mrf.mxu1 }
 0x44f   :  { %v8211_v17 = vpop.f32.mrf.mxu1 }
 0x450   :  { %v5601_v17 = vsel %vm5454_vm14, %v10691_v58, 0.0 }
 0x451   :  { %v5754_v16 = vmul.f32 %v5601_v17, %v5601_v17  ;;  %v5651_v56 = vsel %vm3997_vm4, %v5601_v17, 0.0  ;;  %v5605_v17 = vsel %vm12017_vm2, %v10871_v3, 0.0 }
 0x452   :  { %v5652_v11 = vadd.f32 %v5651_v56, %v5650_v49  ;;  %v4829_v56 = vadd.s32 112, %v11988_v60 }
 0x453   :  { %v5804_v58 = vsel %vm3997_vm4, %v5754_v16, 0.0  ;;  %v5655_v16 = vsel %vm3997_vm4, %v5603_v8, 0.0 }
 0x45d   :  { %v11982_v12 = vpop.f32.mrf.mxu1 }
 0x45f   :  { %v8214_v37 = vpop.f32.mrf.mxu1 }
 0x460   :  { %v5653_v37 = vsel %vm3997_vm4, %v5602_v24, 0.0 }
 0x461   :  { %v5654_v49 = vadd.f32 %v5653_v37, %v5652_v11 }
 0x46c   :  { %v11984_v53 = vpop.f32.mrf.mxu1 }
 0x46e   :  { %v8217_v28 = vpop.f32.mrf.mxu1 }
 0x47c   :  { %v11986_v52 = vpop.f32.mrf.mxu1 }
 0x47e   :  { %v8220_v18 = vpop.f32.mrf.mxu1 }
 0x47f   :  { %v4824_v18 = vadd.s32 72, %v11988_v60 }
 0x481   :  { %v4931_v36 = vand.u32 7, %v4824_v18  ;;  %v4952_v18 = vand.u32 7, %v4827_v46  ;;  %v5606_v46 = vsel %vm12023_vm5, %v11001_v23, 0.0 }
 0x483   :  { %vm12049_vm9 = vcmp.lt.s32.totalorder %v4931_v36, 2  ;;  %vm12068_vm13 = vcmp.lt.s32.totalorder %v4952_v18, 2 }
 0x484   :  { %v5608_v18 = vsel %vm12049_vm9, %v11090_v38, 0.0 }
 0x48c   :  { %v11990_v26 = vpop.f32.mrf.mxu1 }
 0x48e   :  { %v8223_v33 = vpop.f32.mrf.mxu1 }
 0x48f   :  { %v5752_v33 = vmul.f32 %v5599_v9, %v5599_v9  ;;  %v5604_v9 = vsel %vm12008_vm1, %v10834_v51, 0.0 }
 0x490   :  { %v5757_v20 = vmul.f32 %v5604_v9, %v5604_v9  ;;  %v5657_v36 = vsel %vm3997_vm4, %v5604_v9, 0.0  ;;  %v5759_v9 = vmul.f32 %v5606_v46, %v5606_v46 }
 0x491   :  { %v5801_v29 = vsel %vm3997_vm4, %v5752_v33, 0.0  ;;  %v5806_v33 = vsel %vm3997_vm4, %v5755_v30, 0.0 }
 0x492   :  { %v5803_v19 = vadd.f32 %v5802_v22, %v5801_v29  ;;  %v5758_v22 = vmul.f32 %v5605_v17, %v5605_v17  ;;  %v5810_v8 = vsel %vm3997_vm4, %v5757_v20, 0.0  ;;  %v5656_v29 = vadd.f32 %v5655_v16, %v5654_v49 }
 0x493   :  { %v5661_v49 = vsel %vm3997_vm4, %v5606_v46, 0.0  ;;  %v4973_v16 = vand.u32 7, %v4830_v48 }
 0x494   :  { %v5805_v24 = vadd.f32 %v5804_v58, %v5803_v19  ;;  %v4959_v58 = vand.u32 7, %v4828_v5  ;;  %v5659_v19 = vsel %vm3997_vm4, %v5605_v17, 0.0  ;;  %v5812_v37 = vsel %vm3997_vm4, %v5758_v22, 0.0 }
 0x495   :  { %v4966_v5 = vand.u32 7, %v4829_v56  ;;  %v5658_v14 = vadd.f32 %v5657_v36, %v5656_v29  ;;  %v5609_v17 = vsel %vm12053_vm11, %v11131_v54, 0.0  ;;  %v5761_v36 = vmul.f32 %v5608_v18, %v5608_v18 }
 0x496   :  { %v5807_v30 = vadd.f32 %v5806_v33, %v5805_v24  ;;  %v4832_v33 = vadd.s32 136, %v11988_v60  ;;  %v5760_v24 = vmul.f32 %v5607_v21, %v5607_v21  ;;  %vm12084_vm14 = vcmp.lt.s32.totalorder %v4959_v58, 2 }
 0x497   :  { %v5660_v22 = vadd.f32 %v5659_v19, %v5658_v14  ;;  %v5663_v58 = vsel %vm3997_vm4, %v5607_v21, 0.0  ;;  %vm12099_vm15 = vcmp.lt.s32.totalorder %v4966_v5, 2  ;;  %v4833_v19 = vadd.s32 144, %v11988_v60 }
 0x498   :  { %v5816_v29 = vsel %vm3997_vm4, %v5760_v24, 0.0  ;;  %v5611_v21 = vsel %vm12068_vm13, %v11222_v62, 0.0  ;;  %vm12108_vm0 = vcmp.lt.s32.totalorder %v4973_v16, 2  ;;  %v5818_v14 = vsel %vm3997_vm4, %v5761_v36, 0.0 }
 0x499   :  { %v5612_v11 = vsel %vm12084_vm14, %v11257_v59, 0.0  ;;  %v4834_v16 = vadd.s32 152, %v11988_v60 }
 0x49c   :  { %v12014_v2 = vpop.f32.mrf.mxu1 }
 0x49e   :  { %v8226_v7 = vpop.f32.mrf.mxu1 }
 0x49f   :  { %v4945_v7 = vand.u32 7, %v4826_v25  ;;  %v4987_v25 = vand.u32 7, %v4832_v33  ;;  %v5665_v33 = vsel %vm3997_vm4, %v5608_v18, 0.0  ;;  %v4994_v18 = vand.u32 7, %v4833_v19 }
 0x4a0   :  { %v5001_v19 = vand.u32 7, %v4834_v16 }
 0x4a1   :  { %vm12058_vm12 = vcmp.lt.s32.totalorder %v4945_v7, 2  ;;  %v5809_v7 = vadd.f32 %v5808_v35, %v5807_v30  ;;  %v4980_v35 = vand.u32 7, %v4831_v10  ;;  %v5814_v30 = vsel %vm3997_vm4, %v5759_v9, 0.0 }
 0x4a2   :  { %v5662_v10 = vadd.f32 %v5661_v49, %v5660_v22  ;;  %vm12121_vm2 = vcmp.lt.s32.totalorder %v4987_v25, 2  ;;  %vm12140_vm5 = vcmp.lt.s32.totalorder %v4994_v18, 2  ;;  %vm12149_vm7 = vcmp.lt.s32.totalorder %v5001_v19, 2 }
 0x4a3   :  { %v5811_v20 = vadd.f32 %v5810_v8, %v5809_v7  ;;  %v5610_v8 = vsel %vm12058_vm12, %v11171_v32, 0.0  ;;  %v5762_v7 = vmul.f32 %v5609_v17, %v5609_v17  ;;  %vm12112_vm1 = vcmp.lt.s32.totalorder %v4980_v35, 2 }
 0x4a4   :  { %v5664_v5 = vadd.f32 %v5663_v58, %v5662_v10  ;;  %v5667_v35 = vsel %vm3997_vm4, %v5609_v17, 0.0  ;;  %v5613_v58 = vsel %vm12099_vm15, %v11367_v63, 0.0  ;;  %v5669_v25 = vsel %vm3997_vm4, %v5610_v8, 0.0 }
 0x4a5   :  { %v5813_v56 = vadd.f32 %v5812_v37, %v5811_v20  ;;  %v5763_v20 = vmul.f32 %v5610_v8, %v5610_v8  ;;  %v5820_v22 = vsel %vm3997_vm4, %v5762_v7, 0.0  ;;  %v5765_v10 = vmul.f32 %v5612_v11, %v5612_v11 }
 0x4a6   :  { %v5614_v7 = vsel %vm12108_vm0, %v11404_v39, 0.0  ;;  %v5615_v16 = vsel %vm12112_vm1, %v13594_v42, 0.0  ;;  %v4838_v37 = vadd.s32 184, %v11988_v60  ;;  %v4839_v42 = vadd.s32 192, %v11988_v60 }
 0x4a7   :  { %v5815_v9 = vadd.f32 %v5814_v30, %v5813_v56  ;;  %v5764_v56 = vmul.f32 %v5611_v21, %v5611_v21  ;;  %v5666_v30 = vadd.f32 %v5665_v33, %v5664_v5  ;;  %v5671_v5 = vsel %vm3997_vm4, %v5611_v21, 0.0 }
 0x4a8   :  { %v5766_v33 = vmul.f32 %v5613_v58, %v5613_v58 }
 0x4a9   :  { %v5817_v24 = vadd.f32 %v5816_v29, %v5815_v9  ;;  %v4836_v29 = vadd.s32 168, %v11988_v60  ;;  %v5668_v17 = vadd.f32 %v5667_v35, %v5666_v30  ;;  %v5824_v46 = vsel %vm3997_vm4, %v5764_v56, 0.0 }
 0x4aa   :  { %v5008_v35 = vand.u32 7, %v4835_v41  ;;  %v5767_v30 = vmul.f32 %v5614_v7, %v5614_v7  ;;  %v13597_v41 = vld [vmem:[#allocation17_spill] sm:$0xff] }
 0x4ab   :  { %v5819_v36 = vadd.f32 %v5818_v14, %v5817_v24  ;;  %v5670_v8 = vadd.f32 %v5669_v25, %v5668_v17  ;;  %v5673_v24 = vsel %vm3997_vm4, %v5612_v11, 0.0  ;;  %v5015_v21 = vand.u32 7, %v4836_v29 }
 0x4ac   :  { %v12092_v28 = vpop.f32.mrf.mxu1  ;;  %v4837_v25 = vadd.s32 176, %v11988_v60  ;;  %v5828_v11 = vsel %vm3997_vm4, %v5766_v33, 0.0  ;;  %vm12160_vm9 = vcmp.lt.s32.totalorder %v5008_v35, 2  ;;  %v13600_v33 = vld [vmem:[#allocation18_spill] sm:$0xff] }
 0x4ad   :  { %v5821_v9 = vadd.f32 %v5820_v22, %v5819_v36  ;;  %v5826_v22 = vsel %vm3997_vm4, %v5765_v10, 0.0  ;;  %v5672_v36 = vadd.f32 %v5671_v5, %v5670_v8  ;;  %v5616_v10 = vsel %vm12121_vm2, %v13597_v41, 0.0  ;;  %v13603_v41 = vld [vmem:[#allocation19_spill] sm:$0xff] }
 0x4ae   :  { %v8229_v48 = vpop.f32.mrf.mxu1  ;;  %v5617_v49 = vsel %vm12140_vm5, %v13600_v33, 0.0  ;;  %vm12171_vm11 = vcmp.lt.s32.totalorder %v5015_v21, 2  ;;  %v5769_v35 = vmul.f32 %v5616_v10, %v5616_v10 }
 0x4af   :  { %v5822_v48 = vsel %vm3997_vm4, %v5763_v20, 0.0  ;;  %v5674_v17 = vadd.f32 %v5673_v24, %v5672_v36  ;;  %v5770_v39 = vmul.f32 %v5617_v49, %v5617_v49 }
 0x4b0   :  { %v5823_v20 = vadd.f32 %v5822_v48, %v5821_v9  ;;  %v5675_v48 = vsel %vm3997_vm4, %v5613_v58, 0.0  ;;  %v5768_v9 = vmul.f32 %v5615_v16, %v5615_v16  ;;  %v5830_v58 = vsel %vm3997_vm4, %v5767_v30, 0.0 }
 0x4b1   :  { %v5029_v30 = vand.u32 7, %v4838_v37  ;;  %v5834_v37 = vsel %vm3997_vm4, %v5769_v35, 0.0  ;;  %v5836_v19 = vsel %vm3997_vm4, %v5770_v39, 0.0 }
 0x4b2   :  { %v5825_v56 = vadd.f32 %v5824_v46, %v5823_v20  ;;  %v5677_v46 = vsel %vm3997_vm4, %v5614_v7, 0.0  ;;  %v5676_v20 = vadd.f32 %v5675_v48, %v5674_v17  ;;  %v5618_v7 = vsel %vm12149_vm7, %v13603_v41, 0.0 }
 0x4b3   :  { %v5832_v21 = vsel %vm3997_vm4, %v5768_v9, 0.0  ;;  %v5681_v48 = vsel %vm3997_vm4, %v5616_v10, 0.0  ;;  %v4841_v17 = vadd.s32 208, %v11988_v60  ;;  %vm12189_vm13 = vcmp.lt.s32.totalorder %v5029_v30, 2 }
 0x4b4   :  { %v5827_v29 = vadd.f32 %v5826_v22, %v5825_v56  ;;  %v5022_v22 = vand.u32 7, %v4837_v25  ;;  %v5679_v56 = vsel %vm3997_vm4, %v5615_v16, 0.0  ;;  %v5678_v14 = vadd.f32 %v5677_v46, %v5676_v20 }
 0x4b5   :  { %v4840_v16 = vadd.s32 200, %v11988_v60  ;;  %v5036_v10 = vand.u32 7, %v4839_v42  ;;  %v5685_v35 = vsel %vm3997_vm4, %v5618_v7, 0.0  ;;  %v4842_v42 = vadd.s32 216, %v11988_v60 }
 0x4b6   :  { %v5829_v24 = vadd.f32 %v5828_v11, %v5827_v29  ;;  %v13604_v11 = vld [vmem:[#allocation20_spill] sm:$0xff]  ;;  %v5680_v18 = vadd.f32 %v5679_v56, %v5678_v14  ;;  %v5771_v29 = vmul.f32 %v5618_v7, %v5618_v7  ;;  %vm5474_vm12 = vcmp.lt.s32.totalorder %v5022_v22, 2 }
 0x4b7   :  { %v5619_v25 = vsel %vm12160_vm9, %v13604_v11, 0.0  ;;  %v5043_v22 = vand.u32 7, %v4840_v16  ;;  %v5621_v30 = vsel %vm5474_vm12, %v11687_v43, 0.0  ;;  %v5622_v7 = vsel %vm12189_vm13, %v11719_v13, 0.0 }
 0x4b8   :  { %v5831_v33 = vadd.f32 %v5830_v58, %v5829_v24  ;;  %v5683_v58 = vsel %vm3997_vm4, %v5617_v49, 0.0  ;;  %v5682_v20 = vadd.f32 %v5681_v48, %v5680_v18  ;;  %v5772_v24 = vmul.f32 %v5619_v25, %v5619_v25 }
 0x4b9   :  { %v5838_v49 = vsel %vm3997_vm4, %v5771_v29, 0.0  ;;  %v5687_v39 = vsel %vm3997_vm4, %v5619_v25, 0.0  ;;  %vm5476_vm14 = vcmp.lt.s32.totalorder %v5036_v10, 2  ;;  %vm12206_vm15 = vcmp.lt.s32.totalorder %v5043_v22, 2 }
 0x4ba   :  { %v5833_v46 = vadd.f32 %v5832_v21, %v5831_v33  ;;  %v5050_v33 = vand.u32 7, %v4841_v17  ;;  %v5684_v14 = vadd.f32 %v5683_v58, %v5682_v20  ;;  %v5840_v8 = vsel %vm3997_vm4, %v5772_v24, 0.0 }
 0x4bb   :  { %v5774_v17 = vmul.f32 %v5621_v30, %v5621_v30  ;;  %v4843_v29 = vadd.s32 224, %v11988_v60  ;;  %v5057_v20 = vand.u32 7, %v4842_v42  ;;  %v5775_v10 = vmul.f32 %v5622_v7, %v5622_v7 }
 0x4bc   :  { %v12164_v5 = vpop.f32.mrf.mxu1  ;;  %v5835_v56 = vadd.f32 %v5834_v37, %v5833_v46  ;;  %v5686_v18 = vadd.f32 %v5685_v35, %v5684_v14  ;;  %vm12212_vm0 = vcmp.lt.s32.totalorder %v5050_v33, 2  ;;  %v5623_v24 = vsel %vm5476_vm14, %v11749_v0, 0.0 }
 0x4bd   :  { %v4844_v35 = vadd.s32 232, %v11988_v60  ;;  %v4845_v22 = vadd.s32 240, %v11988_v60  ;;  %v4846_v14 = vadd.s32 248, %v11988_v60  ;;  %v5064_v42 = vand.u32 7, %v4843_v29 }
 0x4be   :  { %v8232_v36 = vpop.f32.mrf.mxu1  ;;  %v5837_v21 = vadd.f32 %v5836_v19, %v5835_v56  ;;  %v5688_v46 = vadd.f32 %v5687_v39, %v5686_v18  ;;  %v5691_v56 = vsel %vm3997_vm4, %v5621_v30, 0.0  ;;  %v5776_v18 = vmul.f32 %v5623_v24, %v5623_v24 }
 0x4bf   :  { %v5620_v36 = vsel %vm12171_vm11, %v11659_v4, 0.0  ;;  %vm12227_vm1 = vcmp.lt.s32.totalorder %v5057_v20, 2  ;;  %v5846_v0 = vsel %vm3997_vm4, %v5775_v10, 0.0  ;;  %v5625_v20 = vsel %vm12212_vm0, %v11790_v44, 0.0 }
 0x4c0   :  { %v5773_v48 = vmul.f32 %v5620_v36, %v5620_v36  ;;  %v5839_v16 = vadd.f32 %v5838_v49, %v5837_v21  ;;  %v5689_v25 = vsel %vm3997_vm4, %v5620_v36, 0.0  ;;  %v5844_v49 = vsel %vm3997_vm4, %v5774_v17, 0.0 }
 0x4c1   :  { %v5690_v33 = vadd.f32 %v5689_v25, %v5688_v46  ;;  %v4847_v21 = vadd.s32 256, %v11988_v60  ;;  %v5624_v46 = vsel %vm12206_vm15, %v11765_v55, 0.0  ;;  %v4848_v17 = vadd.s32 264, %v11988_v60 }
 0x4c2   :  { %v5841_v19 = vadd.f32 %v5840_v8, %v5839_v16  ;;  %v5842_v9 = vsel %vm3997_vm4, %v5773_v48, 0.0  ;;  %v5693_v48 = vsel %vm3997_vm4, %v5622_v7, 0.0  ;;  %v5071_v25 = vand.u32 7, %v4844_v35 }
 0x4c3   :  { %v5692_v16 = vadd.f32 %v5691_v56, %v5690_v33  ;;  %vm12239_vm2 = vcmp.lt.s32.totalorder %v5064_v42, 2  ;;  %v5092_v10 = vand.u32 7, %v4847_v21  ;;  %v5695_v37 = vsel %vm3997_vm4, %v5623_v24, 0.0 }
 0x4c4   :  { %v5843_v39 = vadd.f32 %v5842_v9, %v5841_v19  ;;  %v5078_v19 = vand.u32 7, %v4845_v22  ;;  %v5085_v9 = vand.u32 7, %v4846_v14  ;;  %v5848_v33 = vsel %vm3997_vm4, %v5776_v18, 0.0 }
 0x4c5   :  { %v5694_v7 = vadd.f32 %v5693_v48, %v5692_v16  ;;  %v5777_v55 = vmul.f32 %v5624_v46, %v5624_v46  ;;  %v5626_v35 = vsel %vm12227_vm1, %v11821_v50, 0.0  ;;  %v5099_v22 = vand.u32 7, %v4848_v17 }
 0x4c6   :  { %v5845_v29 = vadd.f32 %v5844_v49, %v5843_v39  ;;  %v4849_v14 = vadd.s32 272, %v11988_v60  ;;  %v4850_v58 = vadd.s32 280, %v11988_v60  ;;  %v5778_v49 = vmul.f32 %v5625_v20, %v5625_v20 }
 0x4c7   :  { %vm5481_vm5 = vcmp.lt.s32.totalorder %v5071_v25, 2  ;;  %vm12250_vm7 = vcmp.lt.s32.totalorder %v5078_v19, 2  ;;  %vm12254_vm9 = vcmp.lt.s32.totalorder %v5085_v9, 2  ;;  %v5696_v24 = vadd.f32 %v5695_v37, %v5694_v7 }
 0x4c8   :  { %v5847_v56 = vadd.f32 %v5846_v0, %v5845_v29  ;;  %v5627_v39 = vsel %vm12239_vm2, %v11847_v15, 0.0  ;;  %vm12261_vm11 = vcmp.lt.s32.totalorder %v5092_v10, 2  ;;  %v5697_v18 = vsel %vm3997_vm4, %v5624_v46, 0.0 }
 0x4c9   :  { %v5850_v30 = vsel %vm3997_vm4, %v5777_v55, 0.0  ;;  %v5779_v16 = vmul.f32 %v5626_v35, %v5626_v35  ;;  %v4851_v17 = vadd.s32 288, %v11988_v60  ;;  %v5628_v29 = vsel %vm5481_vm5, %v11870_v57, 0.0 }
 0x4ca   :  { %v5849_v21 = vadd.f32 %v5848_v33, %v5847_v56  ;;  %vm12269_vm12 = vcmp.lt.s32.totalorder %v5099_v22, 2  ;;  %v5106_v19 = vand.u32 7, %v4849_v14  ;;  %v5113_v9 = vand.u32 7, %v4850_v58 }
 0x4cb   :  { %v5699_v7 = vsel %vm3997_vm4, %v5625_v20, 0.0  ;;  %v5780_v10 = vmul.f32 %v5627_v39, %v5627_v39  ;;  %v4852_v46 = vadd.s32 296, %v11988_v60  ;;  %v5698_v56 = vadd.f32 %v5697_v18, %v5696_v24 }
 0x4cc   :  { %v12222_v36 = vpop.f32.mrf.mxu1  ;;  %v5851_v55 = vadd.f32 %v5850_v30, %v5849_v21  ;;  %v5701_v37 = vsel %vm3997_vm4, %v5626_v35, 0.0  ;;  %v5629_v33 = vsel %vm12250_vm7, %v11888_v6, 0.0  ;;  %v5854_v22 = vsel %vm3997_vm4, %v5779_v16, 0.0 }
 0x4cd   :  { %v5781_v57 = vmul.f32 %v5628_v29, %v5628_v29  ;;  %v5120_v14 = vand.u32 7, %v4851_v17  ;;  %v4853_v58 = vadd.s32 304, %v11988_v60  ;;  %v5700_v20 = vadd.f32 %v5699_v7, %v5698_v56 }
 0x4ce   :  { %v8235_v8 = vpop.f32.mrf.mxu1  ;;  %vm12282_vm13 = vcmp.lt.s32.totalorder %v5106_v19, 2  ;;  %vm12286_vm14 = vcmp.lt.s32.totalorder %v5113_v9, 2  ;;  %v5703_v35 = vsel %vm3997_vm4, %v5627_v39, 0.0  ;;  %v5856_v42 = vsel %vm3997_vm4, %v5780_v10, 0.0 }
 0x4cf   :  { %v5852_v8 = vsel %vm3997_vm4, %v5778_v49, 0.0  ;;  %v5782_v21 = vmul.f32 %v5629_v33, %v5629_v33  ;;  %v5127_v18 = vand.u32 7, %v4852_v46  ;;  %v5702_v16 = vadd.f32 %v5701_v37, %v5700_v20 }
 0x4d0   :  { %v5853_v15 = vadd.f32 %v5852_v8, %v5851_v55  ;;  %v5630_v19 = vsel %vm12254_vm9, %v11906_v45, 0.0  ;;  %v4854_v7 = vadd.s32 312, %v11988_v60  ;;  %v5705_v9 = vsel %vm3997_vm4, %v5628_v29, 0.0  ;;  %v6584_v29 = vld [vmem:[%s13509_s6 + $0x78] sm:$0xff] }
 0x4d1   :  { %v5858_v8 = vsel %vm3997_vm4, %v5781_v57, 0.0  ;;  %vm12300_vm15 = vcmp.lt.s32.totalorder %v5120_v14, 2  ;;  %v5134_v10 = vand.u32 7, %v4853_v58  ;;  %v5704_v56 = vadd.f32 %v5703_v35, %v5702_v16  ;;  %v6583_v57 = vld [vmem:[%s13509_s6 + $0x70] sm:$0xff]  ;;  %6614 = vmatpush1.msra.mxu1 %v6584_v29 }
 0x4d2   :  { %v5855_v17 = vadd.f32 %v5854_v22, %v5853_v15  ;;  %v5631_v15 = vsel %vm12261_vm11, %v11923_v34, 0.0  ;;  %v4855_v0 = vadd.s32 320, %v11988_v60  ;;  %v5707_v37 = vsel %vm3997_vm4, %v5629_v33, 0.0  ;;  %6615 = vmatprep.subr.mxu1 %v13558_v61  ;;  %v6582_v33 = vld [vmem:[%s13509_s6 + $0x68] sm:$0xff] }
 0x4d3   :  { %v5860_v22 = vsel %vm3997_vm4, %v5782_v21, 0.0  ;;  %v5783_v14 = vmul.f32 %v5630_v19, %v5630_v19  ;;  %vm12316_vm0 = vcmp.lt.s32.totalorder %v5127_v18, 2  ;;  %v5706_v48 = vadd.f32 %v5705_v9, %v5704_v56  ;;  %6616 = vmatpush1.msra.mxu1 %v6583_v57 }
 0x4d4   :  { %v5857_v55 = vadd.f32 %v5856_v42, %v5855_v17  ;;  %v5632_v35 = vsel %vm12269_vm12, %v11938_v31, 0.0  ;;  %v5141_v42 = vand.u32 7, %v4854_v7  ;;  %v5709_v21 = vsel %vm3997_vm4, %v5630_v19, 0.0  ;;  %6617 = vmatprep.subr.mxu1 %v13558_v61  ;;  %v6581_v19 = vld [vmem:[%s13509_s6 + $0x60] sm:$0xff] }
 0x4d5   :  { %v5784_v18 = vmul.f32 %v5631_v15, %v5631_v15  ;;  %vm12328_vm1 = vcmp.lt.s32.totalorder %v5134_v10, 2  ;;  %v4856_v17 = vadd.s32 328, %v11988_v60  ;;  %v5708_v9 = vadd.f32 %v5707_v37, %v5706_v48  ;;  %6618 = vmatpush1.msra.mxu1 %v6582_v33  ;;  %v6578_v33 = vld [vmem:[%s13509_s6 + $0x48] sm:$0xff] }
 0x4d6   :  { %v5859_v20 = vadd.f32 %v5858_v8, %v5857_v55  ;;  %v5633_v7 = vsel %vm12282_vm13, %v11952_v1, 0.0  ;;  %v5148_v8 = vand.u32 7, %v4855_v0  ;;  %v5862_v10 = vsel %vm3997_vm4, %v5783_v14, 0.0  ;;  %6619 = vmatprep.subr.mxu1 %v13558_v61 }
 0x4d7   :  { %v5785_v56 = vmul.f32 %v5632_v35, %v5632_v35  ;;  %v4857_v55 = vadd.s32 336, %v11988_v60  ;;  %v5710_v29 = vadd.f32 %v5709_v21, %v5708_v9  ;;  %v5634_v49 = vsel %vm12286_vm14, %v11971_v40, 0.0  ;;  %6620 = vmatpush1.msra.mxu1 %v6581_v19  ;;  %v6579_v21 = vld [vmem:[%s13509_s6 + $0x50] sm:$0xff] }
 0x4d8   :  { %v5861_v25 = vadd.f32 %v5860_v22, %v5859_v20  ;;  %vm12346_vm2 = vcmp.lt.s32.totalorder %v5141_v42, 2  ;;  %v4858_v57 = vadd.s32 344, %v11988_v60  ;;  %v5864_v37 = vsel %vm3997_vm4, %v5784_v18, 0.0  ;;  %6621 = vmatprep.subr.mxu1 %v13558_v61 }
 0x4d9   :  { %v5713_v22 = vsel %vm3997_vm4, %v5632_v35, 0.0  ;;  %v5786_v14 = vmul.f32 %v5633_v7, %v5633_v7  ;;  %v5155_v48 = vand.u32 7, %v4856_v17  ;;  %v5635_v42 = vsel %vm12300_vm15, %v11980_v27, 0.0 }
 0x4da   :  { %v5863_v24 = vadd.f32 %v5862_v10, %v5861_v25  ;;  %vm12360_vm5 = vcmp.lt.s32.totalorder %v5148_v8, 2  ;;  %v5866_v35 = vsel %vm3997_vm4, %v5785_v56, 0.0  ;;  %v5715_v18 = vsel %vm3997_vm4, %v5633_v7, 0.0 }
 0x4db   :  { %v5787_v17 = vmul.f32 %v5634_v49, %v5634_v49  ;;  %v5162_v9 = vand.u32 7, %v4857_v55  ;;  %v5636_v8 = vsel %vm12316_vm0, %v11982_v12, 0.0  ;;  %v5169_v19 = vand.u32 7, %v4858_v57 }
 0x4dc   :  { %v12292_v30 = vpop.f32.mrf.mxu1  ;;  %v5865_v25 = vadd.f32 %v5864_v37, %v5863_v24  ;;  %v5868_v10 = vsel %vm3997_vm4, %v5786_v14, 0.0  ;;  %vm12376_vm7 = vcmp.lt.s32.totalorder %v5155_v48, 2  ;;  %v5637_v58 = vsel %vm12328_vm1, %v11984_v53, 0.0 }
 0x4dd   :  { %v4859_v57 = vadd.s32 352, %v11988_v60  ;;  %v5789_v37 = vmul.f32 %v5636_v8, %v5636_v8  ;;  %vm12387_vm9 = vcmp.lt.s32.totalorder %v5162_v9, 2  ;;  %v5638_v16 = vsel %vm12346_vm2, %v11986_v52, 0.0 }
 0x4de   :  { %v8238_v46 = vpop.f32.mrf.mxu1  ;;  %v5867_v7 = vadd.f32 %v5866_v35, %v5865_v25  ;;  %vm12396_vm11 = vcmp.lt.s32.totalorder %v5169_v19, 2  ;;  %v5790_v35 = vmul.f32 %v5637_v58, %v5637_v58  ;;  %v5641_v56 = vsel %vm12387_vm9, %v12092_v28, 0.0 }
 0x4df   :  { %v5711_v46 = vsel %vm3997_vm4, %v5631_v15, 0.0  ;;  %v6580_v15 = vld [vmem:[%s13509_s6 + $0x58] sm:$0xff]  ;;  %v5176_v0 = vand.u32 7, %v4859_v57  ;;  %v5874_v19 = vsel %vm3997_vm4, %v5789_v37, 0.0  ;;  %vm6539_vm1 = vcmask 654336  }
 0x4e0   :  { %v5712_v20 = vadd.f32 %v5711_v46, %v5710_v29  ;;  %6622 = vmatpush1.msra.mxu1 %v6580_v15  ;;  %v5717_v46 = vsel %vm3997_vm4, %v5634_v49, 0.0  ;;  %v5788_v29 = vmul.f32 %v5635_v42, %v5635_v42  ;;  %v5870_v15 = vsel %vm3997_vm4, %v5787_v17, 0.0 }
 0x4e1   :  { %6623 = vmatprep.subr.mxu1 %v13558_v61  ;;  %v5719_v49 = vsel %vm3997_vm4, %v5635_v42, 0.0  ;;  %v5869_v48 = vadd.f32 %v5868_v10, %v5867_v7  ;;  %v5721_v42 = vsel %vm3997_vm4, %v5636_v8, 0.0  ;;  %v5723_v10 = vsel %vm3997_vm4, %v5637_v58, 0.0 }
 0x4e2   :  { %v5714_v39 = vadd.f32 %v5713_v22, %v5712_v20  ;;  %6624 = vmatpush1.msra.mxu1 %v6579_v21  ;;  %v5872_v21 = vsel %vm3997_vm4, %v5788_v29, 0.0  ;;  %v4861_v29 = vadd.s32 368, %v11988_v60  ;;  %v5876_v57 = vsel %vm3997_vm4, %v5790_v35, 0.0 }
 0x4e3   :  { %6625 = vmatprep.subr.mxu1 %v13558_v61  ;;  %v5871_v9 = vadd.f32 %v5870_v15, %v5869_v48  ;;  %v4862_v15 = vadd.s32 376, %v11988_v60  ;;  %vm12421_vm12 = vcmp.lt.s32.totalorder %v5176_v0, 2  ;;  %vm6549_vm2 = vcmask 785408  }
 0x4e4   :  { %v5716_v55 = vadd.f32 %v5715_v18, %v5714_v39  ;;  %v4860_v18 = vadd.s32 360, %v11988_v60  ;;  %v5639_v39 = vsel %vm12360_vm5, %v11990_v26, 0.0  ;;  %6626 = vmatpush1.msra.mxu1 %v6578_v33  ;;  %vm6559_vm5 = vcmask 916480  }
 0x4e5   :  { %v5873_v7 = vadd.f32 %v5872_v21, %v5871_v9  ;;  %v5792_v58 = vmul.f32 %v5639_v39, %v5639_v39  ;;  %6627 = vmatprep.subr.mxu1 %v13558_v61  ;;  %v5727_v35 = vsel %vm3997_vm4, %v5639_v39, 0.0  ;;  %v5197_v22 = vand.u32 7, %v4862_v15 }
 0x4e6   :  { %v5718_v24 = vadd.f32 %v5717_v46, %v5716_v55  ;;  %v5791_v46 = vmul.f32 %v5638_v16, %v5638_v16  ;;  %v5640_v55 = vsel %vm12376_vm7, %v12014_v2, 0.0  ;;  %v5183_v37 = vand.u32 7, %v4860_v18 }
 0x4e7   :  { %v5875_v48 = vadd.f32 %v5874_v19, %v5873_v7  ;;  %v5880_v0 = vsel %vm3997_vm4, %v5792_v58, 0.0  ;;  %v5729_v19 = vsel %vm3997_vm4, %v5640_v55, 0.0  ;;  %v5643_v39 = vsel %vm12421_vm12, %v12222_v36, 0.0 }
 0x4e8   :  { %v5720_v25 = vadd.f32 %v5719_v49, %v5718_v24  ;;  %v5725_v49 = vsel %vm3997_vm4, %v5638_v16, 0.0  ;;  %v5793_v16 = vmul.f32 %v5640_v55, %v5640_v55  ;;  %vm5497_vm13 = vcmp.lt.s32.totalorder %v5183_v37, 2 }
 0x4e9   :  { %v5877_v18 = vadd.f32 %v5876_v57, %v5875_v48  ;;  %v5644_v57 = vsel %vm5497_vm13, %v12292_v30, 0.0  ;;  %vm5499_vm15 = vcmp.lt.s32.totalorder %v5197_v22, 2  ;;  %v5796_v58 = vmul.f32 %v5643_v39, %v5643_v39 }
 0x4ea   :  { %v5722_v8 = vadd.f32 %v5721_v42, %v5720_v25  ;;  %v5878_v42 = vsel %vm3997_vm4, %v5791_v46, 0.0  ;;  %v5642_v25 = vsel %vm12396_vm11, %v12164_v5, 0.0  ;;  %v5882_v46 = vsel %vm3997_vm4, %v5793_v16, 0.0 }
 0x4eb   :  { %v5879_v7 = vadd.f32 %v5878_v42, %v5877_v18  ;;  %v5795_v33 = vmul.f32 %v5642_v25, %v5642_v25  ;;  %v4863_v37 = vadd.s32 384, %v11988_v60  ;;  %v5735_v42 = vsel %vm3997_vm4, %v5643_v39, 0.0 }
 0x4ec   :  { %v12391_v14 = vpop.f32.mrf.mxu1  ;;  %v5724_v24 = vadd.f32 %v5723_v10, %v5722_v8  ;;  %v5794_v10 = vmul.f32 %v5641_v56, %v5641_v56  ;;  %v5888_v22 = vsel %vm3997_vm4, %v5796_v58, 0.0 }
 0x4ed   :  { %v5881_v20 = vadd.f32 %v5880_v0, %v5879_v7  ;;  %v5737_v0 = vsel %vm3997_vm4, %v5644_v57, 0.0  ;;  %v5204_v7 = vand.u32 7, %v4863_v37 }
 0x4ee   :  { %v8241_v17 = vpop.f32.mrf.mxu1  ;;  %v5726_v9 = vadd.f32 %v5725_v49, %v5724_v24  ;;  %v5884_v55 = vsel %vm3997_vm4, %v5794_v10, 0.0  ;;  %v5733_v49 = vsel %vm3997_vm4, %v5642_v25, 0.0  ;;  %v6577_v25 = vld [vmem:[%s13509_s6 + $0x40] sm:$0xff] }
 0x4ef   :  { %v5190_v17 = vand.u32 7, %v4861_v29  ;;  %v5731_v29 = vsel %vm3997_vm4, %v5641_v56, 0.0  ;;  %v5883_v48 = vadd.f32 %v5882_v46, %v5881_v20  ;;  %v5886_v56 = vsel %vm3997_vm4, %v5795_v33, 0.0  ;;  %6628 = vmatpush1.msra.mxu1 %v6577_v25 }
 0x4f0   :  { %v5728_v8 = vadd.f32 %v5727_v35, %v5726_v9  ;;  %v5797_v35 = vmul.f32 %v5644_v57, %v5644_v57  ;;  %6629 = vmatprep.subr.mxu1 %v13558_v61  ;;  %vm5500_vm0 = vcmp.lt.s32.totalorder %v5204_v7, 2 }
 0x4f1   :  { %vm5498_vm14 = vcmp.lt.s32.totalorder %v5190_v17, 2  ;;  %v5885_v17 = vadd.f32 %v5884_v55, %v5883_v48 }
 0x4f2   :  { %v5730_v15 = vadd.f32 %v5729_v19, %v5728_v8  ;;  %v5645_v21 = vsel %vm5498_vm14, %v12391_v14, 0.0  ;;  %v5890_v46 = vsel %vm3997_vm4, %v5797_v35, 0.0 }
 0x4f3   :  { %v5798_v19 = vmul.f32 %v5645_v21, %v5645_v21  ;;  %v5887_v8 = vadd.f32 %v5886_v56, %v5885_v17 }
 0x4f4   :  { %v5732_v24 = vadd.f32 %v5731_v29, %v5730_v15  ;;  %v5739_v29 = vsel %vm3997_vm4, %v5645_v21, 0.0  ;;  %v6576_v21 = vld [vmem:[%s13509_s6 + $0x38] sm:$0xff] }
 0x4f5   :  { %v5889_v20 = vadd.f32 %v5888_v22, %v5887_v8  ;;  %v5892_v55 = vsel %vm3997_vm4, %v5798_v19, 0.0  ;;  %6630 = vmatpush1.msra.mxu1 %v6576_v21 }
 0x4f6   :  { %v5734_v18 = vadd.f32 %v5733_v49, %v5732_v24  ;;  %6631 = vmatprep.subr.mxu1 %v13558_v61 }
 0x4f7   :  { %v5891_v57 = vadd.f32 %v5890_v46, %v5889_v20 }
 0x4f8   :  { %v5736_v39 = vadd.f32 %v5735_v42, %v5734_v18 }
 0x4f9   :  { %v5893_v24 = vadd.f32 %v5892_v55, %v5891_v57 }
 0x4fa   :  { %v5738_v15 = vadd.f32 %v5737_v0, %v5736_v39 }
 0x4fc   :  { %v12445_v16 = vpop.f32.mrf.mxu1  ;;  %v5740_v58 = vadd.f32 %v5739_v29, %v5738_v15  ;;  %v6575_v15 = vld [vmem:[%s13509_s6 + $0x30] sm:$0xff] }
 0x4fd   :  { %v5646_v9 = vsel %vm5499_vm15, %v12445_v16, 0.0  ;;  %6632 = vmatpush1.msra.mxu1 %v6575_v15 }
 0x4fe   :  { %v8244_v10 = vpop.f32.mrf.mxu1  ;;  %v5799_v33 = vmul.f32 %v5646_v9, %v5646_v9  ;;  %v5741_v49 = vsel %vm3997_vm4, %v5646_v9, 0.0  ;;  %6633 = vmatprep.subr.mxu1 %v13558_v61 }
 0x4ff   :  { %v5742_v56 = vadd.f32 %v5741_v49, %v5740_v58 }
 0x500   :  { %v5894_v37 = vsel %vm3997_vm4, %v5799_v33, 0.0 }
 0x501   :  { %v5895_v9 = vadd.f32 %v5894_v37, %v5893_v24 }
 0x504   :  { %v12459_v48 = vpop.f32.mrf.mxu1 }
 0x505   :  { %v5647_v42 = vsel %vm5500_vm0, %v12459_v48, 0.0 }
 0x506   :  { %v5743_v35 = vsel %vm3997_vm4, %v5647_v42, 0.0  ;;  %v5800_v17 = vmul.f32 %v5647_v42, %v5647_v42  ;;  %v8247_v18 = vpop.f32.mrf.mxu1 }
 0x507   :  { %v5744_v25 = vadd.f32 %v5743_v35, %v5742_v56  ;;  %v6574_v35 = vld [vmem:[%s13509_s6 + $0x28] sm:$0xff] }
 0x508   :  { %v5896_v22 = vsel %vm3997_vm4, %v5800_v17, 0.0  ;;  %6634 = vmatpush1.msra.mxu1 %v6574_v35  ;;  %v13654_v35 = vld [vmem:[#allocation21_spill] sm:$0xff] }
 0x509   :  { %v5745_v0 = vrot.slane %v5744_v25, 4  ;;  %v5897_v19 = vadd.f32 %v5896_v22, %v5895_v9  ;;  %6635 = vmatprep.subr.mxu1 %v13558_v61  ;;  %v13645_v9 = vld [vmem:[#allocation10_spill] sm:$0xff]  ;;  %v13646_v22 = vld [vmem:[#allocation11_spill] sm:$0xff] }
 0x50b   :  { %v5746_v10 = vadd.f32 %v5745_v0, %v5744_v25  ;;  %v5898_v7 = vrot.slane %v5897_v19, 4 }
 0x50d   :  { %v5747_v8 = vrot.slane %v5746_v10, 2  ;;  %v5899_v39 = vadd.f32 %v5898_v7, %v5897_v19  ;;  %v13647_v19 = vld [vmem:[#allocation12_spill] sm:$0xff]  ;;  %v13648_v7 = vld [vmem:[#allocation13_spill] sm:$0xff] }
 0x50f   :  { %v5748_v46 = vadd.f32 %v5747_v8, %v5746_v10  ;;  %v5900_v29 = vrot.slane %v5899_v39, 2 }
 0x511   :  { %v5749_v33 = vrot.slane %v5748_v46, 1  ;;  %v5901_v20 = vadd.f32 %v5900_v29, %v5899_v39 }
 0x513   :  { %v5750_v55 = vadd.f32 %v5749_v33, %v5748_v46  ;;  %v5902_v49 = vrot.slane %v5901_v20, 1  ;;  %v13649_v46 = vld [vmem:[#allocation14_spill] sm:$0xff] }
 0x515   :  { %v12472_v57 = vmul.f32 0.010204081, %v5750_v55  ;;  %v5903_v58 = vadd.f32 %v5902_v49, %v5901_v20  ;;  %v13650_v49 = vld [vmem:[#allocation15_spill] sm:$0xff] }
 0x516   :  { %v6571_v55 = vld [vmem:[%s13509_s6 + $0x10] sm:$0xff] }
 0x517   :  { %v5904_v37 = vmul.f32 0.010204081, %v5903_v58  ;;  %v5905_v24 = vmul.f32 %v12472_v57, %v12472_v57  ;;  %v5956_v17 = vsub.f32 %v12459_v48, %v12472_v57  ;;  %v5908_v18 = vsub.f32 %v10617_v47, %v12472_v57  ;;  %v13655_v58 = vld [vmem:[#allocation22_spill] sm:$0xff] }
 0x518   :  { %v5909_v25 = vsub.f32 %v13645_v9, %v12472_v57  ;;  %v5910_v0 = vsub.f32 %v13646_v22, %v12472_v57  ;;  %v5911_v10 = vsub.f32 %v13647_v19, %v12472_v57  ;;  %v5912_v8 = vsub.f32 %v13648_v7, %v12472_v57  ;;  %v6573_v22 = vld [vmem:[%s13509_s6 + $0x20] sm:$0xff] }
 0x519   :  { %v5906_v56 = vsub.f32 %v5904_v37, %v5905_v24  ;;  %v5913_v39 = vsub.f32 %v10834_v51, %v12472_v57  ;;  %v5914_v48 = vsub.f32 %v10871_v3, %v12472_v57  ;;  %v13651_v37 = vld [vmem:[#allocation16_spill] sm:$0xff]  ;;  %6636 = vmatpush1.msra.mxu1 %v6573_v22  ;;  %v13656_v24 = vld [vmem:[#allocation23_spill] sm:$0xff]  ;;  %v5948_v9 = vsub.f32 %v11990_v26, %v12472_v57  ;;  %v12589_v26 = vld [vmem:[%s13507_s4] ss:$0 sm:$0xff] }
 0x51a   :  { %6637 = vmatprep.subr.mxu1 %v13558_v61  ;;  %v6572_v22 = vld [vmem:[%s13509_s6 + $0x18] sm:$0xff]  ;;  %v5949_v15 = vsub.f32 %v12014_v2, %v12472_v57  ;;  %v5950_v20 = vsub.f32 %v12092_v28, %v12472_v57  ;;  %v5951_v3 = vsub.f32 %v12164_v5, %v12472_v57  ;;  %v6570_v51 = vld [vmem:[%s13509_s6 + $0x8] sm:$0xff]  ;;  %v5952_v2 = vsub.f32 %v12222_v36, %v12472_v57  ;;  %v12607_v36 = vld [vmem:[%s13508_s5] ss:$0 sm:$0xff] }
 0x51b   :  { %v5907_v42 = vmax.f32 %v5906_v56, 0.0  ;;  %v13652_v56 = vld [vmem:[#allocation17_spill] sm:$0xff]  ;;  %6638 = vmatpush1.msra.mxu1 %v6572_v22  ;;  %v5953_v28 = vsub.f32 %v12292_v30, %v12472_v57  ;;  %v5954_v5 = vsub.f32 %v12391_v14, %v12472_v57  ;;  %v5955_v22 = vsub.f32 %v12445_v16, %v12472_v57 }
 0x51c   :  { %6639 = vmatprep.subr.mxu1 %v13558_v61 }
 0x51d   :  { %v5957_v21 = vadd.f32 1e-05, %v5907_v42  ;;  %v13657_v42 = vld [vmem:[#allocation24_spill] sm:$0xff]  ;;  %6640 = vmatpush1.msra.mxu1 %v6571_v55  ;;  %v13659_v55 = vsub.f32 %v13649_v46, %v12472_v57  ;;  %v13663_v46 = vsub.f32 %v11222_v62, %v12472_v57  ;;  %v13667_v62 = vsub.f32 %v13651_v37, %v12472_v57 }
 0x51e   :  { %6641 = vmatprep.subr.mxu1 %v13558_v61  ;;  %v13671_v37 = vsub.f32 %v13604_v11, %v12472_v57  ;;  %v13675_v11 = vsub.f32 %v13654_v35, %v12472_v57  ;;  %v13679_v35 = vsub.f32 %v13656_v24, %v12472_v57  ;;  %v13683_v24 = vsub.f32 %v11923_v34, %v12472_v57 }
 0x51f   :  { %8490 = vrsqrt.f32 %v5957_v21  ;;  %v13653_v21 = vld [vmem:[#allocation18_spill] sm:$0xff]  ;;  %6642 = vmatpush1.msra.mxu1 %v6570_v51  ;;  %v13687_v34 = vsub.f32 %v11980_v27, %v12472_v57 }
 0x520   :  { %6643 = vmatprep.subr.mxu1 %v13558_v61 }
 0x52c   :  { %v12584_v7 = vpop.eup %8490 }
 0x52d   :  { %v6007_v19 = vmul.f32 %v12584_v7, %v5956_v17  ;;  %v5959_v33 = vmul.f32 %v12584_v7, %v5908_v18  ;;  %v5960_v29 = vmul.f32 %v12584_v7, %v5909_v25  ;;  %v5961_v47 = vmul.f32 %v12584_v7, %v5910_v0 }
 0x52e   :  { %v5962_v30 = vmul.f32 %v12584_v7, %v5911_v10  ;;  %v5963_v14 = vmul.f32 %v12584_v7, %v5912_v8  ;;  %v5964_v16 = vmul.f32 %v12584_v7, %v5913_v39  ;;  %v5965_v17 = vmul.f32 %v12584_v7, %v5914_v48 }
 0x52f   :  { %v6063_v18 = vmul.f32 %v12589_v26, %v6007_v19  ;;  %v13658_v25 = vsub.f32 %v11001_v23, %v12472_v57  ;;  %v5967_v60 = vmul.f32 %v12584_v7, %v13659_v55  ;;  %v13660_v10 = vsub.f32 %v11090_v38, %v12472_v57 }
 0x530   :  { %v13661_v39 = vsub.f32 %v11131_v54, %v12472_v57  ;;  %v13662_v23 = vsub.f32 %v11171_v32, %v12472_v57  ;;  %v5971_v19 = vmul.f32 %v12584_v7, %v13663_v46  ;;  %v13664_v38 = vsub.f32 %v11257_v59, %v12472_v57 }
 0x531   :  { %v5966_v0 = vmul.f32 %v12584_v7, %v13658_v25  ;;  %v5968_v8 = vmul.f32 %v12584_v7, %v13660_v10  ;;  %v6119_v55 = vadd.f32 %v12607_v36, %v6063_v18  ;;  %v13665_v54 = vsub.f32 %v11367_v63, %v12472_v57 }
 0x532   :  { %v5969_v48 = vmul.f32 %v12584_v7, %v13661_v39  ;;  %v5970_v51 = vmul.f32 %v12584_v7, %v13662_v23  ;;  %v5972_v25 = vmul.f32 %v12584_v7, %v13664_v38  ;;  %v13666_v32 = vsub.f32 %v13650_v49, %v12472_v57 }
 0x533   :  { %v5973_v10 = vmul.f32 %v12584_v7, %v13665_v54  ;;  %v5975_v23 = vmul.f32 %v12584_v7, %v13667_v62  ;;  %v13668_v59 = vsub.f32 %v13652_v56, %v12472_v57  ;;  %v13669_v63 = vsub.f32 %v13653_v21, %v12472_v57 }
 0x534   :  { %v5974_v39 = vmul.f32 %v12584_v7, %v13666_v32  ;;  %v13670_v49 = vsub.f32 %v13603_v41, %v12472_v57  ;;  %v5979_v54 = vmul.f32 %v12584_v7, %v13671_v37  ;;  %v6168_v32 = vmax.f32 %v6119_v55, 0.0 }
 0x535   :  { %v5976_v18 = vmul.f32 %v12584_v7, %v13668_v59  ;;  %v5977_v46 = vmul.f32 %v12584_v7, %v13669_v63  ;;  %v13672_v56 = vsub.f32 %v11659_v4, %v12472_v57  ;;  %v13673_v21 = vsub.f32 %v11687_v43, %v12472_v57 }
 0x536   :  { %v5978_v38 = vmul.f32 %v12584_v7, %v13670_v49  ;;  %v13674_v41 = vsub.f32 %v11719_v13, %v12472_v57  ;;  %v5983_v55 = vmul.f32 %v12584_v7, %v13675_v11  ;;  %v13676_v4 = vsub.f32 %v13655_v58, %v12472_v57  ;;  %6217 = vst.msk [vmem:[#allocation3 + $0x1b0] sm:$0xff] %vm3997_vm4, %v6168_v32 }
 0x537   :  { %v5980_v62 = vmul.f32 %v12584_v7, %v13672_v56  ;;  %v5981_v59 = vmul.f32 %v12584_v7, %v13673_v21  ;;  %v13677_v43 = vsub.f32 %v11790_v44, %v12472_v57  ;;  %v13678_v13 = vsub.f32 %v11821_v50, %v12472_v57 }
 0x538   :  { %v5982_v63 = vmul.f32 %v12584_v7, %v13674_v41  ;;  %v5984_v49 = vmul.f32 %v12584_v7, %v13676_v4  ;;  %v5987_v21 = vmul.f32 %v12584_v7, %v13679_v35  ;;  %v13680_v58 = vsub.f32 %v13657_v42, %v12472_v57 }
 0x539   :  { %v5985_v37 = vmul.f32 %v12584_v7, %v13677_v43  ;;  %v5986_v56 = vmul.f32 %v12584_v7, %v13678_v13  ;;  %v13681_v44 = vsub.f32 %v11888_v6, %v12472_v57  ;;  %v13682_v50 = vsub.f32 %v11906_v45, %v12472_v57 }
 0x53a   :  { %v5988_v41 = vmul.f32 %v12584_v7, %v13680_v58  ;;  %v5991_v4 = vmul.f32 %v12584_v7, %v13683_v24  ;;  %v13684_v42 = vsub.f32 %v11938_v31, %v12472_v57  ;;  %v13685_v6 = vsub.f32 %v11952_v1, %v12472_v57 }
 0x53b   :  { %v5989_v11 = vmul.f32 %v12584_v7, %v13681_v44  ;;  %v5990_v32 = vmul.f32 %v12584_v7, %v13682_v50  ;;  %v13686_v45 = vsub.f32 %v11971_v40, %v12472_v57  ;;  %v5995_v58 = vmul.f32 %v12584_v7, %v13687_v34 }
 0x53c   :  { %v5992_v43 = vmul.f32 %v12584_v7, %v13684_v42  ;;  %v5993_v13 = vmul.f32 %v12584_v7, %v13685_v6  ;;  %v13688_v31 = vsub.f32 %v11982_v12, %v12472_v57  ;;  %v13689_v1 = vsub.f32 %v11984_v53, %v12472_v57 }
 0x53d   :  { %v5994_v35 = vmul.f32 %v12584_v7, %v13686_v45  ;;  %v13690_v40 = vsub.f32 %v11986_v52, %v12472_v57  ;;  %v5999_v42 = vmul.f32 %v12584_v7, %v5948_v9  ;;  %v6000_v27 = vmul.f32 %v12584_v7, %v5949_v15 }
 0x53e   :  { %v5996_v44 = vmul.f32 %v12584_v7, %v13688_v31  ;;  %v5997_v50 = vmul.f32 %v12584_v7, %v13689_v1  ;;  %v6001_v6 = vmul.f32 %v12584_v7, %v5950_v20  ;;  %v6002_v12 = vmul.f32 %v12584_v7, %v5951_v3 }
 0x53f   :  { %v5998_v24 = vmul.f32 %v12584_v7, %v13690_v40  ;;  %v6003_v45 = vmul.f32 %v12584_v7, %v5952_v2  ;;  %v6004_v34 = vmul.f32 %v12584_v7, %v5953_v28  ;;  %v6005_v53 = vmul.f32 %v12584_v7, %v5954_v5 }
 0x540   :  { %v6006_v31 = vmul.f32 %v12584_v7, %v5955_v22  ;;  %v6015_v52 = vmul.f32 %v12589_v26, %v5959_v33  ;;  %v6016_v57 = vmul.f32 %v12589_v26, %v5960_v29  ;;  %v6017_v9 = vmul.f32 %v12589_v26, %v5961_v47 }
 0x541   :  { %v6018_v15 = vmul.f32 %v12589_v26, %v5962_v30  ;;  %v6019_v20 = vmul.f32 %v12589_v26, %v5963_v14  ;;  %v6020_v3 = vmul.f32 %v12589_v26, %v5964_v16  ;;  %v6021_v2 = vmul.f32 %v12589_v26, %v5965_v17 }
 0x542   :  { %v6022_v28 = vmul.f32 %v12589_v26, %v5966_v0  ;;  %v6023_v5 = vmul.f32 %v12589_v26, %v5967_v60  ;;  %v6024_v7 = vmul.f32 %v12589_v26, %v5968_v8  ;;  %v6025_v33 = vmul.f32 %v12589_v26, %v5969_v48 }
 0x543   :  { %v6026_v29 = vmul.f32 %v12589_v26, %v5970_v51  ;;  %v6027_v47 = vmul.f32 %v12589_v26, %v5971_v19  ;;  %v6028_v22 = vmul.f32 %v12589_v26, %v5972_v25  ;;  %v6029_v30 = vmul.f32 %v12589_v26, %v5973_v10 }
 0x544   :  { %v6030_v14 = vmul.f32 %v12589_v26, %v5974_v39  ;;  %v6031_v16 = vmul.f32 %v12589_v26, %v5975_v23  ;;  %v6032_v17 = vmul.f32 %v12589_v26, %v5976_v18  ;;  %v6033_v60 = vmul.f32 %v12589_v26, %v5977_v46 }
 0x545   :  { %v6034_v0 = vmul.f32 %v12589_v26, %v5978_v38  ;;  %v6035_v8 = vmul.f32 %v12589_v26, %v5979_v54  ;;  %v6036_v48 = vmul.f32 %v12589_v26, %v5980_v62  ;;  %v6037_v51 = vmul.f32 %v12589_v26, %v5981_v59 }
 0x546   :  { %v6038_v19 = vmul.f32 %v12589_v26, %v5982_v63  ;;  %v6039_v25 = vmul.f32 %v12589_v26, %v5983_v55  ;;  %v6040_v10 = vmul.f32 %v12589_v26, %v5984_v49  ;;  %v6041_v39 = vmul.f32 %v12589_v26, %v5985_v37 }
 0x547   :  { %v6042_v23 = vmul.f32 %v12589_v26, %v5986_v56  ;;  %v6043_v18 = vmul.f32 %v12589_v26, %v5987_v21  ;;  %v6044_v46 = vmul.f32 %v12589_v26, %v5988_v41  ;;  %v6045_v38 = vmul.f32 %v12589_v26, %v5989_v11 }
 0x548   :  { %v6046_v54 = vmul.f32 %v12589_v26, %v5990_v32  ;;  %v6047_v62 = vmul.f32 %v12589_v26, %v5991_v4  ;;  %v6048_v59 = vmul.f32 %v12589_v26, %v5992_v43  ;;  %v6049_v63 = vmul.f32 %v12589_v26, %v5993_v13 }
 0x549   :  { %v6050_v55 = vmul.f32 %v12589_v26, %v5994_v35  ;;  %v6051_v49 = vmul.f32 %v12589_v26, %v5995_v58  ;;  %v6052_v37 = vmul.f32 %v12589_v26, %v5996_v44  ;;  %v6053_v56 = vmul.f32 %v12589_v26, %v5997_v50 }
 0x54a   :  { %v6054_v21 = vmul.f32 %v12589_v26, %v5998_v24  ;;  %v6055_v41 = vmul.f32 %v12589_v26, %v5999_v42  ;;  %v6056_v11 = vmul.f32 %v12589_v26, %v6000_v27  ;;  %v6057_v32 = vmul.f32 %v12589_v26, %v6001_v6 }
 0x54b   :  { %v6058_v4 = vmul.f32 %v12589_v26, %v6002_v12  ;;  %v6059_v43 = vmul.f32 %v12589_v26, %v6003_v45  ;;  %v6060_v13 = vmul.f32 %v12589_v26, %v6004_v34  ;;  %v6061_v35 = vmul.f32 %v12589_v26, %v6005_v53 }
 0x54c   :  { %v6062_v58 = vmul.f32 %v12589_v26, %v6006_v31  ;;  %v6071_v44 = vadd.f32 %v12607_v36, %v6015_v52  ;;  %v6072_v1 = vadd.f32 %v12607_v36, %v6016_v57  ;;  %v6073_v50 = vadd.f32 %v12607_v36, %v6017_v9 }
 0x54d   :  { %v6074_v40 = vadd.f32 %v12607_v36, %v6018_v15  ;;  %v12810_v24 = vadd.f32 %v12607_v36, %v6019_v20  ;;  %v12813_v42 = vadd.f32 %v12607_v36, %v6020_v3  ;;  %v12816_v27 = vadd.f32 %v12607_v36, %v6021_v2 }
 0x54e   :  { %v12819_v6 = vadd.f32 %v12607_v36, %v6022_v28  ;;  %v12822_v26 = vadd.f32 %v12607_v36, %v6023_v5  ;;  %v12825_v12 = vadd.f32 %v12607_v36, %v6024_v7  ;;  %v12828_v45 = vadd.f32 %v12607_v36, %v6025_v33 }
 0x54f   :  { %v12831_v34 = vadd.f32 %v12607_v36, %v6026_v29  ;;  %v12834_v53 = vadd.f32 %v12607_v36, %v6027_v47  ;;  %v12837_v31 = vadd.f32 %v12607_v36, %v6028_v22  ;;  %v12840_v52 = vadd.f32 %v12607_v36, %v6029_v30 }
 0x550   :  { %v12843_v57 = vadd.f32 %v12607_v36, %v6030_v14  ;;  %v12846_v9 = vadd.f32 %v12607_v36, %v6031_v16  ;;  %v12849_v15 = vadd.f32 %v12607_v36, %v6032_v17  ;;  %v12852_v20 = vadd.f32 %v12607_v36, %v6033_v60 }
 0x551   :  { %v12855_v3 = vadd.f32 %v12607_v36, %v6034_v0  ;;  %v12858_v2 = vadd.f32 %v12607_v36, %v6035_v8  ;;  %v12861_v28 = vadd.f32 %v12607_v36, %v6036_v48  ;;  %v12864_v5 = vadd.f32 %v12607_v36, %v6037_v51 }
 0x552   :  { %v12867_v7 = vadd.f32 %v12607_v36, %v6038_v19  ;;  %v12870_v33 = vadd.f32 %v12607_v36, %v6039_v25  ;;  %v12873_v29 = vadd.f32 %v12607_v36, %v6040_v10  ;;  %v12876_v47 = vadd.f32 %v12607_v36, %v6041_v39 }
 0x553   :  { %v12879_v22 = vadd.f32 %v12607_v36, %v6042_v23  ;;  %v12882_v30 = vadd.f32 %v12607_v36, %v6043_v18  ;;  %v12885_v14 = vadd.f32 %v12607_v36, %v6044_v46  ;;  %v12888_v16 = vadd.f32 %v12607_v36, %v6045_v38 }
 0x554   :  { %v12891_v17 = vadd.f32 %v12607_v36, %v6046_v54  ;;  %v12894_v60 = vadd.f32 %v12607_v36, %v6047_v62  ;;  %v12897_v0 = vadd.f32 %v12607_v36, %v6048_v59  ;;  %v12900_v8 = vadd.f32 %v12607_v36, %v6049_v63 }
 0x555   :  { %v12903_v48 = vadd.f32 %v12607_v36, %v6050_v55  ;;  %v12906_v51 = vadd.f32 %v12607_v36, %v6051_v49  ;;  %v12909_v19 = vadd.f32 %v12607_v36, %v6052_v37  ;;  %v12912_v25 = vadd.f32 %v12607_v36, %v6053_v56 }
 0x556   :  { %v12915_v10 = vadd.f32 %v12607_v36, %v6054_v21  ;;  %v12918_v39 = vadd.f32 %v12607_v36, %v6055_v41  ;;  %v12921_v23 = vadd.f32 %v12607_v36, %v6056_v11  ;;  %v12924_v18 = vadd.f32 %v12607_v36, %v6057_v32 }
 0x557   :  { %v12927_v46 = vadd.f32 %v12607_v36, %v6058_v4  ;;  %v12930_v38 = vadd.f32 %v12607_v36, %v6059_v43  ;;  %v12933_v54 = vadd.f32 %v12607_v36, %v6060_v13  ;;  %v12936_v62 = vadd.f32 %v12607_v36, %v6061_v35 }
 0x558   :  { %v12939_v59 = vadd.f32 %v12607_v36, %v6062_v58  ;;  %v6120_v63 = vmax.f32 %v6071_v44, 0.0  ;;  %v6121_v55 = vmax.f32 %v6072_v1, 0.0  ;;  %v6122_v49 = vmax.f32 %v6073_v50, 0.0 }
 0x559   :  { %v6123_v37 = vmax.f32 %v6074_v40, 0.0  ;;  %v6124_v56 = vmax.f32 %v12810_v24, 0.0  ;;  %v6125_v21 = vmax.f32 %v12813_v42, 0.0  ;;  %v6126_v41 = vmax.f32 %v12816_v27, 0.0  ;;  %v6569_v42 = vld [vmem:[%s13509_s6] sm:$0xff] }
 0x55a   :  { %v6127_v11 = vmax.f32 %v12819_v6, 0.0  ;;  %v6128_v32 = vmax.f32 %v12822_v26, 0.0  ;;  %v6129_v4 = vmax.f32 %v12825_v12, 0.0  ;;  %v6130_v43 = vmax.f32 %v12828_v45, 0.0  ;;  %6169 = vst.msk [vmem:[#allocation3] sm:$0xff] %vm3997_vm4, %v6120_v63  ;;  %6170 = vst.msk [vmem:[#allocation3 + $0x8] sm:$0xff] %vm3997_vm4, %v6121_v55  ;;  %6644 = vmatpush1.msra.mxu1 %v6569_v42 }
 0x55b   :  { %v6131_v36 = vmax.f32 %v12831_v34, 0.0  ;;  %6171 = vst.msk [vmem:[#allocation3 + $0x10] sm:$0xff] %vm3997_vm4, %v6122_v49  ;;  %6172 = vst.msk [vmem:[#allocation3 + $0x18] sm:$0xff] %vm3997_vm4, %v6123_v37  ;;  %v6132_v13 = vmax.f32 %v12834_v53, 0.0  ;;  %v6133_v35 = vmax.f32 %v12837_v31, 0.0  ;;  %v6134_v58 = vmax.f32 %v12840_v52, 0.0  ;;  %6673 = vmatprep.subr.mxu1 %v13558_v61 }
 0x55c   :  { %v6135_v44 = vmax.f32 %v12843_v57, 0.0  ;;  %6173 = vst.msk [vmem:[#allocation3 + $0x20] sm:$0xff] %vm3997_vm4, %v6124_v56  ;;  %6174 = vst.msk [vmem:[#allocation3 + $0x28] sm:$0xff] %vm3997_vm4, %v6125_v21  ;;  %v6136_v1 = vmax.f32 %v12846_v9, 0.0  ;;  %v6137_v50 = vmax.f32 %v12849_v15, 0.0  ;;  %v6138_v40 = vmax.f32 %v12852_v20, 0.0 }
 0x55d   :  { %6175 = vst.msk [vmem:[#allocation3 + $0x30] sm:$0xff] %vm3997_vm4, %v6126_v41  ;;  %6176 = vst.msk [vmem:[#allocation3 + $0x40] sm:$0xff] %vm3997_vm4, %v6127_v11  ;;  %v6139_v24 = vmax.f32 %v12855_v3, 0.0  ;;  %v6140_v27 = vmax.f32 %v12858_v2, 0.0  ;;  %v6141_v6 = vmax.f32 %v12861_v28, 0.0  ;;  %v6142_v26 = vmax.f32 %v12864_v5, 0.0 }
 0x55e   :  { %6177 = vst.msk [vmem:[#allocation3 + $0x48] sm:$0xff] %vm3997_vm4, %v6128_v32  ;;  %6178 = vst.msk [vmem:[#allocation3 + $0x50] sm:$0xff] %vm3997_vm4, %v6129_v4  ;;  %v6143_v12 = vmax.f32 %v12867_v7, 0.0  ;;  %v6144_v45 = vmax.f32 %v12870_v33, 0.0  ;;  %v6145_v34 = vmax.f32 %v12873_v29, 0.0  ;;  %v6146_v53 = vmax.f32 %v12876_v47, 0.0 }
 0x55f   :  { %6179 = vst.msk [vmem:[#allocation3 + $0x58] sm:$0xff] %vm3997_vm4, %v6130_v43  ;;  %6180 = vst.msk [vmem:[#allocation3 + $0x60] sm:$0xff] %vm3997_vm4, %v6131_v36  ;;  %v6147_v31 = vmax.f32 %v12879_v22, 0.0  ;;  %v6148_v52 = vmax.f32 %v12882_v30, 0.0  ;;  %v6149_v57 = vmax.f32 %v12885_v14, 0.0  ;;  %v6150_v9 = vmax.f32 %v12888_v16, 0.0 }
 0x560   :  { %6181 = vst.msk [vmem:[#allocation3 + $0x68] sm:$0xff] %vm3997_vm4, %v6132_v13  ;;  %6182 = vst.msk [vmem:[#allocation3 + $0x70] sm:$0xff] %vm3997_vm4, %v6133_v35  ;;  %v6151_v15 = vmax.f32 %v12891_v17, 0.0  ;;  %v6152_v20 = vmax.f32 %v12894_v60, 0.0  ;;  %v6153_v3 = vmax.f32 %v12897_v0, 0.0  ;;  %v6154_v2 = vmax.f32 %v12900_v8, 0.0 }
 0x561   :  { %6183 = vst.msk [vmem:[#allocation3 + $0x80] sm:$0xff] %vm3997_vm4, %v6134_v58  ;;  %6184 = vst.msk [vmem:[#allocation3 + $0x88] sm:$0xff] %vm3997_vm4, %v6135_v44  ;;  %v6155_v28 = vmax.f32 %v12903_v48, 0.0  ;;  %v6156_v5 = vmax.f32 %v12906_v51, 0.0  ;;  %v6157_v7 = vmax.f32 %v12909_v19, 0.0  ;;  %v6158_v33 = vmax.f32 %v12912_v25, 0.0 }
 0x562   :  { %6185 = vst.msk [vmem:[#allocation3 + $0x90] sm:$0xff] %vm3997_vm4, %v6136_v1  ;;  %6186 = vst.msk [vmem:[#allocation3 + $0x98] sm:$0xff] %vm3997_vm4, %v6137_v50  ;;  %v6159_v29 = vmax.f32 %v12915_v10, 0.0  ;;  %v13013_v47 = vld [vmem:[#allocation3 + $0x10] sm:$0xff]  ;;  %v6219_v22 = vld [vmem:[#allocation3 + $0x8] sm:$0xff]  ;;  %v6160_v30 = vmax.f32 %v12918_v39, 0.0 }
 0x563   :  { %6187 = vst.msk [vmem:[#allocation3 + $0xa0] sm:$0xff] %vm3997_vm4, %v6138_v40  ;;  %6188 = vst.msk [vmem:[#allocation3 + $0xa8] sm:$0xff] %vm3997_vm4, %v6139_v24  ;;  %v6161_v14 = vmax.f32 %v12921_v23, 0.0  ;;  %v6162_v16 = vmax.f32 %v12924_v18, 0.0  ;;  %v6163_v17 = vmax.f32 %v12927_v46, 0.0  ;;  %v13023_v60 = vld [vmem:[#allocation3 + $0x20] sm:$0xff] }
 0x564   :  { %6189 = vst.msk [vmem:[#allocation3 + $0xb0] sm:$0xff] %vm3997_vm4, %v6140_v27  ;;  %6190 = vst.msk [vmem:[#allocation3 + $0xc0] sm:$0xff] %vm3997_vm4, %v6141_v6  ;;  %v6221_v0 = vld [vmem:[#allocation3 + $0x18] sm:$0xff]  ;;  %v6164_v8 = vmax.f32 %v12930_v38, 0.0  ;;  %v6165_v48 = vmax.f32 %v12933_v54, 0.0  ;;  %v6166_v51 = vmax.f32 %v12936_v62, 0.0  ;;  %v8355_v25 = vpack.i.bf16 %v13023_v60, %v13013_v47 }
 0x565   :  { %6191 = vst.msk [vmem:[#allocation3 + $0xc8] sm:$0xff] %vm3997_vm4, %v6142_v26  ;;  %6192 = vst.msk [vmem:[#allocation3 + $0xd0] sm:$0xff] %vm3997_vm4, %v6143_v12  ;;  %v6167_v19 = vmax.f32 %v12939_v59, 0.0  ;;  %v8350_v10 = vpack.i.bf16 %v6221_v0, %v6219_v22  ;;  %v6226_v23 = vld [vmem:[#allocation3 + $0x48] sm:$0xff]  ;;  %v6225_v46 = vld [vmem:[#allocation3 + $0x40] sm:$0xff] }
 0x566   :  { %6193 = vst.msk [vmem:[#allocation3 + $0xd8] sm:$0xff] %vm3997_vm4, %v6144_v45  ;;  %6194 = vst.msk [vmem:[#allocation3 + $0xe0] sm:$0xff] %vm3997_vm4, %v6145_v34  ;;  %v6228_v18 = vld [vmem:[#allocation3 + $0x58] sm:$0xff]  ;;  %8356 = vrot.lane.b32.xlu1 %v8355_v25, %s8585_s19  ;;  %v6227_v38 = vld [vmem:[#allocation3 + $0x50] sm:$0xff] }
 0x567   :  { %6195 = vst.msk [vmem:[#allocation3 + $0xe8] sm:$0xff] %vm3997_vm4, %v6146_v53  ;;  %6196 = vst.msk [vmem:[#allocation3 + $0xf0] sm:$0xff] %vm3997_vm4, %v6147_v31  ;;  %8351 = vrot.lane.b32.xlu0 %v8350_v10, %s8581_s18  ;;  %v8365_v54 = vpack.i.bf16 %v6228_v18, %v6226_v23  ;;  %v8360_v62 = vpack.i.bf16 %v6227_v38, %v6225_v46  ;;  %v6229_v63 = vld [vmem:[#allocation3 + $0x60] sm:$0xff]  ;;  %v6223_v37 = vld [vmem:[#allocation3 + $0x28] sm:$0xff] }
 0x568   :  { %6197 = vst.msk [vmem:[#allocation3 + $0x100] sm:$0xff] %vm3997_vm4, %v6148_v52  ;;  %6198 = vst.msk [vmem:[#allocation3 + $0x108] sm:$0xff] %vm3997_vm4, %v6149_v57  ;;  %v13049_v59 = vld [vmem:[#allocation3 + $0x80] sm:$0xff]  ;;  %v8370_v49 = vpack.i.bf16 %v6229_v63, %v6227_v38  ;;  %v6233_v56 = vld [vmem:[#allocation3 + $0x88] sm:$0xff] }
 0x569   :  { %6199 = vst.msk [vmem:[#allocation3 + $0x110] sm:$0xff] %vm3997_vm4, %v6150_v9  ;;  %6200 = vst.msk [vmem:[#allocation3 + $0x118] sm:$0xff] %vm3997_vm4, %v6151_v15  ;;  %v13043_v39 = vld [vmem:[#allocation3 + $0x90] sm:$0xff]  ;;  %v6235_v21 = vld [vmem:[#allocation3 + $0x98] sm:$0xff]  ;;  %v8385_v41 = vpack.i.bf16 %v6233_v56, %v6223_v37 }
 0x56a   :  { %6201 = vst.msk [vmem:[#allocation3 + $0x120] sm:$0xff] %vm3997_vm4, %v6152_v20  ;;  %6202 = vst.msk [vmem:[#allocation3 + $0x128] sm:$0xff] %vm3997_vm4, %v6153_v3  ;;  %7441 = vmatprep.mubr.msk.f32.mxu1 %vm3997_vm4, %v13043_v39  ;;  %8366 = vrot.lane.b32.xlu1 %v8365_v54, %s8586_s28  ;;  %v8375_v55 = vpack.i.bf16 %v13043_v39, %v13049_v59  ;;  %v8380_v11 = vpack.i.bf16 %v6235_v21, %v6233_v56  ;;  %v6224_v4 = vld [vmem:[#allocation3 + $0x30] sm:$0xff]  ;;  %v6586_v43 = vld [vmem:[%s13509_s6 + $0x88] sm:$0xff] }
 0x56b   :  { %6203 = vst.msk [vmem:[#allocation3 + $0x130] sm:$0xff] %vm3997_vm4, %v6154_v2  ;;  %6204 = vst.msk [vmem:[#allocation3 + $0x140] sm:$0xff] %vm3997_vm4, %v6155_v28  ;;  %8361 = vrot.lane.b32.xlu0 %v8360_v62, %s8583_s26  ;;  %v6239_v32 = vld [vmem:[#allocation3 + $0xc0] sm:$0xff]  ;;  %6674 = vmatpush2.msra.mxu1 %v6586_v43  ;;  %v8390_v35 = vpack.i.bf16 %v13043_v39, %v6224_v4  ;;  %v6231_v58 = vld [vmem:[#allocation3 + $0x70] sm:$0xff] }
 0x56c   :  { %6205 = vst.msk [vmem:[#allocation3 + $0x148] sm:$0xff] %vm3997_vm4, %v6156_v5  ;;  %6206 = vst.msk [vmem:[#allocation3 + $0x150] sm:$0xff] %vm3997_vm4, %v6157_v7  ;;  %v6585_v36 = vld [vmem:[%s13509_s6 + $0x80] sm:$0xff]  ;;  %v8395_v13 = vpack.i.bf16 %v6239_v32, %v6229_v63  ;;  %6675 = vmatprep.subr.mxu1 %v13558_v61  ;;  %v6241_v44 = vld [vmem:[#allocation3 + $0xd0] sm:$0xff] }
 0x56d   :  { %6207 = vst.msk [vmem:[#allocation3 + $0x158] sm:$0xff] %vm3997_vm4, %v6158_v33  ;;  %6208 = vst.msk [vmem:[#allocation3 + $0x160] sm:$0xff] %vm3997_vm4, %v6159_v29  ;;  %6676 = vmatpush2.msra.mxu1 %v6585_v36  ;;  %v6230_v1 = vld [vmem:[#allocation3 + $0x68] sm:$0xff]  ;;  %v8405_v40 = vpack.i.bf16 %v6241_v44, %v6231_v58  ;;  %v13070_v6 = vld [vmem:[#allocation3 + $0xa0] sm:$0xff] }
 0x56e   :  { %6209 = vst.msk [vmem:[#allocation3 + $0x168] sm:$0xff] %vm3997_vm4, %v6160_v30  ;;  %6210 = vst.msk [vmem:[#allocation3 + $0x170] sm:$0xff] %vm3997_vm4, %v6161_v14  ;;  %8376 = vrot.lane.b32.xlu1 %v8375_v55, %s8589_s25  ;;  %v6240_v50 = vld [vmem:[#allocation3 + $0xc8] sm:$0xff]  ;;  %v13077_v34 = vld [vmem:[#allocation3 + $0xb0] sm:$0xff] }
 0x56f   :  { %6211 = vst.msk [vmem:[#allocation3 + $0x180] sm:$0xff] %vm3997_vm4, %v6162_v16  ;;  %6212 = vst.msk [vmem:[#allocation3 + $0x188] sm:$0xff] %vm3997_vm4, %v6163_v17  ;;  %8371 = vrot.lane.b32.xlu0 %v8370_v49, %s8590_s1  ;;  %v8400_v24 = vpack.i.bf16 %v6240_v50, %v6230_v1  ;;  %v6237_v42 = vld [vmem:[#allocation3 + $0xa8] sm:$0xff]  ;;  %v13072_v26 = vld [vmem:[#allocation3 + $0x100] sm:$0xff]  ;;  %v8425_v53 = vpack.i.bf16 %v13077_v34, %v13070_v6 }
 0x570   :  { %6213 = vst.msk [vmem:[#allocation3 + $0x190] sm:$0xff] %vm3997_vm4, %v6164_v8  ;;  %6214 = vst.msk [vmem:[#allocation3 + $0x198] sm:$0xff] %vm3997_vm4, %v6165_v48  ;;  %v6247_v27 = vld [vmem:[#allocation3 + $0x108] sm:$0xff]  ;;  %v8410_v45 = vpack.i.bf16 %v13072_v26, %v13070_v6  ;;  %v8420_v31 = vpack.i.bf16 %v6237_v42, %v6235_v21  ;;  %v6242_v52 = vld [vmem:[#allocation3 + $0xd8] sm:$0xff] }
 0x571   :  { %6215 = vst.msk [vmem:[#allocation3 + $0x1a0] sm:$0xff] %vm3997_vm4, %v6166_v51  ;;  %6216 = vst.msk [vmem:[#allocation3 + $0x1a8] sm:$0xff] %vm3997_vm4, %v6167_v19  ;;  %v8415_v12 = vpack.i.bf16 %v6247_v27, %v6237_v42  ;;  %v6244_v57 = vld [vmem:[#allocation3 + $0xe8] sm:$0xff]  ;;  %v6243_v9 = vld [vmem:[#allocation3 + $0xe0] sm:$0xff] }
 0x572   :  { %8386 = vrot.lane.b32.xlu1 %v8385_v41, %s8581_s18  ;;  %v8435_v15 = vpack.i.bf16 %v6244_v57, %v6242_v52  ;;  %v8430_v20 = vpack.i.bf16 %v6243_v9, %v6241_v44  ;;  %v13085_v3 = vld [vmem:[#allocation3 + $0x110] sm:$0xff]  ;;  %v13087_v2 = vld [vmem:[#allocation3 + $0x120] sm:$0xff]  ;;  %v6249_v33 = vld [vmem:[#allocation3 + $0x118] sm:$0xff] }
 0x573   :  { %8381 = vrot.lane.b32.xlu0 %v8380_v11, %s8591_s27  ;;  %v6245_v28 = vld [vmem:[#allocation3 + $0xf0] sm:$0xff]  ;;  %v8445_v5 = vpack.i.bf16 %v13087_v2, %v13085_v3  ;;  %v6251_v29 = vld [vmem:[#allocation3 + $0x128] sm:$0xff]  ;;  %v8455_v22 = vpack.i.bf16 %v6249_v33, %v6247_v27  ;;  %v6253_v14 = vld [vmem:[#allocation3 + $0x140] sm:$0xff] }
 0x574   :  { %v8440_v7 = vpack.i.bf16 %v6245_v28, %v6243_v9  ;;  %v8450_v30 = vpack.i.bf16 %v6251_v29, %v6249_v33  ;;  %v6255_v16 = vld [vmem:[#allocation3 + $0x150] sm:$0xff]  ;;  %v6254_v0 = vld [vmem:[#allocation3 + $0x148] sm:$0xff]  ;;  %v6256_v8 = vld [vmem:[#allocation3 + $0x158] sm:$0xff] }
 0x575   :  { %v8465_v17 = vpack.i.bf16 %v6255_v16, %v6253_v14  ;;  %v8470_v48 = vpack.i.bf16 %v6256_v8, %v6254_v0  ;;  %v6257_v10 = vld [vmem:[#allocation3 + $0x160] sm:$0xff]  ;;  %v13111_v18 = vld [vmem:[#allocation3 + $0x130] sm:$0xff]  ;;  %v6258_v38 = vld [vmem:[#allocation3 + $0x168] sm:$0xff] }
 0x576   :  { %8396 = vrot.lane.b32.xlu1 %v8395_v13, %s8583_s26  ;;  %v6261_v51 = vld [vmem:[#allocation3 + $0x188] sm:$0xff]  ;;  %v6260_v19 = vld [vmem:[#allocation3 + $0x180] sm:$0xff]  ;;  %v6259_v46 = vld [vmem:[#allocation3 + $0x170] sm:$0xff] }
 0x577   :  { %8391 = vrot.lane.b32.xlu0 %v8390_v35, %s8585_s19  ;;  %v13103_v25 = vld [vmem:[#allocation3 + $0x190] sm:$0xff]  ;;  %v6263_v23 = vld [vmem:[#allocation3 + $0x198] sm:$0xff]  ;;  %v6218_v56 = vld [vmem:[#allocation3] sm:$0xff] }
 0x578   :  { %v6265_v54 = vld [vmem:[#allocation3 + $0x1a8] sm:$0xff]  ;;  %v13118_v62 = vld [vmem:[#allocation3 + $0x1a0] sm:$0xff] }
 0x57a   :  { %8406 = vrot.lane.b32.xlu1 %v8405_v40, %s8590_s1 }
 0x57b   :  { %8401 = vrot.lane.b32.xlu0 %v8400_v24, %s8586_s28 }
 0x57e   :  { %8416 = vrot.lane.b32.xlu1 %v8415_v12, %s8591_s27 }
 0x57f   :  { %8411 = vrot.lane.b32.xlu0 %v8410_v45, %s8589_s25 }
 0x582   :  { %8426 = vrot.lane.b32.xlu1 %v8425_v53, %s8585_s19 }
 0x583   :  { %8421 = vrot.lane.b32.xlu0 %v8420_v31, %s8581_s18 }
 0x586   :  { %8436 = vrot.lane.b32.xlu1 %v8435_v15, %s8586_s28 }
 0x587   :  { %8431 = vrot.lane.b32.xlu0 %v8430_v20, %s8583_s26 }
 0x58a   :  { %8446 = vrot.lane.b32.xlu1 %v8445_v5, %s8589_s25 }
 0x58b   :  { %8441 = vrot.lane.b32.xlu0 %v8440_v7, %s8590_s1 }
 0x58e   :  { %8456 = vrot.lane.b32.xlu1 %v8455_v22, %s8581_s18 }
 0x58f   :  { %8451 = vrot.lane.b32.xlu0 %v8450_v30, %s8591_s27 }
 0x592   :  { %8466 = vrot.lane.b32.xlu1 %v8465_v17, %s8583_s26 }
 0x593   :  { %8461 = vrot.lane.b32.xlu0 %v8445_v5, %s8585_s19 }
 0x596   :  { %6426 = vrot.lane.b32.xlu1 %v6255_v16, %s8590_s1 }
 0x597   :  { %8471 = vrot.lane.b32.xlu0 %v8470_v48, %s8586_s28 }
 0x59a   :  { %6488 = vrot.lane.b32.xlu1 %v6261_v51, %s8591_s27 }
 0x59b   :  { %6458 = vrot.lane.b32.xlu0 %v6260_v19, %s8589_s25 }
 0x59e   :  { %6460 = vrot.lane.b32.xlu1 %v13103_v25, %s8589_s25 }
 0x59f   :  { %6428 = vrot.lane.b32.xlu0 %v6257_v10, %s8590_s1 }
 0x5a2   :  { %6292 = vrot.lane.b32.xlu1 %v6251_v29, %s8581_s18 }
 0x5a3   :  { %6490 = vrot.lane.b32.xlu0 %v6263_v23, %s8591_s27 }
 0x5a6   :  { %6364 = vrot.lane.b32.xlu1 %v6257_v10, %s8583_s26 }
 0x5a7   :  { %6328 = vrot.lane.b32.xlu0 %v13111_v18, %s8585_s19 }
 0x5aa   :  { %6430 = vrot.lane.b32.xlu1 %v6259_v46, %s8590_s1 }
 0x5ab   :  { %6400 = vrot.lane.b32.xlu0 %v6258_v38, %s8586_s28 }
 0x5ae   :  { %6492 = vrot.lane.b32.xlu1 %v6265_v54, %s8591_s27 }
 0x5af   :  { %6462 = vrot.lane.b32.xlu0 %v13118_v62, %s8589_s25 }
 0x5d8   :  { %v8357_v63 = vpop.permute.xlu1 %8356 }
 0x5d9   :  { %v8352_v55 = vpop.permute.xlu0 %8351  ;;  %v8358_v37 = vunpack.i.l.bf16 %v8357_v63  ;;  %v8359_v43 = vunpack.i.h.bf16 %v8357_v63 }
 0x5da   :  { %v8353_v49 = vunpack.i.l.bf16 %v8352_v55  ;;  %v8354_v21 = vunpack.i.h.bf16 %v8352_v55 }
 0x5dc   :  { %v6503_v41 = vsel %vm3997_vm4, %v6218_v56, %v8353_v49  ;;  %v8367_v11 = vpop.permute.xlu1 %8366  ;;  %v6504_v35 = vsel %vm3997_vm4, %v13013_v47, %v8354_v21 }
 0x5dd   :  { %v8362_v32 = vpop.permute.xlu0 %8361  ;;  %v8368_v36 = vunpack.i.l.bf16 %v8367_v11  ;;  %v6512_v13 = vsel %vm4097_vm6, %v6503_v41, %v8358_v37  ;;  %v8369_v24 = vunpack.i.h.bf16 %v8367_v11  ;;  %v6513_v42 = vsel %vm4097_vm6, %v6504_v35, %v8359_v43 }
 0x5de   :  { %v8363_v4 = vunpack.i.l.bf16 %v8362_v32  ;;  %v8364_v58 = vunpack.i.h.bf16 %v8362_v32 }
 0x5e0   :  { %v6521_v44 = vsel %vm4197_vm8, %v6512_v13, %v8363_v4  ;;  %v8377_v1 = vpop.permute.xlu1 %8376  ;;  %v6522_v45 = vsel %vm4197_vm8, %v6513_v42, %v8364_v58 }
 0x5e1   :  { %v8372_v50 = vpop.permute.xlu0 %8371  ;;  %v8378_v27 = vunpack.i.l.bf16 %v8377_v1  ;;  %v6530_v12 = vsel %vm4297_vm10, %v6521_v44, %v8368_v36  ;;  %v8379_v9 = vunpack.i.h.bf16 %v8377_v1  ;;  %v6531_v15 = vsel %vm4297_vm10, %v6522_v45, %v8369_v24 }
 0x5e2   :  { %v8373_v40 = vunpack.i.l.bf16 %v8372_v50  ;;  %v8374_v53 = vunpack.i.h.bf16 %v8372_v50 }
 0x5e4   :  { %v6540_v31 = vsel %vm6539_vm1, %v6530_v12, %v8373_v40  ;;  %v8387_v52 = vpop.permute.xlu1 %8386  ;;  %v6541_v5 = vsel %vm6539_vm1, %v6531_v15, %v8374_v53 }
 0x5e5   :  { %v8382_v47 = vpop.permute.xlu0 %8381  ;;  %v8388_v20 = vunpack.i.l.bf16 %v8387_v52  ;;  %v6550_v28 = vsel %vm6549_vm2, %v6540_v31, %v8378_v27  ;;  %v8389_v22 = vunpack.i.h.bf16 %v8387_v52  ;;  %v6551_v8 = vsel %vm6549_vm2, %v6541_v5, %v8379_v9 }
 0x5e6   :  { %v8383_v57 = vunpack.i.l.bf16 %v8382_v47  ;;  %v8384_v7 = vunpack.i.h.bf16 %v8382_v47 }
 0x5e7   :  { %v6505_v17 = vsel %vm3997_vm4, %v13023_v60, %v8388_v20  ;;  %v6506_v10 = vsel %vm3997_vm4, %v13049_v59, %v8389_v22 }
 0x5e8   :  { %v6560_v33 = vsel %vm6559_vm5, %v6550_v28, %v8383_v57  ;;  %v8397_v29 = vpop.permute.xlu1 %8396  ;;  %v6561_v19 = vsel %vm6559_vm5, %v6551_v8, %v8384_v7 }
 0x5e9   :  { %v8392_v30 = vpop.permute.xlu0 %8391  ;;  %6678 = vmatmul.mubr.f32.vlgmr.msra.gmra.mxu1 %v6560_v33  ;;  %v8398_v0 = vunpack.i.l.bf16 %v8397_v29  ;;  %v8399_v23 = vunpack.i.h.bf16 %v8397_v29 }
 0x5ea   :  { %v8394_v14 = vunpack.i.h.bf16 %v8392_v30  ;;  %v8393_v16 = vunpack.i.l.bf16 %v8392_v30  ;;  %7442 = vmatprep.mubr.msk.f32.mxu1 %vm3997_vm4, %v13070_v6 }
 0x5ec   :  { %v6514_v48 = vsel %vm4097_vm6, %v6505_v17, %v8393_v16  ;;  %v8407_v51 = vpop.permute.xlu1 %8406  ;;  %v6515_v38 = vsel %vm4097_vm6, %v6506_v10, %v8394_v14 }
 0x5ed   :  { %v8402_v46 = vpop.permute.xlu0 %8401  ;;  %6683 = vmatmul.mubr.f32.gmra.mxu1 %v6561_v19  ;;  %v8408_v60 = vunpack.i.l.bf16 %v8407_v51  ;;  %v6523_v55 = vsel %vm4197_vm8, %v6514_v48, %v8398_v0  ;;  %v8409_v56 = vunpack.i.h.bf16 %v8407_v51  ;;  %v6524_v21 = vsel %vm4197_vm8, %v6515_v38, %v8399_v23 }
 0x5ee   :  { %v8404_v54 = vunpack.i.h.bf16 %v8402_v46  ;;  %v8403_v63 = vunpack.i.l.bf16 %v8402_v46  ;;  %7443 = vmatprep.mubr.msk.f32.mxu1 %vm3997_vm4, %v13077_v34 }
 0x5f0   :  { %v6532_v49 = vsel %vm4297_vm10, %v6523_v55, %v8403_v63  ;;  %v8417_v37 = vpop.permute.xlu1 %8416  ;;  %v6533_v11 = vsel %vm4297_vm10, %v6524_v21, %v8404_v54 }
 0x5f1   :  { %v8418_v59 = vunpack.i.l.bf16 %v8417_v37  ;;  %v8412_v41 = vpop.permute.xlu0 %8411  ;;  %v6542_v43 = vsel %vm6539_vm1, %v6532_v49, %v8408_v60  ;;  %v8419_v13 = vunpack.i.h.bf16 %v8417_v37  ;;  %v6543_v44 = vsel %vm6539_vm1, %v6533_v11, %v8409_v56 }
 0x5f2   :  { %v8414_v32 = vunpack.i.h.bf16 %v8412_v41  ;;  %v8413_v4 = vunpack.i.l.bf16 %v8412_v41 }
 0x5f4   :  { %v8427_v36 = vpop.permute.xlu1 %8426  ;;  %v6552_v34 = vsel %vm6549_vm2, %v6542_v43, %v8413_v4  ;;  %v6553_v50 = vsel %vm6549_vm2, %v6543_v44, %v8414_v32 }
 0x5f5   :  { %v8422_v35 = vpop.permute.xlu0 %8421  ;;  %v6562_v58 = vsel %vm6559_vm5, %v6552_v34, %v8418_v59  ;;  %v8428_v40 = vunpack.i.l.bf16 %v8427_v36  ;;  %v6563_v45 = vsel %vm6559_vm5, %v6553_v50, %v8419_v13  ;;  %v8429_v31 = vunpack.i.h.bf16 %v8427_v36 }
 0x5f6   :  { %v8423_v1 = vunpack.i.l.bf16 %v8422_v35  ;;  %6688 = vmatmul.mubr.f32.gmra.mxu1 %v6562_v58  ;;  %v8424_v24 = vunpack.i.h.bf16 %v8422_v35 }
 0x5f7   :  { %7444 = vmatprep.mubr.msk.f32.mxu1 %vm3997_vm4, %v13085_v3 }
 0x5f8   :  { %v6507_v42 = vsel %vm3997_vm4, %v13043_v39, %v8423_v1  ;;  %v8437_v27 = vpop.permute.xlu1 %8436  ;;  %v6508_v57 = vsel %vm3997_vm4, %v13070_v6, %v8424_v24 }
 0x5f9   :  { %v8432_v12 = vpop.permute.xlu0 %8431  ;;  %v8438_v52 = vunpack.i.l.bf16 %v8437_v27  ;;  %v6516_v47 = vsel %vm4097_vm6, %v6507_v42, %v8428_v40  ;;  %v8439_v5 = vunpack.i.h.bf16 %v8437_v27  ;;  %v6517_v7 = vsel %vm4097_vm6, %v6508_v57, %v8429_v31 }
 0x5fa   :  { %v8433_v53 = vunpack.i.l.bf16 %v8432_v12  ;;  %6693 = vmatmul.mubr.f32.gmra.mxu1 %v6563_v45  ;;  %v8434_v9 = vunpack.i.h.bf16 %v8432_v12  ;;  %v6266_v45 = vld [vmem:[#allocation3 + $0x1b0] sm:$0xff] }
 0x5fb   :  { %7445 = vmatprep.mubr.msk.f32.mxu1 %vm3997_vm4, %v13087_v2 }
 0x5fc   :  { %v6525_v15 = vsel %vm4197_vm8, %v6516_v47, %v8433_v53  ;;  %v8447_v39 = vpop.permute.xlu1 %8446  ;;  %v6526_v22 = vsel %vm4197_vm8, %v6517_v7, %v8434_v9 }
 0x5fd   :  { %v8442_v20 = vpop.permute.xlu0 %8441  ;;  %v8448_v33 = vunpack.i.l.bf16 %v8447_v39  ;;  %v6534_v29 = vsel %vm4297_vm10, %v6525_v15, %v8438_v52  ;;  %v8449_v0 = vunpack.i.h.bf16 %v8447_v39  ;;  %v6535_v8 = vsel %vm4297_vm10, %v6526_v22, %v8439_v5  ;;  %v6776_v22 = vld [vmem:[%s13511_s8 + $0x70] sm:$0xff] }
 0x5fe   :  { %v8443_v28 = vunpack.i.l.bf16 %v8442_v20  ;;  %v8444_v30 = vunpack.i.h.bf16 %v8442_v20 }
 0x600   :  { %v6544_v14 = vsel %vm6539_vm1, %v6534_v29, %v8443_v28  ;;  %v8457_v16 = vpop.permute.xlu1 %8456  ;;  %v6545_v19 = vsel %vm6539_vm1, %v6535_v8, %v8444_v30  ;;  %v6792_v29 = vld [vmem:[%s13511_s8 + $0xf0] sm:$0xff]  ;;  %v6791_v30 = vld [vmem:[%s13511_s8 + $0xe8] sm:$0xff] }
 0x601   :  { %v8452_v17 = vpop.permute.xlu0 %8451  ;;  %v8458_v48 = vunpack.i.l.bf16 %v8457_v16  ;;  %v6554_v51 = vsel %vm6549_vm2, %v6544_v14, %v8448_v33  ;;  %v6555_v55 = vsel %vm6549_vm2, %v6545_v19, %v8449_v0  ;;  %v8459_v49 = vunpack.i.h.bf16 %v8457_v16  ;;  %v6777_v33 = vld [vmem:[%s13511_s8 + $0x78] sm:$0xff]  ;;  %v6775_v14 = vld [vmem:[%s13511_s8 + $0x68] sm:$0xff]  ;;  %v6790_v16 = vld [vmem:[%s13511_s8 + $0xe0] sm:$0xff] }
 0x602   :  { %v8453_v6 = vunpack.i.l.bf16 %v8452_v17  ;;  %v8454_v10 = vunpack.i.h.bf16 %v8452_v17  ;;  %v6774_v17 = vld [vmem:[%s13511_s8 + $0x60] sm:$0xff]  ;;  %v6773_v0 = vld [vmem:[%s13511_s8 + $0x58] sm:$0xff]  ;;  %v6788_v8 = vld [vmem:[%s13511_s8 + $0xd0] sm:$0xff] }
 0x603   :  { %v6509_v63 = vsel %vm3997_vm4, %v13072_v26, %v8458_v48  ;;  %v6510_v26 = vsel %vm3997_vm4, %v13085_v3, %v8459_v49  ;;  %v6772_v48 = vld [vmem:[%s13511_s8 + $0x50] sm:$0xff]  ;;  %v6771_v19 = vld [vmem:[%s13511_s8 + $0x48] sm:$0xff] }
 0x604   :  { %v8467_v23 = vpop.permute.xlu1 %8466  ;;  %v6564_v46 = vsel %vm6559_vm5, %v6554_v51, %v8453_v6  ;;  %v6565_v21 = vsel %vm6559_vm5, %v6555_v55, %v8454_v10  ;;  %v6789_v6 = vld [vmem:[%s13511_s8 + $0xd8] sm:$0xff]  ;;  %v6787_v51 = vld [vmem:[%s13511_s8 + $0xc8] sm:$0xff]  ;;  %v6786_v10 = vld [vmem:[%s13511_s8 + $0xc0] sm:$0xff] }
 0x605   :  { %v8462_v38 = vpop.permute.xlu0 %8461  ;;  %6698 = vmatmul.mubr.f32.gmra.mxu1 %v6564_v46  ;;  %v8468_v60 = vunpack.i.l.bf16 %v8467_v23  ;;  %v8469_v32 = vunpack.i.h.bf16 %v8467_v23  ;;  %v6770_v23 = vld [vmem:[%s13511_s8 + $0x40] sm:$0xff]  ;;  %v6785_v46 = vld [vmem:[%s13511_s8 + $0xb8] sm:$0xff] }
 0x606   :  { %v8463_v54 = vunpack.i.l.bf16 %v8462_v38  ;;  %7446 = vmatprep.mubr.msk.f32.mxu1 %vm3997_vm4, %v13111_v18  ;;  %v8464_v59 = vunpack.i.h.bf16 %v8462_v38  ;;  %v13262_v38 = vld [vmem:[%s13510_s7] ss:$0 sm:$0xff] }
 0x608   :  { %v6518_v37 = vsel %vm4097_vm6, %v6509_v63, %v8463_v54  ;;  %v6427_v56 = vpop.permute.xlu1 %6426  ;;  %v6519_v36 = vsel %vm4097_vm6, %v6510_v26, %v8464_v59  ;;  %v6768_v26 = vld [vmem:[%s13511_s8 + $0x30] sm:$0xff] }
 0x609   :  { %v8472_v41 = vpop.permute.xlu0 %8471  ;;  %6703 = vmatmul.mubr.f32.gmra.mxu1 %v6565_v21  ;;  %v6527_v18 = vsel %vm4197_vm8, %v6518_v37, %v8468_v60  ;;  %v6528_v1 = vsel %vm4197_vm8, %v6519_v36, %v8469_v32  ;;  %v6767_v36 = vld [vmem:[%s13511_s8 + $0x28] sm:$0xff] }
 0x60a   :  { %v8473_v11 = vunpack.i.l.bf16 %v8472_v41  ;;  %7447 = vmatprep.mubr.msk.f32.mxu1 %vm3997_vm4, %v13103_v25  ;;  %v8474_v34 = vunpack.i.h.bf16 %v8472_v41 }
 0x60c   :  { %v6489_v4 = vpop.permute.xlu1 %6488  ;;  %v6536_v43 = vsel %vm4297_vm10, %v6527_v18, %v8473_v11  ;;  %v6537_v3 = vsel %vm4297_vm10, %v6528_v1, %v8474_v34  ;;  %v6769_v11 = vld [vmem:[%s13511_s8 + $0x38] sm:$0xff]  ;;  %v6784_v18 = vld [vmem:[%s13511_s8 + $0xb0] sm:$0xff] }
 0x60d   :  { %v6459_v13 = vpop.permute.xlu0 %6458  ;;  %v6546_v35 = vsel %vm6539_vm1, %v6536_v43, %v6427_v56 }
 0x60e   :  { %v6556_v58 = vsel %vm6549_vm2, %v6546_v35, %v6459_v13  ;;  %v6782_v13 = vld [vmem:[%s13511_s8 + $0xa0] sm:$0xff] }
 0x60f   :  { %v6566_v44 = vsel %vm6559_vm5, %v6556_v58, %v6489_v4  ;;  %v6783_v4 = vld [vmem:[%s13511_s8 + $0xa8] sm:$0xff] }
 0x610   :  { %6708 = vmatmul.mubr.f32.gmra.mxu1 %v6566_v44  ;;  %v6461_v25 = vpop.permute.xlu1 %6460 }
 0x611   :  { %v6429_v50 = vpop.permute.xlu0 %6428  ;;  %7448 = vmatprep.mubr.msk.f32.mxu1 %vm3997_vm4, %v13118_v62 }
 0x612   :  { %v6547_v40 = vsel %vm6539_vm1, %v6537_v3, %v6429_v50  ;;  %v6766_v50 = vld [vmem:[%s13511_s8 + $0x20] sm:$0xff]  ;;  %v6781_v3 = vld [vmem:[%s13511_s8 + $0x98] sm:$0xff] }
 0x613   :  { %v6557_v27 = vsel %vm6549_vm2, %v6547_v40, %v6461_v25  ;;  %v6765_v40 = vld [vmem:[%s13511_s8 + $0x18] sm:$0xff] }
 0x614   :  { %v6293_v24 = vpop.permute.xlu1 %6292 }
 0x615   :  { %v6491_v42 = vpop.permute.xlu0 %6490  ;;  %v6511_v31 = vsel %vm3997_vm4, %v13087_v2, %v6293_v24  ;;  %v6793_v2 = vld [vmem:[%s13511_s8 + $0xf8] sm:$0xff]  ;;  %v6780_v24 = vld [vmem:[%s13511_s8 + $0x90] sm:$0xff] }
 0x616   :  { %v6567_v12 = vsel %vm6559_vm5, %v6557_v27, %v6491_v42  ;;  %7711 = vmatprep.subr.mxu1 %v6793_v2  ;;  %v6764_v27 = vld [vmem:[%s13511_s8 + $0x10] sm:$0xff] }
 0x617   :  { %6713 = vmatmul.mubr.f32.gmra.mxu1 %v6567_v12 }
 0x618   :  { %7449 = vmatprep.mubr.msk.f32.mxu1 %vm3997_vm4, %v6266_v45  ;;  %v6365_v53 = vpop.permute.xlu1 %6364  ;;  %7712 = vmatpush3.msra.mxu1 %v6777_v33  ;;  %v6779_v45 = vld [vmem:[%s13511_s8 + $0x88] sm:$0xff] }
 0x619   :  { %v6329_v52 = vpop.permute.xlu0 %6328  ;;  %7713 = vmatprep.subr.mxu1 %v6792_v29 }
 0x61a   :  { %v6520_v47 = vsel %vm4097_vm6, %v6511_v31, %v6329_v52  ;;  %7714 = vmatpush3.msra.mxu1 %v6776_v22 }
 0x61b   :  { %v6529_v57 = vsel %vm4197_vm8, %v6520_v47, %v6365_v53  ;;  %7715 = vmatprep.subr.mxu1 %v6791_v30 }
 0x61c   :  { %v6431_v62 = vpop.permute.xlu1 %6430  ;;  %7716 = vmatpush3.msra.mxu1 %v6775_v14 }
 0x61d   :  { %v6401_v9 = vpop.permute.xlu0 %6400  ;;  %7717 = vmatprep.subr.mxu1 %v6790_v16 }
 0x61e   :  { %v6538_v15 = vsel %vm4297_vm10, %v6529_v57, %v6401_v9  ;;  %7718 = vmatpush3.msra.mxu1 %v6774_v17  ;;  %v6763_v57 = vld [vmem:[%s13511_s8 + $0x8] sm:$0xff]  ;;  %v6778_v9 = vld [vmem:[%s13511_s8 + $0x80] sm:$0xff] }
 0x61f   :  { %v6548_v20 = vsel %vm6539_vm1, %v6538_v15, %v6431_v62  ;;  %7719 = vmatprep.subr.mxu1 %v6789_v6  ;;  %v6762_v15 = vld [vmem:[%s13511_s8] sm:$0xff] }
 0x620   :  { %v6493_v39 = vpop.permute.xlu1 %6492  ;;  %7720 = vmatpush3.msra.mxu1 %v6773_v0 }
 0x621   :  { %v6463_v28 = vpop.permute.xlu0 %6462  ;;  %7721 = vmatprep.subr.mxu1 %v6788_v8 }
 0x622   :  { %v6558_v5 = vsel %vm6549_vm2, %v6548_v20, %v6463_v28  ;;  %7722 = vmatpush3.msra.mxu1 %v6772_v48 }
 0x623   :  { %v6568_v7 = vsel %vm6559_vm5, %v6558_v5, %v6493_v39  ;;  %7723 = vmatprep.subr.mxu1 %v6787_v51 }
 0x624   :  { %6718 = vmatmul.mubr.f32.gmra.mxu1 %v6568_v7 }
 0x625   :  { %7724 = vmatpush3.msra.mxu1 %v6771_v19 }
 0x626   :  { %7725 = vmatprep.subr.mxu1 %v6786_v10 }
 0x627   :  { %7726 = vmatpush3.msra.mxu1 %v6770_v23 }
 0x628   :  { %7727 = vmatprep.subr.mxu1 %v6785_v46 }
 0x629   :  { %7728 = vmatpush3.msra.mxu1 %v6769_v11  ;;  %v6964_v11 = vld [vmem:[%s13513_s10 + $0x78] sm:$0xff] }
 0x62a   :  { %7729 = vmatprep.subr.mxu1 %v6784_v18  ;;  %v6963_v18 = vld [vmem:[%s13513_s10 + $0x70] sm:$0xff] }
 0x62b   :  { %7730 = vmatpush3.msra.mxu1 %v6768_v26  ;;  %v6962_v26 = vld [vmem:[%s13513_s10 + $0x68] sm:$0xff] }
 0x62c   :  { %7731 = vmatprep.subr.mxu1 %v6783_v4  ;;  %v6960_v4 = vld [vmem:[%s13513_s10 + $0x58] sm:$0xff] }
 0x62d   :  { %7732 = vmatpush3.msra.mxu1 %v6767_v36  ;;  %v6958_v36 = vld [vmem:[%s13513_s10 + $0x48] sm:$0xff] }
 0x62e   :  { %7733 = vmatprep.subr.mxu1 %v6782_v13  ;;  %v6956_v13 = vld [vmem:[%s13513_s10 + $0x38] sm:$0xff] }
 0x62f   :  { %7734 = vmatpush3.msra.mxu1 %v6766_v50  ;;  %v6950_v50 = vld [vmem:[%s13513_s10 + $0x8] sm:$0xff] }
 0x630   :  { %7735 = vmatprep.subr.mxu1 %v6781_v3  ;;  %v6949_v3 = vld [vmem:[%s13513_s10] sm:$0xff] }
 0x631   :  { %7736 = vmatpush3.msra.mxu1 %v6765_v40 }
 0x632   :  { %7737 = vmatprep.subr.mxu1 %v6780_v24 }
 0x633   :  { %7738 = vmatpush3.msra.mxu1 %v6764_v27 }
 0x634   :  { %7739 = vmatprep.subr.mxu1 %v6779_v45 }
 0x635   :  { %7740 = vmatpush3.msra.mxu1 %v6763_v57  ;;  %v7055_v57 = vld [vmem:[%s13515_s12 + $0x68] sm:$0xff] }
 0x636   :  { %7741 = vmatprep.subr.mxu1 %v6778_v9  ;;  %v7054_v9 = vld [vmem:[%s13515_s12 + $0x60] sm:$0xff] }
 0x637   :  { %7742 = vmatpush3.msra.mxu1 %v6762_v15  ;;  %v7053_v15 = vld [vmem:[%s13515_s12 + $0x58] sm:$0xff] }
 0x638   :  { %8248 = vmatprep.subr.mxu1 %v13558_v61 }
 0x6a9   :  { %v6679_v54 = vpop.f32.mrf.mxu1 }
 0x6aa   :  { %v13265_v63 = vadd.f32 %v13262_v38, %v6679_v54 }
 0x6ab   :  { %v6681_v60 = vpop.f32.mrf.mxu1 }
 0x6ac   :  { %v6723_v51 = vmax.f32 %v13265_v63, 0.0  ;;  %v6797_v63 = vld [vmem:[%s13511_s8 + $0x118] sm:$0xff] }
 0x6ad   :  { %v6684_v55 = vpop.f32.mrf.mxu1 }
 0x6ae   :  { %v6685_v34 = vadd.f32 %v13262_v38, %v6684_v55 }
 0x6af   :  { %v6686_v49 = vpop.f32.mrf.mxu1 }
 0x6b0   :  { %v6724_v25 = vmax.f32 %v6685_v34, 0.0  ;;  %v6957_v34 = vld [vmem:[%s13513_s10 + $0x40] sm:$0xff] }
 0x6b6   :  { %v6689_v37 = vpop.f32.mrf.mxu1 }
 0x6b7   :  { %v6690_v12 = vadd.f32 %v13262_v38, %v6689_v37 }
 0x6b8   :  { %v6691_v56 = vpop.f32.mrf.mxu1 }
 0x6b9   :  { %v6725_v47 = vmax.f32 %v6690_v12, 0.0  ;;  %v6796_v56 = vld [vmem:[%s13511_s8 + $0x110] sm:$0xff] }
 0x6ba   :  { %v6694_v21 = vpop.f32.mrf.mxu1 }
 0x6bb   :  { %v6695_v20 = vadd.f32 %v13262_v38, %v6694_v21  ;;  %v6795_v21 = vld [vmem:[%s13511_s8 + $0x108] sm:$0xff] }
 0x6bc   :  { %v6696_v59 = vpop.f32.mrf.mxu1 }
 0x6bd   :  { %v6726_v2 = vmax.f32 %v6695_v20, 0.0  ;;  %v6794_v59 = vld [vmem:[%s13511_s8 + $0x100] sm:$0xff]  ;;  %v7051_v20 = vld [vmem:[%s13515_s12 + $0x48] sm:$0xff] }
 0x6c5   :  { %v6699_v41 = vpop.f32.mrf.mxu1 }
 0x6c6   :  { %v13277_v32 = vadd.f32 %v13262_v38, %v6699_v41 }
 0x6c7   :  { %v6701_v43 = vpop.f32.mrf.mxu1 }
 0x6c8   :  { %v6727_v19 = vmax.f32 %v13277_v32, 0.0  ;;  %v6961_v32 = vld [vmem:[%s13513_s10 + $0x60] sm:$0xff]  ;;  %v6959_v43 = vld [vmem:[%s13513_s10 + $0x50] sm:$0xff] }
 0x6c9   :  { %v6704_v35 = vpop.f32.mrf.mxu1 }
 0x6ca   :  { %v6705_v58 = vadd.f32 %v13262_v38, %v6704_v35  ;;  %v6955_v35 = vld [vmem:[%s13513_s10 + $0x30] sm:$0xff] }
 0x6cb   :  { %v6706_v44 = vpop.f32.mrf.mxu1 }
 0x6cc   :  { %v6728_v1 = vmax.f32 %v6705_v58, 0.0  ;;  %v6954_v58 = vld [vmem:[%s13513_s10 + $0x28] sm:$0xff]  ;;  %v6953_v44 = vld [vmem:[%s13513_s10 + $0x20] sm:$0xff] }
 0x6ce   :  { %v8475_v42 = vpack.i.bf16 %v6724_v25, %v6728_v1  ;;  %v6952_v25 = vld [vmem:[%s13513_s10 + $0x18] sm:$0xff]  ;;  %v6951_v1 = vld [vmem:[%s13513_s10 + $0x10] sm:$0xff] }
 0x6d0   :  { %v6709_v53 = vpop.f32.mrf.mxu1  ;;  %8476 = vrot.lane.b32.xlu0 %v8475_v42, %s8585_s19  ;;  %v7450_v42 = vld [vmem:[%s13512_s9] ss:$0 sm:$0xff] }
 0x6d1   :  { %v6710_v31 = vadd.f32 %v13262_v38, %v6709_v53 }
 0x6d2   :  { %v6711_v52 = vpop.f32.mrf.mxu1 }
 0x6d3   :  { %v6729_v62 = vmax.f32 %v6710_v31, 0.0 }
 0x6d5   :  { %v8480_v39 = vpack.i.bf16 %v6725_v47, %v6729_v62  ;;  %v7057_v47 = vld [vmem:[%s13515_s12 + $0x78] sm:$0xff]  ;;  %v7056_v62 = vld [vmem:[%s13515_s12 + $0x70] sm:$0xff] }
 0x6d7   :  { %v6714_v28 = vpop.f32.mrf.mxu1  ;;  %8481 = vrot.lane.b32.xlu1 %v8480_v39, %s8586_s28  ;;  %v7052_v39 = vld [vmem:[%s13515_s12 + $0x50] sm:$0xff] }
 0x6d8   :  { %v6715_v5 = vadd.f32 %v13262_v38, %v6714_v28  ;;  %v7050_v28 = vld [vmem:[%s13515_s12 + $0x40] sm:$0xff] }
 0x6d9   :  { %v6716_v7 = vpop.f32.mrf.mxu1 }
 0x6da   :  { %v6730_v33 = vmax.f32 %v6715_v5, 0.0  ;;  %v7049_v5 = vld [vmem:[%s13515_s12 + $0x38] sm:$0xff]  ;;  %v7048_v7 = vld [vmem:[%s13515_s12 + $0x30] sm:$0xff] }
 0x6dc   :  { %v8485_v29 = vpack.i.bf16 %v6726_v2, %v6730_v33  ;;  %v7047_v2 = vld [vmem:[%s13515_s12 + $0x28] sm:$0xff]  ;;  %v7046_v33 = vld [vmem:[%s13515_s12 + $0x20] sm:$0xff] }
 0x6de   :  { %8486 = vrot.lane.b32.xlu0 %v8485_v29, %s8589_s25  ;;  %v7045_v29 = vld [vmem:[%s13515_s12 + $0x18] sm:$0xff] }
 0x6e4   :  { %v6719_v22 = vpop.f32.mrf.mxu1 }
 0x6e5   :  { %v6720_v30 = vadd.f32 %v13262_v38, %v6719_v22  ;;  %v7044_v22 = vld [vmem:[%s13515_s12 + $0x10] sm:$0xff] }
 0x6e6   :  { %v6721_v14 = vpop.f32.mrf.mxu1 }
 0x6e7   :  { %v6731_v41 = vmax.f32 %v6720_v30, 0.0  ;;  %v7043_v30 = vld [vmem:[%s13515_s12 + $0x8] sm:$0xff]  ;;  %v7042_v14 = vld [vmem:[%s13515_s12] sm:$0xff] }
 0x742   :  { %v8477_v16 = vpop.permute.xlu0 %8476 }
 0x743   :  { %v8479_v6 = vunpack.i.h.bf16 %v8477_v16  ;;  %v8478_v0 = vunpack.i.l.bf16 %v8477_v16 }
 0x745   :  { %v6756_v23 = vsel %vm4097_vm6, %v6723_v51, %v8479_v6  ;;  %v6759_v60 = vsel %vm4097_vm6, %v6727_v19, %v8478_v0  ;;  %v7453_v6 = vld [vmem:[%s13516_s13] ss:$0 sm:$0xff] }
 0x746   :  { %v7452_v19 = vld [vmem:[%s13514_s11] ss:$0 sm:$0xff]  ;;  %s8592_s11 = smov [#allocation4]  }
 0x747   :  { %s7169_s13 = sshll.u32 %s8592_s11, 4  ;;  %s7170_s13 = int_to_ptr.vmem [resolvable:$true] %s7169_s13 }
 0x748   :  { %p8540_p1 = scmp.lt.s32.totalorder %s7170_s13, %s7170_s13 }
 0x749   :  { %v8482_v17 = vpop.permute.xlu1 %8481 }
 0x74a   :  { %v8484_v8 = vunpack.i.h.bf16 %v8482_v17  ;;  %v8483_v48 = vunpack.i.l.bf16 %v8482_v17 }
 0x74c   :  { %v6757_v38 = vsel %vm4297_vm10, %v6756_v23, %v8484_v8  ;;  %v6760_v55 = vsel %vm4297_vm10, %v6759_v60, %v8483_v48 }
 0x750   :  { %v8487_v10 = vpop.permute.xlu0 %8486 }
 0x751   :  { %v8489_v46 = vunpack.i.h.bf16 %v8487_v10  ;;  %v8488_v54 = vunpack.i.l.bf16 %v8487_v10 }
 0x753   :  { %v6758_v49 = vsel %vm6549_vm2, %v6757_v38, %v8489_v46  ;;  %v6761_v37 = vsel %vm6549_vm2, %v6760_v55, %v8488_v54 }
 0x754   :  { %6872 = vmatprep.mubr.f32.mxu1 %v6761_v37  ;;  %v13691_v37 = vld [vmem:[#allocation25_spill] sm:$0xff] }
 0x755   :  { %6873 = vmatmul.mubr.f32.vlgmr.msra.gmra.mxu1 %v6758_v49  ;;  %vm7147_vm4 = vcmp.lt.s32.totalorder %v13691_v37, 2 }
 0x756   :  { %8249 = vmatpush3.msra.mxu1 %v6797_v63  ;;  %8256 = vmatprep.mubr.msk.f32.mxu1 %vm8587_vm3, %v13558_v61 }
 0x757   :  { %8250 = vmatprep.subr.mxu1 %v13558_v61 }
 0x758   :  { %8251 = vmatpush3.msra.mxu1 %v6796_v56 }
 0x759   :  { %8252 = vmatprep.subr.mxu1 %v13558_v61 }
 0x75a   :  { %8253 = vmatpush3.msra.mxu1 %v6795_v21 }
 0x75b   :  { %8254 = vmatprep.subr.mxu1 %v13558_v61 }
 0x75c   :  { %8255 = vmatpush3.msra.mxu1 %v6794_v59 }
 0x75d   :  { %8257 = vmatmul.mubr.msk.f32.vlgmr.msra.gmra.mxu1 %vm4097_vm6, %v6731_v41  ;;  %8259 = vmatprep.subr.mxu1 %v13558_v61  ;;  %vm7149_vm6 = vcmask 31744  }
 0x75e   :  { %8260 = vmatpush3.msra.mxu1 %v6964_v11  ;;  %8291 = vmatprep.mubr.msk.f32.mxu1 %vm8587_vm3, %v13558_v61 }
 0x75f   :  { %8261 = vmatprep.subr.mxu1 %v13558_v61 }
 0x760   :  { %8262 = vmatpush3.msra.mxu1 %v6963_v18 }
 0x761   :  { %8263 = vmatprep.subr.mxu1 %v13558_v61 }
 0x762   :  { %8264 = vmatpush3.msra.mxu1 %v6962_v26 }
 0x763   :  { %8265 = vmatprep.subr.mxu1 %v13558_v61 }
 0x764   :  { %8266 = vmatpush3.msra.mxu1 %v6961_v32 }
 0x765   :  { %8267 = vmatprep.subr.mxu1 %v13558_v61 }
 0x766   :  { %8268 = vmatpush3.msra.mxu1 %v6960_v4 }
 0x767   :  { %8269 = vmatprep.subr.mxu1 %v13558_v61 }
 0x768   :  { %8270 = vmatpush3.msra.mxu1 %v6959_v43 }
 0x769   :  { %8271 = vmatprep.subr.mxu1 %v13558_v61 }
 0x76a   :  { %8272 = vmatpush3.msra.mxu1 %v6958_v36 }
 0x76b   :  { %8273 = vmatprep.subr.mxu1 %v13558_v61 }
 0x76c   :  { %8274 = vmatpush3.msra.mxu1 %v6957_v34 }
 0x76d   :  { %8275 = vmatprep.subr.mxu1 %v13558_v61 }
 0x76e   :  { %8276 = vmatpush3.msra.mxu1 %v6956_v13 }
 0x76f   :  { %8277 = vmatprep.subr.mxu1 %v13558_v61 }
 0x770   :  { %8278 = vmatpush3.msra.mxu1 %v6955_v35 }
 0x771   :  { %8279 = vmatprep.subr.mxu1 %v13558_v61 }
 0x772   :  { %8280 = vmatpush3.msra.mxu1 %v6954_v58 }
 0x773   :  { %8281 = vmatprep.subr.mxu1 %v13558_v61 }
 0x774   :  { %8282 = vmatpush3.msra.mxu1 %v6953_v44 }
 0x775   :  { %8283 = vmatprep.subr.mxu1 %v13558_v61 }
 0x776   :  { %8284 = vmatpush3.msra.mxu1 %v6952_v25 }
 0x777   :  { %8285 = vmatprep.subr.mxu1 %v13558_v61 }
 0x778   :  { %8286 = vmatpush3.msra.mxu1 %v6951_v1 }
 0x779   :  { %8287 = vmatprep.subr.mxu1 %v13558_v61 }
 0x77a   :  { %8288 = vmatpush3.msra.mxu1 %v6950_v50 }
 0x77b   :  { %8289 = vmatprep.subr.mxu1 %v13558_v61 }
 0x77c   :  { %8290 = vmatpush3.msra.mxu1 %v6949_v3 }
 0x77d   :  { %8294 = vmatprep.subr.mxu1 %v13558_v61 }
 0x815   :  { %v7743_v40 = vpop.f32.mrf.mxu1 }
 0x817   :  { %v7744_v24 = vpop.f32.mrf.mxu1 }
 0x818   :  { %v7745_v27 = vadd.f32 %v7744_v24, %v7743_v40 }
 0x81a   :  { %v6875_v12 = vadd.f32 %v7745_v27, %v7450_v42 }
 0x81d   :  { %v6944_v45 = vpop.f32.mrf.mxu1 }
 0x81e   :  { %v6945_v53 = vadd.f32 %v6944_v45, %v6875_v12 }
 0x81f   :  { %v8258_v31 = vpop.f32.mrf.mxu1 }
 0x820   :  { %v6948_v52 = vmax.f32 %v6945_v53, 0.0 }
 0x822   :  { %8292 = vmatmul.mubr.f32.vlgmr.msra.gmra.mxu1 %v6948_v52 }
 0x823   :  { %8295 = vmatpush3.msra.mxu1 %v7057_v47  ;;  %8326 = vmatprep.mubr.msk.f32.mxu1 %vm8587_vm3, %v13558_v61  ;;  %vm7140_vm3 = vcmask 25600  }
 0x824   :  { %8296 = vmatprep.subr.mxu1 %v13558_v61 }
 0x825   :  { %8297 = vmatpush3.msra.mxu1 %v7056_v62 }
 0x826   :  { %8298 = vmatprep.subr.mxu1 %v13558_v61 }
 0x827   :  { %8299 = vmatpush3.msra.mxu1 %v7055_v57 }
 0x828   :  { %8300 = vmatprep.subr.mxu1 %v13558_v61 }
 0x829   :  { %8301 = vmatpush3.msra.mxu1 %v7054_v9 }
 0x82a   :  { %8302 = vmatprep.subr.mxu1 %v13558_v61 }
 0x82b   :  { %8303 = vmatpush3.msra.mxu1 %v7053_v15 }
 0x82c   :  { %8304 = vmatprep.subr.mxu1 %v13558_v61 }
 0x82d   :  { %8305 = vmatpush3.msra.mxu1 %v7052_v39 }
 0x82e   :  { %8306 = vmatprep.subr.mxu1 %v13558_v61 }
 0x82f   :  { %8307 = vmatpush3.msra.mxu1 %v7051_v20 }
 0x830   :  { %8308 = vmatprep.subr.mxu1 %v13558_v61 }
 0x831   :  { %8309 = vmatpush3.msra.mxu1 %v7050_v28 }
 0x832   :  { %8310 = vmatprep.subr.mxu1 %v13558_v61 }
 0x833   :  { %8311 = vmatpush3.msra.mxu1 %v7049_v5 }
 0x834   :  { %8312 = vmatprep.subr.mxu1 %v13558_v61 }
 0x835   :  { %8313 = vmatpush3.msra.mxu1 %v7048_v7 }
 0x836   :  { %8314 = vmatprep.subr.mxu1 %v13558_v61 }
 0x837   :  { %8315 = vmatpush3.msra.mxu1 %v7047_v2 }
 0x838   :  { %8316 = vmatprep.subr.mxu1 %v13558_v61 }
 0x839   :  { %8317 = vmatpush3.msra.mxu1 %v7046_v33 }
 0x83a   :  { %8318 = vmatprep.subr.mxu1 %v13558_v61 }
 0x83b   :  { %8319 = vmatpush3.msra.mxu1 %v7045_v29 }
 0x83c   :  { %8320 = vmatprep.subr.mxu1 %v13558_v61 }
 0x83d   :  { %8321 = vmatpush3.msra.mxu1 %v7044_v22 }
 0x83e   :  { %8322 = vmatprep.subr.mxu1 %v13558_v61 }
 0x83f   :  { %8323 = vmatpush3.msra.mxu1 %v7043_v30 }
 0x840   :  { %8324 = vmatprep.subr.mxu1 %v13558_v61  ;;  %v7137_v61 = vld [vmem:[%s13517_s14] sm:$0xff]  ;;  %s8535_s14 = scalar_lea.vmem %s7170_s13, 32 }
 0x841   :  { %8325 = vmatpush3.msra.mxu1 %v7042_v14  ;;  %p8536_p0 = scmp.ne.s32.totalorder %s7170_s13, %s8535_s14  ;;  %p8541_p2 = scmp.lt.s32.totalorder %s8535_s14, %s8535_s14 }
 0x842   :  { %8327 = vmatmul.mubr.f32.vlgmr.msra.gmra.mxu1 %v6948_v52 }
 0x843   :  { %p8542_p3 = por %p8541_p2, %p8540_p1 }
 0x845   :  { %p8543_p4 = pnand %p8542_p3, %p8536_p0 }
 0x8e2   :  { %v7038_v16 = vpop.f32.mrf.mxu1 }
 0x8e3   :  { %v7039_v10 = vadd.f32 %v7452_v19, %v7038_v16 }
 0x8e4   :  { %v8293_v17 = vpop.f32.mrf.mxu1 }
 0x8e5   :  { %v7143_v46 = vmul.f32 %v7039_v10, %v7039_v10 }
 0x902   :  { %v7131_v0 = vpop.f32.mrf.mxu1 }
 0x903   :  { %v7132_v8 = vadd.f32 %v7453_v6, %v7131_v0 }
 0x904   :  { %v8328_v48 = vpop.f32.mrf.mxu1 }
 0x905   :  { %v7135_v51 = vmul.f32 1.442695, %v7132_v8 }
 0x907   :  { %8492 = vpow2.f32 %v7135_v51 }
 0x914   :  { %v8493_v23 = vpop.eup %8492 }
 0x915   :  { %v7142_v54 = vmul.f32 %v8493_v23, %v8493_v23  ;;  %v7138_v60 = vmul.f32 %v8493_v23, %v7137_v61 }
 0x917   :  { %v7144_v38 = vadd.f32 %v7143_v46, %v7142_v54  ;;  %v7139_v55 = vadd.f32 %v7138_v60, %v7039_v10 }
 0x919   :  { %v7145_v49 = vsub.f32 %v7144_v38, %v7132_v8  ;;  %7141 = vst.msk [vmem:[#allocation4] sm:$0x3] %vm7140_vm3, %v7139_v55 }
 0x91b   :  { %v7454_v63 = vadd.f32 -0.5, %v7145_v49 }
 0x91d   :  { %v7148_v56 = vsel %vm7147_vm4, %v7454_v63, 0.0 }
 0x91e   :  { %v7150_v21 = vsel %vm7149_vm6, %v7148_v56, 0.0 }
 0x91f   :  { %7151 = vadd.xlane.f32.xlu1 %v7150_v21 }
 0x920   :  { %8546 = shalt.err (!%p8543_p4)
}
 0x921   :  { %7172 = dma.vmem_to_hbm [thread:$0]  %s7170_s13, 32, %s13518_s15, [#allocation5]   ;;  %vm7161_vm8 = vcmask 0  }
 0x922   :  { %s8593_s3 = smov [#allocation6]  }
 0x923   :  { %s7179_s20 = sshll.u32 %s8593_s3, 4  ;;  %s7180_s20 = int_to_ptr.vmem [resolvable:$true] %s7179_s20 }
 0x924   :  { %s8555_s6 = scalar_lea.vmem %s7180_s20, 16  ;;  %s8559_s8 = scalar_lea.vmem %s7180_s20, 32 }
 0x925   :  { %p8556_p5 = scmp.ne.s32.totalorder %s7180_s20, %s8555_s6  ;;  %p8560_p6 = scmp.lt.s32.totalorder %s7180_s20, %s7180_s20 }
 0x926   :  { %p8561_p7 = scmp.lt.s32.totalorder %s8559_s8, %s8555_s6 }
 0x928   :  { %p8562_p8 = por %p8561_p7, %p8560_p6 }
 0x92a   :  { %p8563_p9 = pnand %p8562_p8, %p8556_p5 }
 0x9a8   :  { %v7152_v59 = vpop.xlane.xlu1 %7151 }
 0x9a9   :  { %v7153_v41 = vrot.slane %v7152_v59, 4 }
 0x9ab   :  { %v7154_v11 = vadd.f32 %v7153_v41, %v7152_v59 }
 0x9ad   :  { %v7155_v18 = vrot.slane %v7154_v11, 2 }
 0x9af   :  { %v7156_v26 = vadd.f32 %v7155_v18, %v7154_v11 }
 0x9b1   :  { %v7157_v32 = vrot.slane %v7156_v26, 1 }
 0x9b3   :  { %v7158_v4 = vadd.f32 %v7157_v32, %v7156_v26 }
 0x9b5   :  { %8333 = vpush %v7158_v4 }
 0x9e6   :  { %s8334_s27 = spop %8333 }
 0x9e7   :  { %v7160_v43 = vstv %s8334_s27 }
 0x9e8   :  { %7162 = vst.msk [vmem:[#allocation6] sm:$0x1] %vm7161_vm8, %v7160_v43 }
 0x9e9   :  { %8566 = shalt.err (!%p8563_p9)
}
 0x9ea   :  { %7182 = dma.vmem_to_hbm [thread:$0]  %s7180_s20, 16, %s13519_s16, [#allocation7]  }
 0x9eb   :  { %8575 = dma.done.wait [#allocation5], 32  }
 0x9ec   :  { %8576 = vsyncadd [#allocation5], 4294967264 }
 0x9ed   :  { %8577 = dma.done.wait [#allocation7], 16  }
 0x9ee   :  { %8578 = vsyncadd [#allocation7], 4294967280 }
 0x9ef   :  { %7189 = vsyncpa [#allocation5], 1 }
 0x9f0   :  { %7190 = vsyncpa [#allocation7], 1 }

</bundles_post_ra>
